<compile_context>
chip_gen: v7x
topology: tpu7x:2x2x1
jax: 0.10.0
libtpu: 0.0.40
codegen_flags: <defaults>
</compile_context>

<pallas_src>
import functools

import numpy as np

import jax
import jax.numpy as jnp
from jax import lax
from jax.experimental import pallas as pl
from jax.experimental.pallas import tpu as pltpu


# f32 erf rational approximation -- same coefficients as XLA's ErfImpl32.
_ERF_ALPHA = (-2.72614225801306e-10, 2.77068142495902e-08, -2.10102402082508e-06,
              -5.69250639462346e-05, -7.34990630326855e-04, -2.95459980854025e-03,
              -1.60960333262415e-02)
_ERF_BETA = (-1.45660718464996e-05, -2.13374055278905e-04, -1.68282697438203e-03,
             -7.37332916720468e-03, -1.42647390514189e-02)


def _erf_f32(x):
    x = jnp.clip(x, -4.0, 4.0)
    x2 = x * x
    p = jnp.float32(_ERF_ALPHA[0])
    for a in _ERF_ALPHA[1:]:
        p = p * x2 + jnp.float32(a)
    q = jnp.float32(_ERF_BETA[0])
    for b in _ERF_BETA[1:]:
        q = q * x2 + jnp.float32(b)
    return (x * p) / q


def _gelu_exact(x):
    return 0.5 * x * (1.0 + _erf_f32(x * jnp.float32(0.7071067811865476)))


# ----------------------------------------------------------------------------
# Fused kernel: linear1 -> dwc(3x3 depthwise) -> GELU -> linear2, channel-major.
# ----------------------------------------------------------------------------
def _mlp_conv_kernel(x_ref, w1_ref, b1_ref, wdw_ref, bdw_ref, w2_ref, b2_ref,
                     mask_ref, o_ref, pad_ref, *, width):
    C2, C = w1_ref.shape
    HW = x_ref.shape[2]
    PAD = (pad_ref.shape[1] - HW) // 2            # lane-aligned left pad (>= width+1)

    # -- linear1 (1x1 conv): (C2, C) @ (C, HW) on the MXU; bf16 in, f32 accumulate.
    x = x_ref[0].astype(jnp.bfloat16)                                  # (C, HW)
    h = jnp.dot(w1_ref[...], x, preferred_element_type=jnp.float32)    # (C2, HW)
    h = h + b1_ref[...]                                                # + (C2, 1)

    # -- 3x3 depthwise conv as 9 shifted lane-slices of a flat zero-padded scratch.
    #    pad_ref is (C2, PAD + HW + PAD); interior store at lane offset PAD is aligned.
    pad_ref[:, 0:PAD] = jnp.zeros((C2, PAD), jnp.float32)
    pad_ref[:, PAD + HW:2 * PAD + HW] = jnp.zeros((C2, PAD), jnp.float32)
    pad_ref[:, PAD:PAD + HW] = h

    acc = jnp.zeros((C2, HW), jnp.float32)
    taps = ((-1, -1), (-1, 0), (-1, 1),
            (0, -1), (0, 0), (0, 1),
            (1, -1), (1, 0), (1, 1))
    for t, (dy, dx) in enumerate(taps):
        s = dy * width + dx                                   # flat spatial shift
        tap = pad_ref[:, PAD + s:PAD + s + HW]                 # (C2, HW)
        m = mask_ref[t:t + 1, :]                               # (1, HW) boundary mask
        wk = wdw_ref[:, t:t + 1]                               # (C2, 1) per-channel tap
        acc = acc + (tap * m) * wk
    acc = acc + bdw_ref[...]                                   # + (C2, 1)

    # -- exact GELU (dropout is identity at inference); f32 VPU math.
    g = _gelu_exact(acc)

    # -- linear2 (1x1 conv): (C, C2) @ (C2, HW); output already channel-major (NCHW).
    y = jnp.dot(w2_ref[...], g.astype(jnp.bfloat16),
                preferred_element_type=jnp.float32)            # (C, HW)
    y = y + b2_ref[...]                                        # + (C, 1)
    o_ref[0] = y.astype(o_ref.dtype)


def transformer_mlp_with_conv(x_nchw, params):
    """TransformerMLPWithConv.forward (inference).  x_nchw: (B, C, H, W) float32."""
    # TODO(synk): nn.Dropout (drop1/drop2) is identity at inference / drop=0; a training
    # version would draw masks in-kernel via pltpu.prng_seed + pltpu.stateful_bernoulli.
    B, C, H, W = x_nchw.shape
    C2 = params["linear1_w"].shape[0]
    HW = H * W
    PAD = ((W + 1 + 127) // 128) * 128             # 128-lane aligned, covers |shift|<=W+1

    # Free (contiguous) reshape -- stays NCHW, no transpose op.
    x = x_nchw.reshape(B, C, HW).astype(jnp.float32)

    # Weights in native PyTorch layouts; 1x1-conv weights bf16 for the MXU.
    w1 = params["linear1_w"].reshape(C2, C).astype(jnp.bfloat16)   # (C2, C)
    b1 = params["linear1_b"].reshape(C2, 1).astype(jnp.float32)
    wdw = params["dwc_w"].reshape(C2, 9).astype(jnp.float32)       # (C2, 9) taps ky*3+kx
    bdw = params["dwc_b"].reshape(C2, 1).astype(jnp.float32)
    w2 = params["linear2_w"].reshape(C, C2).astype(jnp.bfloat16)   # (C, C2)
    b2 = params["linear2_b"].reshape(C, 1).astype(jnp.float32)

    # Precomputed boundary masks (zero padding + row-wrap) per tap, flat spatial layout.
    yy, xx = np.meshgrid(np.arange(H), np.arange(W), indexing="ij")
    rows = []
    for dy in (-1, 0, 1):
        for dx in (-1, 0, 1):
            valid = ((yy + dy >= 0) & (yy + dy < H) &
                     (xx + dx >= 0) & (xx + dx < W))
            rows.append(valid.reshape(-1))
    mask = jnp.asarray(np.stack(rows).astype(np.float32))          # (9, HW)

    kernel = functools.partial(_mlp_conv_kernel, width=W)
    out = pl.pallas_call(
        kernel,
        out_shape=jax.ShapeDtypeStruct((B, C, HW), jnp.float32),
        grid=(B,),
        in_specs=[
            pl.BlockSpec((1, C, HW), lambda b: (b, 0, 0)),   # one image per grid step
            pl.BlockSpec((C2, C), lambda b: (0, 0)),          # weights stay resident
            pl.BlockSpec((C2, 1), lambda b: (0, 0)),
            pl.BlockSpec((C2, 9), lambda b: (0, 0)),
            pl.BlockSpec((C2, 1), lambda b: (0, 0)),
            pl.BlockSpec((C, C2), lambda b: (0, 0)),
            pl.BlockSpec((C, 1), lambda b: (0, 0)),
            pl.BlockSpec((9, HW), lambda b: (0, 0)),
        ],
        out_specs=pl.BlockSpec((1, C, HW), lambda b: (b, 0, 0)),
        scratch_shapes=[pltpu.VMEM((C2, HW + 2 * PAD), jnp.float32)],
        compiler_params=pltpu.CompilerParams(
            dimension_semantics=("parallel",),     # shard images across TCs on v7x
            vmem_limit_bytes=32 * 1024 * 1024,
        ),
    )(x, w1, b1, wdw, bdw, w2, b2, mask)

    return out.reshape(B, C, H, W)                 # free reshape back to NCHW


# ----------------------------------------------------------------------------
# Plain-JAX reference (mirrors the PyTorch module) for a numerical self-check.
# ----------------------------------------------------------------------------
def _reference_forward(x_nchw, params):
    dn = ("NCHW", "OIHW", "NCHW")
    h = lax.conv_general_dilated(x_nchw, params["linear1_w"], (1, 1), "VALID",
                                 dimension_numbers=dn)
    h = h + params["linear1_b"].reshape(1, -1, 1, 1)
    h = lax.conv_general_dilated(h, params["dwc_w"], (1, 1), [(1, 1), (1, 1)],
                                 dimension_numbers=dn,
                                 feature_group_count=params["dwc_w"].shape[0])
    h = h + params["dwc_b"].reshape(1, -1, 1, 1)
    h = jax.nn.gelu(h, approximate=False)
    y = lax.conv_general_dilated(h, params["linear2_w"], (1, 1), "VALID",
                                 dimension_numbers=dn)
    return y + params["linear2_b"].reshape(1, -1, 1, 1)


# ----------------------------------------------------------------------------
if __name__ == "__main__":
    B, C, H, W = 2, 32, 16, 16      # channels=32, expansion=4 -> hidden C2=128 (lane dense)
    expansion = 4
    C2 = C * expansion

    key = jax.random.PRNGKey(0)
    kx, k1, k2, k3, k4, k5, k6 = jax.random.split(key, 7)
    params = {
        "linear1_w": jax.random.normal(k1, (C2, C, 1, 1), jnp.float32) / np.sqrt(C),
        "linear1_b": 0.02 * jax.random.normal(k2, (C2,), jnp.float32),
        "dwc_w": jax.random.normal(k3, (C2, 1, 3, 3), jnp.float32) / 3.0,
        "dwc_b": 0.02 * jax.random.normal(k4, (C2,), jnp.float32),
        "linear2_w": jax.random.normal(k5, (C, C2, 1, 1), jnp.float32) / np.sqrt(C2),
        "linear2_b": 0.02 * jax.random.normal(k6, (C,), jnp.float32),
    }
    x = jax.random.normal(kx, (B, C, H, W), jnp.float32)

    fwd = jax.jit(transformer_mlp_with_conv)
    out = fwd(x, params)
    jax.block_until_ready(out)

    assert out.shape == (B, C, H, W)
    assert bool(jnp.all(jnp.isfinite(out)))

    # Numerical check vs the f32 reference; tolerance covers intentional bf16 MXU inputs.
    ref = _reference_forward(x, params)
    rel_err = float(jnp.linalg.norm(out - ref) / (jnp.linalg.norm(ref) + 1e-12))
    assert rel_err < 2e-2, f"fused kernel mismatch: relative L2 error = {rel_err:.3e}"

    print("KERNEL_OK")
</pallas_src>

<mosaic_0001>
module attributes {stable_mosaic.version = 11 : i64} {
  func.func @_mlp_conv_kernel(%arg0: i32, %arg1: memref<1x32x256xf32, #tpu.memory_space<vmem>>, %arg2: memref<128x32xbf16, #tpu.memory_space<vmem>>, %arg3: memref<128x1xf32, #tpu.memory_space<vmem>>, %arg4: memref<128x9xf32, #tpu.memory_space<vmem>>, %arg5: memref<128x1xf32, #tpu.memory_space<vmem>>, %arg6: memref<32x128xbf16, #tpu.memory_space<vmem>>, %arg7: memref<32x1xf32, #tpu.memory_space<vmem>>, %arg8: memref<9x256xf32, #tpu.memory_space<vmem>>, %arg9: memref<1x32x256xf32, #tpu.memory_space<vmem>>, %arg10: memref<128x512xf32, #tpu.memory_space<vmem>>) attributes {dimension_semantics = [#tpu.dimension_semantics<parallel>], iteration_bounds = array<i64: 2>, scalar_prefetch = 0 : i64, scratch_operands = 1 : i64, tpu.core_type = #tpu.core_type<tc>, window_params = [{transform_indices = @transform_0, window_bounds = array<i64: 1, 32, 256>}, {pipeline_mode = #tpu.pipeline_mode<synchronous>, transform_indices = @transform_1, window_bounds = array<i64: 128, 32>}, {pipeline_mode = #tpu.pipeline_mode<synchronous>, transform_indices = @transform_2, window_bounds = array<i64: 128, 1>}, {pipeline_mode = #tpu.pipeline_mode<synchronous>, transform_indices = @transform_3, window_bounds = array<i64: 128, 9>}, {pipeline_mode = #tpu.pipeline_mode<synchronous>, transform_indices = @transform_4, window_bounds = array<i64: 128, 1>}, {pipeline_mode = #tpu.pipeline_mode<synchronous>, transform_indices = @transform_5, window_bounds = array<i64: 32, 128>}, {pipeline_mode = #tpu.pipeline_mode<synchronous>, transform_indices = @transform_6, window_bounds = array<i64: 32, 1>}, {pipeline_mode = #tpu.pipeline_mode<synchronous>, transform_indices = @transform_7, window_bounds = array<i64: 9, 256>}, {transform_indices = @transform_8, window_bounds = array<i64: 1, 32, 256>}]} {
    %c0 = arith.constant 0 : index
    %c0_0 = arith.constant 0 : index
    %c0_1 = arith.constant 0 : index
    %0 = vector.load %arg1[%c0, %c0_0, %c0_1] : memref<1x32x256xf32, #tpu.memory_space<vmem>>, vector<1x32x256xf32>
    %1 = vector.shape_cast %0 : vector<1x32x256xf32> to vector<32x256xf32>
    %2 = arith.truncf %1 : vector<32x256xf32> to vector<32x256xbf16>
    %c0_2 = arith.constant 0 : index
    %c0_3 = arith.constant 0 : index
    %3 = vector.load %arg2[%c0_2, %c0_3] : memref<128x32xbf16, #tpu.memory_space<vmem>>, vector<128x32xbf16>
    %cst = arith.constant dense<0.000000e+00> : vector<128x256xf32>
    %4 = tpu.matmul %3, %2, %cst {dimension_numbers = #tpu.dot_dimension_numbers<[1], [0], [0], [1], [0, 0, 1, 1], [], []>} : vector<128x32xbf16>, vector<32x256xbf16>, vector<128x256xf32> -> vector<128x256xf32>
    %c0_4 = arith.constant 0 : index
    %c0_5 = arith.constant 0 : index
    %5 = vector.load %arg3[%c0_4, %c0_5] : memref<128x1xf32, #tpu.memory_space<vmem>>, vector<128x1xf32>
    %6 = vector.broadcast %5 : vector<128x1xf32> to vector<128x256xf32>
    %7 = arith.addf %4, %6 : vector<128x256xf32>
    %cst_6 = arith.constant 0.000000e+00 : f32
    %8 = vector.broadcast %cst_6 : f32 to vector<128x128xf32>
    %c0_7 = arith.constant 0 : index
    %c0_8 = arith.constant 0 : index
    %9 = vector.load %arg10[%c0_7, %c0_8] : memref<128x512xf32, #tpu.memory_space<vmem>>, vector<128x128xf32>
    tpu.vector_store %arg10[%c0_7, %c0_8], %8 {strides = array<i32>} : memref<128x512xf32, #tpu.memory_space<vmem>>, vector<128x128xf32>,
    %cst_9 = arith.constant 0.000000e+00 : f32
    %10 = vector.broadcast %cst_9 : f32 to vector<128x128xf32>
    %c0_10 = arith.constant 0 : index
    %c384 = arith.constant 384 : index
    %11 = vector.load %arg10[%c0_10, %c384] : memref<128x512xf32, #tpu.memory_space<vmem>>, vector<128x128xf32>
    tpu.vector_store %arg10[%c0_10, %c384], %10 {strides = array<i32>} : memref<128x512xf32, #tpu.memory_space<vmem>>, vector<128x128xf32>,
    %c0_11 = arith.constant 0 : index
    %c128 = arith.constant 128 : index
    %12 = vector.load %arg10[%c0_11, %c128] : memref<128x512xf32, #tpu.memory_space<vmem>>, vector<128x256xf32>
    tpu.vector_store %arg10[%c0_11, %c128], %7 {strides = array<i32>} : memref<128x512xf32, #tpu.memory_space<vmem>>, vector<128x256xf32>,
    %cst_12 = arith.constant 0.000000e+00 : f32
    %13 = vector.broadcast %cst_12 : f32 to vector<128x256xf32>
    %c0_13 = arith.constant 0 : index
    %c111 = arith.constant 111 : index
    %14 = vector.load %arg10[%c0_13, %c111] : memref<128x512xf32, #tpu.memory_space<vmem>>, vector<128x256xf32>
    %c0_14 = arith.constant 0 : index
    %c0_15 = arith.constant 0 : index
    %15 = vector.load %arg8[%c0_14, %c0_15] : memref<9x256xf32, #tpu.memory_space<vmem>>, vector<1x256xf32>
    %c0_16 = arith.constant 0 : index
    %c0_17 = arith.constant 0 : index
    %16 = vector.load %arg4[%c0_16, %c0_17] : memref<128x9xf32, #tpu.memory_space<vmem>>, vector<128x1xf32>
    %17 = vector.broadcast %15 : vector<1x256xf32> to vector<128x256xf32>
    %18 = arith.mulf %14, %17 : vector<128x256xf32>
    %19 = vector.broadcast %16 : vector<128x1xf32> to vector<128x256xf32>
    %20 = arith.mulf %18, %19 : vector<128x256xf32>
    %21 = arith.addf %13, %20 : vector<128x256xf32>
    %c0_18 = arith.constant 0 : index
    %c112 = arith.constant 112 : index
    %22 = vector.load %arg10[%c0_18, %c112] : memref<128x512xf32, #tpu.memory_space<vmem>>, vector<128x256xf32>
    %c1 = arith.constant 1 : index
    %c0_19 = arith.constant 0 : index
    %23 = vector.load %arg8[%c1, %c0_19] : memref<9x256xf32, #tpu.memory_space<vmem>>, vector<1x256xf32>
    %c0_20 = arith.constant 0 : index
    %c1_21 = arith.constant 1 : index
    %24 = vector.load %arg4[%c0_20, %c1_21] : memref<128x9xf32, #tpu.memory_space<vmem>>, vector<128x1xf32>
    %25 = vector.broadcast %23 : vector<1x256xf32> to vector<128x256xf32>
    %26 = arith.mulf %22, %25 : vector<128x256xf32>
    %27 = vector.broadcast %24 : vector<128x1xf32> to vector<128x256xf32>
    %28 = arith.mulf %26, %27 : vector<128x256xf32>
    %29 = arith.addf %21, %28 : vector<128x256xf32>
    %c0_22 = arith.constant 0 : index
    %c113 = arith.constant 113 : index
    %30 = vector.load %arg10[%c0_22, %c113] : memref<128x512xf32, #tpu.memory_space<vmem>>, vector<128x256xf32>
    %c2 = arith.constant 2 : index
    %c0_23 = arith.constant 0 : index
    %31 = vector.load %arg8[%c2, %c0_23] : memref<9x256xf32, #tpu.memory_space<vmem>>, vector<1x256xf32>
    %c0_24 = arith.constant 0 : index
    %c2_25 = arith.constant 2 : index
    %32 = vector.load %arg4[%c0_24, %c2_25] : memref<128x9xf32, #tpu.memory_space<vmem>>, vector<128x1xf32>
    %33 = vector.broadcast %31 : vector<1x256xf32> to vector<128x256xf32>
    %34 = arith.mulf %30, %33 : vector<128x256xf32>
    %35 = vector.broadcast %32 : vector<128x1xf32> to vector<128x256xf32>
    %36 = arith.mulf %34, %35 : vector<128x256xf32>
    %37 = arith.addf %29, %36 : vector<128x256xf32>
    %c0_26 = arith.constant 0 : index
    %c127 = arith.constant 127 : index
    %38 = vector.load %arg10[%c0_26, %c127] : memref<128x512xf32, #tpu.memory_space<vmem>>, vector<128x256xf32>
    %c3 = arith.constant 3 : index
    %c0_27 = arith.constant 0 : index
    %39 = vector.load %arg8[%c3, %c0_27] : memref<9x256xf32, #tpu.memory_space<vmem>>, vector<1x256xf32>
    %c0_28 = arith.constant 0 : index
    %c3_29 = arith.constant 3 : index
    %40 = vector.load %arg4[%c0_28, %c3_29] : memref<128x9xf32, #tpu.memory_space<vmem>>, vector<128x1xf32>
    %41 = vector.broadcast %39 : vector<1x256xf32> to vector<128x256xf32>
    %42 = arith.mulf %38, %41 : vector<128x256xf32>
    %43 = vector.broadcast %40 : vector<128x1xf32> to vector<128x256xf32>
    %44 = arith.mulf %42, %43 : vector<128x256xf32>
    %45 = arith.addf %37, %44 : vector<128x256xf32>
    %c0_30 = arith.constant 0 : index
    %c128_31 = arith.constant 128 : index
    %46 = vector.load %arg10[%c0_30, %c128_31] : memref<128x512xf32, #tpu.memory_space<vmem>>, vector<128x256xf32>
    %c4 = arith.constant 4 : index
    %c0_32 = arith.constant 0 : index
    %47 = vector.load %arg8[%c4, %c0_32] : memref<9x256xf32, #tpu.memory_space<vmem>>, vector<1x256xf32>
    %c0_33 = arith.constant 0 : index
    %c4_34 = arith.constant 4 : index
    %48 = vector.load %arg4[%c0_33, %c4_34] : memref<128x9xf32, #tpu.memory_space<vmem>>, vector<128x1xf32>
    %49 = vector.broadcast %47 : vector<1x256xf32> to vector<128x256xf32>
    %50 = arith.mulf %46, %49 : vector<128x256xf32>
    %51 = vector.broadcast %48 : vector<128x1xf32> to vector<128x256xf32>
    %52 = arith.mulf %50, %51 : vector<128x256xf32>
    %53 = arith.addf %45, %52 : vector<128x256xf32>
    %c0_35 = arith.constant 0 : index
    %c129 = arith.constant 129 : index
    %54 = vector.load %arg10[%c0_35, %c129] : memref<128x512xf32, #tpu.memory_space<vmem>>, vector<128x256xf32>
    %c5 = arith.constant 5 : index
    %c0_36 = arith.constant 0 : index
    %55 = vector.load %arg8[%c5, %c0_36] : memref<9x256xf32, #tpu.memory_space<vmem>>, vector<1x256xf32>
    %c0_37 = arith.constant 0 : index
    %c5_38 = arith.constant 5 : index
    %56 = vector.load %arg4[%c0_37, %c5_38] : memref<128x9xf32, #tpu.memory_space<vmem>>, vector<128x1xf32>
    %57 = vector.broadcast %55 : vector<1x256xf32> to vector<128x256xf32>
    %58 = arith.mulf %54, %57 : vector<128x256xf32>
    %59 = vector.broadcast %56 : vector<128x1xf32> to vector<128x256xf32>
    %60 = arith.mulf %58, %59 : vector<128x256xf32>
    %61 = arith.addf %53, %60 : vector<128x256xf32>
    %c0_39 = arith.constant 0 : index
    %c143 = arith.constant 143 : index
    %62 = vector.load %arg10[%c0_39, %c143] : memref<128x512xf32, #tpu.memory_space<vmem>>, vector<128x256xf32>
    %c6 = arith.constant 6 : index
    %c0_40 = arith.constant 0 : index
    %63 = vector.load %arg8[%c6, %c0_40] : memref<9x256xf32, #tpu.memory_space<vmem>>, vector<1x256xf32>
    %c0_41 = arith.constant 0 : index
    %c6_42 = arith.constant 6 : index
    %64 = vector.load %arg4[%c0_41, %c6_42] : memref<128x9xf32, #tpu.memory_space<vmem>>, vector<128x1xf32>
    %65 = vector.broadcast %63 : vector<1x256xf32> to vector<128x256xf32>
    %66 = arith.mulf %62, %65 : vector<128x256xf32>
    %67 = vector.broadcast %64 : vector<128x1xf32> to vector<128x256xf32>
    %68 = arith.mulf %66, %67 : vector<128x256xf32>
    %69 = arith.addf %61, %68 : vector<128x256xf32>
    %c0_43 = arith.constant 0 : index
    %c144 = arith.constant 144 : index
    %70 = vector.load %arg10[%c0_43, %c144] : memref<128x512xf32, #tpu.memory_space<vmem>>, vector<128x256xf32>
    %c7 = arith.constant 7 : index
    %c0_44 = arith.constant 0 : index
    %71 = vector.load %arg8[%c7, %c0_44] : memref<9x256xf32, #tpu.memory_space<vmem>>, vector<1x256xf32>
    %c0_45 = arith.constant 0 : index
    %c7_46 = arith.constant 7 : index
    %72 = vector.load %arg4[%c0_45, %c7_46] : memref<128x9xf32, #tpu.memory_space<vmem>>, vector<128x1xf32>
    %73 = vector.broadcast %71 : vector<1x256xf32> to vector<128x256xf32>
    %74 = arith.mulf %70, %73 : vector<128x256xf32>
    %75 = vector.broadcast %72 : vector<128x1xf32> to vector<128x256xf32>
    %76 = arith.mulf %74, %75 : vector<128x256xf32>
    %77 = arith.addf %69, %76 : vector<128x256xf32>
    %c0_47 = arith.constant 0 : index
    %c145 = arith.constant 145 : index
    %78 = vector.load %arg10[%c0_47, %c145] : memref<128x512xf32, #tpu.memory_space<vmem>>, vector<128x256xf32>
    %c8 = arith.constant 8 : index
    %c0_48 = arith.constant 0 : index
    %79 = vector.load %arg8[%c8, %c0_48] : memref<9x256xf32, #tpu.memory_space<vmem>>, vector<1x256xf32>
    %c0_49 = arith.constant 0 : index
    %c8_50 = arith.constant 8 : index
    %80 = vector.load %arg4[%c0_49, %c8_50] : memref<128x9xf32, #tpu.memory_space<vmem>>, vector<128x1xf32>
    %81 = vector.broadcast %79 : vector<1x256xf32> to vector<128x256xf32>
    %82 = arith.mulf %78, %81 : vector<128x256xf32>
    %83 = vector.broadcast %80 : vector<128x1xf32> to vector<128x256xf32>
    %84 = arith.mulf %82, %83 : vector<128x256xf32>
    %85 = arith.addf %77, %84 : vector<128x256xf32>
    %c0_51 = arith.constant 0 : index
    %c0_52 = arith.constant 0 : index
    %86 = vector.load %arg5[%c0_51, %c0_52] : memref<128x1xf32, #tpu.memory_space<vmem>>, vector<128x1xf32>
    %87 = vector.broadcast %86 : vector<128x1xf32> to vector<128x256xf32>
    %88 = arith.addf %85, %87 : vector<128x256xf32>
    %cst_53 = arith.constant 5.000000e-01 : f32
    %89 = vector.broadcast %cst_53 : f32 to vector<128x256xf32>
    %90 = arith.mulf %89, %88 : vector<128x256xf32>
    %cst_54 = arith.constant 0.707106769 : f32
    %91 = vector.broadcast %cst_54 : f32 to vector<128x256xf32>
    %92 = arith.mulf %88, %91 : vector<128x256xf32>
    %cst_55 = arith.constant -4.000000e+00 : f32
    %cst_56 = arith.constant 4.000000e+00 : f32
    %93 = vector.broadcast %cst_55 : f32 to vector<128x256xf32>
    %94 = arith.maximumf %93, %92 : vector<128x256xf32>
    %95 = vector.broadcast %cst_56 : f32 to vector<128x256xf32>
    %96 = arith.minimumf %95, %94 : vector<128x256xf32>
    %97 = arith.mulf %96, %96 : vector<128x256xf32>
    %cst_57 = arith.constant -2.72614237E-10 : f32
    %98 = vector.broadcast %cst_57 : f32 to vector<128x256xf32>
    %99 = arith.mulf %98, %97 : vector<128x256xf32>
    %cst_58 = arith.constant 2.77068146E-8 : f32
    %100 = vector.broadcast %cst_58 : f32 to vector<128x256xf32>
    %101 = arith.addf %99, %100 : vector<128x256xf32>
    %102 = arith.mulf %101, %97 : vector<128x256xf32>
    %cst_59 = arith.constant -2.10102394E-6 : f32
    %103 = vector.broadcast %cst_59 : f32 to vector<128x256xf32>
    %104 = arith.addf %102, %103 : vector<128x256xf32>
    %105 = arith.mulf %104, %97 : vector<128x256xf32>
    %cst_60 = arith.constant -5.69250624E-5 : f32
    %106 = vector.broadcast %cst_60 : f32 to vector<128x256xf32>
    %107 = arith.addf %105, %106 : vector<128x256xf32>
    %108 = arith.mulf %107, %97 : vector<128x256xf32>
    %cst_61 = arith.constant -7.34990637E-4 : f32
    %109 = vector.broadcast %cst_61 : f32 to vector<128x256xf32>
    %110 = arith.addf %108, %109 : vector<128x256xf32>
    %111 = arith.mulf %110, %97 : vector<128x256xf32>
    %cst_62 = arith.constant -2.954600e-03 : f32
    %112 = vector.broadcast %cst_62 : f32 to vector<128x256xf32>
    %113 = arith.addf %111, %112 : vector<128x256xf32>
    %114 = arith.mulf %113, %97 : vector<128x256xf32>
    %cst_63 = arith.constant -0.0160960332 : f32
    %115 = vector.broadcast %cst_63 : f32 to vector<128x256xf32>
    %116 = arith.addf %114, %115 : vector<128x256xf32>
    %cst_64 = arith.constant -1.45660715E-5 : f32
    %117 = vector.broadcast %cst_64 : f32 to vector<128x256xf32>
    %118 = arith.mulf %117, %97 : vector<128x256xf32>
    %cst_65 = arith.constant -2.13374049E-4 : f32
    %119 = vector.broadcast %cst_65 : f32 to vector<128x256xf32>
    %120 = arith.addf %118, %119 : vector<128x256xf32>
    %121 = arith.mulf %120, %97 : vector<128x256xf32>
    %cst_66 = arith.constant -0.00168282702 : f32
    %122 = vector.broadcast %cst_66 : f32 to vector<128x256xf32>
    %123 = arith.addf %121, %122 : vector<128x256xf32>
    %124 = arith.mulf %123, %97 : vector<128x256xf32>
    %cst_67 = arith.constant -0.00737332925 : f32
    %125 = vector.broadcast %cst_67 : f32 to vector<128x256xf32>
    %126 = arith.addf %124, %125 : vector<128x256xf32>
    %127 = arith.mulf %126, %97 : vector<128x256xf32>
    %cst_68 = arith.constant -0.0142647391 : f32
    %128 = vector.broadcast %cst_68 : f32 to vector<128x256xf32>
    %129 = arith.addf %127, %128 : vector<128x256xf32>
    %130 = arith.mulf %96, %116 : vector<128x256xf32>
    %131 = arith.divf %130, %129 : vector<128x256xf32>
    %cst_69 = arith.constant 1.000000e+00 : f32
    %132 = vector.broadcast %cst_69 : f32 to vector<128x256xf32>
    %133 = arith.addf %132, %131 : vector<128x256xf32>
    %134 = arith.mulf %90, %133 : vector<128x256xf32>
    %c0_70 = arith.constant 0 : index
    %c0_71 = arith.constant 0 : index
    %135 = vector.load %arg6[%c0_70, %c0_71] : memref<32x128xbf16, #tpu.memory_space<vmem>>, vector<32x128xbf16>
    %136 = arith.truncf %134 : vector<128x256xf32> to vector<128x256xbf16>
    %cst_72 = arith.constant dense<0.000000e+00> : vector<32x256xf32>
    %137 = tpu.matmul %135, %136, %cst_72 {dimension_numbers = #tpu.dot_dimension_numbers<[1], [0], [0], [1], [0, 0, 1, 1], [], []>} : vector<32x128xbf16>, vector<128x256xbf16>, vector<32x256xf32> -> vector<32x256xf32>
    %c0_73 = arith.constant 0 : index
    %c0_74 = arith.constant 0 : index
    %138 = vector.load %arg7[%c0_73, %c0_74] : memref<32x1xf32, #tpu.memory_space<vmem>>, vector<32x1xf32>
    %139 = vector.broadcast %138 : vector<32x1xf32> to vector<32x256xf32>
    %140 = arith.addf %137, %139 : vector<32x256xf32>
    %c0_75 = arith.constant 0 : index
    %c0_76 = arith.constant 0 : index
    %c0_77 = arith.constant 0 : index
    %141 = vector.load %arg9[%c0_75, %c0_76, %c0_77] : memref<1x32x256xf32, #tpu.memory_space<vmem>>, vector<1x32x256xf32>
    %142 = vector.shape_cast %141 : vector<1x32x256xf32> to vector<32x256xf32>
    %143 = vector.shape_cast %140 : vector<32x256xf32> to vector<1x32x256xf32>
    tpu.vector_store %arg9[%c0_75, %c0_76, %c0_77], %143 {strides = array<i32>} : memref<1x32x256xf32, #tpu.memory_space<vmem>>, vector<1x32x256xf32>,
    return
  }
  func.func @transform_0(%arg0: i32) -> (i32, i32, i32) {
    %c0_i32 = arith.constant 0 : i32
    %c0_i32_0 = arith.constant 0 : i32
    %c0_i32_1 = arith.constant 0 : i32
    return %arg0, %c0_i32, %c0_i32_0 : i32, i32, i32
  }
  func.func @transform_1(%arg0: i32) -> (i32, i32) {
    %c0_i32 = arith.constant 0 : i32
    %c0_i32_0 = arith.constant 0 : i32
    %c0_i32_1 = arith.constant 0 : i32
    return %c0_i32, %c0_i32_0 : i32, i32
  }
  func.func @transform_2(%arg0: i32) -> (i32, i32) {
    %c0_i32 = arith.constant 0 : i32
    %c0_i32_0 = arith.constant 0 : i32
    %c0_i32_1 = arith.constant 0 : i32
    return %c0_i32, %c0_i32_0 : i32, i32
  }
  func.func @transform_3(%arg0: i32) -> (i32, i32) {
    %c0_i32 = arith.constant 0 : i32
    %c0_i32_0 = arith.constant 0 : i32
    %c0_i32_1 = arith.constant 0 : i32
    return %c0_i32, %c0_i32_0 : i32, i32
  }
  func.func @transform_4(%arg0: i32) -> (i32, i32) {
    %c0_i32 = arith.constant 0 : i32
    %c0_i32_0 = arith.constant 0 : i32
    %c0_i32_1 = arith.constant 0 : i32
    return %c0_i32, %c0_i32_0 : i32, i32
  }
  func.func @transform_5(%arg0: i32) -> (i32, i32) {
    %c0_i32 = arith.constant 0 : i32
    %c0_i32_0 = arith.constant 0 : i32
    %c0_i32_1 = arith.constant 0 : i32
    return %c0_i32, %c0_i32_0 : i32, i32
  }
  func.func @transform_6(%arg0: i32) -> (i32, i32) {
    %c0_i32 = arith.constant 0 : i32
    %c0_i32_0 = arith.constant 0 : i32
    %c0_i32_1 = arith.constant 0 : i32
    return %c0_i32, %c0_i32_0 : i32, i32
  }
  func.func @transform_7(%arg0: i32) -> (i32, i32) {
    %c0_i32 = arith.constant 0 : i32
    %c0_i32_0 = arith.constant 0 : i32
    %c0_i32_1 = arith.constant 0 : i32
    return %c0_i32, %c0_i32_0 : i32, i32
  }
  func.func @transform_8(%arg0: i32) -> (i32, i32, i32) {
    %c0_i32 = arith.constant 0 : i32
    %c0_i32_0 = arith.constant 0 : i32
    %c0_i32_1 = arith.constant 0 : i32
    return %arg0, %c0_i32, %c0_i32_0 : i32, i32, i32
  }
}

</mosaic_0001>

<bundles_post_ra>
// kernel: transformer_mlp_with_conv.1
= control target key start
LH: loop header
LB: loop body
LE: loop exit
PB: predicated region body
PF: predicated region fallthrough
CT: control target
= control target key end

     0   :  { %s6779_s27 = smov 0   ;;  %s13188_s0 = inlined_call_operand.vmem [shape: f32[2,32,256], index: 0, kind: input, shape index: {}]   ;;  %s13189_s1 = inlined_call_operand.vmem [shape: bf16[128,32], index: 1, kind: input, shape index: {}]   ;;  %s13190_s2 = inlined_call_operand.vmem [shape: f32[128,1], index: 2, kind: input, shape index: {}]   ;;  %s13191_s3 = inlined_call_operand.vmem [shape: f32[128,9], index: 3, kind: input, shape index: {}]   ;;  %s13192_s4 = inlined_call_operand.vmem [shape: f32[128,1], index: 4, kind: input, shape index: {}]   ;;  %s13193_s5 = inlined_call_operand.vmem [shape: bf16[32,128], index: 5, kind: input, shape index: {}]   ;;  %s13194_s6 = inlined_call_operand.vmem [shape: f32[32,1], index: 6, kind: input, shape index: {}]   ;;  %s13195_s7 = inlined_call_operand.vmem [shape: f32[9,256], index: 7, kind: input, shape index: {}]   ;;  %s13196_s8 = inlined_call_operand.vmem [shape: f32[2,32,256], index: 8, kind: output, shape index: {}]  }
   0x1 LB: > { %s6415_s28 = sadd.s32 4294967295, %s6710_s27   ;;  %p6419_p0 = scmp.ge.s32.totalorder %s6710_s27, 1  ;;  %s6710_s27 = sphi %s6779_s27, %s18_s27  }
   0x2   : > { %p262_p1 = scmp.lt.s32.totalorder %s6710_s27, 3 }
   0x4   : > { %p263_p2 = pnand %p6419_p0, %p262_p1 }
   0x6   : > { %266 = sbr.rel (%p263_p2) target bundleno = 2467 (0x9a3), region = 52 }
   0xd   : > { %v337_v0 = vld [vmem:[%s13190_s2 + $0x10] sm:$0xff]  ;;  %v335_v1 = vld [vmem:[%s13190_s2] sm:$0xff]  ;;  %p296_p3 = scmp.lt.s32.totalorder %s6415_s28, 1  ;;  %v13197_v2 = vmov 0   ;;  %v338_v3 = vld [vmem:[%s13190_s2 + $0x18] sm:$0xff]  ;;  %vm471_vm0 = vcmask 261120   ;;  %v739_v24 = vlaneseq }
   0xe   : > { %6533 = vset.pattern.permute.xlu1 %v13197_v2  ;;  %6532 = vset.pattern.permute.xlu0 %v13197_v2  ;;  %v336_v4 = vld [vmem:[%s13190_s2 + $0x8] sm:$0xff]  ;;  %v339_v6 = vld [vmem:[%s13190_s2 + $0x20] sm:$0xff]  ;;  %v342_v18 = vld [vmem:[%s13190_s2 + $0x38] sm:$0xff]  ;;  %s6713_s14 = smov 111   ;;  %v6714_v42 = vmov 1   ;;  %s6715_s20 = smov 112  }
   0xf   : > { %363 = vperm.xlu1 %6533, %v337_v0   ;;  %353 = vperm.xlu0 %6532, %v335_v1   ;;  %s14769_s28 = smov (!%p296_p3, %s6415_s28), 1  ;;  %v340_v5 = vld [vmem:[%s13190_s2 + $0x28] sm:$0xff]  ;;  %v341_v19 = vld [vmem:[%s13190_s2 + $0x30] sm:$0xff]  ;;  %v6566_v21 = vld [vmem:[%s13189_s1] sm:$0xff]   ;;  %v740_v29 = vshrl.u32 %v739_v24, 7  ;;  %v6716_v0 = vmov 2  }
  0x10   : > { %528 = vmatprep.mubr.bf16.mxu0 %v13197_v2  ;;  %6331 = vmatprep.mubr.bf16.mxu1 %v13197_v2  ;;  %s6500_s15 = sshll.u32 %s14769_s28, 6  ;;  %v344_v22 = vld [vmem:[%s13190_s2 + $0x48] sm:$0xff]  ;;  %v343_v23 = vld [vmem:[%s13190_s2 + $0x40] sm:$0xff]  ;;  %v346_v25 = vld [vmem:[%s13190_s2 + $0x58] sm:$0xff]  ;;  %s6717_s25 = smov 127   ;;  %vm995_vm1 = vcmask 916480  }
  0x11   : > { %s300_s18 = scalar_lea.vmem %s13188_s0, %s6500_s15  ;;  %v345_v26 = vld [vmem:[%s13190_s2 + $0x50] sm:$0xff]  ;;  %v6567_v27 = vld [vmem:[%s13189_s1 + $0x8] sm:$0xff]   ;;  %v347_v30 = vld [vmem:[%s13190_s2 + $0x60] sm:$0xff]  ;;  %v6850_v31 = vsub.s32 1, %v740_v29  ;;  %v6859_v34 = vsub.s32 0, %v740_v29  ;;  %s6718_s30 = smov 113  }
  0x12   : > { %v308_v7 = vld [vmem:[%s300_s18 + $0x8] sm:$0xff]  ;;  %v310_v8 = vld [vmem:[%s300_s18 + $0x18] sm:$0xff]  ;;  %v307_v9 = vld [vmem:[%s300_s18] sm:$0xff]  ;;  %s6719_s9 = smov 126   ;;  %vm1448_vm2 = vcmask 924672   ;;  %vm1304_vm3 = vcmask 1039360   ;;  %s305_s17 = scalar_lea.vmem %s13196_s8, %s6500_s15 }
  0x13   : > { %368 = vperm.xlu1 %6533, %v338_v3   ;;  %358 = vperm.xlu0 %6532, %v336_v4   ;;  %v316_v10 = vpack.c.bf16 %v310_v8, %v308_v7  ;;  %v309_v11 = vld [vmem:[%s300_s18 + $0x10] sm:$0xff]  ;;  %v312_v12 = vld [vmem:[%s300_s18 + $0x28] sm:$0xff]  ;;  %v314_v13 = vld [vmem:[%s300_s18 + $0x38] sm:$0xff]  ;;  %13531 = vst [vmem:[#allocation3_spill] sm:$0xff] %v6850_v31  ;;  %s6723_s13 = smov 1   ;;  %vm2749_vm4 = vcmask 7168  }
  0x14   : > { %v315_v14 = vpack.c.bf16 %v309_v11, %v307_v9  ;;  %v318_v15 = vpack.c.bf16 %v314_v13, %v312_v12  ;;  %v311_v16 = vld [vmem:[%s300_s18 + $0x20] sm:$0xff]  ;;  %v313_v17 = vld [vmem:[%s300_s18 + $0x30] sm:$0xff]  ;;  %v348_v28 = vld [vmem:[%s13190_s2 + $0x68] sm:$0xff]  ;;  %13532 = vst [vmem:[#allocation4_spill] sm:$0xff] %v6859_v34  ;;  %s6726_s18 = smov 15   ;;  %vm3202_vm5 = vcmask 121856  }
  0x15   : > { %496 = vmatprep.subr.bf16.mxu0 %v316_v10  ;;  %v317_v20 = vpack.c.bf16 %v313_v17, %v311_v16  ;;  %v350_v32 = vld [vmem:[%s13190_s2 + $0x78] sm:$0xff]  ;;  %v721_v33 = vld [vmem:[%s13195_s7] ss:$8 sm:$0x3]  ;;  %v349_v35 = vld [vmem:[%s13190_s2 + $0x70] sm:$0xff]  ;;  %s6731_s26 = smov 16  }
  0x16   : > { %497 = vmatpush1.bf16.msra.mxu0 %v315_v14  ;;  %v6568_v36 = vld [vmem:[%s13189_s1 + $0x10] sm:$0xff]   ;;  %v746_v37 = vrot.slane %v721_v33, %v6850_v31  ;;  %v742_v38 = vrot.slane %v721_v33, %v6859_v34  ;;  %v6440_v39 = vld [vmem:[%s13195_s7 + $0x1] ss:$8 sm:$0x3]  ;;  %v6569_v43 = vld [vmem:[%s13189_s1 + $0x18] sm:$0xff]   ;;  %vm751_vm6 = vcmask 908288  }
  0x17   : > { %378 = vperm.xlu1 %6533, %v340_v5   ;;  %373 = vperm.xlu0 %6532, %v339_v6   ;;  %v6878_v40 = vld [vmem:[%s13191_s3 + $0x8] sm:$0xff]  ;;  %v986_v41 = vrot.slane %v6440_v39, %v6859_v34  ;;  %v6890_v44 = vld [vmem:[%s13191_s3 + $0x18] sm:$0xff]  ;;  %v6895_v45 = vld [vmem:[%s13191_s3] sm:$0xff]  ;;  %v990_v55 = vrot.slane %v6440_v39, %v6850_v31  ;;  %vm1757_vm7 = vcmask 1031168   ;;  %vm3655_vm8 = vcmask 130048   ;;  %s6733_s29 = smov 94  }
  0x18   : > { %498 = vmatprep.subr.bf16.mxu0 %v318_v15  ;;  %v6903_v46 = vld [vmem:[%s13191_s3 + $0x28] sm:$0xff]  ;;  %v6570_v47 = vld [vmem:[%s13189_s1 + $0x20] sm:$0xff]   ;;  %v6914_v48 = vld [vmem:[%s13191_s3 + $0x38] sm:$0xff]  ;;  %vm4108_vm9 = vcmask 138240   ;;  %vm3058_vm10 = vcmask 900096   ;;  %vm3511_vm11 = vcmask 785408  }
  0x19   : > { %v6922_v49 = vld [vmem:[%s13191_s3 + $0x48] sm:$0xff]  ;;  %v6933_v51 = vld [vmem:[%s13191_s3 + $0x58] sm:$0xff]  ;;  %v6572_v53 = vld [vmem:[%s13189_s1 + $0x30] sm:$0xff]   ;;  %vm3964_vm12 = vcmask 777216   ;;  %vm4417_vm13 = vcmask 769024  }
  0x1a   : > { %499 = vmatpush1.bf16.msra.mxu0 %v317_v20  ;;  %v6571_v50 = vld [vmem:[%s13189_s1 + $0x28] sm:$0xff]   ;;  %v6952_v54 = vld [vmem:[%s13191_s3 + $0x78] sm:$0xff]  ;;  %v6969_v57 = vld [vmem:[%s13191_s3 + $0x10] sm:$0xff] }
  0x1b   : > { %388 = vperm.xlu1 %6533, %v342_v18   ;;  %383 = vperm.xlu0 %6532, %v341_v19   ;;  %v6941_v52 = vld [vmem:[%s13191_s3 + $0x68] sm:$0xff]  ;;  %v6573_v56 = vld [vmem:[%s13189_s1 + $0x38] sm:$0xff]   ;;  %13533 = vst [vmem:[#allocation5_spill] sm:$0xff] %v6969_v57  ;;  %v6975_v58 = vld [vmem:[%s13191_s3 + $0x20] sm:$0xff] }
  0x1c   : > { %13534 = vst [vmem:[#allocation6_spill] sm:$0xff] %v6975_v58  ;;  %v6981_v59 = vld [vmem:[%s13191_s3 + $0x30] sm:$0xff]  ;;  %v6987_v60 = vld [vmem:[%s13191_s3 + $0x40] sm:$0xff] }
  0x1d   : > { %6432 = vmatmul.mubr.msk.bf16.vlgmr.msra.gmra.mrb[0].mxu0 %vm471_vm0, %v6566_v21  ;;  %13535 = vst [vmem:[#allocation7_spill] sm:$0xff] %v6981_v59  ;;  %13536 = vst [vmem:[#allocation8_spill] sm:$0xff] %v6987_v60  ;;  %v6993_v61 = vld [vmem:[%s13191_s3 + $0x50] sm:$0xff]  ;;  %v6999_v62 = vld [vmem:[%s13191_s3 + $0x60] sm:$0xff] }
  0x1e   : > { %538 = vmatprep.mubr.bf16.mxu0 %v13197_v2  ;;  %13537 = vst [vmem:[#allocation9_spill] sm:$0xff] %v6993_v61  ;;  %13538 = vst [vmem:[#allocation10_spill] sm:$0xff] %v6999_v62  ;;  %v7005_v63 = vld [vmem:[%s13191_s3 + $0x70] sm:$0xff] }
  0x1f   : > { %398 = vperm.xlu1 %6533, %v344_v22   ;;  %393 = vperm.xlu0 %6532, %v343_v23   ;;  %13539 = vst [vmem:[#allocation11_spill] sm:$0xff] %v7005_v63 }
  0x23   : > { %408 = vperm.xlu1 %6533, %v346_v25   ;;  %403 = vperm.xlu0 %6532, %v345_v26  }
  0x25   : > { %6433 = vmatmul.mubr.msk.bf16.gmra.mrb[4].mxu0 %vm471_vm0, %v6567_v27 }
  0x26   : > { %548 = vmatprep.mubr.bf16.mxu0 %v13197_v2 }
  0x27   : > { %418 = vperm.xlu1 %6533, %v348_v28   ;;  %413 = vperm.xlu0 %6532, %v347_v30  }
  0x2b   : > { %428 = vperm.xlu1 %6533, %v350_v32   ;;  %423 = vperm.xlu0 %6532, %v349_v35  }
  0x2d   : > { %6434 = vmatmul.mubr.msk.bf16.gmra.mrb[8].mxu0 %vm471_vm0, %v6568_v36 }
  0x2e   : > { %558 = vmatprep.mubr.bf16.mxu0 %v13197_v2 }
  0x2f   : > { %749 = vrot.lane.b32.xlu1 %v746_v37, %s6713_s14  ;;  %747 = vrot.lane.b32.xlu0 %v742_v38, %s6713_s14 }
  0x30   : > { %6534 = vset.pattern.permute.xlu0 %v6714_v42 }
  0x33   : > { %811 = vperm.xlu1 %6533, %v6878_v40   ;;  %991 = vrot.lane.b32.xlu0 %v986_v41, %s6715_s20 }
  0x35   : > { %6435 = vmatmul.mubr.msk.bf16.gmra.mrb[12].mxu0 %vm471_vm0, %v6569_v43 }
  0x36   : > { %568 = vmatprep.mubr.bf16.mxu0 %v13197_v2 }
  0x37   : > { %821 = vperm.xlu1 %6533, %v6890_v44   ;;  %1049 = vperm.xlu0 %6534, %v6895_v45  }
  0x3b   : > { %831 = vperm.xlu1 %6533, %v6903_v46   ;;  %1061 = vperm.xlu0 %6534, %v6890_v44  }
  0x3d   : > { %6436 = vmatmul.mubr.msk.bf16.gmra.mrb[16].mxu0 %vm471_vm0, %v6570_v47 }
  0x3e   : > { %578 = vmatprep.mubr.bf16.mxu0 %v13197_v2 }
  0x3f   : > { %841 = vperm.xlu1 %6533, %v6914_v48   ;;  %1069 = vperm.xlu0 %6534, %v6903_v46  }
  0x43   : > { %851 = vperm.xlu1 %6533, %v6922_v49   ;;  %1077 = vperm.xlu0 %6534, %v6914_v48  }
  0x45   : > { %6437 = vmatmul.mubr.msk.bf16.gmra.mrb[20].mxu0 %vm471_vm0, %v6571_v50 }
  0x46   : > { %588 = vmatprep.mubr.bf16.mxu0 %v13197_v2 }
  0x47   : > { %861 = vperm.xlu1 %6533, %v6933_v51   ;;  %1085 = vperm.xlu0 %6534, %v6922_v49  }
  0x4b   : > { %871 = vperm.xlu1 %6533, %v6941_v52   ;;  %1093 = vperm.xlu0 %6534, %v6933_v51  }
  0x4d   : > { %6438 = vmatmul.mubr.msk.bf16.gmra.mrb[24].mxu0 %vm471_vm0, %v6572_v53 }
  0x4e   : > { %598 = vmatprep.mubr.bf16.mxu0 %v13197_v2 }
  0x4f   : > { %881 = vperm.xlu1 %6533, %v6952_v54   ;;  %1101 = vperm.xlu0 %6534, %v6941_v52  }
  0x53   : > { %993 = vrot.lane.b32.xlu1 %v990_v55, %s6715_s20  ;;  %1109 = vperm.xlu0 %6534, %v6952_v54  }
  0x54   : > { %6535 = vset.pattern.permute.xlu1 %v6714_v42 }
  0x55   : > { %6439 = vmatmul.mubr.msk.bf16.gmra.mrb[28].mxu0 %vm471_vm0, %v6573_v56 }
  0x57   : > { %1053 = vperm.xlu1 %6535, %v6878_v40   ;;  %6537 = vset.pattern.permute.xlu0 %v6716_v0 }
  0x5b   : > { %1057 = vperm.xlu1 %6535, %v6969_v57  }
  0x5f   : > { %1065 = vperm.xlu1 %6535, %v6975_v58  }
  0x63   : > { %1073 = vperm.xlu1 %6535, %v6981_v59  }
  0x67   : > { %1081 = vperm.xlu1 %6535, %v6987_v60  }
  0x6b   : > { %1089 = vperm.xlu1 %6535, %v6993_v61  }
  0x6f   : > { %1097 = vperm.xlu1 %6535, %v6999_v62  }
  0x73   : > { %1105 = vperm.xlu1 %6535, %v7005_v63  }
  0x77   : > { %6536 = vset.pattern.permute.xlu1 %v6716_v0 }
  0x8e   : > { %v7008_v1 = vpop.permute.xlu1 %363  ;;  %v7010_v3 = vpop.permute.xlu0 %353 }
  0x92   : > { %v7012_v4 = vpop.permute.xlu1 %368  ;;  %v7014_v5 = vpop.permute.xlu0 %358 }
  0x96   : > { %v7016_v6 = vpop.permute.xlu1 %378  ;;  %v7018_v7 = vpop.permute.xlu0 %373 }
  0x9a   : > { %v7020_v8 = vpop.permute.xlu1 %388  ;;  %v7022_v9 = vpop.permute.xlu0 %383 }
  0x9e   : > { %v7024_v10 = vpop.permute.xlu1 %398  ;;  %v7026_v11 = vpop.permute.xlu0 %393 }
  0xa2   : > { %v7028_v12 = vpop.permute.xlu1 %408  ;;  %v7030_v13 = vpop.permute.xlu0 %403 }
  0xa3   : > { %13540 = vst [vmem:[#allocation12_spill] sm:$0xff] %v7028_v12 }
  0xa6   : > { %v7032_v14 = vpop.permute.xlu1 %418  ;;  %v7034_v15 = vpop.permute.xlu0 %413 }
  0xa7   : > { %13541 = vst [vmem:[#allocation13_spill] sm:$0xff] %v7032_v14  ;;  %13542 = vst [vmem:[#allocation14_spill] sm:$0xff] %v7034_v15 }
  0xaa   : > { %v7036_v16 = vpop.permute.xlu1 %428  ;;  %v7038_v17 = vpop.permute.xlu0 %423 }
  0xab   : > { %13543 = vst [vmem:[#allocation15_spill] sm:$0xff] %v7036_v16  ;;  %13544 = vst [vmem:[#allocation16_spill] sm:$0xff] %v7038_v17 }
  0xae   : > { %v7040_v18 = vpop.permute.xlu1 %749  ;;  %v7042_v19 = vpop.permute.xlu0 %747 }
  0xaf   : > { %13545 = vst [vmem:[#allocation17_spill] sm:$0xff] %v7040_v18  ;;  %13546 = vst [vmem:[#allocation18_spill] sm:$0xff] %v7042_v19 }
  0xb2   : > { %v7044_v20 = vpop.permute.xlu1 %811  ;;  %v7046_v21 = vpop.permute.xlu0 %991 }
  0xb3   : > { %13547 = vst [vmem:[#allocation19_spill] sm:$0xff] %v7044_v20  ;;  %v7049_v22 = vmul.f32 0.0, %v7046_v21 }
  0xb6   : > { %v7051_v23 = vpop.permute.xlu1 %821  ;;  %v7053_v24 = vpop.permute.xlu0 %1049 }
  0xb7   : > { %13548 = vst [vmem:[#allocation20_spill] sm:$0xff] %v7051_v23  ;;  %v1112_v25 = vmul.f32 %v7053_v24, %v7049_v22 }
  0xb9   : > { %1208 = vrot.lane.b32.xlu1 %v1112_v25, %s6717_s25 }
  0xba   : > { %v7057_v26 = vpop.permute.xlu1 %831  ;;  %v7068_v32 = vpop.permute.xlu0 %1061 }
  0xbb   : > { %13549 = vst [vmem:[#allocation21_spill] sm:$0xff] %v7057_v26  ;;  %v1121_v43 = vmul.f32 %v7068_v32, %v7049_v22 }
  0xbe   : > { %v7060_v27 = vpop.permute.xlu1 %841  ;;  %v7074_v36 = vpop.permute.xlu0 %1069 }
  0xbf   : > { %13550 = vst [vmem:[#allocation22_spill] sm:$0xff] %v7060_v27  ;;  %v1127_v53 = vmul.f32 %v7074_v36, %v7049_v22 }
  0xc2   : > { %v7062_v28 = vpop.permute.xlu1 %851  ;;  %v7081_v39 = vpop.permute.xlu0 %1077 }
  0xc3   : > { %13551 = vst [vmem:[#allocation23_spill] sm:$0xff] %v7062_v28  ;;  %v1133_v25 = vmul.f32 %v7081_v39, %v7049_v22 }
  0xc6   : > { %v7064_v29 = vpop.permute.xlu1 %861  ;;  %v7097_v55 = vpop.permute.xlu0 %1085 }
  0xc7   : > { %13552 = vst [vmem:[#allocation24_spill] sm:$0xff] %v7064_v29  ;;  %13555 = vst [vmem:[#allocation27_spill] sm:$0xff] %v7097_v55 }
  0xca   : > { %v7066_v30 = vpop.permute.xlu1 %871 }
  0xcb   : > { %13553 = vst [vmem:[#allocation25_spill] sm:$0xff] %v7066_v30 }
  0xce   : > { %v7070_v33 = vpop.permute.xlu1 %881 }
  0xcf   : > { %13554 = vst [vmem:[#allocation26_spill] sm:$0xff] %v7070_v33 }
  0xd2   : > { %v7072_v35 = vpop.permute.xlu1 %993 }
  0xd6   : > { %v7076_v37 = vpop.permute.xlu1 %1053 }
  0xd7   : > { %v1115_v38 = vmul.f32 %v7076_v37, %v7049_v22 }
  0xd9   : > { %1214 = vrot.lane.b32.xlu0 %v1115_v38, %s6717_s25  ;;  %v7109_v38 = vpop.permute.xlu0 %1093 }
  0xda   : > { %v7083_v41 = vpop.permute.xlu1 %1057  ;;  %13556 = vst [vmem:[#allocation28_spill] sm:$0xff] %v7109_v38 }
  0xdb   : > { %v1118_v42 = vmul.f32 %v7083_v41, %v7049_v22 }
  0xdd   : > { %1220 = vrot.lane.b32.xlu1 %v1118_v42, %s6717_s25  ;;  %1226 = vrot.lane.b32.xlu0 %v1121_v43, %s6717_s25  ;;  %v7125_v2 = vpop.permute.xlu0 %1101 }
  0xde   : > { %v7091_v47 = vpop.permute.xlu1 %1065  ;;  %13558 = vst [vmem:[#allocation30_spill] sm:$0xff] %v7125_v2  ;;  %v1151_v30 = vmul.f32 %v7125_v2, %v7049_v22 }
  0xdf   : > { %v1124_v50 = vmul.f32 %v7091_v47, %v7049_v22 }
  0xe1   : > { %1232 = vrot.lane.b32.xlu1 %v1124_v50, %s6717_s25  ;;  %1238 = vrot.lane.b32.xlu0 %v1127_v53, %s6717_s25  ;;  %v1139_v50 = vmul.f32 %v7097_v55, %v7049_v22 }
  0xe2   : > { %v7101_v56 = vpop.permute.xlu1 %1073 }
  0xe3   : > { %v1130_v0 = vmul.f32 %v7101_v56, %v7049_v22 }
  0xe5   : > { %1244 = vrot.lane.b32.xlu1 %v1130_v0, %s6717_s25  ;;  %1250 = vrot.lane.b32.xlu0 %v1133_v25, %s6717_s25  ;;  %v1145_v25 = vmul.f32 %v7109_v38, %v7049_v22 }
  0xe6   : > { %v7111_v42 = vpop.permute.xlu1 %1081 }
  0xe7   : > { %v1136_v43 = vmul.f32 %v7111_v42, %v7049_v22 }
  0xe9   : > { %1256 = vrot.lane.b32.xlu1 %v1136_v43, %s6717_s25  ;;  %1262 = vrot.lane.b32.xlu0 %v1139_v50, %s6717_s25  ;;  %v6441_v43 = vld [vmem:[%s13195_s7 + $0x2] ss:$8 sm:$0x3] }
  0xea   : > { %v7119_v53 = vpop.permute.xlu1 %1089 }
  0xeb   : > { %13557 = vst [vmem:[#allocation29_spill] sm:$0xff] %v7119_v53  ;;  %v1142_v0 = vmul.f32 %v7119_v53, %v7049_v22 }
  0xed   : > { %1268 = vrot.lane.b32.xlu1 %v1142_v0, %s6717_s25  ;;  %1274 = vrot.lane.b32.xlu0 %v1145_v25, %s6717_s25  ;;  %v1443_v0 = vrot.slane %v6441_v43, %v6850_v31 }
  0xee   : > { %v7129_v33 = vpop.permute.xlu1 %1097 }
  0xef   : > { %13559 = vst [vmem:[#allocation31_spill] sm:$0xff] %v7129_v33  ;;  %v1148_v50 = vmul.f32 %v7129_v33, %v7049_v22 }
  0xf0   : > { %v7141_v29 = vpop.f32.mrb[0].mxu0 }
  0xf1   : > { %1280 = vrot.lane.b32.xlu1 %v1148_v50, %s6717_s25  ;;  %1286 = vrot.lane.b32.xlu0 %v1151_v30, %s6717_s25  ;;  %v7145_v28 = vpop.f32.mrb[1].mxu0  ;;  %v1439_v30 = vrot.slane %v6441_v43, %v6859_v34  ;;  %v7294_v53 = vadd.f32 %v7141_v29, %v7010_v3  ;;  %v7309_v29 = vsel %vm995_vm1, %v7046_v21, %v7072_v35 }
  0xf2   : > { %v7143_v25 = vpop.permute.xlu1 %1105  ;;  %v7149_v26 = vpop.f32.mrb[2].mxu0  ;;  %v7323_v21 = vadd.f32 %v7145_v28, %v7010_v3 }
  0xf3   : > { %13560 = vst [vmem:[#allocation32_spill] sm:$0xff] %v7143_v25  ;;  %v1154_v27 = vmul.f32 %v7143_v25, %v7049_v22  ;;  %v7151_v23 = vpop.f32.mrb[3].mxu0  ;;  %13587 = vst [vmem:[#allocation59_spill] sm:$0xff] %v7294_v53  ;;  %v1001_v55 = vmul.f32 %v7309_v29, %v7294_v53  ;;  %v7339_v3 = vadd.f32 %v7149_v26, %v7014_v5 }
  0xf4   : > { %v7343_v28 = vadd.f32 %v7151_v23, %v7014_v5 }
  0xf5   : > { %1292 = vrot.lane.b32.xlu1 %v1154_v27, %s6717_s25  ;;  %1446 = vrot.lane.b32.xlu0 %v1443_v0, %s6718_s30  ;;  %v1004_v23 = vmul.f32 %v7309_v29, %v7339_v3 }
  0xf6   : > { %13588 = vst [vmem:[#allocation60_spill] sm:$0xff] %v7343_v28  ;;  %v1005_v5 = vmul.f32 %v7072_v35, %v7343_v28 }
  0xf8   : > { %v7156_v50 = vpop.f32.mrb[4].mxu0 }
  0xf9   : > { %1444 = vrot.lane.b32.xlu1 %v1439_v30, %s6718_s30  ;;  %1506 = vperm.xlu0 %6537, %v6878_v40   ;;  %v7158_v20 = vpop.f32.mrb[5].mxu0  ;;  %v7178_v30 = vpop.permute.xlu0 %1109 }
  0xfa   : > { %v7160_v18 = vpop.f32.mrb[6].mxu0  ;;  %13561 = vst [vmem:[#allocation33_spill] sm:$0xff] %v7178_v30 }
  0xfb   : > { %v7162_v19 = vpop.f32.mrb[7].mxu0 }
  0xfd   : > { %1502 = vperm.xlu1 %6536, %v6895_v45   ;;  %1518 = vperm.xlu0 %6537, %v6975_v58   ;;  %v1157_v58 = vmul.f32 %v7178_v30, %v7049_v22 }
 0x100   : > { %v7168_v27 = vpop.f32.mrb[8].mxu0 }
 0x101   : > { %1510 = vperm.xlu1 %6536, %v6969_v57   ;;  %1526 = vperm.xlu0 %6537, %v6981_v59   ;;  %v7170_v43 = vpop.f32.mrb[9].mxu0 }
 0x102   : > { %v7172_v40 = vpop.f32.mrb[10].mxu0 }
 0x103   : > { %v7174_v0 = vpop.f32.mrb[11].mxu0 }
 0x105   : > { %1514 = vperm.xlu1 %6536, %v6890_v44   ;;  %1534 = vperm.xlu0 %6537, %v6987_v60  }
 0x108   : > { %v7182_v45 = vpop.f32.mrb[12].mxu0 }
 0x109   : > { %1522 = vperm.xlu1 %6536, %v6903_v46   ;;  %1542 = vperm.xlu0 %6537, %v6993_v61   ;;  %v7184_v59 = vpop.f32.mrb[13].mxu0 }
 0x10a   : > { %v7188_v57 = vpop.f32.mrb[14].mxu0 }
 0x10b   : > { %v7190_v31 = vpop.f32.mrb[15].mxu0 }
 0x10d   : > { %1530 = vperm.xlu1 %6536, %v6914_v48   ;;  %1298 = vrot.lane.b32.xlu0 %v1157_v58, %s6717_s25 }
 0x110   : > { %v7196_v44 = vpop.f32.mrb[16].mxu0 }
 0x111   : > { %1538 = vperm.xlu1 %6536, %v6922_v49   ;;  %1550 = vperm.xlu0 %6537, %v6999_v62   ;;  %v7198_v46 = vpop.f32.mrb[17].mxu0 }
 0x112   : > { %v7200_v61 = vpop.f32.mrb[18].mxu0 }
 0x113   : > { %v7202_v60 = vpop.f32.mrb[19].mxu0 }
 0x115   : > { %1546 = vperm.xlu1 %6536, %v6933_v51   ;;  %1558 = vperm.xlu0 %6537, %v7005_v63  }
 0x118   : > { %v7207_v48 = vpop.f32.mrb[20].mxu0 }
 0x119   : > { %1554 = vperm.xlu1 %6536, %v6941_v52   ;;  %v7209_v58 = vpop.f32.mrb[21].mxu0 }
 0x11a   : > { %v7211_v49 = vpop.f32.mrb[22].mxu0 }
 0x11b   : > { %13562 = vst [vmem:[#allocation34_spill] sm:$0xff] %v7211_v49  ;;  %v7213_v22 = vpop.f32.mrb[23].mxu0 }
 0x11c   : > { %13563 = vst [vmem:[#allocation35_spill] sm:$0xff] %v7213_v22  ;;  %v1113_v22 = vmul.f32 %v7053_v24, %v1001_v55 }
 0x11d   : > { %1562 = vperm.xlu1 %6536, %v6952_v54  }
 0x120   : > { %v7216_v62 = vpop.f32.mrb[24].mxu0 }
 0x121   : > { %13564 = vst [vmem:[#allocation36_spill] sm:$0xff] %v7216_v62  ;;  %v7218_v34 = vpop.f32.mrb[25].mxu0 }
 0x122   : > { %13565 = vst [vmem:[#allocation37_spill] sm:$0xff] %v7218_v34  ;;  %v7220_v30 = vpop.f32.mrb[26].mxu0 }
 0x123   : > { %13566 = vst [vmem:[#allocation38_spill] sm:$0xff] %v7220_v30  ;;  %v7222_v51 = vpop.f32.mrb[27].mxu0 }
 0x124   : > { %13567 = vst [vmem:[#allocation39_spill] sm:$0xff] %v7222_v51 }
 0x128   : > { %v7224_v63 = vpop.f32.mrb[28].mxu0 }
 0x129   : > { %13568 = vst [vmem:[#allocation40_spill] sm:$0xff] %v7224_v63  ;;  %v7226_v52 = vpop.f32.mrb[29].mxu0 }
 0x12a   : > { %13569 = vst [vmem:[#allocation41_spill] sm:$0xff] %v7226_v52  ;;  %v7228_v25 = vpop.f32.mrb[30].mxu0 }
 0x12b   : > { %13570 = vst [vmem:[#allocation42_spill] sm:$0xff] %v7228_v25  ;;  %v7230_v16 = vpop.f32.mrb[31].mxu0  ;;  %v7232_v2 = vpop.permute.xlu1 %1208 }
 0x12c   : > { %13571 = vst [vmem:[#allocation43_spill] sm:$0xff] %v7230_v16  ;;  %13572 = vst [vmem:[#allocation44_spill] sm:$0xff] %v7232_v2 }
 0x14b   : > { %v7234_v33 = vpop.permute.xlu0 %1214 }
 0x14c   : > { %13573 = vst [vmem:[#allocation45_spill] sm:$0xff] %v7234_v33 }
 0x14f   : > { %v7236_v54 = vpop.permute.xlu1 %1220  ;;  %v7238_v17 = vpop.permute.xlu0 %1226 }
 0x150   : > { %13574 = vst [vmem:[#allocation46_spill] sm:$0xff] %v7236_v54  ;;  %13575 = vst [vmem:[#allocation47_spill] sm:$0xff] %v7238_v17 }
 0x153   : > { %v7240_v38 = vpop.permute.xlu1 %1232  ;;  %v7242_v30 = vpop.permute.xlu0 %1238 }
 0x154   : > { %13576 = vst [vmem:[#allocation48_spill] sm:$0xff] %v7240_v38  ;;  %13577 = vst [vmem:[#allocation49_spill] sm:$0xff] %v7242_v30 }
 0x157   : > { %v7244_v51 = vpop.permute.xlu1 %1244  ;;  %v7246_v63 = vpop.permute.xlu0 %1250 }
 0x158   : > { %13578 = vst [vmem:[#allocation50_spill] sm:$0xff] %v7244_v51  ;;  %13579 = vst [vmem:[#allocation51_spill] sm:$0xff] %v7246_v63 }
 0x15b   : > { %v7248_v52 = vpop.permute.xlu1 %1256  ;;  %v7250_v25 = vpop.permute.xlu0 %1262 }
 0x15c   : > { %13580 = vst [vmem:[#allocation52_spill] sm:$0xff] %v7248_v52  ;;  %13581 = vst [vmem:[#allocation53_spill] sm:$0xff] %v7250_v25 }
 0x15f   : > { %v7252_v16 = vpop.permute.xlu1 %1268  ;;  %v7254_v2 = vpop.permute.xlu0 %1274 }
 0x160   : > { %13582 = vst [vmem:[#allocation54_spill] sm:$0xff] %v7252_v16  ;;  %13583 = vst [vmem:[#allocation55_spill] sm:$0xff] %v7254_v2 }
 0x163   : > { %v7256_v33 = vpop.permute.xlu1 %1280  ;;  %v7258_v54 = vpop.permute.xlu0 %1286 }
 0x164   : > { %13584 = vst [vmem:[#allocation56_spill] sm:$0xff] %v7256_v33  ;;  %13585 = vst [vmem:[#allocation57_spill] sm:$0xff] %v7258_v54 }
 0x167   : > { %v7260_v17 = vpop.permute.xlu1 %1292  ;;  %v7262_v38 = vpop.permute.xlu0 %1446 }
 0x168   : > { %13586 = vst [vmem:[#allocation58_spill] sm:$0xff] %v7260_v17 }
 0x16b   : > { %v1445_v30 = vpop.permute.xlu1 %1444 }
 0x16c   : > { %v7264_v51 = vmul.f32 0.0, %v1445_v30 }
 0x178   : > { %v7266_v63 = vpop.permute.xlu0 %1506 }
 0x179   : > { %v1568_v52 = vmul.f32 %v7266_v63, %v7264_v51 }
 0x17b   : > { %1667 = vrot.lane.b32.xlu1 %v1568_v52, %s6719_s9 }
 0x17c   : > { %v1503_v16 = vpop.permute.xlu1 %1502  ;;  %v7272_v2 = vpop.permute.xlu0 %1518 }
 0x17d   : > { %v1565_v33 = vmul.f32 %v1503_v16, %v7264_v51  ;;  %v1577_v34 = vmul.f32 %v7272_v2, %v7264_v51 }
 0x17f   : > { %1661 = vrot.lane.b32.xlu0 %v1565_v33, %s6719_s9 }
 0x180   : > { %v7275_v17 = vpop.permute.xlu1 %1510  ;;  %v7280_v25 = vpop.permute.xlu0 %1526 }
 0x181   : > { %v1571_v54 = vmul.f32 %v7275_v17, %v7264_v51 }
 0x183   : > { %1673 = vrot.lane.b32.xlu0 %v1571_v54, %s6719_s9  ;;  %v1583_v54 = vmul.f32 %v7280_v25, %v7264_v51 }
 0x184   : > { %v7282_v14 = vpop.permute.xlu1 %1514  ;;  %v7298_v62 = vpop.permute.xlu0 %1534 }
 0x185   : > { %v1574_v52 = vmul.f32 %v7282_v14, %v7264_v51  ;;  %v1589_v49 = vmul.f32 %v7298_v62, %v7264_v51 }
 0x187   : > { %1679 = vrot.lane.b32.xlu1 %v1574_v52, %s6719_s9  ;;  %1685 = vrot.lane.b32.xlu0 %v1577_v34, %s6719_s9 }
 0x188   : > { %v7290_v33 = vpop.permute.xlu1 %1522 }
 0x189   : > { %v1580_v15 = vmul.f32 %v7290_v33, %v7264_v51 }
 0x18b   : > { %1697 = vrot.lane.b32.xlu0 %v1583_v54, %s6719_s9  ;;  %1691 = vrot.lane.b32.xlu1 %v1580_v15, %s6719_s9  ;;  %v7326_v54 = vsel %vm1448_vm2, %v1445_v30, %v7262_v38 }
 0x18c   : > { %v7304_v34 = vpop.permute.xlu1 %1530 }
 0x18d   : > { %v1586_v52 = vmul.f32 %v7304_v34, %v7264_v51 }
 0x18f   : > { %1709 = vrot.lane.b32.xlu0 %v1589_v49, %s6719_s9  ;;  %1703 = vrot.lane.b32.xlu1 %v1586_v52, %s6719_s9  ;;  %v1455_v49 = vmul.f32 %v7262_v38, %v7323_v21  ;;  %v1454_v52 = vmul.f32 %v7326_v54, %v7294_v53  ;;  %v1457_v53 = vmul.f32 %v7326_v54, %v7339_v3 }
 0x190   : > { %v7319_v15 = vpop.permute.xlu1 %1538 }
 0x191   : > { %v1592_v12 = vmul.f32 %v7319_v15, %v7264_v51  ;;  %v1567_v55 = vmul.f32 %v1503_v16, %v1455_v49  ;;  %v1566_v30 = vmul.f32 %v1503_v16, %v1454_v52  ;;  %v1569_v26 = vmul.f32 %v7266_v63, %v1457_v53 }
 0x192   : > { %v1117_v49 = vmul.f32 %v7076_v37, %v1005_v5  ;;  %v1116_v52 = vmul.f32 %v7076_v37, %v1004_v23  ;;  %v1458_v53 = vmul.f32 %v7262_v38, %v7343_v28 }
 0x193   : > { %1210 = vrot.lane.b32.xlu0 %v1113_v22, %s6717_s25  ;;  %1715 = vrot.lane.b32.xlu1 %v1592_v12, %s6719_s9  ;;  %v1002_v22 = vmul.f32 %v7072_v35, %v7323_v21  ;;  %v7353_v12 = vadd.f32 %v7156_v50, %v7008_v1 }
 0x195   : > { %v1114_v16 = vmul.f32 %v7053_v24, %v1002_v22  ;;  %v1007_v50 = vmul.f32 %v7309_v29, %v7353_v12  ;;  %v7373_v24 = vadd.f32 %v7158_v20, %v7008_v1  ;;  %v1460_v22 = vmul.f32 %v7326_v54, %v7353_v12 }
 0x196   : > { %v7389_v1 = vadd.f32 %v7162_v19, %v7012_v4  ;;  %v6720_v20 = vmov 3  }
 0x197   : > { %1665 = vrot.lane.b32.xlu0 %v1567_v55, %s6719_s9  ;;  %1663 = vrot.lane.b32.xlu1 %v1566_v30, %s6719_s9  ;;  %v1119_v55 = vmul.f32 %v7083_v41, %v1007_v50  ;;  %v1570_v30 = vmul.f32 %v7266_v63, %v1458_v53  ;;  %v1461_v37 = vmul.f32 %v7262_v38, %v7373_v24 }
 0x198   : > { %13590 = vst [vmem:[#allocation62_spill] sm:$0xff] %v7389_v1  ;;  %6538 = vset.pattern.permute.xlu0 %v6720_v20  ;;  %6539 = vset.pattern.permute.xlu1 %v6720_v20  ;;  %v1572_v5 = vmul.f32 %v7275_v17, %v1460_v22  ;;  %v1011_v23 = vmul.f32 %v7072_v35, %v7389_v1 }
 0x199   : > { %v1573_v63 = vmul.f32 %v7275_v17, %v1461_v37  ;;  %v1464_v53 = vmul.f32 %v7262_v38, %v7389_v1  ;;  %v7433_v22 = vadd.f32 %v7172_v40, %v7016_v6  ;;  %v7449_v40 = vadd.f32 %v7182_v45, %v7022_v9 }
 0x19a   : > { %v1123_v50 = vmul.f32 %v7068_v32, %v1011_v23 }
 0x19b   : > { %1669 = vrot.lane.b32.xlu0 %v1569_v26, %s6719_s9  ;;  %1212 = vrot.lane.b32.xlu1 %v1114_v16, %s6717_s25  ;;  %v7385_v26 = vadd.f32 %v7160_v18, %v7012_v4  ;;  %v1008_v16 = vmul.f32 %v7072_v35, %v7373_v24  ;;  %v7401_v4 = vadd.f32 %v7168_v27, %v7018_v7 }
 0x19c   : > { %13592 = vst [vmem:[#allocation64_spill] sm:$0xff] %v7433_v22  ;;  %v1469_v20 = vmul.f32 %v7326_v54, %v7433_v22  ;;  %13594 = vst [vmem:[#allocation66_spill] sm:$0xff] %v7449_v40  ;;  %v1019_v45 = vmul.f32 %v7309_v29, %v7449_v40 }
 0x19d   : > { %13589 = vst [vmem:[#allocation61_spill] sm:$0xff] %v7385_v26  ;;  %v1463_v18 = vmul.f32 %v7326_v54, %v7385_v26  ;;  %13591 = vst [vmem:[#allocation63_spill] sm:$0xff] %v7401_v4  ;;  %v1120_v17 = vmul.f32 %v7083_v41, %v1008_v16  ;;  %v1013_v27 = vmul.f32 %v7309_v29, %v7401_v4 }
 0x19e   : > { %v7421_v41 = vadd.f32 %v7170_v43, %v7018_v7  ;;  %v1466_v37 = vmul.f32 %v7326_v54, %v7401_v4  ;;  %v7437_v7 = vadd.f32 %v7174_v0, %v7016_v6  ;;  %v1581_v6 = vmul.f32 %v7290_v33, %v1469_v20 }
 0x19f   : > { %1218 = vrot.lane.b32.xlu0 %v1117_v49, %s6717_s25  ;;  %1216 = vrot.lane.b32.xlu1 %v1116_v52, %s6717_s25  ;;  %v1575_v19 = vmul.f32 %v7282_v14, %v1463_v18  ;;  %v1010_v49 = vmul.f32 %v7309_v29, %v7385_v26  ;;  %v1131_v23 = vmul.f32 %v7101_v56, %v1019_v45 }
 0x1a0   : > { %13593 = vst [vmem:[#allocation65_spill] sm:$0xff] %v7437_v7  ;;  %v1578_v43 = vmul.f32 %v7272_v2, %v1466_v37  ;;  %v1017_v0 = vmul.f32 %v7072_v35, %v7437_v7 }
 0x1a1   : > { %v1122_v52 = vmul.f32 %v7068_v32, %v1010_v49  ;;  %v1467_v32 = vmul.f32 %v7262_v38, %v7421_v41 }
 0x1a2   : > { %v1129_v16 = vmul.f32 %v7074_v36, %v1017_v0 }
 0x1a3   : > { %1222 = vrot.lane.b32.xlu0 %v1119_v55, %s6717_s25  ;;  %1671 = vrot.lane.b32.xlu1 %v1570_v30, %s6719_s9  ;;  %v1125_v55 = vmul.f32 %v7091_v47, %v1013_v27  ;;  %v1576_v30 = vmul.f32 %v7282_v14, %v1464_v53  ;;  %v1579_v14 = vmul.f32 %v7272_v2, %v1467_v32 }
 0x1a7   : > { %1677 = vrot.lane.b32.xlu0 %v1573_v63, %s6719_s9  ;;  %1675 = vrot.lane.b32.xlu1 %v1572_v5, %s6719_s9  ;;  %v1014_v63 = vmul.f32 %v7072_v35, %v7421_v41  ;;  %v1016_v5 = vmul.f32 %v7309_v29, %v7433_v22 }
 0x1a9   : > { %v1126_v2 = vmul.f32 %v7091_v47, %v1014_v63  ;;  %v1128_v18 = vmul.f32 %v7074_v36, %v1016_v5  ;;  %v7469_v47 = vadd.f32 %v7184_v59, %v7022_v9  ;;  %v1472_v36 = vmul.f32 %v7326_v54, %v7449_v40  ;;  %v7557_v5 = vpop.permute.xlu0 %1542 }
 0x1aa   : > { %v7485_v59 = vadd.f32 %v7190_v31, %v7020_v8  ;;  %v7529_v63 = vadd.f32 %v7200_v61, %v7024_v10  ;;  %v7545_v61 = vadd.f32 %v7207_v48, %v7030_v13  ;;  %v13604_v48 = vld [vmem:[#allocation12_spill] sm:$0xff] }
 0x1ab   : > { %1681 = vrot.lane.b32.xlu0 %v1575_v19, %s6719_s9  ;;  %1224 = vrot.lane.b32.xlu1 %v1120_v17, %s6717_s25  ;;  %v1470_v19 = vmul.f32 %v7262_v38, %v7437_v7  ;;  %13595 = vst [vmem:[#allocation67_spill] sm:$0xff] %v7469_v47  ;;  %v1473_v49 = vmul.f32 %v7262_v38, %v7469_v47 }
 0x1ac   : > { %13597 = vst [vmem:[#allocation69_spill] sm:$0xff] %v7485_v59  ;;  %v1020_v27 = vmul.f32 %v7072_v35, %v7469_v47  ;;  %v1476_v32 = vmul.f32 %v7262_v38, %v7485_v59  ;;  %13600 = vst [vmem:[#allocation72_spill] sm:$0xff] %v7529_v63 }
 0x1ad   : > { %v1582_v17 = vmul.f32 %v7290_v33, %v1470_v19  ;;  %v1585_v9 = vmul.f32 %v7280_v25, %v1473_v49  ;;  %v1584_v33 = vmul.f32 %v7280_v25, %v1472_v36  ;;  %13602 = vst [vmem:[#allocation74_spill] sm:$0xff] %v7545_v61  ;;  %v13610_v49 = vld [vmem:[#allocation14_spill] sm:$0xff]  ;;  %v13611_v36 = vld [vmem:[#allocation36_spill] sm:$0xff] }
 0x1ae   : > { %v1132_v25 = vmul.f32 %v7101_v56, %v1020_v27  ;;  %v7517_v56 = vadd.f32 %v7198_v46, %v7026_v11  ;;  %v13613_v27 = vld [vmem:[#allocation29_spill] sm:$0xff] }
 0x1af   : > { %1230 = vrot.lane.b32.xlu0 %v1123_v50, %s6717_s25  ;;  %1228 = vrot.lane.b32.xlu1 %v1122_v52, %s6717_s25  ;;  %v7481_v50 = vadd.f32 %v7188_v57, %v7020_v8  ;;  %v7497_v57 = vadd.f32 %v7196_v44, %v7026_v11  ;;  %v1023_v8 = vmul.f32 %v7072_v35, %v7485_v59 }
 0x1b0   : > { %13599 = vst [vmem:[#allocation71_spill] sm:$0xff] %v7517_v56  ;;  %v7533_v11 = vadd.f32 %v7202_v60, %v7024_v10  ;;  %v1026_v20 = vmul.f32 %v7072_v35, %v7517_v56 }
 0x1b1   : > { %13596 = vst [vmem:[#allocation68_spill] sm:$0xff] %v7481_v50  ;;  %v1475_v52 = vmul.f32 %v7326_v54, %v7481_v50  ;;  %13598 = vst [vmem:[#allocation70_spill] sm:$0xff] %v7497_v57  ;;  %v1022_v53 = vmul.f32 %v7309_v29, %v7481_v50  ;;  %v1025_v44 = vmul.f32 %v7309_v29, %v7497_v57 }
 0x1b2   : > { %13601 = vst [vmem:[#allocation73_spill] sm:$0xff] %v7533_v11  ;;  %v1029_v10 = vmul.f32 %v7072_v35, %v7533_v11  ;;  %v1138_v0 = vmul.f32 %v7111_v42, %v1026_v20 }
 0x1b3   : > { %1234 = vrot.lane.b32.xlu0 %v1125_v55, %s6717_s25  ;;  %1683 = vrot.lane.b32.xlu1 %v1576_v30, %s6719_s9  ;;  %v1587_v31 = vmul.f32 %v7304_v34, %v1475_v52  ;;  %v1135_v55 = vmul.f32 %v7081_v39, %v1023_v8  ;;  %v1134_v30 = vmul.f32 %v7081_v39, %v1022_v53  ;;  %v13614_v8 = vld [vmem:[#allocation37_spill] sm:$0xff] }
 0x1b4   : > { %v1137_v37 = vmul.f32 %v7111_v42, %v1025_v44  ;;  %v1478_v39 = vmul.f32 %v7326_v54, %v7497_v57  ;;  %v13608_v42 = vld [vmem:[#allocation34_spill] sm:$0xff]  ;;  %v13615_v44 = vld [vmem:[#allocation13_spill] sm:$0xff] }
 0x1b7   : > { %1689 = vrot.lane.b32.xlu0 %v1579_v14, %s6719_s9  ;;  %1687 = vrot.lane.b32.xlu1 %v1578_v43, %s6719_s9  ;;  %v1588_v14 = vmul.f32 %v7304_v34, %v1476_v32  ;;  %v1479_v43 = vmul.f32 %v7262_v38, %v7517_v56  ;;  %v1590_v34 = vmul.f32 %v7298_v62, %v1478_v39 }
 0x1b9   : > { %v1591_v46 = vmul.f32 %v7298_v62, %v1479_v43  ;;  %v7552_v62 = vadd.f32 %v7209_v58, %v7030_v13  ;;  %v1031_v13 = vmul.f32 %v7309_v29, %v7545_v61  ;;  %v7570_v58 = vadd.f32 %v13608_v42, %v13604_v48 }
 0x1bb   : > { %1693 = vrot.lane.b32.xlu0 %v1581_v6, %s6719_s9  ;;  %1236 = vrot.lane.b32.xlu1 %v1126_v2, %s6717_s25  ;;  %v1481_v6 = vmul.f32 %v7326_v54, %v7529_v63  ;;  %13603 = vst [vmem:[#allocation75_spill] sm:$0xff] %v7552_v62  ;;  %v1028_v2 = vmul.f32 %v7309_v29, %v7529_v63 }
 0x1bc   : > { %v1143_v52 = vmul.f32 %v13613_v27, %v1031_v13 }
 0x1bd   : > { %v1593_v60 = vmul.f32 %v7319_v15, %v1481_v6 }
 0x1bf   : > { %1242 = vrot.lane.b32.xlu0 %v1129_v16, %s6717_s25  ;;  %1240 = vrot.lane.b32.xlu1 %v1128_v18, %s6717_s25  ;;  %v13605_v16 = vld [vmem:[#allocation35_spill] sm:$0xff] }
 0x1c0   : > { %v7563_v45 = vadd.f32 %v13605_v16, %v13604_v48  ;;  %v13607_v18 = vld [vmem:[#allocation27_spill] sm:$0xff]  ;;  %13609 = vst [vmem:[#allocation35_spill] sm:$0xff] %v7570_v58 }
 0x1c1   : > { %v1141_v19 = vmul.f32 %v13607_v18, %v1029_v10  ;;  %v13621_v10 = vld [vmem:[#allocation16_spill] sm:$0xff]  ;;  %v13624_v48 = vld [vmem:[#allocation31_spill] sm:$0xff] }
 0x1c2   : > { %13606 = vst [vmem:[#allocation12_spill] sm:$0xff] %v7563_v45 }
 0x1c3   : > { %1246 = vrot.lane.b32.xlu0 %v1131_v23, %s6717_s25  ;;  %1695 = vrot.lane.b32.xlu1 %v1582_v17, %s6719_s9  ;;  %v1140_v23 = vmul.f32 %v13607_v18, %v1028_v2  ;;  %v1032_v17 = vmul.f32 %v7072_v35, %v7552_v62 }
 0x1c5   : > { %v1144_v53 = vmul.f32 %v13613_v27, %v1032_v17 }
 0x1c7   : > { %1701 = vrot.lane.b32.xlu0 %v1585_v9, %s6719_s9  ;;  %1699 = vrot.lane.b32.xlu1 %v1584_v33, %s6719_s9  ;;  %v7579_v9 = vadd.f32 %v13611_v36, %v13610_v49  ;;  %v7581_v33 = vpop.permute.xlu0 %1298  ;;  %v13627_v36 = vld [vmem:[#allocation30_spill] sm:$0xff] }
 0x1c8   : > { %13612 = vst [vmem:[#allocation27_spill] sm:$0xff] %v7581_v33 }
 0x1c9   : > { %v1037_v39 = vmul.f32 %v7309_v29, %v7579_v9 }
 0x1cb   : > { %1705 = vrot.lane.b32.xlu0 %v1587_v31, %s6719_s9  ;;  %1248 = vrot.lane.b32.xlu1 %v1132_v25, %s6717_s25  ;;  %v1035_v31 = vmul.f32 %v7072_v35, %v7563_v45  ;;  %v7588_v25 = vadd.f32 %v13614_v8, %v13610_v49  ;;  %v1149_v16 = vmul.f32 %v13624_v48, %v1037_v39  ;;  %v13629_v8 = vld [vmem:[#allocation42_spill] sm:$0xff] }
 0x1cd   : > { %v1038_v6 = vmul.f32 %v7072_v35, %v7588_v25 }
 0x1cf   : > { %1254 = vrot.lane.b32.xlu0 %v1135_v55, %s6717_s25  ;;  %1252 = vrot.lane.b32.xlu1 %v1134_v30, %s6717_s25  ;;  %v1034_v55 = vmul.f32 %v7309_v29, %v7570_v58  ;;  %v13616_v30 = vld [vmem:[#allocation39_spill] sm:$0xff]  ;;  %v1150_v42 = vmul.f32 %v13624_v48, %v1038_v6  ;;  %v1595_v6 = vmul.f32 %v7557_v5, %v7264_v51  ;;  %v13635_v48 = vld [vmem:[#allocation33_spill] sm:$0xff] }
 0x1d0   : > { %v7597_v32 = vadd.f32 %v13616_v30, %v13615_v44 }
 0x1d2   : > { %13617 = vst [vmem:[#allocation34_spill] sm:$0xff] %v7597_v32  ;;  %v1041_v18 = vmul.f32 %v7072_v35, %v7597_v32 }
 0x1d3   : > { %1258 = vrot.lane.b32.xlu0 %v1137_v37, %s6717_s25  ;;  %1707 = vrot.lane.b32.xlu1 %v1588_v14, %s6719_s9  ;;  %v7599_v37 = vpop.permute.xlu1 %1546  ;;  %v13618_v14 = vld [vmem:[#allocation28_spill] sm:$0xff] }
 0x1d4   : > { %v1147_v43 = vmul.f32 %v13618_v14, %v1035_v31  ;;  %v1146_v20 = vmul.f32 %v13618_v14, %v1034_v55  ;;  %v1153_v27 = vmul.f32 %v13627_v36, %v1041_v18  ;;  %v13628_v31 = vld [vmem:[#allocation15_spill] sm:$0xff]  ;;  %v1485_v18 = vmul.f32 %v7262_v38, %v7552_v62 }
 0x1d7   : > { %1713 = vrot.lane.b32.xlu0 %v1591_v46, %s6719_s9  ;;  %1711 = vrot.lane.b32.xlu1 %v1590_v34, %s6719_s9  ;;  %v13619_v46 = vld [vmem:[#allocation38_spill] sm:$0xff]  ;;  %v7629_v17 = vpop.permute.xlu1 %1554 }
 0x1d8   : > { %v7606_v34 = vadd.f32 %v13619_v46, %v13615_v44 }
 0x1da   : > { %13620 = vst [vmem:[#allocation14_spill] sm:$0xff] %v7606_v34 }
 0x1db   : > { %1717 = vrot.lane.b32.xlu0 %v1593_v60, %s6719_s9  ;;  %1260 = vrot.lane.b32.xlu1 %v1138_v0, %s6717_s25  ;;  %v7611_v60 = vpop.permute.xlu0 %1550  ;;  %v13622_v0 = vld [vmem:[#allocation40_spill] sm:$0xff]  ;;  %v7647_v30 = vpop.permute.xlu1 %1562 }
 0x1dc   : > { %v7617_v2 = vadd.f32 %v13622_v0, %v13621_v10 }
 0x1de   : > { %13623 = vst [vmem:[#allocation36_spill] sm:$0xff] %v7617_v2 }
 0x1df   : > { %1266 = vrot.lane.b32.xlu0 %v1141_v19, %s6717_s25  ;;  %1264 = vrot.lane.b32.xlu1 %v1140_v23, %s6717_s25  ;;  %v13625_v19 = vld [vmem:[#allocation41_spill] sm:$0xff]  ;;  %v1040_v23 = vmul.f32 %v7309_v29, %v7606_v34  ;;  %v7633_v49 = vpop.permute.xlu0 %1558 }
 0x1e0   : > { %v7624_v13 = vadd.f32 %v13625_v19, %v13621_v10  ;;  %v1597_v19 = vmul.f32 %v7557_v5, %v1485_v18 }
 0x1e1   : > { %v1152_v55 = vmul.f32 %v13627_v36, %v1040_v23 }
 0x1e2   : > { %13626 = vst [vmem:[#allocation29_spill] sm:$0xff] %v7624_v13  ;;  %v1044_v44 = vmul.f32 %v7072_v35, %v7624_v13 }
 0x1e3   : > { %1270 = vrot.lane.b32.xlu0 %v1143_v52, %s6717_s25  ;;  %1272 = vrot.lane.b32.xlu1 %v1144_v53, %s6717_s25  ;;  %v1043_v52 = vmul.f32 %v7309_v29, %v7617_v2  ;;  %v7640_v53 = vadd.f32 %v13629_v8, %v13628_v31 }
 0x1e5   : > { %13630 = vst [vmem:[#allocation37_spill] sm:$0xff] %v7640_v53 }
 0x1e7   : > { %1278 = vrot.lane.b32.xlu0 %v1147_v43, %s6717_s25  ;;  %1276 = vrot.lane.b32.xlu1 %v1146_v20, %s6717_s25  ;;  %v13632_v43 = vld [vmem:[#allocation32_spill] sm:$0xff]  ;;  %v1046_v20 = vmul.f32 %v7309_v29, %v7640_v53  ;;  %v1482_v29 = vmul.f32 %v7262_v38, %v7533_v11 }
 0x1e8   : > { %v1155_v39 = vmul.f32 %v13632_v43, %v1043_v52  ;;  %v1156_v46 = vmul.f32 %v13632_v43, %v1044_v44  ;;  %v1484_v52 = vmul.f32 %v7326_v54, %v7545_v61 }
 0x1e9   : > { %v1594_v36 = vmul.f32 %v7319_v15, %v1482_v29  ;;  %v1601_v15 = vmul.f32 %v7611_v60, %v7264_v51 }
 0x1ea   : > { %v1596_v44 = vmul.f32 %v7557_v5, %v1484_v52  ;;  %v1488_v5 = vmul.f32 %v7262_v38, %v7563_v45  ;;  %v13644_v52 = vld [vmem:[#allocation43_spill] sm:$0xff] }
 0x1eb   : > { %1282 = vrot.lane.b32.xlu0 %v1149_v16, %s6717_s25  ;;  %1284 = vrot.lane.b32.xlu1 %v1150_v42, %s6717_s25  ;;  %v1158_v16 = vmul.f32 %v13635_v48, %v1046_v20 }
 0x1ec   : > { %v1600_v29 = vmul.f32 %v7599_v37, %v1488_v5 }
 0x1ed   : > { %v7659_v10 = vpop.permute.xlu1 %1667 }
 0x1ee   : > { %13633 = vst [vmem:[#allocation39_spill] sm:$0xff] %v7659_v10 }
 0x1ef   : > { %1290 = vrot.lane.b32.xlu0 %v1153_v27, %s6717_s25  ;;  %1288 = vrot.lane.b32.xlu1 %v1152_v55, %s6717_s25  ;;  %v1487_v27 = vmul.f32 %v7326_v54, %v7570_v58 }
 0x1f1   : > { %v7649_v14 = vpop.permute.xlu0 %1661  ;;  %v1599_v8 = vmul.f32 %v7599_v37, %v1487_v27  ;;  %v1490_v27 = vmul.f32 %v7326_v54, %v7579_v9 }
 0x1f2   : > { %13631 = vst [vmem:[#allocation13_spill] sm:$0xff] %v7649_v14 }
 0x1f3   : > { %1294 = vrot.lane.b32.xlu0 %v1155_v39, %s6717_s25  ;;  %1296 = vrot.lane.b32.xlu1 %v1156_v46, %s6717_s25  ;;  %v1598_v46 = vmul.f32 %v7599_v37, %v7264_v51  ;;  %v1602_v37 = vmul.f32 %v7611_v60, %v1490_v27 }
 0x1f5   : > { %v7661_v0 = vpop.permute.xlu0 %1673 }
 0x1f6   : > { %13634 = vst [vmem:[#allocation28_spill] sm:$0xff] %v7661_v0  ;;  %v13684_v0 = vld [vmem:[#allocation11_spill] sm:$0xff] }
 0x1f7   : > { %1721 = vrot.lane.b32.xlu0 %v1595_v6, %s6719_s9  ;;  %1300 = vrot.lane.b32.xlu1 %v1158_v16, %s6717_s25  ;;  %v1491_v6 = vmul.f32 %v7262_v38, %v7588_v25 }
 0x1f9   : > { %v7671_v42 = vpop.permute.xlu1 %1679  ;;  %v7673_v23 = vpop.permute.xlu0 %1685  ;;  %v1603_v16 = vmul.f32 %v7611_v60, %v1491_v6  ;;  %v1607_v6 = vmul.f32 %v7633_v49, %v7264_v51  ;;  %v1494_v60 = vmul.f32 %v7262_v38, %v7597_v32 }
 0x1fa   : > { %13636 = vst [vmem:[#allocation38_spill] sm:$0xff] %v7671_v42  ;;  %13637 = vst [vmem:[#allocation16_spill] sm:$0xff] %v7673_v23  ;;  %v7832_v23 = vld [vmem:[%s13191_s3 + $0x38] sm:$0xff] }
 0x1fb   : > { %1725 = vrot.lane.b32.xlu0 %v1597_v19, %s6719_s9  ;;  %1719 = vrot.lane.b32.xlu1 %v1594_v36, %s6719_s9  ;;  %v1493_v36 = vmul.f32 %v7326_v54, %v7606_v34 }
 0x1fd   : > { %v7683_v55 = vpop.permute.xlu0 %1697  ;;  %v7686_v43 = vpop.permute.xlu1 %1691 }
 0x1fe   : > { %13638 = vst [vmem:[#allocation40_spill] sm:$0xff] %v7683_v55  ;;  %13639 = vst [vmem:[#allocation31_spill] sm:$0xff] %v7686_v43 }
 0x1ff   : > { %1729 = vrot.lane.b32.xlu0 %v1599_v8, %s6719_s9  ;;  %1723 = vrot.lane.b32.xlu1 %v1596_v44, %s6719_s9  ;;  %v7718_v8 = vadd.f32 %v13644_v52, %v13628_v31  ;;  %v1605_v44 = vmul.f32 %v7629_v17, %v1493_v36  ;;  %v1606_v52 = vmul.f32 %v7629_v17, %v1494_v60  ;;  %v6442_v60 = vld [vmem:[%s13195_s7 + $0x3] ss:$8 sm:$0x3] }
 0x201   : > { %v7692_v39 = vpop.permute.xlu0 %1709  ;;  %v7696_v20 = vpop.permute.xlu1 %1703  ;;  %13645 = vst [vmem:[#allocation32_spill] sm:$0xff] %v7718_v8  ;;  %v1047_v31 = vmul.f32 %v7072_v35, %v7718_v8  ;;  %v1497_v35 = vmul.f32 %v7262_v38, %v7624_v13 }
 0x202   : > { %13640 = vst [vmem:[#allocation41_spill] sm:$0xff] %v7692_v39  ;;  %13641 = vst [vmem:[#allocation30_spill] sm:$0xff] %v7696_v20  ;;  %v13666_v20 = vld [vmem:[#allocation5_spill] sm:$0xff] }
 0x203   : > { %1733 = vrot.lane.b32.xlu0 %v1601_v15, %s6719_s9  ;;  %1727 = vrot.lane.b32.xlu1 %v1598_v46, %s6719_s9  ;;  %v1159_v27 = vmul.f32 %v13635_v48, %v1047_v31 }
 0x205   : > { %v7705_v18 = vpop.permute.xlu0 %1210  ;;  %v7708_v19 = vpop.permute.xlu1 %1715 }
 0x206   : > { %13642 = vst [vmem:[#allocation15_spill] sm:$0xff] %v7705_v18  ;;  %13643 = vst [vmem:[#allocation42_spill] sm:$0xff] %v7708_v19 }
 0x207   : > { %1737 = vrot.lane.b32.xlu0 %v1603_v16, %s6719_s9  ;;  %1731 = vrot.lane.b32.xlu1 %v1600_v29, %s6719_s9  ;;  %v1604_v16 = vmul.f32 %v7629_v17, %v7264_v51  ;;  %v1499_v17 = vmul.f32 %v7326_v54, %v7640_v53 }
 0x209   : > { %v7721_v15 = vpop.permute.xlu0 %1665  ;;  %v7724_v46 = vpop.permute.xlu1 %1663 }
 0x20a   : > { %13646 = vst [vmem:[#allocation33_spill] sm:$0xff] %v7721_v15  ;;  %13647 = vst [vmem:[#allocation43_spill] sm:$0xff] %v7724_v46 }
 0x20b   : > { %1741 = vrot.lane.b32.xlu0 %v1605_v44, %s6719_s9  ;;  %1735 = vrot.lane.b32.xlu1 %v1602_v37, %s6719_s9  ;;  %v1496_v37 = vmul.f32 %v7326_v54, %v7617_v2  ;;  %v13656_v54 = vld [vmem:[#allocation4_spill] sm:$0xff] }
 0x20d   : > { %v7730_v5 = vpop.permute.xlu0 %1669  ;;  %v7736_v29 = vpop.permute.xlu1 %1212  ;;  %v1608_v48 = vmul.f32 %v7633_v49, %v1496_v37  ;;  %v1892_v37 = vrot.slane %v6442_v60, %v13656_v54 }
 0x20e   : > { %13648 = vst [vmem:[#allocation76_spill] sm:$0xff] %v7730_v5  ;;  %13649 = vst [vmem:[#allocation77_spill] sm:$0xff] %v7736_v29 }
 0x20f   : > { %1745 = vrot.lane.b32.xlu0 %v1607_v6, %s6719_s9  ;;  %1739 = vrot.lane.b32.xlu1 %v1604_v16, %s6719_s9  ;;  %v1609_v6 = vmul.f32 %v7633_v49, %v1497_v35  ;;  %v1610_v49 = vmul.f32 %v7647_v30, %v7264_v51  ;;  %v13659_v51 = vld [vmem:[#allocation3_spill] sm:$0xff] }
 0x210   : > { %v1896_v19 = vrot.slane %v6442_v60, %v13659_v51  ;;  %v7805_v60 = vld [vmem:[%s13191_s3 + $0x18] sm:$0xff] }
 0x211   : > { %v7742_v36 = vpop.permute.xlu0 %1218  ;;  %v7746_v44 = vpop.permute.xlu1 %1216 }
 0x212   : > { %13650 = vst [vmem:[#allocation78_spill] sm:$0xff] %v7742_v36  ;;  %13651 = vst [vmem:[#allocation79_spill] sm:$0xff] %v7746_v44 }
 0x213   : > { %1302 = vrot.lane.b32.xlu0 %v1159_v27, %s6717_s25  ;;  %1743 = vrot.lane.b32.xlu1 %v1606_v52, %s6719_s9  ;;  %v1611_v27 = vmul.f32 %v7647_v30, %v1499_v17 }
 0x215   : > { %v7755_v16 = vpop.permute.xlu0 %1222  ;;  %v7758_v31 = vpop.permute.xlu1 %1671 }
 0x216   : > { %13652 = vst [vmem:[#allocation80_spill] sm:$0xff] %v7755_v16  ;;  %13653 = vst [vmem:[#allocation81_spill] sm:$0xff] %v7758_v31 }
 0x217   : > { %1749 = vrot.lane.b32.xlu0 %v1609_v6, %s6719_s9  ;;  %1747 = vrot.lane.b32.xlu1 %v1608_v48, %s6719_s9  ;;  %v1500_v6 = vmul.f32 %v7262_v38, %v7718_v8  ;;  %v7794_v38 = vld [vmem:[%s13191_s3] sm:$0xff] }
 0x219   : > { %v7768_v52 = vpop.permute.xlu0 %1677  ;;  %v7772_v35 = vpop.permute.xlu1 %1675  ;;  %v1612_v17 = vmul.f32 %v7647_v30, %v1500_v6 }
 0x21a   : > { %13654 = vst [vmem:[#allocation82_spill] sm:$0xff] %v7768_v52  ;;  %13655 = vst [vmem:[#allocation83_spill] sm:$0xff] %v7772_v35 }
 0x21b   : > { %1753 = vrot.lane.b32.xlu0 %v1611_v27, %s6719_s9  ;;  %1751 = vrot.lane.b32.xlu1 %v1610_v49, %s6719_s9 }
 0x21d   : > { %v7779_v48 = vpop.permute.xlu0 %1681  ;;  %v7782_v33 = vpop.permute.xlu1 %1224 }
 0x21e   : > { %13657 = vst [vmem:[#allocation4_spill] sm:$0xff] %v7779_v48  ;;  %13658 = vst [vmem:[#allocation84_spill] sm:$0xff] %v7782_v33 }
 0x21f   : > { %1897 = vrot.lane.b32.xlu0 %v1892_v37, %s6717_s25  ;;  %1755 = vrot.lane.b32.xlu1 %v1612_v17, %s6719_s9  ;;  %v7811_v37 = vld [vmem:[%s13191_s3 + $0x8] sm:$0xff] }
 0x220   : > { %v7821_v17 = vld [vmem:[%s13191_s3 + $0x28] sm:$0xff] }
 0x221   : > { %v7787_v27 = vpop.permute.xlu0 %1230  ;;  %v7789_v39 = vpop.permute.xlu1 %1228 }
 0x222   : > { %13660 = vst [vmem:[#allocation3_spill] sm:$0xff] %v7787_v27  ;;  %13661 = vst [vmem:[#allocation85_spill] sm:$0xff] %v7789_v39 }
 0x223   : > { %1954 = vperm.xlu0 %6538, %v7794_v38   ;;  %1899 = vrot.lane.b32.xlu1 %v1896_v19, %s6717_s25  ;;  %s6730_s25 = smov 17  }
 0x225   : > { %v7798_v30 = vpop.permute.xlu0 %1234  ;;  %v7800_v49 = vpop.permute.xlu1 %1683 }
 0x226   : > { %13662 = vst [vmem:[#allocation86_spill] sm:$0xff] %v7798_v30  ;;  %13663 = vst [vmem:[#allocation87_spill] sm:$0xff] %v7800_v49 }
 0x227   : > { %1966 = vperm.xlu0 %6538, %v7805_v60   ;;  %1958 = vperm.xlu1 %6539, %v7811_v37  }
 0x229   : > { %v7814_v6 = vpop.permute.xlu0 %1689  ;;  %v7816_v19 = vpop.permute.xlu1 %1687 }
 0x22a   : > { %13664 = vst [vmem:[#allocation88_spill] sm:$0xff] %v7814_v6  ;;  %13665 = vst [vmem:[#allocation89_spill] sm:$0xff] %v7816_v19  ;;  %v13669_v6 = vld [vmem:[#allocation6_spill] sm:$0xff] }
 0x22b   : > { %1974 = vperm.xlu0 %6538, %v7821_v17   ;;  %1962 = vperm.xlu1 %6539, %v13666_v20   ;;  %v7843_v20 = vld [vmem:[%s13191_s3 + $0x48] sm:$0xff] }
 0x22d   : > { %v7825_v55 = vpop.permute.xlu0 %1693  ;;  %v7827_v43 = vpop.permute.xlu1 %1236 }
 0x22e   : > { %13667 = vst [vmem:[#allocation5_spill] sm:$0xff] %v7825_v55  ;;  %13668 = vst [vmem:[#allocation90_spill] sm:$0xff] %v7827_v43  ;;  %v13672_v43 = vld [vmem:[#allocation7_spill] sm:$0xff] }
 0x22f   : > { %1982 = vperm.xlu0 %6538, %v7832_v23   ;;  %1970 = vperm.xlu1 %6539, %v13669_v6   ;;  %v7854_v6 = vld [vmem:[%s13191_s3 + $0x58] sm:$0xff] }
 0x231   : > { %v7836_v19 = vpop.permute.xlu0 %1242  ;;  %v7838_v30 = vpop.permute.xlu1 %1240 }
 0x232   : > { %13670 = vst [vmem:[#allocation6_spill] sm:$0xff] %v7836_v19  ;;  %13671 = vst [vmem:[#allocation91_spill] sm:$0xff] %v7838_v30  ;;  %v13675_v19 = vld [vmem:[#allocation8_spill] sm:$0xff] }
 0x233   : > { %1990 = vperm.xlu0 %6538, %v7843_v20   ;;  %1978 = vperm.xlu1 %6539, %v13672_v43   ;;  %v7865_v43 = vld [vmem:[%s13191_s3 + $0x68] sm:$0xff] }
 0x235   : > { %v7847_v55 = vpop.permute.xlu0 %1246  ;;  %v7849_v33 = vpop.permute.xlu1 %1695 }
 0x236   : > { %13673 = vst [vmem:[#allocation7_spill] sm:$0xff] %v7847_v55  ;;  %13674 = vst [vmem:[#allocation92_spill] sm:$0xff] %v7849_v33  ;;  %v13678_v55 = vld [vmem:[#allocation9_spill] sm:$0xff] }
 0x237   : > { %1998 = vperm.xlu0 %6538, %v7854_v6   ;;  %1986 = vperm.xlu1 %6539, %v13675_v19   ;;  %v7876_v19 = vld [vmem:[%s13191_s3 + $0x78] sm:$0xff] }
 0x239   : > { %v7858_v49 = vpop.permute.xlu0 %1701  ;;  %v7860_v42 = vpop.permute.xlu1 %1699 }
 0x23a   : > { %13676 = vst [vmem:[#allocation8_spill] sm:$0xff] %v7858_v49  ;;  %13677 = vst [vmem:[#allocation93_spill] sm:$0xff] %v7860_v42  ;;  %v13681_v49 = vld [vmem:[#allocation10_spill] sm:$0xff] }
 0x23b   : > { %2006 = vperm.xlu0 %6538, %v7865_v43   ;;  %1994 = vperm.xlu1 %6539, %v13678_v55  }
 0x23d   : > { %v7869_v33 = vpop.permute.xlu0 %1705  ;;  %v7871_v48 = vpop.permute.xlu1 %1248 }
 0x23e   : > { %13679 = vst [vmem:[#allocation9_spill] sm:$0xff] %v7869_v33  ;;  %13680 = vst [vmem:[#allocation94_spill] sm:$0xff] %v7871_v48 }
 0x23f   : > { %2014 = vperm.xlu0 %6538, %v7876_v19   ;;  %2002 = vperm.xlu1 %6539, %v13681_v49  }
 0x241   : > { %v7880_v42 = vpop.permute.xlu0 %1254  ;;  %v7882_v52 = vpop.permute.xlu1 %1252 }
 0x242   : > { %13682 = vst [vmem:[#allocation10_spill] sm:$0xff] %v7880_v42  ;;  %13683 = vst [vmem:[#allocation95_spill] sm:$0xff] %v7882_v52 }
 0x243   : > { %2010 = vperm.xlu1 %6539, %v13684_v0  }
 0x245   : > { %v7885_v55 = vpop.permute.xlu0 %1258  ;;  %v7887_v33 = vpop.permute.xlu1 %1707 }
 0x246   : > { %13685 = vst [vmem:[#allocation11_spill] sm:$0xff] %v7885_v55  ;;  %13686 = vst [vmem:[#allocation96_spill] sm:$0xff] %v7887_v33 }
 0x249   : > { %v7889_v48 = vpop.permute.xlu0 %1713  ;;  %v7891_v35 = vpop.permute.xlu1 %1711 }
 0x24a   : > { %13687 = vst [vmem:[#allocation97_spill] sm:$0xff] %v7889_v48  ;;  %13688 = vst [vmem:[#allocation98_spill] sm:$0xff] %v7891_v35 }
 0x24d   : > { %v7893_v30 = vpop.permute.xlu0 %1717  ;;  %v7895_v27 = vpop.permute.xlu1 %1260 }
 0x24e   : > { %13689 = vst [vmem:[#allocation99_spill] sm:$0xff] %v7893_v30  ;;  %13690 = vst [vmem:[#allocation100_spill] sm:$0xff] %v7895_v27 }
 0x251   : > { %v7897_v16 = vpop.permute.xlu0 %1266  ;;  %v7899_v49 = vpop.permute.xlu1 %1264 }
 0x252   : > { %13691 = vst [vmem:[#allocation101_spill] sm:$0xff] %v7897_v16  ;;  %13692 = vst [vmem:[#allocation102_spill] sm:$0xff] %v7899_v49 }
 0x255   : > { %v7901_v42 = vpop.permute.xlu0 %1270  ;;  %v7903_v52 = vpop.permute.xlu1 %1272 }
 0x256   : > { %13693 = vst [vmem:[#allocation103_spill] sm:$0xff] %v7901_v42  ;;  %13694 = vst [vmem:[#allocation104_spill] sm:$0xff] %v7903_v52 }
 0x259   : > { %v7905_v0 = vpop.permute.xlu0 %1278  ;;  %v7907_v55 = vpop.permute.xlu1 %1276 }
 0x25a   : > { %13695 = vst [vmem:[#allocation105_spill] sm:$0xff] %v7905_v0  ;;  %13696 = vst [vmem:[#allocation106_spill] sm:$0xff] %v7907_v55 }
 0x25d   : > { %v7909_v33 = vpop.permute.xlu0 %1282  ;;  %v7911_v48 = vpop.permute.xlu1 %1284 }
 0x25e   : > { %13697 = vst [vmem:[#allocation107_spill] sm:$0xff] %v7909_v33  ;;  %13698 = vst [vmem:[#allocation108_spill] sm:$0xff] %v7911_v48 }
 0x261   : > { %v7913_v35 = vpop.permute.xlu0 %1290  ;;  %v7915_v30 = vpop.permute.xlu1 %1288 }
 0x262   : > { %13699 = vst [vmem:[#allocation109_spill] sm:$0xff] %v7913_v35  ;;  %13700 = vst [vmem:[#allocation110_spill] sm:$0xff] %v7915_v30 }
 0x265   : > { %v7917_v27 = vpop.permute.xlu0 %1294  ;;  %v7919_v16 = vpop.permute.xlu1 %1296 }
 0x266   : > { %13701 = vst [vmem:[#allocation111_spill] sm:$0xff] %v7917_v27  ;;  %13702 = vst [vmem:[#allocation112_spill] sm:$0xff] %v7919_v16 }
 0x269   : > { %v7921_v49 = vpop.permute.xlu0 %1721  ;;  %v7923_v42 = vpop.permute.xlu1 %1300 }
 0x26a   : > { %13703 = vst [vmem:[#allocation113_spill] sm:$0xff] %v7921_v49  ;;  %13704 = vst [vmem:[#allocation114_spill] sm:$0xff] %v7923_v42 }
 0x26d   : > { %v7925_v52 = vpop.permute.xlu0 %1725  ;;  %v7927_v0 = vpop.permute.xlu1 %1719 }
 0x26e   : > { %13705 = vst [vmem:[#allocation115_spill] sm:$0xff] %v7925_v52  ;;  %13706 = vst [vmem:[#allocation116_spill] sm:$0xff] %v7927_v0  ;;  %v6721_v52 = vmov 4  }
 0x26f   : > { %6540 = vset.pattern.permute.xlu1 %v6721_v52  ;;  %6541 = vset.pattern.permute.xlu0 %v6721_v52 }
 0x271   : > { %v7929_v55 = vpop.permute.xlu0 %1729  ;;  %v7931_v33 = vpop.permute.xlu1 %1723 }
 0x272   : > { %13707 = vst [vmem:[#allocation117_spill] sm:$0xff] %v7929_v55  ;;  %13708 = vst [vmem:[#allocation118_spill] sm:$0xff] %v7931_v33 }
 0x275   : > { %v7933_v48 = vpop.permute.xlu0 %1733  ;;  %v7935_v35 = vpop.permute.xlu1 %1727 }
 0x276   : > { %13709 = vst [vmem:[#allocation119_spill] sm:$0xff] %v7933_v48  ;;  %13710 = vst [vmem:[#allocation120_spill] sm:$0xff] %v7935_v35 }
 0x279   : > { %v7937_v30 = vpop.permute.xlu0 %1737  ;;  %v7939_v27 = vpop.permute.xlu1 %1731 }
 0x27a   : > { %13711 = vst [vmem:[#allocation121_spill] sm:$0xff] %v7937_v30  ;;  %13712 = vst [vmem:[#allocation122_spill] sm:$0xff] %v7939_v27 }
 0x27d   : > { %v7941_v16 = vpop.permute.xlu1 %1735  ;;  %v7943_v49 = vpop.permute.xlu0 %1741 }
 0x27e   : > { %13713 = vst [vmem:[#allocation123_spill] sm:$0xff] %v7941_v16  ;;  %13714 = vst [vmem:[#allocation124_spill] sm:$0xff] %v7943_v49 }
 0x281   : > { %v7945_v42 = vpop.permute.xlu1 %1739  ;;  %v7947_v55 = vpop.permute.xlu0 %1745 }
 0x282   : > { %13715 = vst [vmem:[#allocation125_spill] sm:$0xff] %v7945_v42  ;;  %13716 = vst [vmem:[#allocation126_spill] sm:$0xff] %v7947_v55 }
 0x285   : > { %v7949_v33 = vpop.permute.xlu1 %1743  ;;  %v7953_v35 = vpop.permute.xlu0 %1302 }
 0x286   : > { %13717 = vst [vmem:[#allocation127_spill] sm:$0xff] %v7949_v33  ;;  %13719 = vst [vmem:[#allocation129_spill] sm:$0xff] %v7953_v35 }
 0x289   : > { %v7951_v48 = vpop.permute.xlu1 %1747  ;;  %v7957_v27 = vpop.permute.xlu0 %1749 }
 0x28a   : > { %13718 = vst [vmem:[#allocation128_spill] sm:$0xff] %v7951_v48  ;;  %13721 = vst [vmem:[#allocation131_spill] sm:$0xff] %v7957_v27  ;;  %v13724_v48 = vld [vmem:[#allocation59_spill] sm:$0xff] }
 0x28d   : > { %v7955_v30 = vpop.permute.xlu1 %1751  ;;  %v7961_v49 = vpop.permute.xlu0 %1753 }
 0x28e   : > { %13720 = vst [vmem:[#allocation130_spill] sm:$0xff] %v7955_v30  ;;  %13723 = vst [vmem:[#allocation133_spill] sm:$0xff] %v7961_v49 }
 0x291   : > { %v7959_v16 = vpop.permute.xlu1 %1755  ;;  %v1898_v52 = vpop.permute.xlu0 %1897 }
 0x292   : > { %13722 = vst [vmem:[#allocation132_spill] sm:$0xff] %v7959_v16  ;;  %v7969_v33 = vmul.f32 0.0, %v1898_v52 }
 0x295   : > { %v7963_v42 = vpop.permute.xlu1 %1899 }
 0x296   : > { %v7967_v55 = vsel %vm1304_vm3, %v1898_v52, %v7963_v42  ;;  %v1907_v16 = vmul.f32 %v7963_v42, %v7323_v21  ;;  %v1910_v15 = vmul.f32 %v7963_v42, %v7343_v28 }
 0x297   : > { %v1906_v35 = vmul.f32 %v7967_v55, %v13724_v48  ;;  %v1909_v52 = vmul.f32 %v7967_v55, %v7339_v3 }
 0x2a2   : > { %v1955_v30 = vpop.permute.xlu0 %1954 }
 0x2a3   : > { %v2017_v27 = vmul.f32 %v1955_v30, %v7969_v33  ;;  %v2018_v0 = vmul.f32 %v1955_v30, %v1906_v35  ;;  %v2019_v49 = vmul.f32 %v1955_v30, %v1907_v16  ;;  %v1912_v16 = vmul.f32 %v7967_v55, %v7353_v12 }
 0x2a5   : > { %2115 = vrot.lane.b32.xlu0 %v2018_v0, %s6715_s20  ;;  %2113 = vrot.lane.b32.xlu1 %v2017_v27, %s6715_s20 }
 0x2a6   : > { %v1959_v29 = vpop.permute.xlu1 %1958  ;;  %v1967_v0 = vpop.permute.xlu0 %1966 }
 0x2a7   : > { %v2020_v10 = vmul.f32 %v1959_v29, %v7969_v33  ;;  %v2021_v35 = vmul.f32 %v1959_v29, %v1909_v52  ;;  %v2022_v5 = vmul.f32 %v1959_v29, %v1910_v15  ;;  %v2026_v15 = vmul.f32 %v1967_v0, %v7969_v33 }
 0x2a8   : > { %v1915_v29 = vmul.f32 %v7967_v55, %v7385_v26 }
 0x2a9   : > { %2117 = vrot.lane.b32.xlu1 %v2019_v49, %s6715_s20  ;;  %2119 = vrot.lane.b32.xlu0 %v2020_v10, %s6715_s20  ;;  %v1913_v49 = vmul.f32 %v7963_v42, %v7373_v24 }
 0x2aa   : > { %v1963_v31 = vpop.permute.xlu1 %1962  ;;  %v2027_v52 = vmul.f32 %v1967_v0, %v1915_v29  ;;  %v1921_v29 = vmul.f32 %v7967_v55, %v7433_v22 }
 0x2ab   : > { %v2023_v27 = vmul.f32 %v1963_v31, %v7969_v33  ;;  %v2024_v30 = vmul.f32 %v1963_v31, %v1912_v16  ;;  %v2025_v10 = vmul.f32 %v1963_v31, %v1913_v49  ;;  %v1918_v31 = vmul.f32 %v7967_v55, %v7401_v4  ;;  %v1975_v49 = vpop.permute.xlu0 %1974 }
 0x2ad   : > { %2121 = vrot.lane.b32.xlu1 %v2021_v35, %s6715_s20  ;;  %2123 = vrot.lane.b32.xlu0 %v2022_v5, %s6715_s20  ;;  %v1916_v5 = vmul.f32 %v7963_v42, %v7389_v1 }
 0x2ae   : > { %v1971_v16 = vpop.permute.xlu1 %1970 }
 0x2af   : > { %v2028_v35 = vmul.f32 %v1967_v0, %v1916_v5  ;;  %v1922_v5 = vmul.f32 %v7963_v42, %v7437_v7 }
 0x2b1   : > { %2125 = vrot.lane.b32.xlu1 %v2023_v27, %s6715_s20  ;;  %2127 = vrot.lane.b32.xlu0 %v2024_v30, %s6715_s20  ;;  %v2029_v27 = vmul.f32 %v1971_v16, %v7969_v33  ;;  %v2030_v30 = vmul.f32 %v1971_v16, %v1918_v31 }
 0x2b2   : > { %v1979_v31 = vpop.permute.xlu1 %1978 }
 0x2b5   : > { %2129 = vrot.lane.b32.xlu1 %v2025_v10, %s6715_s20  ;;  %2131 = vrot.lane.b32.xlu0 %v2026_v15, %s6715_s20  ;;  %v1919_v10 = vmul.f32 %v7963_v42, %v7421_v41  ;;  %v2032_v15 = vmul.f32 %v1975_v49, %v7969_v33 }
 0x2b7   : > { %v2031_v0 = vmul.f32 %v1971_v16, %v1919_v10  ;;  %v1924_v16 = vmul.f32 %v7967_v55, %v7449_v40  ;;  %v1983_v10 = vpop.permute.xlu0 %1982 }
 0x2b9   : > { %2133 = vrot.lane.b32.xlu1 %v2027_v52, %s6715_s20  ;;  %2135 = vrot.lane.b32.xlu0 %v2028_v35, %s6715_s20  ;;  %v2033_v52 = vmul.f32 %v1975_v49, %v1921_v29  ;;  %v2034_v35 = vmul.f32 %v1975_v49, %v1922_v5  ;;  %v1927_v29 = vmul.f32 %v7967_v55, %v7481_v50 }
 0x2ba   : > { %v1928_v5 = vmul.f32 %v7963_v42, %v7485_v59 }
 0x2bd   : > { %2137 = vrot.lane.b32.xlu1 %v2029_v27, %s6715_s20  ;;  %2139 = vrot.lane.b32.xlu0 %v2030_v30, %s6715_s20  ;;  %v2035_v27 = vmul.f32 %v1979_v31, %v7969_v33  ;;  %v2036_v30 = vmul.f32 %v1979_v31, %v1924_v16  ;;  %v1987_v16 = vpop.permute.xlu1 %1986 }
 0x2c1   : > { %2141 = vrot.lane.b32.xlu1 %v2031_v0, %s6715_s20  ;;  %2143 = vrot.lane.b32.xlu0 %v2032_v15, %s6715_s20  ;;  %v1925_v0 = vmul.f32 %v7963_v42, %v7469_v47  ;;  %v2038_v15 = vmul.f32 %v1983_v10, %v7969_v33 }
 0x2c3   : > { %v2037_v49 = vmul.f32 %v1979_v31, %v1925_v0  ;;  %v1930_v31 = vmul.f32 %v7967_v55, %v7497_v57  ;;  %v1991_v0 = vpop.permute.xlu0 %1990 }
 0x2c5   : > { %2145 = vrot.lane.b32.xlu1 %v2033_v52, %s6715_s20  ;;  %2147 = vrot.lane.b32.xlu0 %v2034_v35, %s6715_s20  ;;  %v2039_v52 = vmul.f32 %v1983_v10, %v1927_v29  ;;  %v2040_v35 = vmul.f32 %v1983_v10, %v1928_v5  ;;  %v1933_v29 = vmul.f32 %v7967_v55, %v7529_v63 }
 0x2c6   : > { %v1934_v5 = vmul.f32 %v7963_v42, %v7533_v11 }
 0x2c9   : > { %2149 = vrot.lane.b32.xlu1 %v2035_v27, %s6715_s20  ;;  %2151 = vrot.lane.b32.xlu0 %v2036_v30, %s6715_s20  ;;  %v2041_v27 = vmul.f32 %v1987_v16, %v7969_v33  ;;  %v2042_v30 = vmul.f32 %v1987_v16, %v1930_v31  ;;  %v1995_v31 = vpop.permute.xlu1 %1994 }
 0x2cd   : > { %2153 = vrot.lane.b32.xlu1 %v2037_v49, %s6715_s20  ;;  %2155 = vrot.lane.b32.xlu0 %v2038_v15, %s6715_s20  ;;  %v1931_v49 = vmul.f32 %v7963_v42, %v7517_v56  ;;  %v2044_v15 = vmul.f32 %v1991_v0, %v7969_v33 }
 0x2cf   : > { %v2043_v10 = vmul.f32 %v1987_v16, %v1931_v49  ;;  %v1936_v16 = vmul.f32 %v7967_v55, %v7545_v61  ;;  %v1999_v49 = vpop.permute.xlu0 %1998 }
 0x2d1   : > { %2157 = vrot.lane.b32.xlu1 %v2039_v52, %s6715_s20  ;;  %2159 = vrot.lane.b32.xlu0 %v2040_v35, %s6715_s20  ;;  %v2045_v52 = vmul.f32 %v1991_v0, %v1933_v29  ;;  %v2046_v35 = vmul.f32 %v1991_v0, %v1934_v5  ;;  %v1939_v29 = vmul.f32 %v7967_v55, %v7570_v58 }
 0x2d2   : > { %v1940_v5 = vmul.f32 %v7963_v42, %v7563_v45 }
 0x2d5   : > { %2161 = vrot.lane.b32.xlu1 %v2041_v27, %s6715_s20  ;;  %2163 = vrot.lane.b32.xlu0 %v2042_v30, %s6715_s20  ;;  %v2047_v27 = vmul.f32 %v1995_v31, %v7969_v33  ;;  %v2048_v30 = vmul.f32 %v1995_v31, %v1936_v16  ;;  %v2003_v16 = vpop.permute.xlu1 %2002 }
 0x2d9   : > { %2165 = vrot.lane.b32.xlu1 %v2043_v10, %s6715_s20  ;;  %2167 = vrot.lane.b32.xlu0 %v2044_v15, %s6715_s20  ;;  %v1937_v10 = vmul.f32 %v7963_v42, %v7552_v62  ;;  %v2050_v15 = vmul.f32 %v1999_v49, %v7969_v33 }
 0x2db   : > { %v2049_v0 = vmul.f32 %v1995_v31, %v1937_v10  ;;  %v1942_v31 = vmul.f32 %v7967_v55, %v7579_v9  ;;  %v2007_v10 = vpop.permute.xlu0 %2006 }
 0x2dd   : > { %2169 = vrot.lane.b32.xlu1 %v2045_v52, %s6715_s20  ;;  %2171 = vrot.lane.b32.xlu0 %v2046_v35, %s6715_s20  ;;  %v2051_v52 = vmul.f32 %v1999_v49, %v1939_v29  ;;  %v2052_v35 = vmul.f32 %v1999_v49, %v1940_v5  ;;  %v1945_v29 = vmul.f32 %v7967_v55, %v7606_v34 }
 0x2de   : > { %v1946_v5 = vmul.f32 %v7963_v42, %v7597_v32 }
 0x2e1   : > { %2173 = vrot.lane.b32.xlu1 %v2047_v27, %s6715_s20  ;;  %2175 = vrot.lane.b32.xlu0 %v2048_v30, %s6715_s20  ;;  %v2053_v27 = vmul.f32 %v2003_v16, %v7969_v33  ;;  %v2054_v30 = vmul.f32 %v2003_v16, %v1942_v31  ;;  %v2011_v31 = vpop.permute.xlu1 %2010 }
 0x2e5   : > { %2177 = vrot.lane.b32.xlu1 %v2049_v0, %s6715_s20  ;;  %2179 = vrot.lane.b32.xlu0 %v2050_v15, %s6715_s20  ;;  %v1943_v0 = vmul.f32 %v7963_v42, %v7588_v25  ;;  %v2056_v15 = vmul.f32 %v2007_v10, %v7969_v33 }
 0x2e7   : > { %v2055_v49 = vmul.f32 %v2003_v16, %v1943_v0  ;;  %v1948_v16 = vmul.f32 %v7967_v55, %v7617_v2  ;;  %v2015_v0 = vpop.permute.xlu0 %2014 }
 0x2e9   : > { %2181 = vrot.lane.b32.xlu1 %v2051_v52, %s6715_s20  ;;  %2183 = vrot.lane.b32.xlu0 %v2052_v35, %s6715_s20  ;;  %v2057_v52 = vmul.f32 %v2007_v10, %v1945_v29  ;;  %v2058_v35 = vmul.f32 %v2007_v10, %v1946_v5  ;;  %v1951_v29 = vmul.f32 %v7967_v55, %v7640_v53  ;;  %v8117_v55 = vld [vmem:[%s13191_s3 + $0x30] sm:$0xff] }
 0x2ea   : > { %v1952_v5 = vmul.f32 %v7963_v42, %v7718_v8 }
 0x2ed   : > { %2185 = vrot.lane.b32.xlu1 %v2053_v27, %s6715_s20  ;;  %2187 = vrot.lane.b32.xlu0 %v2054_v30, %s6715_s20  ;;  %v2059_v27 = vmul.f32 %v2011_v31, %v7969_v33  ;;  %v2060_v30 = vmul.f32 %v2011_v31, %v1948_v16  ;;  %v8131_v16 = vld [vmem:[%s13191_s3 + $0x50] sm:$0xff] }
 0x2f1   : > { %2189 = vrot.lane.b32.xlu1 %v2055_v49, %s6715_s20  ;;  %2191 = vrot.lane.b32.xlu0 %v2056_v15, %s6715_s20  ;;  %v1949_v49 = vmul.f32 %v7963_v42, %v7624_v13  ;;  %v2062_v15 = vmul.f32 %v2015_v0, %v7969_v33  ;;  %v8104_v33 = vld [vmem:[%s13191_s3 + $0x10] sm:$0xff]  ;;  %v8110_v42 = vld [vmem:[%s13191_s3 + $0x20] sm:$0xff] }
 0x2f3   : > { %v2061_v10 = vmul.f32 %v2011_v31, %v1949_v49  ;;  %v8124_v31 = vld [vmem:[%s13191_s3 + $0x40] sm:$0xff] }
 0x2f5   : > { %2193 = vrot.lane.b32.xlu1 %v2057_v52, %s6715_s20  ;;  %2195 = vrot.lane.b32.xlu0 %v2058_v35, %s6715_s20  ;;  %v2063_v52 = vmul.f32 %v2015_v0, %v1951_v29  ;;  %v2064_v35 = vmul.f32 %v2015_v0, %v1952_v5  ;;  %v8142_v0 = vld [vmem:[%s13191_s3 + $0x60] sm:$0xff] }
 0x2f9   : > { %2197 = vrot.lane.b32.xlu1 %v2059_v27, %s6715_s20  ;;  %2199 = vrot.lane.b32.xlu0 %v2060_v30, %s6715_s20 }
 0x2fd   : > { %2201 = vrot.lane.b32.xlu1 %v2061_v10, %s6715_s20  ;;  %2203 = vrot.lane.b32.xlu0 %v2062_v15, %s6715_s20  ;;  %v8153_v15 = vld [vmem:[%s13191_s3 + $0x70] sm:$0xff] }
 0x301   : > { %2205 = vrot.lane.b32.xlu1 %v2063_v52, %s6715_s20  ;;  %2207 = vrot.lane.b32.xlu0 %v2064_v35, %s6715_s20 }
 0x305   : > { %2383 = vperm.xlu1 %6540, %v7794_v38   ;;  %2387 = vperm.xlu0 %6541, %v7811_v37  }
 0x309   : > { %2391 = vperm.xlu1 %6540, %v8104_v33   ;;  %2399 = vperm.xlu0 %6541, %v8110_v42  }
 0x30d   : > { %2395 = vperm.xlu1 %6540, %v7805_v60   ;;  %2407 = vperm.xlu0 %6541, %v8117_v55  }
 0x311   : > { %2403 = vperm.xlu1 %6540, %v7821_v17   ;;  %2415 = vperm.xlu0 %6541, %v8124_v31  }
 0x315   : > { %2411 = vperm.xlu1 %6540, %v7832_v23   ;;  %2423 = vperm.xlu0 %6541, %v8131_v16  }
 0x317   : > { %v8134_v27 = vpop.permute.xlu1 %2113  ;;  %v8136_v30 = vpop.permute.xlu0 %2115 }
 0x318   : > { %13725 = vst [vmem:[#allocation59_spill] sm:$0xff] %v8134_v27  ;;  %13726 = vst [vmem:[#allocation134_spill] sm:$0xff] %v8136_v30 }
 0x319   : > { %2419 = vperm.xlu1 %6540, %v7843_v20   ;;  %2431 = vperm.xlu0 %6541, %v8142_v0  }
 0x31b   : > { %v8145_v49 = vpop.permute.xlu1 %2117  ;;  %v8147_v10 = vpop.permute.xlu0 %2119 }
 0x31c   : > { %13727 = vst [vmem:[#allocation135_spill] sm:$0xff] %v8145_v49  ;;  %13728 = vst [vmem:[#allocation136_spill] sm:$0xff] %v8147_v10 }
 0x31d   : > { %2427 = vperm.xlu1 %6540, %v7854_v6   ;;  %2439 = vperm.xlu0 %6541, %v8153_v15  }
 0x31f   : > { %v8156_v29 = vpop.permute.xlu1 %2121  ;;  %v8158_v5 = vpop.permute.xlu0 %2123 }
 0x320   : > { %13729 = vst [vmem:[#allocation137_spill] sm:$0xff] %v8156_v29  ;;  %13730 = vst [vmem:[#allocation138_spill] sm:$0xff] %v8158_v5 }
 0x321   : > { %2435 = vperm.xlu1 %6540, %v7865_v43  }
 0x323   : > { %v8161_v52 = vpop.permute.xlu1 %2125  ;;  %v8163_v35 = vpop.permute.xlu0 %2127 }
 0x324   : > { %13731 = vst [vmem:[#allocation139_spill] sm:$0xff] %v8161_v52  ;;  %13732 = vst [vmem:[#allocation140_spill] sm:$0xff] %v8163_v35 }
 0x325   : > { %2443 = vperm.xlu1 %6540, %v7876_v19  }
 0x327   : > { %v8166_v49 = vpop.permute.xlu1 %2129  ;;  %v8168_v27 = vpop.permute.xlu0 %2131 }
 0x328   : > { %13733 = vst [vmem:[#allocation141_spill] sm:$0xff] %v8166_v49  ;;  %13734 = vst [vmem:[#allocation142_spill] sm:$0xff] %v8168_v27 }
 0x32b   : > { %v8170_v30 = vpop.permute.xlu1 %2133  ;;  %v8172_v10 = vpop.permute.xlu0 %2135 }
 0x32c   : > { %13735 = vst [vmem:[#allocation143_spill] sm:$0xff] %v8170_v30  ;;  %13736 = vst [vmem:[#allocation144_spill] sm:$0xff] %v8172_v10 }
 0x32f   : > { %v8174_v14 = vpop.permute.xlu1 %2137  ;;  %v8176_v29 = vpop.permute.xlu0 %2139 }
 0x330   : > { %13737 = vst [vmem:[#allocation145_spill] sm:$0xff] %v8174_v14  ;;  %13738 = vst [vmem:[#allocation146_spill] sm:$0xff] %v8176_v29 }
 0x333   : > { %v8178_v5 = vpop.permute.xlu1 %2141  ;;  %v8180_v46 = vpop.permute.xlu0 %2143 }
 0x334   : > { %13739 = vst [vmem:[#allocation147_spill] sm:$0xff] %v8178_v5  ;;  %13740 = vst [vmem:[#allocation148_spill] sm:$0xff] %v8180_v46  ;;  %v6722_v46 = vmov 5  }
 0x335   : > { %6543 = vset.pattern.permute.xlu1 %v6722_v46  ;;  %6542 = vset.pattern.permute.xlu0 %v6722_v46 }
 0x337   : > { %v8182_v52 = vpop.permute.xlu1 %2145  ;;  %v8184_v35 = vpop.permute.xlu0 %2147 }
 0x338   : > { %13741 = vst [vmem:[#allocation149_spill] sm:$0xff] %v8182_v52  ;;  %13742 = vst [vmem:[#allocation150_spill] sm:$0xff] %v8184_v35 }
 0x33b   : > { %v8186_v18 = vpop.permute.xlu1 %2149  ;;  %v8188_v49 = vpop.permute.xlu0 %2151 }
 0x33c   : > { %13743 = vst [vmem:[#allocation151_spill] sm:$0xff] %v8186_v18  ;;  %13744 = vst [vmem:[#allocation152_spill] sm:$0xff] %v8188_v49 }
 0x33f   : > { %v8190_v27 = vpop.permute.xlu1 %2153  ;;  %v8192_v30 = vpop.permute.xlu0 %2155 }
 0x340   : > { %13745 = vst [vmem:[#allocation153_spill] sm:$0xff] %v8190_v27  ;;  %13746 = vst [vmem:[#allocation154_spill] sm:$0xff] %v8192_v30 }
 0x343   : > { %v8194_v10 = vpop.permute.xlu1 %2157  ;;  %v8196_v14 = vpop.permute.xlu0 %2159 }
 0x344   : > { %13747 = vst [vmem:[#allocation155_spill] sm:$0xff] %v8194_v10  ;;  %13748 = vst [vmem:[#allocation156_spill] sm:$0xff] %v8196_v14 }
 0x347   : > { %v8198_v29 = vpop.permute.xlu1 %2161  ;;  %v8200_v5 = vpop.permute.xlu0 %2163 }
 0x348   : > { %13749 = vst [vmem:[#allocation157_spill] sm:$0xff] %v8198_v29  ;;  %13750 = vst [vmem:[#allocation158_spill] sm:$0xff] %v8200_v5 }
 0x34b   : > { %v8202_v35 = vpop.permute.xlu1 %2165  ;;  %v8204_v18 = vpop.permute.xlu0 %2167 }
 0x34c   : > { %13751 = vst [vmem:[#allocation159_spill] sm:$0xff] %v8202_v35  ;;  %13752 = vst [vmem:[#allocation160_spill] sm:$0xff] %v8204_v18 }
 0x34f   : > { %v8206_v49 = vpop.permute.xlu1 %2169  ;;  %v8208_v27 = vpop.permute.xlu0 %2171 }
 0x350   : > { %13753 = vst [vmem:[#allocation161_spill] sm:$0xff] %v8206_v49  ;;  %13754 = vst [vmem:[#allocation162_spill] sm:$0xff] %v8208_v27 }
 0x353   : > { %v8210_v30 = vpop.permute.xlu1 %2173  ;;  %v8212_v10 = vpop.permute.xlu0 %2175 }
 0x354   : > { %13755 = vst [vmem:[#allocation163_spill] sm:$0xff] %v8210_v30  ;;  %13756 = vst [vmem:[#allocation164_spill] sm:$0xff] %v8212_v10 }
 0x357   : > { %v8214_v14 = vpop.permute.xlu1 %2177  ;;  %v8216_v29 = vpop.permute.xlu0 %2179 }
 0x358   : > { %13757 = vst [vmem:[#allocation165_spill] sm:$0xff] %v8214_v14  ;;  %13758 = vst [vmem:[#allocation166_spill] sm:$0xff] %v8216_v29 }
 0x35b   : > { %v8218_v5 = vpop.permute.xlu1 %2181  ;;  %v8220_v52 = vpop.permute.xlu0 %2183 }
 0x35c   : > { %13759 = vst [vmem:[#allocation167_spill] sm:$0xff] %v8218_v5  ;;  %13760 = vst [vmem:[#allocation168_spill] sm:$0xff] %v8220_v52 }
 0x35f   : > { %v8222_v46 = vpop.permute.xlu1 %2185  ;;  %v8224_v35 = vpop.permute.xlu0 %2187 }
 0x360   : > { %13761 = vst [vmem:[#allocation169_spill] sm:$0xff] %v8222_v46  ;;  %13762 = vst [vmem:[#allocation170_spill] sm:$0xff] %v8224_v35  ;;  %v6443_v46 = vld [vmem:[%s13195_s7 + $0x4] ss:$8 sm:$0x3] }
 0x361   : > { %v8249_v35 = vrot.slane %v6443_v46, %v13656_v54 }
 0x363   : > { %v8226_v18 = vpop.permute.xlu1 %2189  ;;  %v8228_v49 = vpop.permute.xlu0 %2191  ;;  %v2352_v39 = vmul.f32 %v8249_v35, %v7339_v3  ;;  %v2354_v44 = vmul.f32 %v8249_v35, %v7353_v12 }
 0x364   : > { %13763 = vst [vmem:[#allocation171_spill] sm:$0xff] %v8226_v18  ;;  %13764 = vst [vmem:[#allocation172_spill] sm:$0xff] %v8228_v49  ;;  %v8246_v18 = vrot.slane %v6443_v46, %v13659_v51 }
 0x366   : > { %v2353_v46 = vmul.f32 %v8246_v18, %v7343_v28 }
 0x367   : > { %v8230_v27 = vpop.permute.xlu1 %2193  ;;  %v8232_v30 = vpop.permute.xlu0 %2195 }
 0x368   : > { %13765 = vst [vmem:[#allocation173_spill] sm:$0xff] %v8230_v27  ;;  %13766 = vst [vmem:[#allocation174_spill] sm:$0xff] %v8232_v30 }
 0x36b   : > { %v8234_v10 = vpop.permute.xlu1 %2197  ;;  %v8236_v14 = vpop.permute.xlu0 %2199 }
 0x36c   : > { %13767 = vst [vmem:[#allocation175_spill] sm:$0xff] %v8234_v10  ;;  %13768 = vst [vmem:[#allocation176_spill] sm:$0xff] %v8236_v14  ;;  %v2350_v10 = vmul.f32 %v8249_v35, %v13724_v48 }
 0x36f   : > { %v8238_v29 = vpop.permute.xlu1 %2201  ;;  %v8243_v52 = vpop.permute.xlu0 %2203 }
 0x370   : > { %13769 = vst [vmem:[#allocation177_spill] sm:$0xff] %v8238_v29  ;;  %13770 = vst [vmem:[#allocation178_spill] sm:$0xff] %v8243_v52  ;;  %v2351_v29 = vmul.f32 %v8246_v18, %v7323_v21 }
 0x373   : > { %v8251_v49 = vpop.permute.xlu1 %2205  ;;  %v8253_v30 = vpop.permute.xlu0 %2207 }
 0x374   : > { %13771 = vst [vmem:[#allocation179_spill] sm:$0xff] %v8251_v49  ;;  %13772 = vst [vmem:[#allocation180_spill] sm:$0xff] %v8253_v30 }
 0x384   : > { %v2384_v14 = vpop.permute.xlu1 %2383  ;;  %v2388_v52 = vpop.permute.xlu0 %2387 }
 0x385   : > { %v2446_v27 = vmul.f32 %v2384_v14, %v2350_v10  ;;  %v2447_v5 = vmul.f32 %v2384_v14, %v2351_v29  ;;  %v2448_v49 = vmul.f32 %v2388_v52, %v2352_v39  ;;  %v2449_v36 = vmul.f32 %v2388_v52, %v2353_v46 }
 0x386   : > { %v2355_v14 = vmul.f32 %v8246_v18, %v7373_v24  ;;  %v2357_v39 = vmul.f32 %v8246_v18, %v7389_v1 }
 0x387   : > { %2512 = vrot.lane.b32.xlu1 %v2447_v5, %s6713_s14  ;;  %2510 = vrot.lane.b32.xlu0 %v2446_v27, %s6713_s14  ;;  %v2356_v5 = vmul.f32 %v8249_v35, %v7385_v26 }
 0x388   : > { %v2392_v30 = vpop.permute.xlu1 %2391  ;;  %v2400_v46 = vpop.permute.xlu0 %2399 }
 0x389   : > { %v2450_v10 = vmul.f32 %v2392_v30, %v2354_v44  ;;  %v2451_v29 = vmul.f32 %v2392_v30, %v2355_v14  ;;  %v2359_v44 = vmul.f32 %v8246_v18, %v7421_v41 }
 0x38b   : > { %2516 = vrot.lane.b32.xlu1 %v2449_v36, %s6713_s14  ;;  %2514 = vrot.lane.b32.xlu0 %v2448_v49, %s6713_s14  ;;  %v2358_v36 = vmul.f32 %v8249_v35, %v7401_v4  ;;  %v2455_v49 = vmul.f32 %v2400_v46, %v2359_v44 }
 0x38c   : > { %v2396_v28 = vpop.permute.xlu1 %2395 }
 0x38d   : > { %v2452_v27 = vmul.f32 %v2396_v28, %v2356_v5  ;;  %v2453_v52 = vmul.f32 %v2396_v28, %v2357_v39  ;;  %v2454_v30 = vmul.f32 %v2400_v46, %v2358_v36  ;;  %v2361_v28 = vmul.f32 %v8246_v18, %v7437_v7  ;;  %v2408_v39 = vpop.permute.xlu0 %2407 }
 0x38f   : > { %2520 = vrot.lane.b32.xlu1 %v2451_v29, %s6713_s14  ;;  %2518 = vrot.lane.b32.xlu0 %v2450_v10, %s6713_s14  ;;  %v2360_v29 = vmul.f32 %v8249_v35, %v7433_v22 }
 0x390   : > { %v2404_v14 = vpop.permute.xlu1 %2403 }
 0x391   : > { %v2456_v10 = vmul.f32 %v2404_v14, %v2360_v29  ;;  %v2457_v5 = vmul.f32 %v2404_v14, %v2361_v28  ;;  %v2416_v28 = vpop.permute.xlu0 %2415 }
 0x393   : > { %2524 = vrot.lane.b32.xlu1 %v2453_v52, %s6713_s14  ;;  %2522 = vrot.lane.b32.xlu0 %v2452_v27, %s6713_s14  ;;  %v2362_v52 = vmul.f32 %v8249_v35, %v7449_v40  ;;  %v2363_v27 = vmul.f32 %v8246_v18, %v7469_v47 }
 0x394   : > { %v2412_v44 = vpop.permute.xlu1 %2411 }
 0x395   : > { %v2458_v46 = vmul.f32 %v2408_v39, %v2362_v52  ;;  %v2459_v36 = vmul.f32 %v2408_v39, %v2363_v27 }
 0x397   : > { %2528 = vrot.lane.b32.xlu1 %v2455_v49, %s6713_s14  ;;  %2526 = vrot.lane.b32.xlu0 %v2454_v30, %s6713_s14  ;;  %v2364_v49 = vmul.f32 %v8249_v35, %v7481_v50  ;;  %v2365_v30 = vmul.f32 %v8246_v18, %v7485_v59 }
 0x398   : > { %v2420_v27 = vpop.permute.xlu1 %2419 }
 0x399   : > { %v2460_v14 = vmul.f32 %v2412_v44, %v2364_v49  ;;  %v2461_v29 = vmul.f32 %v2412_v44, %v2365_v30  ;;  %v2424_v30 = vpop.permute.xlu0 %2423 }
 0x39b   : > { %2532 = vrot.lane.b32.xlu1 %v2457_v5, %s6713_s14  ;;  %2530 = vrot.lane.b32.xlu0 %v2456_v10, %s6713_s14  ;;  %v2366_v5 = vmul.f32 %v8249_v35, %v7497_v57  ;;  %v2367_v10 = vmul.f32 %v8246_v18, %v7517_v56 }
 0x39d   : > { %v2462_v39 = vmul.f32 %v2416_v28, %v2366_v5  ;;  %v2463_v52 = vmul.f32 %v2416_v28, %v2367_v10  ;;  %v2428_v10 = vpop.permute.xlu1 %2427 }
 0x39f   : > { %2536 = vrot.lane.b32.xlu1 %v2459_v36, %s6713_s14  ;;  %2534 = vrot.lane.b32.xlu0 %v2458_v46, %s6713_s14  ;;  %v2368_v36 = vmul.f32 %v8249_v35, %v7529_v63  ;;  %v2369_v46 = vmul.f32 %v8246_v18, %v7533_v11 }
 0x3a1   : > { %v2464_v44 = vmul.f32 %v2420_v27, %v2368_v36  ;;  %v2465_v49 = vmul.f32 %v2420_v27, %v2369_v46  ;;  %v2432_v46 = vpop.permute.xlu0 %2431 }
 0x3a3   : > { %2540 = vrot.lane.b32.xlu1 %v2461_v29, %s6713_s14  ;;  %2538 = vrot.lane.b32.xlu0 %v2460_v14, %s6713_s14  ;;  %v2370_v29 = vmul.f32 %v8249_v35, %v7545_v61  ;;  %v2371_v14 = vmul.f32 %v8246_v18, %v7552_v62 }
 0x3a5   : > { %v2466_v28 = vmul.f32 %v2424_v30, %v2370_v29  ;;  %v2467_v5 = vmul.f32 %v2424_v30, %v2371_v14  ;;  %v2436_v14 = vpop.permute.xlu1 %2435 }
 0x3a7   : > { %2544 = vrot.lane.b32.xlu1 %v2463_v52, %s6713_s14  ;;  %2542 = vrot.lane.b32.xlu0 %v2462_v39, %s6713_s14  ;;  %v2372_v52 = vmul.f32 %v8249_v35, %v7570_v58  ;;  %v2373_v39 = vmul.f32 %v8246_v18, %v7563_v45 }
 0x3a9   : > { %v2468_v27 = vmul.f32 %v2428_v10, %v2372_v52  ;;  %v2469_v36 = vmul.f32 %v2428_v10, %v2373_v39  ;;  %v2440_v39 = vpop.permute.xlu0 %2439 }
 0x3ab   : > { %2548 = vrot.lane.b32.xlu1 %v2465_v49, %s6713_s14  ;;  %2546 = vrot.lane.b32.xlu0 %v2464_v44, %s6713_s14  ;;  %v2374_v49 = vmul.f32 %v8249_v35, %v7579_v9  ;;  %v2375_v44 = vmul.f32 %v8246_v18, %v7588_v25 }
 0x3ad   : > { %v2470_v30 = vmul.f32 %v2432_v46, %v2374_v49  ;;  %v2471_v29 = vmul.f32 %v2432_v46, %v2375_v44  ;;  %v2444_v44 = vpop.permute.xlu1 %2443 }
 0x3af   : > { %2552 = vrot.lane.b32.xlu1 %v2467_v5, %s6713_s14  ;;  %2550 = vrot.lane.b32.xlu0 %v2466_v28, %s6713_s14  ;;  %v2376_v5 = vmul.f32 %v8249_v35, %v7606_v34  ;;  %v2377_v28 = vmul.f32 %v8246_v18, %v7597_v32 }
 0x3b1   : > { %v2472_v10 = vmul.f32 %v2436_v14, %v2376_v5  ;;  %v2473_v52 = vmul.f32 %v2436_v14, %v2377_v28  ;;  %v6444_v14 = vld [vmem:[%s13195_s7 + $0x5] ss:$8 sm:$0x3] }
 0x3b3   : > { %2556 = vrot.lane.b32.xlu1 %v2469_v36, %s6713_s14  ;;  %2554 = vrot.lane.b32.xlu0 %v2468_v27, %s6713_s14  ;;  %v2378_v36 = vmul.f32 %v8249_v35, %v7617_v2  ;;  %v2379_v27 = vmul.f32 %v8246_v18, %v7624_v13 }
 0x3b5   : > { %v2474_v46 = vmul.f32 %v2440_v39, %v2378_v36  ;;  %v2475_v49 = vmul.f32 %v2440_v39, %v2379_v27 }
 0x3b7   : > { %2560 = vrot.lane.b32.xlu1 %v2471_v29, %s6713_s14  ;;  %2558 = vrot.lane.b32.xlu0 %v2470_v30, %s6713_s14  ;;  %v2380_v29 = vmul.f32 %v8249_v35, %v7640_v53  ;;  %v2381_v30 = vmul.f32 %v8246_v18, %v7718_v8  ;;  %v2740_v35 = vrot.slane %v6444_v14, %v13656_v54 }
 0x3b9   : > { %v2476_v5 = vmul.f32 %v2444_v44, %v2380_v29  ;;  %v2477_v28 = vmul.f32 %v2444_v44, %v2381_v30 }
 0x3bb   : > { %2564 = vrot.lane.b32.xlu1 %v2473_v52, %s6713_s14  ;;  %2562 = vrot.lane.b32.xlu0 %v2472_v10, %s6713_s14  ;;  %v2744_v10 = vrot.slane %v6444_v14, %v13659_v51 }
 0x3bf   : > { %2568 = vrot.lane.b32.xlu1 %v2475_v49, %s6713_s14  ;;  %2566 = vrot.lane.b32.xlu0 %v2474_v46, %s6713_s14 }
 0x3c3   : > { %2572 = vrot.lane.b32.xlu1 %v2477_v28, %s6713_s14  ;;  %2570 = vrot.lane.b32.xlu0 %v2476_v5, %s6713_s14  ;;  %s6725_s14 = smov 110  }
 0x3c7   : > { %2747 = vrot.lane.b32.xlu1 %v2744_v10, %s6723_s13  ;;  %2745 = vrot.lane.b32.xlu0 %v2740_v35, %s6723_s13 }
 0x3cb   : > { %2807 = vperm.xlu1 %6543, %v7811_v37   ;;  %2803 = vperm.xlu0 %6542, %v7794_v38  }
 0x3cf   : > { %2811 = vperm.xlu1 %6543, %v8104_v33   ;;  %2815 = vperm.xlu0 %6542, %v7805_v60  }
 0x3d3   : > { %2819 = vperm.xlu1 %6543, %v8110_v42   ;;  %2823 = vperm.xlu0 %6542, %v7821_v17  }
 0x3d7   : > { %2827 = vperm.xlu1 %6543, %v8117_v55   ;;  %2831 = vperm.xlu0 %6542, %v7832_v23  }
 0x3db   : > { %2835 = vperm.xlu1 %6543, %v8124_v31   ;;  %2839 = vperm.xlu0 %6542, %v7843_v20  }
 0x3df   : > { %2843 = vperm.xlu1 %6543, %v8131_v16   ;;  %2847 = vperm.xlu0 %6542, %v7854_v6  }
 0x3e3   : > { %2851 = vperm.xlu1 %6543, %v8142_v0   ;;  %2855 = vperm.xlu0 %6542, %v7865_v43  }
 0x3e7   : > { %2859 = vperm.xlu1 %6543, %v8153_v15   ;;  %2863 = vperm.xlu0 %6542, %v7876_v19  }
 0x3f9   : > { %v8372_v18 = vpop.permute.xlu1 %2512  ;;  %v8374_v38 = vpop.permute.xlu0 %2510 }
 0x3fa   : > { %13773 = vst [vmem:[#allocation181_spill] sm:$0xff] %v8372_v18  ;;  %13774 = vst [vmem:[#allocation182_spill] sm:$0xff] %v8374_v38 }
 0x3fd   : > { %v8376_v23 = vpop.permute.xlu1 %2516  ;;  %v8378_v60 = vpop.permute.xlu0 %2514 }
 0x401   : > { %v8380_v37 = vpop.permute.xlu1 %2520  ;;  %v8382_v17 = vpop.permute.xlu0 %2518 }
 0x402   : > { %13775 = vst [vmem:[#allocation183_spill] sm:$0xff] %v8380_v37  ;;  %13776 = vst [vmem:[#allocation184_spill] sm:$0xff] %v8382_v17 }
 0x405   : > { %v8384_v20 = vpop.permute.xlu1 %2524  ;;  %v8386_v6 = vpop.permute.xlu0 %2522 }
 0x406   : > { %13777 = vst [vmem:[#allocation185_spill] sm:$0xff] %v8386_v6 }
 0x409   : > { %v8388_v43 = vpop.permute.xlu1 %2528  ;;  %v8390_v52 = vpop.permute.xlu0 %2526 }
 0x40a   : > { %13778 = vst [vmem:[#allocation186_spill] sm:$0xff] %v8388_v43  ;;  %13779 = vst [vmem:[#allocation187_spill] sm:$0xff] %v8390_v52  ;;  %v13802_v43 = vld [vmem:[#allocation60_spill] sm:$0xff] }
 0x40d   : > { %v8392_v19 = vpop.permute.xlu1 %2532  ;;  %v8394_v39 = vpop.permute.xlu0 %2530 }
 0x40e   : > { %13780 = vst [vmem:[#allocation188_spill] sm:$0xff] %v8392_v19  ;;  %13781 = vst [vmem:[#allocation189_spill] sm:$0xff] %v8394_v39 }
 0x411   : > { %v8396_v36 = vpop.permute.xlu1 %2536  ;;  %v8398_v27 = vpop.permute.xlu0 %2534 }
 0x412   : > { %13782 = vst [vmem:[#allocation190_spill] sm:$0xff] %v8396_v36  ;;  %13783 = vst [vmem:[#allocation191_spill] sm:$0xff] %v8398_v27 }
 0x415   : > { %v8400_v46 = vpop.permute.xlu1 %2540  ;;  %v8402_v49 = vpop.permute.xlu0 %2538 }
 0x416   : > { %13784 = vst [vmem:[#allocation192_spill] sm:$0xff] %v8400_v46  ;;  %13785 = vst [vmem:[#allocation193_spill] sm:$0xff] %v8402_v49  ;;  %v6724_v49 = vmov 6  }
 0x417   : > { %6544 = vset.pattern.permute.xlu1 %v6724_v49  ;;  %6545 = vset.pattern.permute.xlu0 %v6724_v49 }
 0x419   : > { %v8404_v44 = vpop.permute.xlu1 %2544  ;;  %v8406_v29 = vpop.permute.xlu0 %2542 }
 0x41a   : > { %13786 = vst [vmem:[#allocation194_spill] sm:$0xff] %v8404_v44  ;;  %13787 = vst [vmem:[#allocation195_spill] sm:$0xff] %v8406_v29 }
 0x41d   : > { %v8408_v30 = vpop.permute.xlu1 %2548  ;;  %v8410_v14 = vpop.permute.xlu0 %2546 }
 0x41e   : > { %13788 = vst [vmem:[#allocation196_spill] sm:$0xff] %v8408_v30  ;;  %13789 = vst [vmem:[#allocation197_spill] sm:$0xff] %v8410_v14 }
 0x421   : > { %v8412_v5 = vpop.permute.xlu1 %2552  ;;  %v8414_v28 = vpop.permute.xlu0 %2550 }
 0x422   : > { %13790 = vst [vmem:[#allocation198_spill] sm:$0xff] %v8412_v5  ;;  %13791 = vst [vmem:[#allocation199_spill] sm:$0xff] %v8414_v28 }
 0x425   : > { %v8416_v10 = vpop.permute.xlu1 %2556  ;;  %v8418_v35 = vpop.permute.xlu0 %2554 }
 0x426   : > { %13792 = vst [vmem:[#allocation200_spill] sm:$0xff] %v8416_v10  ;;  %13793 = vst [vmem:[#allocation201_spill] sm:$0xff] %v8418_v35 }
 0x429   : > { %v8420_v27 = vpop.permute.xlu1 %2560  ;;  %v8422_v36 = vpop.permute.xlu0 %2558 }
 0x42a   : > { %13794 = vst [vmem:[#allocation202_spill] sm:$0xff] %v8420_v27  ;;  %13795 = vst [vmem:[#allocation203_spill] sm:$0xff] %v8422_v36 }
 0x42d   : > { %v8424_v29 = vpop.permute.xlu1 %2564  ;;  %v8426_v44 = vpop.permute.xlu0 %2562 }
 0x42e   : > { %13796 = vst [vmem:[#allocation204_spill] sm:$0xff] %v8424_v29  ;;  %13797 = vst [vmem:[#allocation205_spill] sm:$0xff] %v8426_v44 }
 0x431   : > { %v8428_v14 = vpop.permute.xlu1 %2568  ;;  %v8430_v5 = vpop.permute.xlu0 %2566 }
 0x432   : > { %13798 = vst [vmem:[#allocation206_spill] sm:$0xff] %v8428_v14  ;;  %13799 = vst [vmem:[#allocation207_spill] sm:$0xff] %v8430_v5 }
 0x435   : > { %v8432_v28 = vpop.permute.xlu1 %2572  ;;  %v8434_v10 = vpop.permute.xlu0 %2570 }
 0x436   : > { %13800 = vst [vmem:[#allocation208_spill] sm:$0xff] %v8432_v28  ;;  %13801 = vst [vmem:[#allocation209_spill] sm:$0xff] %v8434_v10 }
 0x439   : > { %v2748_v35 = vpop.permute.xlu1 %2747  ;;  %v8436_v30 = vpop.permute.xlu0 %2745 }
 0x43a   : > { %v8439_v36 = vsel %vm2749_vm4, %v8436_v30, %v2748_v35  ;;  %v2754_v49 = vmul.f32 %v8436_v30, %v13724_v48  ;;  %v8445_v29 = vmul.f32 0.0, %v2748_v35  ;;  %v2757_v10 = vmul.f32 %v8436_v30, %v7339_v3 }
 0x43b   : > { %v2755_v27 = vmul.f32 %v8439_v36, %v7323_v21  ;;  %v2758_v39 = vmul.f32 %v8439_v36, %v13802_v43 }
 0x44a   : > { %v2804_v14 = vpop.permute.xlu0 %2803  ;;  %v2808_v28 = vpop.permute.xlu1 %2807 }
 0x44b   : > { %v2866_v44 = vmul.f32 %v2804_v14, %v2754_v49  ;;  %v2867_v5 = vmul.f32 %v2804_v14, %v2755_v27  ;;  %v2868_v46 = vmul.f32 %v2804_v14, %v8445_v29  ;;  %v2869_v52 = vmul.f32 %v2808_v28, %v2757_v10 }
 0x44c   : > { %v2870_v27 = vmul.f32 %v2808_v28, %v2758_v39  ;;  %v2871_v35 = vmul.f32 %v2808_v28, %v8445_v29  ;;  %v2761_v14 = vmul.f32 %v8439_v36, %v7373_v24  ;;  %v2764_v28 = vmul.f32 %v8439_v36, %v7389_v1 }
 0x44d   : > { %2962 = vrot.lane.b32.xlu1 %v2866_v44, %s6725_s14  ;;  %2964 = vrot.lane.b32.xlu0 %v2867_v5, %s6725_s14  ;;  %v2760_v44 = vmul.f32 %v8436_v30, %v7353_v12 }
 0x44e   : > { %v2812_v49 = vpop.permute.xlu1 %2811  ;;  %v2816_v19 = vpop.permute.xlu0 %2815 }
 0x44f   : > { %v2872_v5 = vmul.f32 %v2812_v49, %v2760_v44  ;;  %v2873_v10 = vmul.f32 %v2812_v49, %v2761_v14  ;;  %v2874_v39 = vmul.f32 %v2812_v49, %v8445_v29  ;;  %v2766_v14 = vmul.f32 %v8436_v30, %v7401_v4 }
 0x450   : > { %v2767_v49 = vmul.f32 %v8439_v36, %v7421_v41 }
 0x451   : > { %2966 = vrot.lane.b32.xlu1 %v2868_v46, %s6725_s14  ;;  %2968 = vrot.lane.b32.xlu0 %v2869_v52, %s6725_s14  ;;  %v2763_v52 = vmul.f32 %v8436_v30, %v7385_v26 }
 0x452   : > { %v2820_v44 = vpop.permute.xlu1 %2819 }
 0x453   : > { %v2875_v46 = vmul.f32 %v2816_v19, %v2763_v52  ;;  %v2824_v52 = vpop.permute.xlu0 %2823 }
 0x455   : > { %2970 = vrot.lane.b32.xlu1 %v2870_v27, %s6725_s14  ;;  %2972 = vrot.lane.b32.xlu0 %v2871_v35, %s6725_s14  ;;  %v2876_v27 = vmul.f32 %v2816_v19, %v2764_v28  ;;  %v2877_v35 = vmul.f32 %v2816_v19, %v8445_v29  ;;  %v2880_v19 = vmul.f32 %v2820_v44, %v8445_v29 }
 0x456   : > { %v2770_v28 = vmul.f32 %v8439_v36, %v7437_v7 }
 0x459   : > { %2974 = vrot.lane.b32.xlu1 %v2872_v5, %s6725_s14  ;;  %2976 = vrot.lane.b32.xlu0 %v2873_v10, %s6725_s14  ;;  %v2878_v5 = vmul.f32 %v2820_v44, %v2766_v14  ;;  %v2879_v10 = vmul.f32 %v2820_v44, %v2767_v49  ;;  %v2828_v14 = vpop.permute.xlu1 %2827  ;;  %v2772_v49 = vmul.f32 %v8436_v30, %v7449_v40 }
 0x45a   : > { %v2773_v44 = vmul.f32 %v8439_v36, %v7469_v47 }
 0x45d   : > { %2978 = vrot.lane.b32.xlu1 %v2874_v39, %s6725_s14  ;;  %2980 = vrot.lane.b32.xlu0 %v2875_v46, %s6725_s14  ;;  %v2769_v39 = vmul.f32 %v8436_v30, %v7433_v22 }
 0x45f   : > { %v2881_v46 = vmul.f32 %v2824_v52, %v2769_v39  ;;  %v2832_v39 = vpop.permute.xlu0 %2831 }
 0x461   : > { %2982 = vrot.lane.b32.xlu1 %v2876_v27, %s6725_s14  ;;  %2984 = vrot.lane.b32.xlu0 %v2877_v35, %s6725_s14  ;;  %v2882_v27 = vmul.f32 %v2824_v52, %v2770_v28  ;;  %v2883_v35 = vmul.f32 %v2824_v52, %v8445_v29  ;;  %v2886_v52 = vmul.f32 %v2828_v14, %v8445_v29 }
 0x462   : > { %v2776_v28 = vmul.f32 %v8439_v36, %v7485_v59 }
 0x465   : > { %2986 = vrot.lane.b32.xlu1 %v2878_v5, %s6725_s14  ;;  %2988 = vrot.lane.b32.xlu0 %v2879_v10, %s6725_s14  ;;  %v2884_v5 = vmul.f32 %v2828_v14, %v2772_v49  ;;  %v2885_v10 = vmul.f32 %v2828_v14, %v2773_v44  ;;  %v2836_v49 = vpop.permute.xlu1 %2835  ;;  %v2778_v44 = vmul.f32 %v8436_v30, %v7497_v57 }
 0x466   : > { %v2779_v14 = vmul.f32 %v8439_v36, %v7517_v56 }
 0x469   : > { %2990 = vrot.lane.b32.xlu1 %v2880_v19, %s6725_s14  ;;  %2992 = vrot.lane.b32.xlu0 %v2881_v46, %s6725_s14  ;;  %v2775_v19 = vmul.f32 %v8436_v30, %v7481_v50 }
 0x46b   : > { %v2887_v46 = vmul.f32 %v2832_v39, %v2775_v19  ;;  %v2840_v19 = vpop.permute.xlu0 %2839 }
 0x46d   : > { %2994 = vrot.lane.b32.xlu1 %v2882_v27, %s6725_s14  ;;  %2996 = vrot.lane.b32.xlu0 %v2883_v35, %s6725_s14  ;;  %v2888_v27 = vmul.f32 %v2832_v39, %v2776_v28  ;;  %v2889_v35 = vmul.f32 %v2832_v39, %v8445_v29  ;;  %v2892_v39 = vmul.f32 %v2836_v49, %v8445_v29 }
 0x46e   : > { %v2782_v28 = vmul.f32 %v8439_v36, %v7533_v11 }
 0x471   : > { %2998 = vrot.lane.b32.xlu1 %v2884_v5, %s6725_s14  ;;  %3000 = vrot.lane.b32.xlu0 %v2885_v10, %s6725_s14  ;;  %v2890_v5 = vmul.f32 %v2836_v49, %v2778_v44  ;;  %v2891_v10 = vmul.f32 %v2836_v49, %v2779_v14  ;;  %v2844_v44 = vpop.permute.xlu1 %2843  ;;  %v2784_v14 = vmul.f32 %v8436_v30, %v7545_v61 }
 0x472   : > { %v2785_v49 = vmul.f32 %v8439_v36, %v7552_v62 }
 0x475   : > { %3002 = vrot.lane.b32.xlu1 %v2886_v52, %s6725_s14  ;;  %3004 = vrot.lane.b32.xlu0 %v2887_v46, %s6725_s14  ;;  %v2781_v52 = vmul.f32 %v8436_v30, %v7529_v63 }
 0x477   : > { %v2893_v46 = vmul.f32 %v2840_v19, %v2781_v52  ;;  %v2848_v52 = vpop.permute.xlu0 %2847 }
 0x479   : > { %3006 = vrot.lane.b32.xlu1 %v2888_v27, %s6725_s14  ;;  %3008 = vrot.lane.b32.xlu0 %v2889_v35, %s6725_s14  ;;  %v2894_v27 = vmul.f32 %v2840_v19, %v2782_v28  ;;  %v2895_v35 = vmul.f32 %v2840_v19, %v8445_v29  ;;  %v2898_v19 = vmul.f32 %v2844_v44, %v8445_v29 }
 0x47a   : > { %v2788_v28 = vmul.f32 %v8439_v36, %v7563_v45 }
 0x47d   : > { %3010 = vrot.lane.b32.xlu1 %v2890_v5, %s6725_s14  ;;  %3012 = vrot.lane.b32.xlu0 %v2891_v10, %s6725_s14  ;;  %v2896_v5 = vmul.f32 %v2844_v44, %v2784_v14  ;;  %v2897_v10 = vmul.f32 %v2844_v44, %v2785_v49  ;;  %v2852_v14 = vpop.permute.xlu1 %2851  ;;  %v2790_v49 = vmul.f32 %v8436_v30, %v7579_v9 }
 0x47e   : > { %v2791_v44 = vmul.f32 %v8439_v36, %v7588_v25 }
 0x481   : > { %3014 = vrot.lane.b32.xlu1 %v2892_v39, %s6725_s14  ;;  %3016 = vrot.lane.b32.xlu0 %v2893_v46, %s6725_s14  ;;  %v2787_v39 = vmul.f32 %v8436_v30, %v7570_v58 }
 0x483   : > { %v2899_v46 = vmul.f32 %v2848_v52, %v2787_v39  ;;  %v2856_v39 = vpop.permute.xlu0 %2855 }
 0x485   : > { %3018 = vrot.lane.b32.xlu1 %v2894_v27, %s6725_s14  ;;  %3020 = vrot.lane.b32.xlu0 %v2895_v35, %s6725_s14  ;;  %v2900_v27 = vmul.f32 %v2848_v52, %v2788_v28  ;;  %v2901_v35 = vmul.f32 %v2848_v52, %v8445_v29  ;;  %v2904_v52 = vmul.f32 %v2852_v14, %v8445_v29 }
 0x486   : > { %v2794_v28 = vmul.f32 %v8439_v36, %v7597_v32 }
 0x489   : > { %3022 = vrot.lane.b32.xlu1 %v2896_v5, %s6725_s14  ;;  %3024 = vrot.lane.b32.xlu0 %v2897_v10, %s6725_s14  ;;  %v2902_v5 = vmul.f32 %v2852_v14, %v2790_v49  ;;  %v2903_v10 = vmul.f32 %v2852_v14, %v2791_v44  ;;  %v2860_v49 = vpop.permute.xlu1 %2859  ;;  %v2796_v44 = vmul.f32 %v8436_v30, %v7617_v2 }
 0x48a   : > { %v2797_v14 = vmul.f32 %v8439_v36, %v7624_v13 }
 0x48d   : > { %3026 = vrot.lane.b32.xlu1 %v2898_v19, %s6725_s14  ;;  %3028 = vrot.lane.b32.xlu0 %v2899_v46, %s6725_s14  ;;  %v2793_v19 = vmul.f32 %v8436_v30, %v7606_v34 }
 0x48f   : > { %v2905_v46 = vmul.f32 %v2856_v39, %v2793_v19  ;;  %v2864_v19 = vpop.permute.xlu0 %2863 }
 0x491   : > { %3030 = vrot.lane.b32.xlu1 %v2900_v27, %s6725_s14  ;;  %3032 = vrot.lane.b32.xlu0 %v2901_v35, %s6725_s14  ;;  %v2906_v27 = vmul.f32 %v2856_v39, %v2794_v28  ;;  %v2907_v35 = vmul.f32 %v2856_v39, %v8445_v29  ;;  %v2910_v39 = vmul.f32 %v2860_v49, %v8445_v29 }
 0x492   : > { %v2800_v28 = vmul.f32 %v8439_v36, %v7718_v8  ;;  %v8579_v36 = vld [vmem:[%s13191_s3] sm:$0xff] }
 0x495   : > { %3034 = vrot.lane.b32.xlu1 %v2902_v5, %s6725_s14  ;;  %3036 = vrot.lane.b32.xlu0 %v2903_v10, %s6725_s14  ;;  %v2908_v5 = vmul.f32 %v2860_v49, %v2796_v44  ;;  %v2909_v10 = vmul.f32 %v2860_v49, %v2797_v14  ;;  %v2913_v44 = vmul.f32 %v2864_v19, %v8445_v29  ;;  %v8585_v29 = vld [vmem:[%s13191_s3 + $0x8] sm:$0xff]  ;;  %v8593_v14 = vld [vmem:[%s13191_s3 + $0x18] sm:$0xff] }
 0x499   : > { %3038 = vrot.lane.b32.xlu1 %v2904_v52, %s6725_s14  ;;  %3040 = vrot.lane.b32.xlu0 %v2905_v46, %s6725_s14  ;;  %v2799_v52 = vmul.f32 %v8436_v30, %v7640_v53 }
 0x49b   : > { %v2911_v46 = vmul.f32 %v2864_v19, %v2799_v52 }
 0x49d   : > { %3042 = vrot.lane.b32.xlu1 %v2906_v27, %s6725_s14  ;;  %3044 = vrot.lane.b32.xlu0 %v2907_v35, %s6725_s14  ;;  %v6445_v27 = vld [vmem:[%s13195_s7 + $0x6] ss:$8 sm:$0x3]  ;;  %v2912_v35 = vmul.f32 %v2864_v19, %v2800_v28 }
 0x49e   : > { %v3193_v30 = vrot.slane %v6445_v27, %v13656_v54  ;;  %v3197_v49 = vrot.slane %v6445_v27, %v13659_v51 }
 0x4a1   : > { %3046 = vrot.lane.b32.xlu1 %v2908_v5, %s6725_s14  ;;  %3048 = vrot.lane.b32.xlu0 %v2909_v10, %s6725_s14  ;;  %v8600_v5 = vld [vmem:[%s13191_s3 + $0x28] sm:$0xff]  ;;  %v8611_v10 = vld [vmem:[%s13191_s3 + $0x38] sm:$0xff] }
 0x4a5   : > { %3050 = vrot.lane.b32.xlu1 %v2910_v39, %s6725_s14  ;;  %3052 = vrot.lane.b32.xlu0 %v2911_v46, %s6725_s14 }
 0x4a9   : > { %3054 = vrot.lane.b32.xlu1 %v2912_v35, %s6725_s14  ;;  %3056 = vrot.lane.b32.xlu0 %v2913_v44, %s6725_s14  ;;  %v8654_v44 = vld [vmem:[%s13191_s3 + $0x78] sm:$0xff] }
 0x4ad   : > { %3198 = vrot.lane.b32.xlu1 %v3193_v30, %s6726_s18  ;;  %3200 = vrot.lane.b32.xlu0 %v3197_v49, %s6726_s18  ;;  %s6728_s18 = smov 96  }
 0x4b1   : > { %3256 = vperm.xlu1 %6544, %v8579_v36   ;;  %3260 = vperm.xlu0 %6545, %v8585_v29  }
 0x4b5   : > { %3264 = vperm.xlu1 %6544, %v8104_v33   ;;  %3272 = vperm.xlu0 %6545, %v8110_v42  }
 0x4b9   : > { %3268 = vperm.xlu1 %6544, %v8593_v14   ;;  %3280 = vperm.xlu0 %6545, %v8117_v55  }
 0x4bd   : > { %3276 = vperm.xlu1 %6544, %v8600_v5   ;;  %3288 = vperm.xlu0 %6545, %v8124_v31   ;;  %v8622_v31 = vld [vmem:[%s13191_s3 + $0x48] sm:$0xff] }
 0x4bf   : > { %v8604_v33 = vpop.permute.xlu1 %2962  ;;  %v8606_v42 = vpop.permute.xlu0 %2964 }
 0x4c0   : > { %13803 = vst [vmem:[#allocation60_spill] sm:$0xff] %v8604_v33  ;;  %13804 = vst [vmem:[#allocation210_spill] sm:$0xff] %v8606_v42 }
 0x4c1   : > { %3284 = vperm.xlu1 %6544, %v8611_v10   ;;  %3296 = vperm.xlu0 %6545, %v8131_v16   ;;  %v8633_v16 = vld [vmem:[%s13191_s3 + $0x58] sm:$0xff] }
 0x4c3   : > { %v8615_v55 = vpop.permute.xlu1 %2966  ;;  %v8617_v19 = vpop.permute.xlu0 %2968 }
 0x4c4   : > { %13805 = vst [vmem:[#allocation211_spill] sm:$0xff] %v8615_v55  ;;  %13806 = vst [vmem:[#allocation212_spill] sm:$0xff] %v8617_v19 }
 0x4c5   : > { %3292 = vperm.xlu1 %6544, %v8622_v31   ;;  %3304 = vperm.xlu0 %6545, %v8142_v0   ;;  %v8644_v0 = vld [vmem:[%s13191_s3 + $0x68] sm:$0xff] }
 0x4c7   : > { %v8626_v52 = vpop.permute.xlu1 %2970  ;;  %v8628_v39 = vpop.permute.xlu0 %2972 }
 0x4c8   : > { %13807 = vst [vmem:[#allocation213_spill] sm:$0xff] %v8626_v52  ;;  %13808 = vst [vmem:[#allocation214_spill] sm:$0xff] %v8628_v39 }
 0x4c9   : > { %3300 = vperm.xlu1 %6544, %v8633_v16   ;;  %3312 = vperm.xlu0 %6545, %v8153_v15  }
 0x4cb   : > { %v8637_v46 = vpop.permute.xlu1 %2974  ;;  %v8639_v28 = vpop.permute.xlu0 %2976 }
 0x4cc   : > { %13809 = vst [vmem:[#allocation215_spill] sm:$0xff] %v8637_v46  ;;  %13810 = vst [vmem:[#allocation216_spill] sm:$0xff] %v8639_v28 }
 0x4cd   : > { %3308 = vperm.xlu1 %6544, %v8644_v0  }
 0x4cf   : > { %v8647_v27 = vpop.permute.xlu1 %2978  ;;  %v8649_v35 = vpop.permute.xlu0 %2980 }
 0x4d0   : > { %13811 = vst [vmem:[#allocation217_spill] sm:$0xff] %v8647_v27  ;;  %13812 = vst [vmem:[#allocation218_spill] sm:$0xff] %v8649_v35 }
 0x4d1   : > { %3316 = vperm.xlu1 %6544, %v8654_v44  }
 0x4d3   : > { %v8657_v15 = vpop.permute.xlu1 %2982  ;;  %v8659_v30 = vpop.permute.xlu0 %2984 }
 0x4d4   : > { %13813 = vst [vmem:[#allocation219_spill] sm:$0xff] %v8657_v15  ;;  %13814 = vst [vmem:[#allocation220_spill] sm:$0xff] %v8659_v30 }
 0x4d7   : > { %v8661_v49 = vpop.permute.xlu1 %2986  ;;  %v8663_v46 = vpop.permute.xlu0 %2988 }
 0x4d8   : > { %13815 = vst [vmem:[#allocation221_spill] sm:$0xff] %v8661_v49  ;;  %13816 = vst [vmem:[#allocation222_spill] sm:$0xff] %v8663_v46 }
 0x4db   : > { %v8665_v28 = vpop.permute.xlu1 %2990  ;;  %v8667_v27 = vpop.permute.xlu0 %2992 }
 0x4dc   : > { %13817 = vst [vmem:[#allocation223_spill] sm:$0xff] %v8665_v28  ;;  %13818 = vst [vmem:[#allocation224_spill] sm:$0xff] %v8667_v27  ;;  %v13379_v27 = vmov 7  }
 0x4dd   : > { %6547 = vset.pattern.permute.xlu1 %v13379_v27  ;;  %6546 = vset.pattern.permute.xlu0 %v13379_v27 }
 0x4df   : > { %v8669_v35 = vpop.permute.xlu1 %2994  ;;  %v8671_v55 = vpop.permute.xlu0 %2996 }
 0x4e0   : > { %13819 = vst [vmem:[#allocation225_spill] sm:$0xff] %v8669_v35  ;;  %13820 = vst [vmem:[#allocation226_spill] sm:$0xff] %v8671_v55 }
 0x4e3   : > { %v8673_v33 = vpop.permute.xlu1 %2998  ;;  %v8675_v42 = vpop.permute.xlu0 %3000 }
 0x4e4   : > { %13821 = vst [vmem:[#allocation227_spill] sm:$0xff] %v8673_v33  ;;  %13822 = vst [vmem:[#allocation228_spill] sm:$0xff] %v8675_v42 }
 0x4e7   : > { %v8677_v39 = vpop.permute.xlu1 %3002  ;;  %v8679_v15 = vpop.permute.xlu0 %3004 }
 0x4e8   : > { %13823 = vst [vmem:[#allocation229_spill] sm:$0xff] %v8677_v39  ;;  %13824 = vst [vmem:[#allocation230_spill] sm:$0xff] %v8679_v15 }
 0x4eb   : > { %v8681_v30 = vpop.permute.xlu1 %3006  ;;  %v8683_v49 = vpop.permute.xlu0 %3008 }
 0x4ec   : > { %13825 = vst [vmem:[#allocation231_spill] sm:$0xff] %v8681_v30  ;;  %13826 = vst [vmem:[#allocation232_spill] sm:$0xff] %v8683_v49 }
 0x4ef   : > { %v8685_v46 = vpop.permute.xlu1 %3010  ;;  %v8687_v28 = vpop.permute.xlu0 %3012 }
 0x4f0   : > { %13827 = vst [vmem:[#allocation233_spill] sm:$0xff] %v8685_v46  ;;  %13828 = vst [vmem:[#allocation234_spill] sm:$0xff] %v8687_v28 }
 0x4f3   : > { %v8691_v33 = vpop.permute.xlu1 %3014  ;;  %v8693_v42 = vpop.permute.xlu0 %3016 }
 0x4f4   : > { %13829 = vst [vmem:[#allocation235_spill] sm:$0xff] %v8691_v33  ;;  %13830 = vst [vmem:[#allocation236_spill] sm:$0xff] %v8693_v42 }
 0x4f7   : > { %v8695_v39 = vpop.permute.xlu1 %3018  ;;  %v8697_v15 = vpop.permute.xlu0 %3020 }
 0x4f8   : > { %13831 = vst [vmem:[#allocation237_spill] sm:$0xff] %v8695_v39  ;;  %13832 = vst [vmem:[#allocation238_spill] sm:$0xff] %v8697_v15 }
 0x4fb   : > { %v8699_v30 = vpop.permute.xlu1 %3022  ;;  %v8701_v49 = vpop.permute.xlu0 %3024 }
 0x4fc   : > { %13833 = vst [vmem:[#allocation239_spill] sm:$0xff] %v8699_v30  ;;  %13834 = vst [vmem:[#allocation240_spill] sm:$0xff] %v8701_v49 }
 0x4ff   : > { %v8703_v46 = vpop.permute.xlu1 %3026  ;;  %v8705_v28 = vpop.permute.xlu0 %3028 }
 0x500   : > { %13835 = vst [vmem:[#allocation241_spill] sm:$0xff] %v8703_v46  ;;  %13836 = vst [vmem:[#allocation242_spill] sm:$0xff] %v8705_v28 }
 0x503   : > { %v8707_v55 = vpop.permute.xlu1 %3030  ;;  %v8709_v35 = vpop.permute.xlu0 %3032 }
 0x504   : > { %13837 = vst [vmem:[#allocation243_spill] sm:$0xff] %v8707_v55  ;;  %13838 = vst [vmem:[#allocation244_spill] sm:$0xff] %v8709_v35 }
 0x507   : > { %v8711_v27 = vpop.permute.xlu1 %3034  ;;  %v8713_v33 = vpop.permute.xlu0 %3036 }
 0x508   : > { %13839 = vst [vmem:[#allocation245_spill] sm:$0xff] %v8711_v27  ;;  %13840 = vst [vmem:[#allocation246_spill] sm:$0xff] %v8713_v33 }
 0x50b   : > { %v8715_v42 = vpop.permute.xlu1 %3038  ;;  %v8717_v39 = vpop.permute.xlu0 %3040 }
 0x50c   : > { %13841 = vst [vmem:[#allocation247_spill] sm:$0xff] %v8715_v42  ;;  %13842 = vst [vmem:[#allocation248_spill] sm:$0xff] %v8717_v39 }
 0x50f   : > { %v8719_v15 = vpop.permute.xlu1 %3042  ;;  %v8721_v30 = vpop.permute.xlu0 %3044 }
 0x510   : > { %13843 = vst [vmem:[#allocation249_spill] sm:$0xff] %v8719_v15  ;;  %13844 = vst [vmem:[#allocation250_spill] sm:$0xff] %v8721_v30 }
 0x513   : > { %v8723_v49 = vpop.permute.xlu1 %3046  ;;  %v8725_v46 = vpop.permute.xlu0 %3048 }
 0x514   : > { %13845 = vst [vmem:[#allocation251_spill] sm:$0xff] %v8723_v49  ;;  %13846 = vst [vmem:[#allocation252_spill] sm:$0xff] %v8725_v46 }
 0x517   : > { %v8727_v28 = vpop.permute.xlu1 %3050  ;;  %v8729_v55 = vpop.permute.xlu0 %3052 }
 0x518   : > { %13847 = vst [vmem:[#allocation253_spill] sm:$0xff] %v8727_v28  ;;  %13848 = vst [vmem:[#allocation254_spill] sm:$0xff] %v8729_v55 }
 0x51b   : > { %v8731_v35 = vpop.permute.xlu1 %3054  ;;  %v8733_v27 = vpop.permute.xlu0 %3056 }
 0x51c   : > { %13849 = vst [vmem:[#allocation255_spill] sm:$0xff] %v8731_v35  ;;  %13850 = vst [vmem:[#allocation256_spill] sm:$0xff] %v8733_v27 }
 0x51f   : > { %v8735_v33 = vpop.permute.xlu1 %3198  ;;  %v3201_v42 = vpop.permute.xlu0 %3200 }
 0x520   : > { %13851 = vst [vmem:[#allocation257_spill] sm:$0xff] %v8735_v33  ;;  %v8738_v39 = vsel %vm3202_vm5, %v8735_v33, %v3201_v42  ;;  %v3207_v49 = vmul.f32 %v8735_v33, %v13724_v48  ;;  %v8744_v35 = vmul.f32 0.0, %v3201_v42  ;;  %v3210_v27 = vmul.f32 %v8735_v33, %v7339_v3 }
 0x521   : > { %13852 = vst [vmem:[#allocation258_spill] sm:$0xff] %v8738_v39  ;;  %v3208_v46 = vmul.f32 %v8738_v39, %v7323_v21  ;;  %v3211_v17 = vmul.f32 %v8738_v39, %v13802_v43  ;;  %v3213_v37 = vmul.f32 %v8735_v33, %v7353_v12 }
 0x522   : > { %13853 = vst [vmem:[#allocation259_spill] sm:$0xff] %v8744_v35 }
 0x530   : > { %v3257_v28 = vpop.permute.xlu1 %3256  ;;  %v3261_v15 = vpop.permute.xlu0 %3260 }
 0x531   : > { %v3319_v30 = vmul.f32 %v3257_v28, %v3207_v49  ;;  %v3320_v55 = vmul.f32 %v3257_v28, %v3208_v46  ;;  %v3321_v19 = vmul.f32 %v3257_v28, %v8744_v35  ;;  %v3322_v52 = vmul.f32 %v3261_v15, %v3210_v27 }
 0x532   : > { %v3323_v46 = vmul.f32 %v3261_v15, %v3211_v17  ;;  %v3324_v49 = vmul.f32 %v3261_v15, %v8744_v35  ;;  %v3217_v15 = vmul.f32 %v8738_v39, %v7389_v1 }
 0x533   : > { %3415 = vrot.lane.b32.xlu0 %v3319_v30, %s6728_s18  ;;  %3417 = vrot.lane.b32.xlu1 %v3320_v55, %s6728_s18  ;;  %v3214_v55 = vmul.f32 %v8738_v39, %v7373_v24 }
 0x534   : > { %v3265_v42 = vpop.permute.xlu1 %3264 }
 0x535   : > { %v3325_v28 = vmul.f32 %v3265_v42, %v3213_v37  ;;  %v3326_v27 = vmul.f32 %v3265_v42, %v3214_v55  ;;  %v3327_v17 = vmul.f32 %v3265_v42, %v8744_v35  ;;  %v3219_v55 = vmul.f32 %v8735_v33, %v7401_v4 }
 0x537   : > { %3419 = vrot.lane.b32.xlu0 %v3321_v19, %s6728_s18  ;;  %3421 = vrot.lane.b32.xlu1 %v3322_v52, %s6728_s18  ;;  %v3216_v19 = vmul.f32 %v8735_v33, %v7385_v26 }
 0x538   : > { %v3269_v30 = vpop.permute.xlu1 %3268 }
 0x539   : > { %v3328_v52 = vmul.f32 %v3269_v30, %v3216_v19  ;;  %v3329_v37 = vmul.f32 %v3269_v30, %v3217_v15  ;;  %v3223_v15 = vmul.f32 %v8738_v39, %v7437_v7 }
 0x53b   : > { %3423 = vrot.lane.b32.xlu0 %v3323_v46, %s6728_s18  ;;  %3425 = vrot.lane.b32.xlu1 %v3324_v49, %s6728_s18  ;;  %v3330_v46 = vmul.f32 %v3269_v30, %v8744_v35  ;;  %v3273_v49 = vpop.permute.xlu0 %3272 }
 0x53c   : > { %v3331_v42 = vmul.f32 %v3273_v49, %v3219_v55  ;;  %v3277_v19 = vpop.permute.xlu1 %3276  ;;  %v3333_v30 = vmul.f32 %v3273_v49, %v8744_v35 }
 0x53f   : > { %3427 = vrot.lane.b32.xlu0 %v3325_v28, %s6728_s18  ;;  %3429 = vrot.lane.b32.xlu1 %v3326_v27, %s6728_s18  ;;  %v3220_v28 = vmul.f32 %v8738_v39, %v7421_v41  ;;  %v3281_v55 = vpop.permute.xlu0 %3280 }
 0x541   : > { %v3332_v27 = vmul.f32 %v3273_v49, %v3220_v28  ;;  %v3225_v28 = vmul.f32 %v8735_v33, %v7449_v40 }
 0x543   : > { %3431 = vrot.lane.b32.xlu0 %v3327_v17, %s6728_s18  ;;  %3433 = vrot.lane.b32.xlu1 %v3328_v52, %s6728_s18  ;;  %v3222_v17 = vmul.f32 %v8735_v33, %v7433_v22  ;;  %v3337_v49 = vmul.f32 %v3281_v55, %v3225_v28  ;;  %v3289_v28 = vpop.permute.xlu0 %3288 }
 0x545   : > { %v3334_v52 = vmul.f32 %v3277_v19, %v3222_v17  ;;  %v3285_v17 = vpop.permute.xlu1 %3284 }
 0x547   : > { %3435 = vrot.lane.b32.xlu0 %v3329_v37, %s6728_s18  ;;  %3437 = vrot.lane.b32.xlu1 %v3330_v46, %s6728_s18  ;;  %v3335_v37 = vmul.f32 %v3277_v19, %v3223_v15  ;;  %v3336_v46 = vmul.f32 %v3277_v19, %v8744_v35  ;;  %v3339_v19 = vmul.f32 %v3281_v55, %v8744_v35 }
 0x548   : > { %v3229_v15 = vmul.f32 %v8738_v39, %v7485_v59 }
 0x54b   : > { %3441 = vrot.lane.b32.xlu1 %v3332_v27, %s6728_s18  ;;  %3439 = vrot.lane.b32.xlu0 %v3331_v42, %s6728_s18  ;;  %v3226_v42 = vmul.f32 %v8738_v39, %v7469_v47 }
 0x54d   : > { %v3338_v27 = vmul.f32 %v3281_v55, %v3226_v42  ;;  %v3231_v42 = vmul.f32 %v8735_v33, %v7497_v57 }
 0x54f   : > { %3445 = vrot.lane.b32.xlu1 %v3334_v52, %s6728_s18  ;;  %3443 = vrot.lane.b32.xlu0 %v3333_v30, %s6728_s18  ;;  %v3228_v30 = vmul.f32 %v8735_v33, %v7481_v50  ;;  %v3343_v55 = vmul.f32 %v3289_v28, %v3231_v42  ;;  %v8820_v42 = vpop.permute.xlu0 %3296 }
 0x550   : > { %13854 = vst [vmem:[#allocation260_spill] sm:$0xff] %v8820_v42 }
 0x551   : > { %v3340_v52 = vmul.f32 %v3285_v17, %v3228_v30  ;;  %v3293_v30 = vpop.permute.xlu1 %3292 }
 0x553   : > { %3449 = vrot.lane.b32.xlu1 %v3336_v46, %s6728_s18  ;;  %3447 = vrot.lane.b32.xlu0 %v3335_v37, %s6728_s18  ;;  %v3341_v37 = vmul.f32 %v3285_v17, %v3229_v15  ;;  %v3342_v46 = vmul.f32 %v3285_v17, %v8744_v35  ;;  %v3345_v17 = vmul.f32 %v3289_v28, %v8744_v35 }
 0x554   : > { %v3235_v15 = vmul.f32 %v8738_v39, %v7533_v11 }
 0x557   : > { %3453 = vrot.lane.b32.xlu1 %v3338_v27, %s6728_s18  ;;  %3451 = vrot.lane.b32.xlu0 %v3337_v49, %s6728_s18  ;;  %v3232_v49 = vmul.f32 %v8738_v39, %v7517_v56 }
 0x559   : > { %v3344_v27 = vmul.f32 %v3289_v28, %v3232_v49  ;;  %v3237_v49 = vmul.f32 %v8735_v33, %v7545_v61 }
 0x55b   : > { %3457 = vrot.lane.b32.xlu1 %v3340_v52, %s6728_s18  ;;  %3455 = vrot.lane.b32.xlu0 %v3339_v19, %s6728_s18  ;;  %v3234_v19 = vmul.f32 %v8735_v33, %v7529_v63  ;;  %v3349_v28 = vmul.f32 %v8820_v42, %v3237_v49  ;;  %v13855_v49 = vmov 7  }
 0x55d   : > { %v3346_v52 = vmul.f32 %v3293_v30, %v3234_v19  ;;  %v6446_v19 = vld [vmem:[%s13195_s7 + $0x7] ss:$8 sm:$0x3] }
 0x55f   : > { %3461 = vrot.lane.b32.xlu1 %v3342_v46, %s6728_s18  ;;  %3459 = vrot.lane.b32.xlu0 %v3341_v37, %s6728_s18  ;;  %v3347_v37 = vmul.f32 %v3293_v30, %v3235_v15  ;;  %v3348_v46 = vmul.f32 %v3293_v30, %v8744_v35  ;;  %v6447_v30 = vld [vmem:[%s13195_s7 + $0x10] ss:$8 sm:$0x3] }
 0x560   : > { %v4103_v15 = vrot.slane %v6447_v30, %v13659_v51  ;;  %v13897_v35 = vld [vmem:[#allocation26_spill] sm:$0xff] }
 0x563   : > { %3465 = vrot.lane.b32.xlu1 %v3344_v27, %s6728_s18  ;;  %3463 = vrot.lane.b32.xlu0 %v3343_v55, %s6728_s18  ;;  %v3238_v55 = vmul.f32 %v8738_v39, %v7552_v62 }
 0x565   : > { %v3350_v27 = vmul.f32 %v8820_v42, %v3238_v55  ;;  %v6698_v55 = vld [vmem:[%s13191_s3 + $0x30] sm:$0xff] }
 0x567   : > { %3469 = vrot.lane.b32.xlu1 %v3346_v52, %s6728_s18  ;;  %3467 = vrot.lane.b32.xlu0 %v3345_v17, %s6728_s18  ;;  %v13400_v17 = vmov 8   ;;  %v6697_v52 = vld [vmem:[%s13191_s3 + $0x10] sm:$0xff] }
 0x56b   : > { %3473 = vrot.lane.b32.xlu1 %v3348_v46, %s6728_s18  ;;  %3471 = vrot.lane.b32.xlu0 %v3347_v37, %s6728_s18  ;;  %v3646_v37 = vrot.slane %v6446_v19, %v13656_v54  ;;  %v3650_v46 = vrot.slane %v6446_v19, %v13659_v51  ;;  %v8864_v51 = vld [vmem:[%s13191_s3 + $0x70] sm:$0xff] }
 0x56f   : > { %3477 = vrot.lane.b32.xlu1 %v3350_v27, %s6728_s18  ;;  %3475 = vrot.lane.b32.xlu0 %v3349_v28, %s6728_s18  ;;  %v8856_v28 = vld [vmem:[%s13191_s3 + $0x50] sm:$0xff]  ;;  %v4099_v27 = vrot.slane %v6447_v30, %v13656_v54  ;;  %v6701_v54 = vld [vmem:[%s13191_s3 + $0x20] sm:$0xff]  ;;  %v8876_v30 = vpop.permute.xlu1 %3300 }
 0x570   : > { %13856 = vst [vmem:[#allocation261_spill] sm:$0xff] %v8876_v30 }
 0x573   : > { %3713 = vperm.xlu1 %6547, %v8585_v29   ;;  %3709 = vperm.xlu0 %6546, %v8579_v36   ;;  %v8884_v19 = vpop.permute.xlu1 %3308 }
 0x574   : > { %13858 = vst [vmem:[#allocation263_spill] sm:$0xff] %v8884_v19 }
 0x577   : > { %6548 = vset.pattern.permute.xlu1 %v13400_v17  ;;  %3717 = vperm.xlu0 %6546, %v6697_v52  }
 0x578   : > { %4162 = vperm.xlu1 %6548, %v8579_v36  }
 0x57b   : > { %4106 = vrot.lane.b32.xlu0 %v4103_v15, %s6730_s25 }
 0x57c   : > { %3651 = vrot.lane.b32.xlu1 %v3646_v37, %s6731_s26  ;;  %v8894_v37 = vpop.permute.xlu1 %3316 }
 0x57d   : > { %6549 = vset.pattern.permute.xlu1 %v13855_v49  ;;  %13860 = vst [vmem:[#allocation265_spill] sm:$0xff] %v8894_v37 }
 0x57f   : > { %3733 = vperm.xlu0 %6546, %v6698_v55  }
 0x580   : > { %3653 = vrot.lane.b32.xlu1 %v3650_v46, %s6731_s26  ;;  %s6732_s26 = smov 95  }
 0x583   : > { %3749 = vperm.xlu0 %6546, %v8856_v28  }
 0x584   : > { %3721 = vperm.xlu1 %6549, %v8593_v14  }
 0x587   : > { %3765 = vperm.xlu0 %6546, %v8864_v51  }
 0x588   : > { %4104 = vrot.lane.b32.xlu1 %v4099_v27, %s6730_s25 }
 0x589   : > { %6550 = vset.pattern.permute.xlu1 %v13400_v17 }
 0x58b   : > { %6561 = vset.pattern.permute.xlu0 %v13400_v17 }
 0x58c   : > { %4170 = vperm.xlu1 %6550, %v6697_v52   ;;  %4166 = vperm.xlu0 %6561, %v8585_v29   ;;  %v8882_v29 = vpop.permute.xlu0 %3304 }
 0x58d   : > { %13857 = vst [vmem:[#allocation262_spill] sm:$0xff] %v8882_v29 }
 0x590   : > { %6551 = vset.pattern.permute.xlu1 %v13855_v49  ;;  %4174 = vperm.xlu0 %6561, %v8593_v14   ;;  %v6702_v14 = vld [vmem:[%s13191_s3 + $0x40] sm:$0xff]  ;;  %v8892_v15 = vpop.permute.xlu0 %3312 }
 0x591   : > { %3725 = vperm.xlu1 %6551, %v6701_v54   ;;  %13859 = vst [vmem:[#allocation264_spill] sm:$0xff] %v8892_v15  ;;  %v13869_v15 = vmov 8  }
 0x594   : > { %4178 = vperm.xlu0 %6561, %v6701_v54  }
 0x595   : > { %3729 = vperm.xlu1 %6551, %v8600_v5  }
 0x598   : > { %4190 = vperm.xlu0 %6561, %v8611_v10  }
 0x599   : > { %6552 = vset.pattern.permute.xlu1 %v13400_v17 }
 0x59a   : > { %4182 = vperm.xlu1 %6552, %v8600_v5   ;;  %v6703_v5 = vld [vmem:[%s13191_s3 + $0x60] sm:$0xff] }
 0x59c   : > { %4194 = vperm.xlu0 %6561, %v6702_v14  }
 0x59e   : > { %6553 = vset.pattern.permute.xlu1 %v13855_v49 }
 0x59f   : > { %3737 = vperm.xlu1 %6553, %v8611_v10  }
 0x5a0   : > { %4206 = vperm.xlu0 %6561, %v8633_v16  }
 0x5a3   : > { %6554 = vset.pattern.permute.xlu1 %v13400_v17  ;;  %v13865_v17 = vmov 0  }
 0x5a4   : > { %4186 = vperm.xlu1 %6554, %v6698_v55   ;;  %4210 = vperm.xlu0 %6561, %v6703_v5  }
 0x5a5   : > { %v8900_v46 = vpop.permute.xlu1 %3417  ;;  %v8902_v27 = vpop.permute.xlu0 %3415 }
 0x5a6   : > { %13861 = vst [vmem:[#allocation266_spill] sm:$0xff] %v8900_v46  ;;  %13862 = vst [vmem:[#allocation267_spill] sm:$0xff] %v8902_v27 }
 0x5a8   : > { %6555 = vset.pattern.permute.xlu1 %v13855_v49  ;;  %4222 = vperm.xlu0 %6561, %v8654_v44  }
 0x5a9   : > { %v8906_v10 = vpop.permute.xlu1 %3421  ;;  %3741 = vperm.xlu1 %6555, %v6702_v14   ;;  %v8908_v37 = vpop.permute.xlu0 %3419 }
 0x5aa   : > { %13863 = vst [vmem:[#allocation268_spill] sm:$0xff] %v8906_v10  ;;  %13864 = vst [vmem:[#allocation269_spill] sm:$0xff] %v8908_v37 }
 0x5ac   : > { %6564 = vset.pattern.permute.xlu0 %v13865_v17 }
 0x5ad   : > { %v8911_v19 = vpop.permute.xlu1 %3425  ;;  %3745 = vperm.xlu1 %6555, %v8622_v31   ;;  %806 = vperm.xlu0 %6564, %v8579_v36   ;;  %v8915_v46 = vpop.permute.xlu0 %3423 }
 0x5ae   : > { %13866 = vst [vmem:[#allocation270_spill] sm:$0xff] %v8911_v19  ;;  %13867 = vst [vmem:[#allocation271_spill] sm:$0xff] %v8915_v46  ;;  %v13896_v19 = vld [vmem:[#allocation25_spill] sm:$0xff] }
 0x5b1   : > { %v8917_v27 = vpop.permute.xlu1 %3429  ;;  %6556 = vset.pattern.permute.xlu1 %v13869_v15  ;;  %816 = vperm.xlu0 %6564, %v6697_v52   ;;  %v8920_v30 = vpop.permute.xlu0 %3427 }
 0x5b2   : > { %13868 = vst [vmem:[#allocation272_spill] sm:$0xff] %v8917_v27  ;;  %13870 = vst [vmem:[#allocation273_spill] sm:$0xff] %v8920_v30  ;;  %4198 = vperm.xlu1 %6556, %v8622_v31  }
 0x5b5   : > { %v8923_v37 = vpop.permute.xlu1 %3433  ;;  %826 = vperm.xlu0 %6564, %v6701_v54   ;;  %v8925_v10 = vpop.permute.xlu0 %3431 }
 0x5b6   : > { %13871 = vst [vmem:[#allocation274_spill] sm:$0xff] %v8923_v37  ;;  %13872 = vst [vmem:[#allocation275_spill] sm:$0xff] %v8925_v10  ;;  %6557 = vset.pattern.permute.xlu1 %v13855_v49  ;;  %v4547_v37 = vld [vmem:[%s13192_s4 + $0x8] sm:$0xff] }
 0x5b7   : > { %3753 = vperm.xlu1 %6557, %v8633_v16  }
 0x5b9   : > { %v8929_v36 = vpop.permute.xlu1 %3437  ;;  %836 = vperm.xlu0 %6564, %v6698_v55   ;;  %v8931_v27 = vpop.permute.xlu0 %3435 }
 0x5ba   : > { %13873 = vst [vmem:[#allocation276_spill] sm:$0xff] %v8929_v36  ;;  %13874 = vst [vmem:[#allocation277_spill] sm:$0xff] %v8931_v27 }
 0x5bb   : > { %6558 = vset.pattern.permute.xlu1 %v13869_v15 }
 0x5bc   : > { %4202 = vperm.xlu1 %6558, %v8856_v28  }
 0x5bd   : > { %v8935_v52 = vpop.permute.xlu1 %3441  ;;  %846 = vperm.xlu0 %6564, %v6702_v14   ;;  %v8937_v31 = vpop.permute.xlu0 %3439 }
 0x5be   : > { %13875 = vst [vmem:[#allocation278_spill] sm:$0xff] %v8935_v52  ;;  %13876 = vst [vmem:[#allocation279_spill] sm:$0xff] %v8937_v31 }
 0x5c0   : > { %6559 = vset.pattern.permute.xlu1 %v13855_v49 }
 0x5c1   : > { %v8940_v54 = vpop.permute.xlu1 %3445  ;;  %3757 = vperm.xlu1 %6559, %v6703_v5   ;;  %856 = vperm.xlu0 %6564, %v8856_v28   ;;  %v8943_v16 = vpop.permute.xlu0 %3443 }
 0x5c2   : > { %13877 = vst [vmem:[#allocation280_spill] sm:$0xff] %v8940_v54  ;;  %13878 = vst [vmem:[#allocation281_spill] sm:$0xff] %v8943_v16  ;;  %v13893_v54 = vld [vmem:[#allocation22_spill] sm:$0xff] }
 0x5c5   : > { %v8945_v55 = vpop.permute.xlu1 %3449  ;;  %3761 = vperm.xlu1 %6559, %v8644_v0   ;;  %866 = vperm.xlu0 %6564, %v6703_v5   ;;  %v8948_v10 = vpop.permute.xlu0 %3447  ;;  %v13885_v5 = vld [vmem:[#allocation18_spill] sm:$0xff] }
 0x5c6   : > { %13879 = vst [vmem:[#allocation282_spill] sm:$0xff] %v8945_v55  ;;  %13880 = vst [vmem:[#allocation283_spill] sm:$0xff] %v8948_v10  ;;  %v8966_v52 = vmul.f32 0.0, %v13885_v5  ;;  %v13892_v55 = vld [vmem:[#allocation21_spill] sm:$0xff] }
 0x5c8   : > { %13886 = vst [vmem:[#allocation18_spill] sm:$0xff] %v8966_v52  ;;  %v8997_v10 = vmul.f32 %v13893_v54, %v8966_v52  ;;  %v9014_v46 = vmul.f32 %v13896_v19, %v8966_v52  ;;  %v9022_v39 = vmul.f32 %v13897_v35, %v8966_v52 }
 0x5c9   : > { %6560 = vset.pattern.permute.xlu1 %v13869_v15  ;;  %876 = vperm.xlu0 %6564, %v8864_v51   ;;  %v8952_v14 = vpop.permute.xlu1 %3453  ;;  %v8954_v31 = vpop.permute.xlu0 %3451 }
 0x5ca   : > { %13881 = vst [vmem:[#allocation284_spill] sm:$0xff] %v8952_v14  ;;  %13882 = vst [vmem:[#allocation285_spill] sm:$0xff] %v8954_v31  ;;  %4214 = vperm.xlu1 %6560, %v8644_v0   ;;  %v4546_v0 = vld [vmem:[%s13192_s4] sm:$0xff] }
 0x5cd   : > { %v8959_v28 = vpop.permute.xlu1 %3457  ;;  %v8961_v16 = vpop.permute.xlu0 %3455 }
 0x5ce   : > { %6562 = vset.pattern.permute.xlu1 %v13855_v49  ;;  %13883 = vst [vmem:[#allocation286_spill] sm:$0xff] %v8959_v28  ;;  %13884 = vst [vmem:[#allocation287_spill] sm:$0xff] %v8961_v16 }
 0x5cf   : > { %3769 = vperm.xlu1 %6562, %v8654_v44   ;;  %v13889_v44 = vld [vmem:[#allocation17_spill] sm:$0xff] }
 0x5d0   : > { %v8978_v49 = vsel %vm751_vm6, %v13885_v5, %v13889_v44  ;;  %v8993_v5 = vmul.f32 %v13892_v55, %v8966_v52  ;;  %v767_v29 = vmul.f32 %v13889_v44, %v7389_v1  ;;  %v9033_v6 = vmul.f32 %v13889_v44, %v7323_v21 }
 0x5d1   : > { %v8968_v14 = vpop.permute.xlu1 %3461  ;;  %v8970_v31 = vpop.permute.xlu0 %3459  ;;  %v766_v36 = vmul.f32 %v8978_v49, %v7385_v26  ;;  %v772_v42 = vmul.f32 %v8978_v49, %v7433_v22  ;;  %v773_v26 = vmul.f32 %v13889_v44, %v7437_v7  ;;  %v778_v22 = vmul.f32 %v8978_v49, %v7481_v50  ;;  %v13914_v50 = vld [vmem:[#allocation45_spill] sm:$0xff] }
 0x5d2   : > { %13887 = vst [vmem:[#allocation288_spill] sm:$0xff] %v8968_v14  ;;  %13888 = vst [vmem:[#allocation289_spill] sm:$0xff] %v8970_v31  ;;  %v13891_v14 = vld [vmem:[#allocation20_spill] sm:$0xff]  ;;  %v761_v31 = vmul.f32 %v13889_v44, %v13802_v43 }
 0x5d3   : > { %6563 = vset.pattern.permute.xlu1 %v13869_v15  ;;  %v760_v15 = vmul.f32 %v8978_v49, %v7339_v3  ;;  %v8987_v28 = vmul.f32 %v13891_v14, %v8966_v52  ;;  %13900 = vst [vmem:[#allocation20_spill] sm:$0xff] %v9033_v6  ;;  %v9059_v6 = vmul.f32 %v13892_v55, %v772_v42 }
 0x5d4   : > { %4218 = vperm.xlu1 %6563, %v8864_v51   ;;  %v13890_v51 = vld [vmem:[#allocation19_spill] sm:$0xff]  ;;  %v9078_v42 = vmul.f32 %v8978_v49, %v7449_v40  ;;  %v13924_v40 = vld [vmem:[#allocation44_spill] sm:$0xff] }
 0x5d5   : > { %v887_v16 = vmul.f32 %v13890_v51, %v8966_v52  ;;  %v888_v33 = vmul.f32 %v13890_v51, %v760_v15  ;;  %v9027_v38 = vpop.permute.xlu1 %3465  ;;  %v9029_v18 = vpop.permute.xlu0 %3463  ;;  %v889_v1 = vmul.f32 %v13890_v51, %v761_v31  ;;  %v9042_v15 = vmul.f32 %v8978_v49, %v13724_v48 }
 0x5d6   : > { %13898 = vst [vmem:[#allocation17_spill] sm:$0xff] %v9027_v38  ;;  %13899 = vst [vmem:[#allocation19_spill] sm:$0xff] %v9029_v18  ;;  %v9045_v38 = vmul.f32 %v13891_v14, %v766_v36  ;;  %v784_v18 = vmul.f32 %v8978_v49, %v7529_v63  ;;  %v9051_v31 = vmul.f32 %v8978_v49, %v7353_v12  ;;  %v13913_v63 = vld [vmem:[#allocation79_spill] sm:$0xff] }
 0x5d7   : > { %13901 = vst [vmem:[#allocation21_spill] sm:$0xff] %v9042_v15  ;;  %v9055_v51 = vmul.f32 %v13889_v44, %v7373_v24  ;;  %v785_v36 = vmul.f32 %v13889_v44, %v7533_v11  ;;  %v9065_v15 = vmul.f32 %v8978_v49, %v7401_v4  ;;  %13906 = vst [vmem:[#allocation26_spill] sm:$0xff] %v9078_v42  ;;  %v13936_v4 = vld [vmem:[#allocation77_spill] sm:$0xff] }
 0x5d8   : > { %6565 = vset.pattern.permute.xlu1 %v13865_v17  ;;  %v13894_v17 = vld [vmem:[#allocation23_spill] sm:$0xff]  ;;  %13902 = vst [vmem:[#allocation22_spill] sm:$0xff] %v9051_v31  ;;  %v790_v31 = vmul.f32 %v8978_v49, %v7570_v58  ;;  %v9118_v11 = vmul.f32 %v8978_v49, %v7545_v61 }
 0x5d9   : > { %4564 = vperm.xlu1 %6565, %v4546_v0   ;;  %v9001_v30 = vmul.f32 %v13894_v17, %v8966_v52  ;;  %v13895_v0 = vld [vmem:[#allocation24_spill] sm:$0xff]  ;;  %13903 = vst [vmem:[#allocation23_spill] sm:$0xff] %v9055_v51  ;;  %v9074_v51 = vmul.f32 %v13889_v44, %v7421_v41  ;;  %v9099_v42 = vpop.permute.xlu1 %3469  ;;  %v13921_v61 = vld [vmem:[#allocation47_spill] sm:$0xff] }
 0x5da   : > { %v9010_v27 = vmul.f32 %v13895_v0, %v8966_v52  ;;  %v779_v52 = vmul.f32 %v13889_v44, %v7485_v59  ;;  %13904 = vst [vmem:[#allocation24_spill] sm:$0xff] %v9065_v15  ;;  %v9068_v59 = vmul.f32 %v13892_v55, %v773_v26  ;;  %v791_v26 = vmul.f32 %v13889_v44, %v7563_v45  ;;  %v14052_v58 = vld [vmem:[#allocation131_spill] sm:$0xff] }
 0x5db   : > { %13905 = vst [vmem:[#allocation25_spill] sm:$0xff] %v9074_v51  ;;  %v9090_v55 = vmul.f32 %v13889_v44, %v7469_v47  ;;  %v9093_v15 = vmul.f32 %v13894_v17, %v784_v18  ;;  %v796_v51 = vmul.f32 %v8978_v49, %v7606_v34  ;;  %13908 = vst [vmem:[#allocation291_spill] sm:$0xff] %v9099_v42 }
 0x5dc   : > { %v9108_v47 = vmul.f32 %v13894_v17, %v785_v36  ;;  %v802_v18 = vmul.f32 %v8978_v49, %v7640_v53  ;;  %13912 = vst [vmem:[#allocation295_spill] sm:$0xff] %v9118_v11  ;;  %v803_v17 = vmul.f32 %v13889_v44, %v7718_v8  ;;  %v9130_v36 = vmul.f32 %v13889_v44, %v7552_v62  ;;  %v14009_v8 = vld [vmem:[#allocation109_spill] sm:$0xff]  ;;  %v14012_v53 = vld [vmem:[#allocation107_spill] sm:$0xff] }
 0x5dd   : > { %4569 = vperm.xlu1 %6565, %v4547_v37   ;;  %v895_v37 = vmul.f32 %v13891_v14, %v767_v29  ;;  %v9081_v29 = vmul.f32 %v13893_v54, %v778_v22  ;;  %v9084_v14 = vmul.f32 %v13893_v54, %v779_v52  ;;  %13907 = vst [vmem:[#allocation290_spill] sm:$0xff] %v9090_v55  ;;  %v9101_v52 = vpop.permute.xlu0 %3467  ;;  %v9182_v42 = vpop.permute.xlu1 %3473 }
 0x5de   : > { %v797_v22 = vmul.f32 %v13889_v44, %v7597_v32  ;;  %13909 = vst [vmem:[#allocation292_spill] sm:$0xff] %v9101_v52  ;;  %v9105_v54 = vmul.f32 %v8978_v49, %v7497_v57  ;;  %v9114_v55 = vmul.f32 %v13889_v44, %v7517_v56  ;;  %v1307_v52 = vsel %vm1304_vm3, %v13914_v50, %v13913_v63 }
 0x5df   : > { %13915 = vst [vmem:[#allocation79_spill] sm:$0xff] %v9130_v36  ;;  %v9137_v11 = vmul.f32 %v8978_v49, %v7579_v9  ;;  %v9141_v50 = vmul.f32 %v13889_v44, %v7588_v25  ;;  %v9147_v57 = vmul.f32 %v13896_v19, %v796_v51  ;;  %v13923_v51 = vld [vmem:[#allocation15_spill] sm:$0xff]  ;;  %13931 = vst [vmem:[#allocation44_spill] sm:$0xff] %v9182_v42  ;;  %v13939_v42 = vld [vmem:[#allocation46_spill] sm:$0xff] }
 0x5e0   : > { %13910 = vst [vmem:[#allocation293_spill] sm:$0xff] %v9105_v54  ;;  %13911 = vst [vmem:[#allocation294_spill] sm:$0xff] %v9114_v55  ;;  %v9124_v54 = vmul.f32 %v13895_v0, %v790_v31  ;;  %v9133_v55 = vmul.f32 %v13895_v0, %v791_v26  ;;  %v13918_v31 = vld [vmem:[#allocation78_spill] sm:$0xff]  ;;  %v9150_v36 = vmul.f32 %v13896_v19, %v797_v22  ;;  %v13926_v22 = vld [vmem:[#allocation43_spill] sm:$0xff] }
 0x5e1   : > { %13916 = vst [vmem:[#allocation45_spill] sm:$0xff] %v9137_v11  ;;  %13917 = vst [vmem:[#allocation296_spill] sm:$0xff] %v9141_v50  ;;  %v1308_v56 = vsel %vm1304_vm3, %v13913_v63, %v13918_v31  ;;  %v9154_v0 = vmul.f32 %v8978_v49, %v7617_v2  ;;  %v1388_v26 = vadd.f32 %v1307_v52, %v887_v16  ;;  %v13920_v11 = vld [vmem:[#allocation85_spill] sm:$0xff] }
 0x5e2   : > { %v1311_v62 = vsel %vm1304_vm3, %v13921_v61, %v13920_v11  ;;  %v9160_v50 = vmul.f32 %v13897_v35, %v802_v18  ;;  %v9164_v63 = vmul.f32 %v13889_v44, %v7624_v13  ;;  %v9169_v19 = vsel %vm1304_vm3, %v13924_v40, %v13923_v51  ;;  %v13927_v49 = vld [vmem:[#allocation13_spill] sm:$0xff]  ;;  %v9184_v44 = vpop.permute.xlu0 %3471 }
 0x5e3   : > { %13919 = vst [vmem:[#allocation78_spill] sm:$0xff] %v9154_v0  ;;  %13925 = vst [vmem:[#allocation47_spill] sm:$0xff] %v9169_v19  ;;  %v9174_v16 = vsel %vm1757_vm7, %v13927_v49, %v13926_v22  ;;  %v13929_v52 = vld [vmem:[#allocation81_spill] sm:$0xff]  ;;  %v13930_v0 = vld [vmem:[#allocation76_spill] sm:$0xff]  ;;  %v9180_v18 = vmul.f32 %v13897_v35, %v803_v17  ;;  %v1390_v7 = vadd.f32 %v13918_v31, %v889_v1 }
 0x5e4   : > { %13922 = vst [vmem:[#allocation85_spill] sm:$0xff] %v9164_v63  ;;  %13928 = vst [vmem:[#allocation15_spill] sm:$0xff] %v9174_v16  ;;  %v1761_v61 = vsel %vm1757_vm7, %v13930_v0, %v13929_v52  ;;  %v13933_v63 = vld [vmem:[#allocation33_spill] sm:$0xff]  ;;  %v13935_v19 = vld [vmem:[#allocation39_spill] sm:$0xff]  ;;  %v1389_v16 = vadd.f32 %v1308_v56, %v888_v33  ;;  %v9198_v35 = vsel %vm1304_vm3, %v13923_v51, %v13936_v4 }
 0x5e5   : > { %13932 = vst [vmem:[#allocation43_spill] sm:$0xff] %v9184_v44  ;;  %v9189_v40 = vsel %vm1757_vm7, %v13926_v22, %v13933_v63  ;;  %v1760_v49 = vsel %vm1757_vm7, %v13935_v19, %v13930_v0  ;;  %13937 = vst [vmem:[#allocation81_spill] sm:$0xff] %v9198_v35  ;;  %v13938_v17 = vld [vmem:[#allocation80_spill] sm:$0xff]  ;;  %v1394_v22 = vadd.f32 %v1311_v62, %v8987_v28  ;;  %v13941_v63 = vld [vmem:[#allocation3_spill] sm:$0xff] }
 0x5e6   : > { %13934 = vst [vmem:[#allocation13_spill] sm:$0xff] %v9189_v40  ;;  %v9203_v44 = vsel %vm1304_vm3, %v13939_v42, %v13938_v17  ;;  %v1312_v40 = vsel %vm1304_vm3, %v13920_v11, %v13941_v63  ;;  %v9209_v0 = vadd.f32 %v1761_v61, %v1389_v16  ;;  %v9212_v1 = vadd.f32 %v13929_v52, %v1390_v7  ;;  %v13942_v56 = vld [vmem:[#allocation91_spill] sm:$0xff]  ;;  %v13943_v33 = vld [vmem:[#allocation49_spill] sm:$0xff]  ;;  %v13945_v42 = vld [vmem:[#allocation28_spill] sm:$0xff] }
 0x5e7   : > { %13940 = vst [vmem:[#allocation76_spill] sm:$0xff] %v9203_v44  ;;  %v1315_v31 = vsel %vm1304_vm3, %v13943_v33, %v13942_v56  ;;  %v9217_v51 = vadd.f32 %v1760_v49, %v1388_v26  ;;  %v13944_v19 = vld [vmem:[#allocation83_spill] sm:$0xff]  ;;  %v13947_v62 = vld [vmem:[#allocation82_spill] sm:$0xff]  ;;  %v13949_v28 = vld [vmem:[#allocation4_spill] sm:$0xff]  ;;  %v1395_v33 = vadd.f32 %v1312_v40, %v9045_v38  ;;  %v9256_v38 = vpop.permute.xlu1 %3477 }
 0x5e8   : > { %v9222_v44 = vsel %vm1757_vm7, %v13945_v42, %v13944_v19  ;;  %v9227_v11 = vsel %vm1757_vm7, %v13944_v19, %v13947_v62  ;;  %v13950_v16 = vld [vmem:[#allocation38_spill] sm:$0xff]  ;;  %v13951_v52 = vld [vmem:[#allocation87_spill] sm:$0xff]  ;;  %v13952_v26 = vld [vmem:[#allocation84_spill] sm:$0xff]  ;;  %v1396_v42 = vadd.f32 %v13941_v63, %v895_v37  ;;  %13960 = vst [vmem:[#allocation91_spill] sm:$0xff] %v9256_v38  ;;  %v9258_v37 = vpop.permute.xlu0 %3475 }
 0x5e9   : > { %13946 = vst [vmem:[#allocation39_spill] sm:$0xff] %v9222_v44  ;;  %13948 = vst [vmem:[#allocation80_spill] sm:$0xff] %v9227_v11  ;;  %v1764_v7 = vsel %vm1757_vm7, %v13950_v16, %v13949_v28  ;;  %v1765_v61 = vsel %vm1757_vm7, %v13949_v28, %v13951_v52  ;;  %v9238_v49 = vsel %vm1304_vm3, %v13938_v17, %v13952_v26  ;;  %v13954_v44 = vld [vmem:[#allocation6_spill] sm:$0xff]  ;;  %v13956_v11 = vld [vmem:[#allocation48_spill] sm:$0xff] }
 0x5ea   : > { %13953 = vst [vmem:[#allocation46_spill] sm:$0xff] %v9238_v49  ;;  %v1316_v19 = vsel %vm1304_vm3, %v13942_v56, %v13954_v44  ;;  %v13955_v62 = vld [vmem:[#allocation86_spill] sm:$0xff]  ;;  %v1400_v28 = vadd.f32 %v1315_v31, %v8993_v5  ;;  %v13958_v4 = vld [vmem:[#allocation95_spill] sm:$0xff]  ;;  %v9254_v26 = vadd.f32 %v1764_v7, %v1394_v22  ;;  %13961 = vst [vmem:[#allocation49_spill] sm:$0xff] %v9258_v37 }
 0x5eb   : > { %v9248_v16 = vsel %vm1304_vm3, %v13956_v11, %v13955_v62  ;;  %v13959_v35 = vld [vmem:[#allocation51_spill] sm:$0xff]  ;;  %v9260_v63 = vadd.f32 %v1765_v61, %v1395_v33  ;;  %v9263_v40 = vadd.f32 %v13951_v52, %v1396_v42  ;;  %v13962_v56 = vld [vmem:[#allocation89_spill] sm:$0xff]  ;;  %v13963_v11 = vld [vmem:[#allocation16_spill] sm:$0xff]  ;;  %v1401_v52 = vadd.f32 %v1316_v19, %v9059_v6 }
 0x5ec   : > { %13957 = vst [vmem:[#allocation3_spill] sm:$0xff] %v9248_v16  ;;  %v1319_v17 = vsel %vm1304_vm3, %v13959_v35, %v13958_v4  ;;  %v9268_v16 = vsel %vm1757_vm7, %v13963_v11, %v13962_v56  ;;  %v13965_v5 = vld [vmem:[#allocation92_spill] sm:$0xff]  ;;  %v13966_v31 = vld [vmem:[#allocation5_spill] sm:$0xff]  ;;  %v13969_v61 = vld [vmem:[#allocation31_spill] sm:$0xff]  ;;  %v1402_v42 = vadd.f32 %v13954_v44, %v9068_v59 }
 0x5ed   : > { %13964 = vst [vmem:[#allocation83_spill] sm:$0xff] %v9268_v16  ;;  %v1769_v35 = vsel %vm1757_vm7, %v13966_v31, %v13965_v5  ;;  %v13967_v22 = vld [vmem:[#allocation88_spill] sm:$0xff]  ;;  %v1768_v33 = vsel %vm1757_vm7, %v13969_v61, %v13966_v31  ;;  %v13970_v11 = vld [vmem:[#allocation90_spill] sm:$0xff]  ;;  %v13972_v49 = vld [vmem:[#allocation7_spill] sm:$0xff] }
 0x5ee   : > { %v9276_v7 = vsel %vm1757_vm7, %v13962_v56, %v13967_v22  ;;  %v9287_v16 = vsel %vm1304_vm3, %v13955_v62, %v13970_v11  ;;  %v13973_v37 = vld [vmem:[#allocation50_spill] sm:$0xff]  ;;  %v1406_v56 = vadd.f32 %v1319_v17, %v8997_v10  ;;  %v9298_v6 = vadd.f32 %v1769_v35, %v1401_v52  ;;  %v13977_v19 = vld [vmem:[#allocation53_spill] sm:$0xff]  ;;  %v13979_v17 = vld [vmem:[#allocation40_spill] sm:$0xff] }
 0x5ef   : > { %13968 = vst [vmem:[#allocation28_spill] sm:$0xff] %v9276_v7  ;;  %13971 = vst [vmem:[#allocation4_spill] sm:$0xff] %v9287_v16  ;;  %v9292_v38 = vsel %vm1304_vm3, %v13973_v37, %v13972_v49  ;;  %v13975_v22 = vld [vmem:[#allocation10_spill] sm:$0xff]  ;;  %v9301_v59 = vadd.f32 %v13965_v5, %v1402_v42  ;;  %v9306_v61 = vadd.f32 %v1768_v33, %v1400_v28  ;;  %v13978_v10 = vld [vmem:[#allocation93_spill] sm:$0xff] }
 0x5f0   : > { %13974 = vst [vmem:[#allocation38_spill] sm:$0xff] %v9292_v38  ;;  %v1320_v31 = vsel %vm1304_vm3, %v13958_v4, %v13975_v22  ;;  %v13976_v44 = vld [vmem:[#allocation102_spill] sm:$0xff]  ;;  %v9315_v38 = vsel %vm1757_vm7, %v13979_v17, %v13978_v10  ;;  %v13981_v4 = vld [vmem:[#allocation8_spill] sm:$0xff]  ;;  %v1408_v35 = vadd.f32 %v13975_v22, %v9084_v14  ;;  %v13984_v28 = vld [vmem:[#allocation9_spill] sm:$0xff] }
 0x5f1   : > { %v1323_v62 = vsel %vm1304_vm3, %v13977_v19, %v13976_v44  ;;  %13980 = vst [vmem:[#allocation87_spill] sm:$0xff] %v9315_v38  ;;  %v9320_v5 = vsel %vm1757_vm7, %v13978_v10, %v13981_v4  ;;  %v13983_v52 = vld [vmem:[#allocation96_spill] sm:$0xff]  ;;  %v13985_v42 = vld [vmem:[#allocation94_spill] sm:$0xff]  ;;  %v1407_v11 = vadd.f32 %v1320_v31, %v9081_v29  ;;  %v13988_v10 = vld [vmem:[#allocation11_spill] sm:$0xff] }
 0x5f2   : > { %v9308_v7 = vpop.permute.xlu1 %3713  ;;  %v9310_v37 = vpop.permute.xlu0 %3709  ;;  %13982 = vst [vmem:[#allocation6_spill] sm:$0xff] %v9320_v5  ;;  %v1773_v33 = vsel %vm1757_vm7, %v13984_v28, %v13983_v52  ;;  %v9330_v19 = vsel %vm1304_vm3, %v13972_v49, %v13985_v42  ;;  %v13987_v17 = vld [vmem:[#allocation30_spill] sm:$0xff]  ;;  %v13989_v4 = vld [vmem:[#allocation52_spill] sm:$0xff]  ;;  %v9342_v14 = vadd.f32 %v13983_v52, %v1408_v35  ;;  %v1412_v22 = vadd.f32 %v1323_v62, %v9001_v30  ;;  %v13991_v16 = vld [vmem:[#allocation101_spill] sm:$0xff] }
 0x5f3   : > { %13986 = vst [vmem:[#allocation86_spill] sm:$0xff] %v9330_v19  ;;  %v1772_v38 = vsel %vm1757_vm7, %v13987_v17, %v13984_v28  ;;  %v9339_v5 = vsel %vm1304_vm3, %v13989_v4, %v13988_v10  ;;  %v1324_v49 = vsel %vm1304_vm3, %v13976_v44, %v13991_v16  ;;  %v9350_v19 = vadd.f32 %v1773_v33, %v1407_v11  ;;  %v13992_v28 = vld [vmem:[#allocation98_spill] sm:$0xff]  ;;  %v13993_v29 = vld [vmem:[#allocation41_spill] sm:$0xff]  ;;  %v13998_v30 = vld [vmem:[#allocation55_spill] sm:$0xff] }
 0x5f4   : > { %13990 = vst [vmem:[#allocation48_spill] sm:$0xff] %v9339_v5  ;;  %v9348_v42 = vadd.f32 %v1772_v38, %v1406_v56  ;;  %v9355_v31 = vsel %vm1757_vm7, %v13993_v29, %v13992_v28  ;;  %v13995_v4 = vld [vmem:[#allocation97_spill] sm:$0xff]  ;;  %v13997_v52 = vld [vmem:[#allocation106_spill] sm:$0xff]  ;;  %v13999_v38 = vld [vmem:[#allocation100_spill] sm:$0xff]  ;;  %v1414_v29 = vadd.f32 %v13991_v16, %v9108_v47 }
 0x5f5   : > { %13994 = vst [vmem:[#allocation95_spill] sm:$0xff] %v9355_v31  ;;  %v9360_v35 = vsel %vm1757_vm7, %v13992_v28, %v13995_v4  ;;  %v1327_v62 = vsel %vm1304_vm3, %v13998_v30, %v13997_v52  ;;  %v9370_v11 = vsel %vm1304_vm3, %v13988_v10, %v13999_v38  ;;  %v14001_v56 = vld [vmem:[#allocation99_spill] sm:$0xff]  ;;  %v14002_v44 = vld [vmem:[#allocation42_spill] sm:$0xff]  ;;  %v14003_v28 = vld [vmem:[#allocation105_spill] sm:$0xff]  ;;  %v1413_v30 = vadd.f32 %v1324_v49, %v9093_v15 }
 0x5f6   : > { %13996 = vst [vmem:[#allocation51_spill] sm:$0xff] %v9360_v35  ;;  %v9365_v17 = vpop.permute.xlu0 %3717  ;;  %14000 = vst [vmem:[#allocation89_spill] sm:$0xff] %v9370_v11  ;;  %v1776_v33 = vsel %vm1757_vm7, %v14002_v44, %v14001_v56  ;;  %v1328_v4 = vsel %vm1304_vm3, %v13997_v52, %v14003_v28  ;;  %v14004_v31 = vld [vmem:[#allocation103_spill] sm:$0xff]  ;;  %v14005_v5 = vld [vmem:[#allocation54_spill] sm:$0xff]  ;;  %v1418_v15 = vadd.f32 %v1327_v62, %v9010_v27 }
 0x5f7   : > { %v9380_v35 = vpop.permute.xlu1 %4162  ;;  %v9386_v10 = vsel %vm1304_vm3, %v14005_v5, %v14004_v31  ;;  %v14007_v38 = vld [vmem:[#allocation110_spill] sm:$0xff]  ;;  %v14008_v11 = vld [vmem:[#allocation57_spill] sm:$0xff]  ;;  %v14010_v16 = vld [vmem:[#allocation104_spill] sm:$0xff]  ;;  %v1420_v49 = vadd.f32 %v14003_v28, %v9133_v55  ;;  %v9402_v5 = vadd.f32 %v1776_v33, %v1412_v22  ;;  %v1426_v22 = vadd.f32 %v14009_v8, %v9150_v36 }
 0x5f8   : > { %14006 = vst [vmem:[#allocation16_spill] sm:$0xff] %v9386_v10  ;;  %v1331_v44 = vsel %vm1304_vm3, %v14008_v11, %v14007_v38  ;;  %v1332_v47 = vsel %vm1304_vm3, %v14007_v38, %v14009_v8  ;;  %v9397_v52 = vsel %vm1304_vm3, %v14004_v31, %v14010_v16  ;;  %v1419_v10 = vadd.f32 %v1328_v4, %v9124_v54  ;;  %v14013_v11 = vld [vmem:[#allocation56_spill] sm:$0xff]  ;;  %v14017_v31 = vld [vmem:[#allocation114_spill] sm:$0xff]  ;;  %v14018_v16 = vld [vmem:[#allocation27_spill] sm:$0xff] }
 0x5f9   : > { %14011 = vst [vmem:[#allocation92_spill] sm:$0xff] %v9397_v52  ;;  %v9408_v32 = vsel %vm1304_vm3, %v14013_v11, %v14012_v53  ;;  %v14015_v38 = vld [vmem:[#allocation108_spill] sm:$0xff]  ;;  %v1335_v27 = vsel %vm1304_vm3, %v14018_v16, %v14017_v31  ;;  %v1424_v55 = vadd.f32 %v1331_v44, %v9014_v46  ;;  %v1425_v54 = vadd.f32 %v1332_v47, %v9147_v57  ;;  %v14021_v11 = vld [vmem:[#allocation58_spill] sm:$0xff]  ;;  %v14023_v16 = vld [vmem:[#allocation117_spill] sm:$0xff] }
 0x5fa   : > { %14014 = vst [vmem:[#allocation5_spill] sm:$0xff] %v9408_v32  ;;  %v9413_v34 = vsel %vm1304_vm3, %v14012_v53, %v14015_v38  ;;  %v9418_v62 = vpop.permute.xlu0 %4106  ;;  %v14019_v4 = vld [vmem:[#allocation116_spill] sm:$0xff]  ;;  %v14020_v53 = vld [vmem:[#allocation111_spill] sm:$0xff]  ;;  %v14025_v44 = vld [vmem:[#allocation122_spill] sm:$0xff]  ;;  %v1430_v47 = vadd.f32 %v1335_v27, %v9022_v39 }
 0x5fb   : > { %14016 = vst [vmem:[#allocation31_spill] sm:$0xff] %v9413_v34  ;;  %v1777_v33 = vsel %vm1757_vm7, %v14001_v56, %v14019_v4  ;;  %v9427_v28 = vpop.permute.xlu1 %3651  ;;  %v9432_v38 = vsel %vm1304_vm3, %v14021_v11, %v14020_v53  ;;  %v14024_v32 = vld [vmem:[#allocation120_spill] sm:$0xff]  ;;  %v1781_v57 = vsel %vm1757_vm7, %v14023_v16, %v14025_v44  ;;  %v9449_v11 = vadd.f32 %v14019_v4, %v1414_v29  ;;  %v14029_v34 = vld [vmem:[#allocation113_spill] sm:$0xff]  ;;  %v14034_v39 = vld [vmem:[#allocation115_spill] sm:$0xff] }
 0x5fc   : > { %14022 = vst [vmem:[#allocation7_spill] sm:$0xff] %v9432_v38  ;;  %v1780_v46 = vsel %vm1757_vm7, %v14024_v32, %v14023_v16  ;;  %v3660_v8 = vmul.f32 %v9427_v28, %v13724_v48  ;;  %v14026_v36 = vld [vmem:[#allocation112_spill] sm:$0xff]  ;;  %v9451_v38 = vadd.f32 %v1777_v33, %v1413_v30  ;;  %v14028_v32 = vld [vmem:[#allocation118_spill] sm:$0xff]  ;;  %v14032_v13 = vld [vmem:[#allocation125_spill] sm:$0xff]  ;;  %v9471_v27 = vadd.f32 %v1781_v57, %v1419_v10 }
 0x5fd   : > { %v9445_v56 = vsel %vm1304_vm3, %v14020_v53, %v14026_v36  ;;  %v9456_v16 = vsel %vm1757_vm7, %v14029_v34, %v14028_v32  ;;  %v14031_v52 = vld [vmem:[#allocation124_spill] sm:$0xff]  ;;  %v9467_v29 = vsel %vm1757_vm7, %v14028_v32, %v14034_v39  ;;  %v9469_v30 = vadd.f32 %v1780_v46, %v1418_v15  ;;  %v14036_v33 = vld [vmem:[#allocation123_spill] sm:$0xff] }
 0x5fe   : > { %14027 = vst [vmem:[#allocation50_spill] sm:$0xff] %v9445_v56  ;;  %14030 = vst [vmem:[#allocation10_spill] sm:$0xff] %v9456_v16  ;;  %v1784_v2 = vsel %vm1757_vm7, %v14032_v13, %v14031_v52  ;;  %v9461_v45 = vpop.permute.xlu0 %3733  ;;  %v3772_v53 = vmul.f32 %v9310_v37, %v3660_v8  ;;  %v9474_v34 = vadd.f32 %v14025_v44, %v1420_v49  ;;  %v14037_v36 = vld [vmem:[#allocation119_spill] sm:$0xff]  ;;  %v14039_v56 = vld [vmem:[#allocation121_spill] sm:$0xff] }
 0x5ff   : > { %14033 = vst [vmem:[#allocation102_spill] sm:$0xff] %v9461_v45  ;;  %14035 = vst [vmem:[#allocation53_spill] sm:$0xff] %v9467_v29  ;;  %v3654_v4 = vpop.permute.xlu1 %3653  ;;  %v9479_v13 = vsel %vm1757_vm7, %v14037_v36, %v14036_v33  ;;  %v9484_v8 = vsel %vm1757_vm7, %v14036_v33, %v14039_v56  ;;  %v9492_v10 = vadd.f32 %v1784_v2, %v1424_v55  ;;  %v14041_v49 = vld [vmem:[#allocation127_spill] sm:$0xff]  ;;  %v14042_v44 = vld [vmem:[#allocation129_spill] sm:$0xff] }
 0x600   : > { %14038 = vst [vmem:[#allocation93_spill] sm:$0xff] %v9479_v13  ;;  %14040 = vst [vmem:[#allocation40_spill] sm:$0xff] %v9484_v8  ;;  %v9487_v32 = vsel %vm3655_vm8, %v9427_v28, %v3654_v4  ;;  %v9489_v15 = vmul.f32 0.0, %v3654_v4  ;;  %3868 = vrot.lane.b32.xlu0 %v3772_v53, %s6732_s26  ;;  %v1785_v46 = vsel %vm1757_vm7, %v14031_v52, %v14041_v49  ;;  %v14043_v33 = vld [vmem:[#allocation133_spill] sm:$0xff]  ;;  %v14044_v13 = vld [vmem:[#allocation130_spill] sm:$0xff] }
 0x601   : > { %v1336_v57 = vsel %vm1304_vm3, %v14017_v31, %v14042_v44  ;;  %v3661_v36 = vmul.f32 %v9487_v32, %v7323_v21  ;;  %v1432_v4 = vadd.f32 %v14042_v44, %v9180_v18  ;;  %v1788_v53 = vsel %vm1757_vm7, %v14044_v13, %v14043_v33  ;;  %v14045_v31 = vld [vmem:[#allocation132_spill] sm:$0xff]  ;;  %v14050_v45 = vld [vmem:[#allocation137_spill] sm:$0xff] }
 0x602   : > { %v3774_v2 = vmul.f32 %v9310_v37, %v9489_v15  ;;  %v3664_v52 = vmul.f32 %v9487_v32, %v13802_v43  ;;  %v9512_v55 = vadd.f32 %v14041_v49, %v1426_v22  ;;  %v1789_v56 = vsel %vm1757_vm7, %v14043_v33, %v14045_v31  ;;  %v9517_v8 = vpop.permute.xlu0 %3749  ;;  %v14047_v16 = vld [vmem:[#allocation128_spill] sm:$0xff]  ;;  %v14048_v22 = vld [vmem:[#allocation126_spill] sm:$0xff] }
 0x603   : > { %14046 = vst [vmem:[#allocation96_spill] sm:$0xff] %v9517_v8  ;;  %v9519_v18 = vpop.permute.xlu1 %3721  ;;  %v3773_v44 = vmul.f32 %v9310_v37, %v3661_v36  ;;  %v3663_v13 = vmul.f32 %v9427_v28, %v7339_v3  ;;  %v9524_v39 = vadd.f32 %v1785_v46, %v1425_v54  ;;  %v1431_v29 = vadd.f32 %v1336_v57, %v9160_v50  ;;  %v14051_v33 = vld [vmem:[#allocation136_spill] sm:$0xff]  ;;  %v14054_v57 = vld [vmem:[#allocation134_spill] sm:$0xff]  ;;  %v14055_v36 = vld [vmem:[#allocation59_spill] sm:$0xff] }
 0x604   : > { %v9530_v49 = vsel %vm1757_vm7, %v14048_v22, %v14047_v16  ;;  %v2211_v8 = vsel %vm995_vm1, %v14051_v33, %v14050_v45  ;;  %3872 = vrot.lane.b32.xlu0 %v3774_v2, %s6732_s26  ;;  %v9539_v37 = vsel %vm1757_vm7, %v14047_v16, %v14052_v58  ;;  %v9541_v54 = vadd.f32 %v1788_v53, %v1430_v47  ;;  %v14057_v2 = vld [vmem:[#allocation138_spill] sm:$0xff]  ;;  %v14058_v53 = vld [vmem:[#allocation135_spill] sm:$0xff]  ;;  %v14069_v58 = vld [vmem:[#allocation148_spill] sm:$0xff] }
 0x605   : > { %14049 = vst [vmem:[#allocation9_spill] sm:$0xff] %v9530_v49  ;;  %14053 = vst [vmem:[#allocation30_spill] sm:$0xff] %v9539_v37  ;;  %v9544_v50 = vadd.f32 %v14045_v31, %v1432_v4  ;;  %3870 = vrot.lane.b32.xlu1 %v3773_v44, %s6732_s26  ;;  %v9547_v46 = vadd.f32 %v1789_v56, %v1431_v29  ;;  %v9552_v22 = vsel %vm995_vm1, %v14055_v36, %v14054_v57  ;;  %v14060_v56 = vld [vmem:[#allocation143_spill] sm:$0xff]  ;;  %v14061_v29 = vld [vmem:[#allocation142_spill] sm:$0xff] }
 0x606   : > { %14056 = vst [vmem:[#allocation11_spill] sm:$0xff] %v9552_v22  ;;  %v2212_v16 = vsel %vm995_vm1, %v14050_v45, %v14057_v2  ;;  %v3776_v47 = vmul.f32 %v9308_v7, %v3664_v52  ;;  %v9561_v4 = vsel %vm995_vm1, %v14054_v57, %v14058_v53  ;;  %v9564_v31 = vadd.f32 %v2211_v8, %v9217_v51  ;;  %v14062_v52 = vld [vmem:[#allocation144_spill] sm:$0xff]  ;;  %v14066_v49 = vld [vmem:[#allocation141_spill] sm:$0xff]  ;;  %v9603_v53 = vpop.permute.xlu0 %3765  ;;  %v14161_v22 = vld [vmem:[#allocation211_spill] sm:$0xff] }
 0x607   : > { %14059 = vst [vmem:[#allocation52_spill] sm:$0xff] %v9561_v4  ;;  %v2215_v44 = vsel %vm995_vm1, %v14061_v29, %v14060_v56  ;;  %v9569_v33 = vpop.permute.xlu1 %4104  ;;  %v3775_v36 = vmul.f32 %v9308_v7, %v3663_v13  ;;  %v9574_v45 = vadd.f32 %v14057_v2, %v9212_v1  ;;  %v2216_v57 = vsel %vm995_vm1, %v14060_v56, %v14062_v52  ;;  %v14063_v29 = vld [vmem:[#allocation140_spill] sm:$0xff]  ;;  %v14064_v1 = vld [vmem:[#allocation139_spill] sm:$0xff]  ;;  %v14068_v56 = vld [vmem:[#allocation149_spill] sm:$0xff] }
 0x608   : > { %3876 = vrot.lane.b32.xlu0 %v3776_v47, %s6732_s26  ;;  %v9583_v51 = vsel %vm4108_vm9, %v9569_v33, %v9418_v62  ;;  %v4113_v8 = vmul.f32 %v9569_v33, %v13724_v48  ;;  %v9588_v13 = vadd.f32 %v2212_v16, %v9209_v0  ;;  %v9593_v2 = vsel %vm995_vm1, %v14064_v1, %v14063_v29  ;;  %v14070_v0 = vld [vmem:[#allocation150_spill] sm:$0xff]  ;;  %v14139_v4 = vld [vmem:[#allocation195_spill] sm:$0xff] }
 0x609   : > { %14065 = vst [vmem:[#allocation101_spill] sm:$0xff] %v9593_v2  ;;  %v9598_v47 = vsel %vm995_vm1, %v14063_v29, %v14066_v49  ;;  %v2219_v37 = vsel %vm995_vm1, %v14069_v58, %v14068_v56  ;;  %3874 = vrot.lane.b32.xlu1 %v3775_v36, %s6732_s26  ;;  %v9607_v48 = vadd.f32 %v2215_v44, %v9254_v26  ;;  %v9613_v1 = vmul.f32 0.0, %v9418_v62  ;;  %v14071_v36 = vld [vmem:[#allocation146_spill] sm:$0xff]  ;;  %v14074_v2 = vld [vmem:[#allocation147_spill] sm:$0xff] }
 0x60a   : > { %14067 = vst [vmem:[#allocation98_spill] sm:$0xff] %v9598_v47  ;;  %v2220_v16 = vsel %vm995_vm1, %v14068_v56, %v14070_v0  ;;  %v4225_v29 = vmul.f32 %v9380_v35, %v4113_v8  ;;  %v9617_v49 = vadd.f32 %v2216_v57, %v9260_v63  ;;  %v9621_v58 = vadd.f32 %v14062_v52, %v9263_v40  ;;  %v14072_v56 = vld [vmem:[#allocation145_spill] sm:$0xff]  ;;  %v14076_v40 = vld [vmem:[#allocation155_spill] sm:$0xff]  ;;  %v14077_v52 = vld [vmem:[#allocation154_spill] sm:$0xff] }
 0x60b   : > { %v3777_v26 = vmul.f32 %v9308_v7, %v9489_v15  ;;  %v4114_v44 = vmul.f32 %v9583_v51, %v7323_v21  ;;  %v9630_v62 = vsel %vm995_vm1, %v14072_v56, %v14071_v36  ;;  %v9635_v63 = vsel %vm995_vm1, %v14071_v36, %v14074_v2  ;;  %v14078_v56 = vld [vmem:[#allocation152_spill] sm:$0xff]  ;;  %v14079_v36 = vld [vmem:[#allocation151_spill] sm:$0xff] }
 0x60c   : > { %14073 = vst [vmem:[#allocation41_spill] sm:$0xff] %v9630_v62  ;;  %14075 = vst [vmem:[#allocation106_spill] sm:$0xff] %v9635_v63  ;;  %v9638_v57 = vadd.f32 %v2219_v37, %v9306_v61  ;;  %v2223_v7 = vsel %vm995_vm1, %v14077_v52, %v14076_v40  ;;  %4321 = vrot.lane.b32.xlu0 %v4225_v29, %s6733_s29  ;;  %v9645_v21 = vadd.f32 %v2220_v16, %v9298_v6  ;;  %v14081_v61 = vld [vmem:[#allocation156_spill] sm:$0xff]  ;;  %v9659_v52 = vpop.permute.xlu1 %4170  ;;  %v14082_v29 = vld [vmem:[#allocation153_spill] sm:$0xff] }
 0x60d   : > { %v9649_v8 = vadd.f32 %v14070_v0, %v9301_v59  ;;  %v9654_v2 = vsel %vm995_vm1, %v14079_v36, %v14078_v56  ;;  %v2224_v37 = vsel %vm995_vm1, %v14076_v40, %v14081_v61  ;;  %3878 = vrot.lane.b32.xlu1 %v3777_v26, %s6732_s26  ;;  %v9665_v6 = vsel %vm995_vm1, %v14078_v56, %v14082_v29  ;;  %v14084_v59 = vld [vmem:[#allocation161_spill] sm:$0xff]  ;;  %v14085_v0 = vld [vmem:[#allocation160_spill] sm:$0xff]  ;;  %v14086_v62 = vld [vmem:[#allocation162_spill] sm:$0xff]  ;;  %v4167_v29 = vpop.permute.xlu0 %4166 }
 0x60e   : > { %14080 = vst [vmem:[#allocation55_spill] sm:$0xff] %v9654_v2  ;;  %14083 = vst [vmem:[#allocation99_spill] sm:$0xff] %v9665_v6  ;;  %v2227_v16 = vsel %vm995_vm1, %v14085_v0, %v14084_v59  ;;  %v4117_v36 = vmul.f32 %v9583_v51, %v13802_v43  ;;  %v4227_v2 = vmul.f32 %v9380_v35, %v9613_v1  ;;  %v14087_v43 = vld [vmem:[#allocation158_spill] sm:$0xff]  ;;  %v14088_v63 = vld [vmem:[#allocation157_spill] sm:$0xff] }
 0x60f   : > { %v9675_v40 = vadd.f32 %v2223_v7, %v9348_v42  ;;  %v9679_v26 = vadd.f32 %v14081_v61, %v9342_v14  ;;  %v2228_v56 = vsel %vm995_vm1, %v14084_v59, %v14086_v62  ;;  %v4226_v0 = vmul.f32 %v9380_v35, %v4114_v44  ;;  %v14090_v42 = vld [vmem:[#allocation159_spill] sm:$0xff]  ;;  %v14093_v61 = vld [vmem:[#allocation166_spill] sm:$0xff]  ;;  %v14094_v44 = vld [vmem:[#allocation168_spill] sm:$0xff] }
 0x610   : > { %v9686_v6 = vadd.f32 %v2224_v37, %v9350_v19  ;;  %v9691_v47 = vsel %vm995_vm1, %v14088_v63, %v14087_v43  ;;  %v9696_v14 = vsel %vm995_vm1, %v14087_v43, %v14090_v42  ;;  %v14092_v7 = vld [vmem:[#allocation167_spill] sm:$0xff]  ;;  %4325 = vrot.lane.b32.xlu0 %v4227_v2, %s6733_s29  ;;  %v9703_v35 = vadd.f32 %v2227_v16, %v9402_v5  ;;  %v14095_v2 = vld [vmem:[#allocation164_spill] sm:$0xff]  ;;  %v14098_v16 = vld [vmem:[#allocation173_spill] sm:$0xff] }
 0x611   : > { %14089 = vst [vmem:[#allocation42_spill] sm:$0xff] %v9691_v47  ;;  %14091 = vst [vmem:[#allocation105_spill] sm:$0xff] %v9696_v14  ;;  %v2231_v59 = vsel %vm995_vm1, %v14093_v61, %v14092_v7  ;;  %v9707_v19 = vadd.f32 %v14086_v62, %v9449_v11  ;;  %v2232_v63 = vsel %vm995_vm1, %v14092_v7, %v14094_v44  ;;  %4323 = vrot.lane.b32.xlu1 %v4226_v0, %s6733_s29  ;;  %v14096_v61 = vld [vmem:[#allocation163_spill] sm:$0xff]  ;;  %v14099_v11 = vld [vmem:[#allocation172_spill] sm:$0xff] }
 0x612   : > { %v4116_v37 = vmul.f32 %v9569_v33, %v7339_v3  ;;  %v9716_v43 = vadd.f32 %v2228_v56, %v9451_v38  ;;  %v9721_v5 = vsel %vm995_vm1, %v14096_v61, %v14095_v2  ;;  %v2235_v62 = vsel %vm995_vm1, %v14099_v11, %v14098_v16  ;;  %v14100_v14 = vld [vmem:[#allocation165_spill] sm:$0xff]  ;;  %v14102_v38 = vld [vmem:[#allocation174_spill] sm:$0xff]  ;;  %v9737_v61 = vpop.permute.xlu1 %3725 }
 0x613   : > { %14097 = vst [vmem:[#allocation103_spill] sm:$0xff] %v9721_v5  ;;  %v4229_v42 = vmul.f32 %v4167_v29, %v4117_v36  ;;  %v9729_v7 = vsel %vm995_vm1, %v14095_v2, %v14100_v14  ;;  %v9732_v3 = vadd.f32 %v2231_v59, %v9469_v30  ;;  %v2236_v56 = vsel %vm995_vm1, %v14098_v16, %v14102_v38  ;;  %v14103_v11 = vld [vmem:[#allocation170_spill] sm:$0xff]  ;;  %v14104_v47 = vld [vmem:[#allocation169_spill] sm:$0xff]  ;;  %v14108_v16 = vld [vmem:[#allocation171_spill] sm:$0xff] }
 0x614   : > { %14101 = vst [vmem:[#allocation54_spill] sm:$0xff] %v9729_v7  ;;  %v4228_v0 = vmul.f32 %v4167_v29, %v4116_v37  ;;  %v2323_v5 = vadd.f32 %v2232_v63, %v9471_v27  ;;  %v2324_v36 = vadd.f32 %v14094_v44, %v9474_v34  ;;  %v9745_v2 = vsel %vm995_vm1, %v14104_v47, %v14103_v11  ;;  %v14106_v7 = vld [vmem:[#allocation179_spill] sm:$0xff]  ;;  %v14107_v30 = vld [vmem:[#allocation178_spill] sm:$0xff]  ;;  %v14110_v44 = vld [vmem:[#allocation180_spill] sm:$0xff] }
 0x615   : > { %14105 = vst [vmem:[#allocation110_spill] sm:$0xff] %v9745_v2  ;;  %v2239_v59 = vsel %vm995_vm1, %v14107_v30, %v14106_v7  ;;  %4329 = vrot.lane.b32.xlu0 %v4229_v42, %s6733_s29  ;;  %v9754_v37 = vsel %vm995_vm1, %v14103_v11, %v14108_v16  ;;  %v2328_v27 = vadd.f32 %v2235_v62, %v9492_v10  ;;  %v4548_v42 = vld [vmem:[%s13192_s4 + $0x10] sm:$0xff]  ;;  %v14111_v30 = vld [vmem:[#allocation176_spill] sm:$0xff]  ;;  %v14112_v11 = vld [vmem:[#allocation175_spill] sm:$0xff] }
 0x616   : > { %14109 = vst [vmem:[#allocation57_spill] sm:$0xff] %v9754_v37  ;;  %v2330_v34 = vadd.f32 %v14102_v38, %v9512_v55  ;;  %v2240_v47 = vsel %vm995_vm1, %v14106_v7, %v14110_v44  ;;  %4327 = vrot.lane.b32.xlu1 %v4228_v0, %s6733_s29  ;;  %v2329_v63 = vadd.f32 %v2236_v56, %v9524_v39  ;;  %v14114_v62 = vld [vmem:[#allocation177_spill] sm:$0xff]  ;;  %v14118_v2 = vld [vmem:[#allocation182_spill] sm:$0xff] }
 0x617   : > { %v9770_v16 = vsel %vm995_vm1, %v14112_v11, %v14111_v30  ;;  %v2575_v10 = vsel %vm751_vm6, %v8378_v60, %v8376_v23  ;;  %v3667_v55 = vmul.f32 %v9487_v32, %v7373_v24  ;;  %v9780_v7 = vsel %vm995_vm1, %v14111_v30, %v14114_v62  ;;  %v14116_v39 = vld [vmem:[#allocation185_spill] sm:$0xff] }
 0x618   : > { %14113 = vst [vmem:[#allocation109_spill] sm:$0xff] %v9770_v16  ;;  %14115 = vst [vmem:[#allocation107_spill] sm:$0xff] %v9780_v7  ;;  %v9783_v38 = vadd.f32 %v2239_v59, %v9541_v54  ;;  %v2577_v56 = vsel %vm751_vm6, %v14116_v39, %v8384_v20  ;;  %v4230_v0 = vmul.f32 %v4167_v29, %v9613_v1  ;;  %v14117_v37 = vld [vmem:[#allocation181_spill] sm:$0xff]  ;;  %v9814_v7 = vpop.permute.xlu1 %3729 }
 0x619   : > { %v2335_v11 = vadd.f32 %v2240_v47, %v9547_v46  ;;  %v2336_v16 = vadd.f32 %v14110_v44, %v9544_v50  ;;  %v9795_v14 = vsel %vm751_vm6, %v14118_v2, %v14117_v37  ;;  %v9799_v54 = vadd.f32 %v8376_v23, %v9574_v45  ;;  %4574 = vperm.xlu0 %6564, %v4548_v42   ;;  %v14120_v46 = vld [vmem:[#allocation183_spill] sm:$0xff]  ;;  %v14121_v47 = vld [vmem:[#allocation184_spill] sm:$0xff]  ;;  %v14124_v30 = vld [vmem:[#allocation189_spill] sm:$0xff]  ;;  %v9828_v45 = vpop.permute.xlu0 %4174 }
 0x61a   : > { %14119 = vst [vmem:[#allocation56_spill] sm:$0xff] %v9795_v14  ;;  %v2641_v59 = vadd.f32 %v8378_v60, %v9564_v31  ;;  %v9804_v29 = vadd.f32 %v2575_v10, %v9588_v13  ;;  %v9809_v50 = vsel %vm751_vm6, %v14121_v47, %v14120_v46  ;;  %v14123_v44 = vld [vmem:[#allocation188_spill] sm:$0xff]  ;;  %4331 = vrot.lane.b32.xlu1 %v4230_v0, %s6733_s29  ;;  %v4549_v42 = vld [vmem:[%s13192_s4 + $0x18] sm:$0xff]  ;;  %v14126_v0 = vld [vmem:[#allocation187_spill] sm:$0xff] }
 0x61b   : > { %14122 = vst [vmem:[#allocation114_spill] sm:$0xff] %v9809_v50  ;;  %v2579_v62 = vsel %vm751_vm6, %v14124_v30, %v14123_v44  ;;  %v9819_v23 = vadd.f32 %v8384_v20, %v9621_v58  ;;  %v9823_v60 = vadd.f32 %v14116_v39, %v9607_v48  ;;  %v9826_v31 = vadd.f32 %v2577_v56, %v9617_v49  ;;  %v14125_v10 = vld [vmem:[#allocation186_spill] sm:$0xff]  ;;  %v14128_v58 = vld [vmem:[#allocation192_spill] sm:$0xff]  ;;  %v14129_v49 = vld [vmem:[#allocation193_spill] sm:$0xff] }
 0x61c   : > { %v3779_v13 = vmul.f32 %v9365_v17, %v3667_v55  ;;  %v9837_v20 = vsel %vm751_vm6, %v14126_v0, %v14125_v10  ;;  %v9841_v48 = vadd.f32 %v14123_v44, %v9649_v8  ;;  %v2581_v39 = vsel %vm751_vm6, %v14129_v49, %v14128_v58  ;;  %v14130_v10 = vld [vmem:[#allocation196_spill] sm:$0xff]  ;;  %v14131_v0 = vld [vmem:[#allocation197_spill] sm:$0xff]  ;;  %v14133_v47 = vld [vmem:[#allocation190_spill] sm:$0xff] }
 0x61d   : > { %14127 = vst [vmem:[#allocation27_spill] sm:$0xff] %v9837_v20  ;;  %v3666_v55 = vmul.f32 %v9427_v28, %v7353_v12  ;;  %v9850_v56 = vadd.f32 %v14124_v30, %v9638_v57  ;;  %v9853_v46 = vadd.f32 %v2579_v62, %v9645_v21  ;;  %v2583_v20 = vsel %vm751_vm6, %v14131_v0, %v14130_v10  ;;  %v14132_v8 = vld [vmem:[#allocation61_spill] sm:$0xff]  ;;  %v14134_v50 = vld [vmem:[#allocation191_spill] sm:$0xff]  ;;  %v14136_v62 = vld [vmem:[#allocation200_spill] sm:$0xff] }
 0x61e   : > { %v3669_v44 = vmul.f32 %v9427_v28, %v14132_v8  ;;  %3882 = vrot.lane.b32.xlu0 %v3779_v13, %s6732_s26  ;;  %v9864_v37 = vsel %vm751_vm6, %v14134_v50, %v14133_v47  ;;  %v9868_v57 = vadd.f32 %v14128_v58, %v9679_v26  ;;  %v9872_v21 = vadd.f32 %v14129_v49, %v9675_v40  ;;  %v14137_v30 = vld [vmem:[#allocation201_spill] sm:$0xff]  ;;  %v14138_v2 = vld [vmem:[#allocation194_spill] sm:$0xff]  ;;  %v9900_v50 = vpop.permute.xlu1 %4182 }
 0x61f   : > { %14135 = vst [vmem:[#allocation116_spill] sm:$0xff] %v9864_v37  ;;  %v2585_v14 = vsel %vm751_vm6, %v14137_v30, %v14136_v62  ;;  %4579 = vperm.xlu1 %6565, %v4549_v42   ;;  %v9878_v13 = vadd.f32 %v2581_v39, %v9686_v6  ;;  %v9883_v47 = vsel %vm751_vm6, %v14139_v4, %v14138_v2  ;;  %v14141_v6 = vld [vmem:[#allocation204_spill] sm:$0xff]  ;;  %v14142_v49 = vld [vmem:[#allocation205_spill] sm:$0xff] }
 0x620   : > { %14140 = vst [vmem:[#allocation111_spill] sm:$0xff] %v9883_v47  ;;  %v9887_v26 = vadd.f32 %v14130_v10, %v9707_v19  ;;  %v3781_v40 = vmul.f32 %v9519_v18, %v3669_v44  ;;  %v9892_v58 = vadd.f32 %v14131_v0, %v9703_v35  ;;  %v9895_v42 = vadd.f32 %v2583_v20, %v9716_v43  ;;  %v14143_v47 = vld [vmem:[#allocation198_spill] sm:$0xff]  ;;  %v14144_v19 = vld [vmem:[#allocation199_spill] sm:$0xff]  ;;  %v9917_v0 = vpop.permute.xlu0 %4178 }
 0x621   : > { %v2587_v39 = vsel %vm751_vm6, %v14142_v49, %v14141_v6  ;;  %v3778_v2 = vmul.f32 %v9365_v17, %v3666_v55  ;;  %v9906_v10 = vsel %vm751_vm6, %v14144_v19, %v14143_v47  ;;  %v9909_v44 = vadd.f32 %v14136_v62, %v2324_v36  ;;  %v14146_v20 = vld [vmem:[#allocation202_spill] sm:$0xff]  ;;  %v14147_v55 = vld [vmem:[#allocation203_spill] sm:$0xff]  ;;  %v14149_v62 = vld [vmem:[#allocation208_spill] sm:$0xff] }
 0x622   : > { %14145 = vst [vmem:[#allocation58_spill] sm:$0xff] %v9906_v10  ;;  %v9913_v35 = vadd.f32 %v14137_v30, %v9732_v3  ;;  %v9915_v43 = vadd.f32 %v2585_v14, %v2323_v5  ;;  %3886 = vrot.lane.b32.xlu0 %v3781_v40, %s6732_s26  ;;  %v9923_v4 = vsel %vm751_vm6, %v14147_v55, %v14146_v20  ;;  %v14150_v3 = vld [vmem:[#allocation209_spill] sm:$0xff]  ;;  %v14156_v55 = vld [vmem:[#allocation207_spill] sm:$0xff] }
 0x623   : > { %14148 = vst [vmem:[#allocation117_spill] sm:$0xff] %v9923_v4  ;;  %v9926_v10 = vadd.f32 %v14141_v6, %v2330_v34  ;;  %v9929_v36 = vadd.f32 %v14142_v49, %v2328_v27  ;;  %v2589_v14 = vsel %vm751_vm6, %v14150_v3, %v14149_v62  ;;  %3880 = vrot.lane.b32.xlu1 %v3778_v2, %s6732_s26  ;;  %v14151_v34 = vld [vmem:[#allocation213_spill] sm:$0xff]  ;;  %v14152_v6 = vld [vmem:[#allocation212_spill] sm:$0xff]  ;;  %v14153_v49 = vld [vmem:[#allocation214_spill] sm:$0xff] }
 0x624   : > { %v9935_v5 = vadd.f32 %v2587_v39, %v2329_v63  ;;  %v3783_v30 = vmul.f32 %v9519_v18, %v9489_v15  ;;  %v4120_v40 = vmul.f32 %v9583_v51, %v7373_v24  ;;  %v3061_v27 = vsel %vm3058_vm10, %v14152_v6, %v14151_v34  ;;  %v14154_v4 = vld [vmem:[#allocation62_spill] sm:$0xff] }
 0x625   : > { %v3062_v20 = vsel %vm3058_vm10, %v14151_v34, %v14153_v49  ;;  %v3670_v2 = vmul.f32 %v9487_v32, %v14154_v4  ;;  %v3780_v63 = vmul.f32 %v9365_v17, %v9489_v15  ;;  %v14155_v39 = vld [vmem:[#allocation206_spill] sm:$0xff]  ;;  %v9957_v24 = vadd.f32 %v14149_v62, %v2336_v16  ;;  %v14159_v49 = vld [vmem:[#allocation60_spill] sm:$0xff]  ;;  %v14163_v62 = vld [vmem:[#allocation219_spill] sm:$0xff] }
 0x626   : > { %v9954_v19 = vsel %vm751_vm6, %v14156_v55, %v14155_v39  ;;  %v9961_v47 = vadd.f32 %v14150_v3, %v9783_v38  ;;  %v9963_v37 = vadd.f32 %v2589_v14, %v2335_v11  ;;  %3890 = vrot.lane.b32.xlu0 %v3783_v30, %s6732_s26  ;;  %v14158_v34 = vld [vmem:[#allocation210_spill] sm:$0xff]  ;;  %v9977_v16 = vadd.f32 %v14152_v6, %v2641_v59  ;;  %v9982_v3 = vpop.permute.xlu1 %3737  ;;  %v14165_v39 = vld [vmem:[#allocation220_spill] sm:$0xff]  ;;  %v9995_v6 = vpop.permute.xlu0 %4190 }
 0x627   : > { %14157 = vst [vmem:[#allocation120_spill] sm:$0xff] %v9954_v19  ;;  %v9969_v17 = vsel %vm3058_vm10, %v14159_v49, %v14158_v34  ;;  %v9974_v55 = vsel %vm3058_vm10, %v14158_v34, %v14161_v22  ;;  %v14164_v38 = vld [vmem:[#allocation218_spill] sm:$0xff]  ;;  %3884 = vrot.lane.b32.xlu1 %v3780_v63, %s6732_s26  ;;  %v9986_v14 = vadd.f32 %v3061_v27, %v9804_v29  ;;  %v14166_v34 = vld [vmem:[#allocation216_spill] sm:$0xff]  ;;  %v14167_v19 = vld [vmem:[#allocation215_spill] sm:$0xff] }
 0x628   : > { %14160 = vst [vmem:[#allocation122_spill] sm:$0xff] %v9969_v17  ;;  %14162 = vst [vmem:[#allocation118_spill] sm:$0xff] %v9974_v55  ;;  %v3065_v11 = vsel %vm3058_vm10, %v14164_v38, %v14163_v62  ;;  %v9989_v30 = vadd.f32 %v3062_v20, %v9799_v54  ;;  %v3066_v22 = vsel %vm3058_vm10, %v14163_v62, %v14165_v39  ;;  %v14169_v63 = vld [vmem:[#allocation217_spill] sm:$0xff]  ;;  %v14172_v39 = vld [vmem:[#allocation224_spill] sm:$0xff] }
 0x629   : > { %v4232_v59 = vmul.f32 %v9659_v52, %v4120_v40  ;;  %v10000_v55 = vsel %vm3058_vm10, %v14167_v19, %v14166_v34  ;;  %v10005_v29 = vsel %vm3058_vm10, %v14166_v34, %v14169_v63  ;;  %v10009_v54 = vadd.f32 %v14164_v38, %v9823_v60  ;;  %v14171_v27 = vld [vmem:[#allocation225_spill] sm:$0xff]  ;;  %v14173_v19 = vld [vmem:[#allocation226_spill] sm:$0xff]  ;;  %v14177_v38 = vld [vmem:[#allocation223_spill] sm:$0xff] }
 0x62a   : > { %14168 = vst [vmem:[#allocation113_spill] sm:$0xff] %v10000_v55  ;;  %14170 = vst [vmem:[#allocation124_spill] sm:$0xff] %v10005_v29  ;;  %v3782_v20 = vmul.f32 %v9519_v18, %v3670_v2  ;;  %v10013_v40 = vadd.f32 %v3065_v11, %v9826_v31  ;;  %v3069_v62 = vsel %vm3058_vm10, %v14172_v39, %v14171_v27  ;;  %v14174_v18 = vld [vmem:[#allocation222_spill] sm:$0xff]  ;;  %v14175_v2 = vld [vmem:[#allocation221_spill] sm:$0xff] }
 0x62b   : > { %v3070_v55 = vsel %vm3058_vm10, %v14171_v27, %v14173_v19  ;;  %v4122_v34 = vmul.f32 %v9569_v33, %v14132_v8  ;;  %4335 = vrot.lane.b32.xlu0 %v4232_v59, %s6733_s29  ;;  %v10025_v60 = vadd.f32 %v3066_v22, %v9819_v23  ;;  %v10030_v31 = vsel %vm3058_vm10, %v14175_v2, %v14174_v18  ;;  %v14179_v23 = vld [vmem:[#allocation231_spill] sm:$0xff]  ;;  %v14180_v22 = vld [vmem:[#allocation230_spill] sm:$0xff]  ;;  %v14181_v63 = vld [vmem:[#allocation232_spill] sm:$0xff] }
 0x62c   : > { %14176 = vst [vmem:[#allocation125_spill] sm:$0xff] %v10030_v31  ;;  %v10035_v11 = vsel %vm3058_vm10, %v14174_v18, %v14177_v38  ;;  %v4119_v19 = vmul.f32 %v9569_v33, %v7353_v12  ;;  %3888 = vrot.lane.b32.xlu1 %v3782_v20, %s6732_s26  ;;  %v10042_v8 = vadd.f32 %v14172_v39, %v9850_v56  ;;  %v14182_v20 = vld [vmem:[#allocation228_spill] sm:$0xff]  ;;  %v10063_v31 = vpop.permute.xlu1 %4186  ;;  %v14186_v2 = vld [vmem:[#allocation229_spill] sm:$0xff]  ;;  %v14244_v29 = vld [vmem:[#allocation262_spill] sm:$0xff] }
 0x62d   : > { %14178 = vst [vmem:[#allocation123_spill] sm:$0xff] %v10035_v11  ;;  %v3073_v59 = vsel %vm3058_vm10, %v14180_v22, %v14179_v23  ;;  %v3074_v27 = vsel %vm3058_vm10, %v14179_v23, %v14181_v63  ;;  %v4234_v18 = vmul.f32 %v9828_v45, %v4122_v34  ;;  %v10052_v38 = vadd.f32 %v3069_v62, %v9853_v46  ;;  %v14183_v11 = vld [vmem:[#allocation227_spill] sm:$0xff]  ;;  %v14190_v34 = vld [vmem:[#allocation238_spill] sm:$0xff]  ;;  %v14246_v49 = vld [vmem:[#allocation64_spill] sm:$0xff] }
 0x62e   : > { %v10055_v12 = vadd.f32 %v3070_v55, %v9841_v48  ;;  %v10060_v56 = vsel %vm3058_vm10, %v14183_v11, %v14182_v20  ;;  %v4231_v39 = vmul.f32 %v9659_v52, %v4119_v19  ;;  %14185 = vst [vmem:[#allocation127_spill] sm:$0xff] %v10063_v31  ;;  %v10068_v23 = vsel %vm3058_vm10, %v14182_v20, %v14186_v2  ;;  %v14188_v48 = vld [vmem:[#allocation237_spill] sm:$0xff]  ;;  %v14189_v55 = vld [vmem:[#allocation236_spill] sm:$0xff]  ;;  %v10080_v19 = vpop.permute.xlu0 %4194 }
 0x62f   : > { %14184 = vst [vmem:[#allocation119_spill] sm:$0xff] %v10060_v56  ;;  %14187 = vst [vmem:[#allocation129_spill] sm:$0xff] %v10068_v23  ;;  %v10072_v46 = vadd.f32 %v14180_v22, %v9872_v21  ;;  %v3077_v62 = vsel %vm3058_vm10, %v14189_v55, %v14188_v48  ;;  %v3078_v63 = vsel %vm3058_vm10, %v14188_v48, %v14190_v34  ;;  %4339 = vrot.lane.b32.xlu0 %v4234_v18, %s6733_s29  ;;  %v14191_v21 = vld [vmem:[#allocation234_spill] sm:$0xff]  ;;  %v14192_v22 = vld [vmem:[#allocation233_spill] sm:$0xff] }
 0x630   : > { %v10084_v11 = vadd.f32 %v3073_v59, %v9878_v13  ;;  %v10087_v2 = vadd.f32 %v3074_v27, %v9868_v57  ;;  %v10092_v20 = vsel %vm3058_vm10, %v14192_v22, %v14191_v21  ;;  %v14194_v23 = vld [vmem:[#allocation235_spill] sm:$0xff]  ;;  %4333 = vrot.lane.b32.xlu1 %v4231_v39, %s6733_s29  ;;  %v10102_v18 = vadd.f32 %v14189_v55, %v9892_v58  ;;  %v14197_v59 = vld [vmem:[#allocation242_spill] sm:$0xff]  ;;  %v14198_v27 = vld [vmem:[#allocation244_spill] sm:$0xff] }
 0x631   : > { %14193 = vst [vmem:[#allocation133_spill] sm:$0xff] %v10092_v20  ;;  %v10097_v56 = vsel %vm3058_vm10, %v14191_v21, %v14194_v23  ;;  %v14196_v13 = vld [vmem:[#allocation243_spill] sm:$0xff]  ;;  %v4236_v34 = vmul.f32 %v9828_v45, %v9613_v1  ;;  %v10113_v23 = vadd.f32 %v3077_v62, %v9895_v42  ;;  %v10116_v39 = vadd.f32 %v3078_v63, %v9887_v26  ;;  %v14199_v21 = vld [vmem:[#allocation240_spill] sm:$0xff]  ;;  %v14202_v20 = vld [vmem:[#allocation241_spill] sm:$0xff] }
 0x632   : > { %14195 = vst [vmem:[#allocation130_spill] sm:$0xff] %v10097_v56  ;;  %v3081_v57 = vsel %vm3058_vm10, %v14197_v59, %v14196_v13  ;;  %v3082_v48 = vsel %vm3058_vm10, %v14196_v13, %v14198_v27  ;;  %v14200_v58 = vld [vmem:[#allocation239_spill] sm:$0xff]  ;;  %v4233_v56 = vmul.f32 %v9659_v52, %v9613_v1  ;;  %v10128_v13 = vsel %vm3058_vm10, %v14199_v21, %v14202_v20  ;;  %v14205_v62 = vld [vmem:[#allocation249_spill] sm:$0xff]  ;;  %v14206_v26 = vld [vmem:[#allocation248_spill] sm:$0xff] }
 0x633   : > { %v10121_v55 = vsel %vm3058_vm10, %v14200_v58, %v14199_v21  ;;  %14203 = vst [vmem:[#allocation128_spill] sm:$0xff] %v10128_v13  ;;  %v10132_v42 = vadd.f32 %v14197_v59, %v9913_v35  ;;  %v3085_v63 = vsel %vm3058_vm10, %v14206_v26, %v14205_v62  ;;  %v14207_v27 = vld [vmem:[#allocation250_spill] sm:$0xff]  ;;  %4343 = vrot.lane.b32.xlu0 %v4236_v34, %s6733_s29  ;;  %v14210_v21 = vld [vmem:[#allocation255_spill] sm:$0xff]  ;;  %v4551_v34 = vld [vmem:[%s13192_s4 + $0x28] sm:$0xff] }
 0x634   : > { %14201 = vst [vmem:[#allocation132_spill] sm:$0xff] %v10121_v55  ;;  %v3086_v55 = vsel %vm3058_vm10, %v14205_v62, %v14207_v27  ;;  %v10142_v52 = vadd.f32 %v3081_v57, %v9915_v43  ;;  %v10145_v20 = vadd.f32 %v3082_v48, %v9909_v44  ;;  %v14211_v58 = vld [vmem:[#allocation254_spill] sm:$0xff]  ;;  %v4123_v59 = vmul.f32 %v9583_v51, %v14154_v4  ;;  %v14214_v57 = vld [vmem:[#allocation245_spill] sm:$0xff]  ;;  %v14216_v48 = vld [vmem:[#allocation247_spill] sm:$0xff] }
 0x635   : > { %14204 = vst [vmem:[#allocation126_spill] sm:$0xff] %v10132_v42  ;;  %v3089_v35 = vsel %vm3058_vm10, %v14211_v58, %v14210_v21  ;;  %v10152_v42 = vpop.permute.xlu1 %3741  ;;  %4337 = vrot.lane.b32.xlu1 %v4233_v56, %s6733_s29  ;;  %v14213_v43 = vld [vmem:[#allocation246_spill] sm:$0xff]  ;;  %v10170_v4 = vadd.f32 %v14206_v26, %v9929_v36  ;;  %v14219_v27 = vld [vmem:[#allocation256_spill] sm:$0xff]  ;;  %v14223_v13 = vld [vmem:[#allocation251_spill] sm:$0xff] }
 0x636   : > { %14208 = vst [vmem:[#allocation137_spill] sm:$0xff] %v10142_v52  ;;  %14209 = vst [vmem:[#allocation136_spill] sm:$0xff] %v10145_v20  ;;  %v10161_v44 = vsel %vm3058_vm10, %v14214_v57, %v14213_v43  ;;  %v10166_v62 = vsel %vm3058_vm10, %v14213_v43, %v14216_v48  ;;  %v3090_v56 = vsel %vm3058_vm10, %v14210_v21, %v14219_v27  ;;  %v10175_v20 = vpop.permute.xlu0 %4206  ;;  %v14222_v57 = vld [vmem:[#allocation252_spill] sm:$0xff]  ;;  %v14225_v26 = vld [vmem:[#allocation253_spill] sm:$0xff] }
 0x637   : > { %14212 = vst [vmem:[#allocation134_spill] sm:$0xff] %v10152_v42  ;;  %14215 = vst [vmem:[#allocation59_spill] sm:$0xff] %v10161_v44  ;;  %v10178_v52 = vadd.f32 %v3085_v63, %v9935_v5  ;;  %v10181_v44 = vadd.f32 %v3086_v55, %v9926_v10  ;;  %v10186_v43 = vsel %vm3058_vm10, %v14223_v13, %v14222_v57  ;;  %4589 = vperm.xlu0 %6564, %v4551_v34   ;;  %v14232_v27 = vld [vmem:[#allocation35_spill] sm:$0xff]  ;;  %v14239_v13 = vld [vmem:[#allocation32_spill] sm:$0xff] }
 0x638   : > { %14217 = vst [vmem:[#allocation138_spill] sm:$0xff] %v10166_v62  ;;  %14218 = vst [vmem:[#allocation143_spill] sm:$0xff] %v10170_v4  ;;  %v4235_v36 = vmul.f32 %v9828_v45, %v4123_v59  ;;  %v10192_v48 = vsel %vm3058_vm10, %v14222_v57, %v14225_v26  ;;  %v10196_v21 = vadd.f32 %v14211_v58, %v9961_v47  ;;  %v14230_v45 = vld [vmem:[#allocation257_spill] sm:$0xff]  ;;  %v14231_v59 = vld [vmem:[#allocation258_spill] sm:$0xff] }
 0x639   : > { %14220 = vst [vmem:[#allocation142_spill] sm:$0xff] %v10178_v52  ;;  %14221 = vst [vmem:[#allocation144_spill] sm:$0xff] %v10181_v44  ;;  %v10199_v5 = vadd.f32 %v3089_v35, %v9963_v37  ;;  %v3673_v10 = vmul.f32 %v9487_v32, %v7421_v41  ;;  %v10204_v55 = vadd.f32 %v3090_v56, %v9957_v24  ;;  %v14233_v37 = vld [vmem:[#allocation12_spill] sm:$0xff]  ;;  %v14235_v26 = vld [vmem:[#allocation29_spill] sm:$0xff] }
 0x63a   : > { %14224 = vst [vmem:[#allocation140_spill] sm:$0xff] %v10186_v43  ;;  %14226 = vst [vmem:[#allocation139_spill] sm:$0xff] %v10192_v48  ;;  %v3243_v63 = vmul.f32 %v14230_v45, %v7579_v9  ;;  %v3244_v57 = vmul.f32 %v14231_v59, %v7588_v25  ;;  %v3240_v47 = vmul.f32 %v14230_v45, %v14232_v27  ;;  %4341 = vrot.lane.b32.xlu1 %v4235_v36, %s6733_s29  ;;  %v14234_v35 = vld [vmem:[#allocation36_spill] sm:$0xff]  ;;  %v14237_v44 = vld [vmem:[#allocation34_spill] sm:$0xff]  ;;  %v10231_v43 = vpop.permute.xlu1 %3745  ;;  %v10242_v31 = vpop.permute.xlu0 %4210 }
 0x63b   : > { %14227 = vst [vmem:[#allocation149_spill] sm:$0xff] %v10196_v21  ;;  %14228 = vst [vmem:[#allocation148_spill] sm:$0xff] %v10199_v5  ;;  %v3241_v58 = vmul.f32 %v14231_v59, %v14233_v37  ;;  %v3249_v34 = vmul.f32 %v14230_v45, %v14234_v35  ;;  %v3250_v24 = vmul.f32 %v14231_v59, %v14235_v26  ;;  %v14236_v5 = vld [vmem:[#allocation14_spill] sm:$0xff]  ;;  %v14238_v52 = vld [vmem:[#allocation37_spill] sm:$0xff] }
 0x63c   : > { %14229 = vst [vmem:[#allocation150_spill] sm:$0xff] %v10204_v55  ;;  %v3785_v56 = vmul.f32 %v9737_v61, %v3673_v10  ;;  %v4550_v55 = vld [vmem:[%s13192_s4 + $0x20] sm:$0xff]  ;;  %v3246_v21 = vmul.f32 %v14230_v45, %v14236_v5  ;;  %v3247_v36 = vmul.f32 %v14231_v59, %v14237_v44  ;;  %v3252_v4 = vmul.f32 %v14230_v45, %v14238_v52  ;;  %v14242_v10 = vld [vmem:[#allocation260_spill] sm:$0xff] }
 0x63d   : > { %v3253_v48 = vmul.f32 %v14231_v59, %v14239_v13  ;;  %14240 = vst [vmem:[#allocation146_spill] sm:$0xff] %v10231_v43  ;;  %v14241_v62 = vld [vmem:[#allocation259_spill] sm:$0xff]  ;;  %v10238_v17 = vmul.f32 %v14244_v29, %v3243_v63  ;;  %v3675_v42 = vmul.f32 %v9427_v28, %v14246_v49  ;;  %v10246_v45 = vmul.f32 %v14244_v29, %v3244_v57  ;;  %v14254_v57 = vld [vmem:[#allocation264_spill] sm:$0xff] }
 0x63e   : > { %v10235_v22 = vmul.f32 %v14242_v10, %v14241_v62  ;;  %3894 = vrot.lane.b32.xlu0 %v3785_v56, %s6732_s26  ;;  %v10250_v59 = vmul.f32 %v14244_v29, %v14241_v62  ;;  %v14249_v10 = vld [vmem:[#allocation261_spill] sm:$0xff]  ;;  %v14251_v63 = vld [vmem:[#allocation63_spill] sm:$0xff]  ;;  %4584 = vperm.xlu1 %6565, %v4550_v55  }
 0x63f   : > { %14245 = vst [vmem:[#allocation155_spill] sm:$0xff] %v10238_v17  ;;  %14247 = vst [vmem:[#allocation154_spill] sm:$0xff] %v10246_v45  ;;  %v3672_v17 = vmul.f32 %v9427_v28, %v14251_v63  ;;  %v10258_v43 = vmul.f32 %v14249_v10, %v3241_v58  ;;  %v10262_v56 = vmul.f32 %v14249_v10, %v14241_v62  ;;  %v14258_v55 = vld [vmem:[#allocation263_spill] sm:$0xff] }
 0x640   : > { %14243 = vst [vmem:[#allocation145_spill] sm:$0xff] %v10235_v22  ;;  %14248 = vst [vmem:[#allocation152_spill] sm:$0xff] %v10250_v59  ;;  %v10253_v22 = vmul.f32 %v14249_v10, %v3240_v47  ;;  %v10265_v45 = vmul.f32 %v14254_v57, %v3249_v34  ;;  %v3787_v29 = vmul.f32 %v9814_v7, %v3675_v42  ;;  %v14262_v42 = vld [vmem:[#allocation271_spill] sm:$0xff] }
 0x641   : > { %14252 = vst [vmem:[#allocation156_spill] sm:$0xff] %v10258_v43  ;;  %14253 = vst [vmem:[#allocation161_spill] sm:$0xff] %v10262_v56  ;;  %v10269_v59 = vmul.f32 %v14254_v57, %v3250_v24  ;;  %v10273_v47 = vmul.f32 %v14254_v57, %v14241_v62  ;;  %v3784_v58 = vmul.f32 %v9737_v61, %v3672_v17 }
 0x642   : > { %14250 = vst [vmem:[#allocation151_spill] sm:$0xff] %v10253_v22  ;;  %14255 = vst [vmem:[#allocation160_spill] sm:$0xff] %v10265_v45  ;;  %v10276_v22 = vmul.f32 %v14258_v55, %v3246_v21  ;;  %v10280_v10 = vmul.f32 %v14258_v55, %v3247_v36  ;;  %v10284_v34 = vmul.f32 %v14258_v55, %v14241_v62  ;;  %v14263_v45 = vld [vmem:[#allocation268_spill] sm:$0xff]  ;;  %3898 = vrot.lane.b32.xlu0 %v3787_v29, %s6732_s26  ;;  %v14265_v21 = vld [vmem:[#allocation265_spill] sm:$0xff] }
 0x643   : > { %14256 = vst [vmem:[#allocation162_spill] sm:$0xff] %v10269_v59  ;;  %14257 = vst [vmem:[#allocation158_spill] sm:$0xff] %v10273_v47  ;;  %v3514_v24 = vsel %vm3511_vm11, %v14263_v45, %v14262_v42  ;;  %v14264_v59 = vld [vmem:[#allocation270_spill] sm:$0xff]  ;;  %v10294_v47 = vmul.f32 %v14265_v21, %v3252_v4  ;;  %v10297_v17 = vmul.f32 %v14265_v21, %v3253_v48  ;;  %3892 = vrot.lane.b32.xlu1 %v3784_v58, %s6732_s26 }
 0x644   : > { %14259 = vst [vmem:[#allocation157_spill] sm:$0xff] %v10276_v22  ;;  %14260 = vst [vmem:[#allocation167_spill] sm:$0xff] %v10280_v10  ;;  %v3515_v57 = vsel %vm3511_vm11, %v14262_v42, %v14264_v59  ;;  %v10301_v36 = vmul.f32 %v14265_v21, %v14241_v62  ;;  %v14269_v55 = vld [vmem:[#allocation266_spill] sm:$0xff]  ;;  %v14270_v10 = vld [vmem:[#allocation267_spill] sm:$0xff]  ;;  %v10308_v22 = vpop.permute.xlu1 %4198  ;;  %v10313_v4 = vadd.f32 %v14263_v45, %v9977_v16 }
 0x645   : > { %14261 = vst [vmem:[#allocation166_spill] sm:$0xff] %v10284_v34  ;;  %14266 = vst [vmem:[#allocation168_spill] sm:$0xff] %v10294_v47  ;;  %v10306_v34 = vsel %vm3511_vm11, %v14270_v10, %v14269_v55  ;;  %v14272_v59 = vld [vmem:[#allocation269_spill] sm:$0xff]  ;;  %v14275_v29 = vld [vmem:[#allocation274_spill] sm:$0xff]  ;;  %v3789_v21 = vmul.f32 %v9814_v7, %v9489_v15  ;;  %v10328_v58 = vadd.f32 %v3514_v24, %v9986_v14 }
 0x646   : > { %14267 = vst [vmem:[#allocation164_spill] sm:$0xff] %v10297_v17  ;;  %14268 = vst [vmem:[#allocation163_spill] sm:$0xff] %v10301_v36  ;;  %v10318_v48 = vsel %vm3511_vm11, %v14269_v55, %v14272_v59  ;;  %v14274_v62 = vld [vmem:[#allocation277_spill] sm:$0xff]  ;;  %v10325_v17 = vpop.permute.xlu0 %4222  ;;  %v10331_v16 = vadd.f32 %v3515_v57, %v9989_v30  ;;  %v14278_v45 = vld [vmem:[#allocation276_spill] sm:$0xff]  ;;  %v3786_v59 = vmul.f32 %v9737_v61, %v9489_v15 }
 0x647   : > { %14271 = vst [vmem:[#allocation173_spill] sm:$0xff] %v10313_v4  ;;  %14273 = vst [vmem:[#allocation172_spill] sm:$0xff] %v10318_v48  ;;  %v3518_v42 = vsel %vm3511_vm11, %v14275_v29, %v14274_v62  ;;  %v3519_v55 = vsel %vm3511_vm11, %v14274_v62, %v14278_v45  ;;  %v14279_v36 = vld [vmem:[#allocation272_spill] sm:$0xff]  ;;  %v14280_v47 = vld [vmem:[#allocation273_spill] sm:$0xff]  ;;  %v10345_v43 = vadd.f32 %v14275_v29, %v10009_v54  ;;  %3902 = vrot.lane.b32.xlu0 %v3789_v21, %s6732_s26 }
 0x648   : > { %14276 = vst [vmem:[#allocation174_spill] sm:$0xff] %v10328_v58  ;;  %14277 = vst [vmem:[#allocation170_spill] sm:$0xff] %v10331_v16  ;;  %v10341_v4 = vsel %vm3511_vm11, %v14280_v47, %v14279_v36  ;;  %v14283_v14 = vld [vmem:[#allocation283_spill] sm:$0xff]  ;;  %v14284_v24 = vld [vmem:[#allocation280_spill] sm:$0xff]  ;;  %v4126_v57 = vmul.f32 %v9583_v51, %v7421_v41  ;;  %v10359_v45 = vadd.f32 %v3518_v42, %v10013_v40  ;;  %3896 = vrot.lane.b32.xlu1 %v3786_v59, %s6732_s26 }
 0x649   : > { %14281 = vst [vmem:[#allocation169_spill] sm:$0xff] %v10341_v4  ;;  %14282 = vst [vmem:[#allocation179_spill] sm:$0xff] %v10345_v43  ;;  %v3522_v30 = vsel %vm3511_vm11, %v14284_v24, %v14283_v14  ;;  %v14285_v62 = vld [vmem:[#allocation275_spill] sm:$0xff]  ;;  %v14288_v16 = vld [vmem:[#allocation282_spill] sm:$0xff]  ;;  %v10368_v41 = vadd.f32 %v3519_v55, %v10025_v60  ;;  %v10377_v40 = vadd.f32 %v14284_v24, %v10042_v8 }
 0x64a   : > { %v10356_v61 = vsel %vm3511_vm11, %v14279_v36, %v14285_v62  ;;  %14287 = vst [vmem:[#allocation180_spill] sm:$0xff] %v10359_v45  ;;  %v3523_v54 = vsel %vm3511_vm11, %v14283_v14, %v14288_v16  ;;  %v14289_v29 = vld [vmem:[#allocation65_spill] sm:$0xff]  ;;  %v14291_v21 = vld [vmem:[#allocation278_spill] sm:$0xff]  ;;  %v14292_v58 = vld [vmem:[#allocation279_spill] sm:$0xff]  ;;  %v4238_v42 = vmul.f32 %v9917_v0, %v4126_v57  ;;  %v10386_v59 = vadd.f32 %v3522_v30, %v10052_v38  ;;  %v10392_v45 = vpop.permute.xlu1 %3753 }
 0x64b   : > { %14286 = vst [vmem:[#allocation178_spill] sm:$0xff] %v10356_v61  ;;  %v3676_v43 = vmul.f32 %v9487_v32, %v14289_v29  ;;  %14290 = vst [vmem:[#allocation176_spill] sm:$0xff] %v10368_v41  ;;  %v10373_v36 = vsel %vm3511_vm11, %v14292_v58, %v14291_v21  ;;  %v14295_v16 = vld [vmem:[#allocation281_spill] sm:$0xff]  ;;  %v14299_v55 = vld [vmem:[#allocation286_spill] sm:$0xff]  ;;  %v10395_v8 = vadd.f32 %v3523_v54, %v10055_v12 }
 0x64c   : > { %14293 = vst [vmem:[#allocation175_spill] sm:$0xff] %v10373_v36  ;;  %14294 = vst [vmem:[#allocation185_spill] sm:$0xff] %v10377_v40  ;;  %v10383_v14 = vsel %vm3511_vm11, %v14291_v21, %v14295_v16  ;;  %v14298_v60 = vld [vmem:[#allocation289_spill] sm:$0xff]  ;;  %v14301_v24 = vld [vmem:[#allocation284_spill] sm:$0xff]  ;;  %v4128_v30 = vmul.f32 %v9569_v33, %v14246_v49  ;;  %v10407_v16 = vpop.permute.xlu0 %806  ;;  %4347 = vrot.lane.b32.xlu0 %v4238_v42, %s6733_s29  ;;  %v10545_v36 = vmul.f32 %v9603_v53, %v9489_v15 }
 0x64d   : > { %14296 = vst [vmem:[#allocation188_spill] sm:$0xff] %v10383_v14  ;;  %14297 = vst [vmem:[#allocation189_spill] sm:$0xff] %v10386_v59  ;;  %v3526_v62 = vsel %vm3511_vm11, %v14299_v55, %v14298_v60  ;;  %v3788_v41 = vmul.f32 %v9814_v7, %v3676_v43  ;;  %v14302_v57 = vld [vmem:[#allocation285_spill] sm:$0xff]  ;;  %v14304_v21 = vld [vmem:[#allocation288_spill] sm:$0xff]  ;;  %v10412_v7 = vadd.f32 %v14299_v55, %v10072_v46 }
 0x64e   : > { %14300 = vst [vmem:[#allocation192_spill] sm:$0xff] %v10395_v8  ;;  %v10400_v40 = vsel %vm3511_vm11, %v14302_v57, %v14301_v24  ;;  %v3527_v38 = vsel %vm3511_vm11, %v14298_v60, %v14304_v21  ;;  %v14306_v12 = vld [vmem:[#allocation43_spill] sm:$0xff]  ;;  %v14308_v8 = vld [vmem:[#allocation44_spill] sm:$0xff]  ;;  %v4125_v60 = vmul.f32 %v9569_v33, %v14251_v63  ;;  %v10429_v46 = vadd.f32 %v3526_v62, %v10084_v11  ;;  %v14312_v55 = vld [vmem:[#allocation66_spill] sm:$0xff] }
 0x64f   : > { %14303 = vst [vmem:[#allocation193_spill] sm:$0xff] %v10400_v40  ;;  %14305 = vst [vmem:[#allocation196_spill] sm:$0xff] %v10412_v7  ;;  %v14307_v43 = vld [vmem:[#allocation291_spill] sm:$0xff]  ;;  %v3531_v59 = vsel %vm3511_vm11, %v14306_v12, %v14308_v8  ;;  %3900 = vrot.lane.b32.xlu1 %v3788_v41, %s6732_s26  ;;  %v3678_v21 = vmul.f32 %v9427_v28, %v14312_v55  ;;  %v4240_v7 = vmul.f32 %v9900_v50, %v4128_v30  ;;  %v14318_v62 = vld [vmem:[#allocation292_spill] sm:$0xff] }
 0x650   : > { %v3530_v54 = vsel %vm3511_vm11, %v14307_v43, %v14306_v12  ;;  %v14309_v49 = vld [vmem:[#allocation287_spill] sm:$0xff]  ;;  %14311 = vst [vmem:[#allocation61_spill] sm:$0xff] %v10429_v46  ;;  %v10435_v8 = vadd.f32 %v3527_v38, %v10087_v2  ;;  %v14314_v12 = vld [vmem:[#allocation17_spill] sm:$0xff]  ;;  %v4237_v11 = vmul.f32 %v9917_v0, %v4125_v60  ;;  %v10456_v2 = vadd.f32 %v3531_v59, %v10116_v39  ;;  %v10474_v59 = vpop.permute.xlu1 %4202  ;;  %v14330_v46 = vld [vmem:[#allocation72_spill] sm:$0xff] }
 0x651   : > { %v10426_v42 = vsel %vm3511_vm11, %v14301_v24, %v14309_v49  ;;  %v14315_v63 = vld [vmem:[#allocation19_spill] sm:$0xff]  ;;  %v10444_v24 = vadd.f32 %v14307_v43, %v10102_v18  ;;  %v10450_v49 = vsel %vm3511_vm11, %v14314_v12, %v14318_v62  ;;  %v10453_v30 = vadd.f32 %v3530_v54, %v10113_v23  ;;  %4351 = vrot.lane.b32.xlu0 %v4240_v7, %s6733_s29  ;;  %v14324_v43 = vld [vmem:[#allocation49_spill] sm:$0xff]  ;;  %v14327_v54 = vld [vmem:[#allocation68_spill] sm:$0xff] }
 0x652   : > { %14310 = vst [vmem:[#allocation197_spill] sm:$0xff] %v10426_v42  ;;  %14313 = vst [vmem:[#allocation200_spill] sm:$0xff] %v10435_v8  ;;  %v10440_v41 = vsel %vm3511_vm11, %v14315_v63, %v14314_v12  ;;  %v14322_v38 = vld [vmem:[#allocation75_spill] sm:$0xff]  ;;  %v3702_v23 = vmul.f32 %v9427_v28, %v14234_v35  ;;  %v10472_v39 = vmul.f32 %v9427_v28, %v14327_v54  ;;  %v14328_v7 = vld [vmem:[#allocation102_spill] sm:$0xff] }
 0x653   : > { %14316 = vst [vmem:[#allocation201_spill] sm:$0xff] %v10440_v41  ;;  %14317 = vst [vmem:[#allocation204_spill] sm:$0xff] %v10444_v24  ;;  %v3691_v8 = vmul.f32 %v9487_v32, %v14322_v38  ;;  %v14323_v18 = vld [vmem:[#allocation91_spill] sm:$0xff]  ;;  %v14326_v24 = vld [vmem:[#allocation74_spill] sm:$0xff]  ;;  %4345 = vrot.lane.b32.xlu1 %v4237_v11, %s6733_s29  ;;  %v10478_v62 = vmul.f32 %v14328_v7, %v3678_v21  ;;  %v3703_v21 = vmul.f32 %v9487_v32, %v14235_v26 }
 0x654   : > { %14319 = vst [vmem:[#allocation205_spill] sm:$0xff] %v10450_v49  ;;  %14320 = vst [vmem:[#allocation208_spill] sm:$0xff] %v10453_v30  ;;  %v10464_v60 = vsel %vm3511_vm11, %v14324_v43, %v14323_v18  ;;  %v3690_v12 = vmul.f32 %v9427_v28, %v14326_v24  ;;  %v4242_v18 = vmul.f32 %v9900_v50, %v9613_v1  ;;  %v10490_v43 = vpop.permute.xlu0 %816  ;;  %v14331_v49 = vld [vmem:[#allocation96_spill] sm:$0xff]  ;;  %v14335_v14 = vld [vmem:[#allocation69_spill] sm:$0xff] }
 0x655   : > { %14321 = vst [vmem:[#allocation209_spill] sm:$0xff] %v10456_v2  ;;  %14325 = vst [vmem:[#allocation213_spill] sm:$0xff] %v10464_v60  ;;  %v14329_v2 = vld [vmem:[#allocation70_spill] sm:$0xff]  ;;  %v10488_v60 = vmul.f32 %v9427_v28, %v14330_v46  ;;  %v4239_v11 = vmul.f32 %v9917_v0, %v9613_v1  ;;  %v10501_v63 = vmul.f32 %v9427_v28, %v14232_v27  ;;  %v14337_v40 = vld [vmem:[#allocation73_spill] sm:$0xff] }
 0x656   : > { %v10484_v30 = vmul.f32 %v9427_v28, %v14329_v2  ;;  %v10493_v41 = vmul.f32 %v14331_v49, %v3690_v12  ;;  %v10504_v42 = vmul.f32 %v14331_v49, %v3691_v8  ;;  %v10508_v57 = vmul.f32 %v14331_v49, %v9489_v15  ;;  %4355 = vrot.lane.b32.xlu0 %v4242_v18, %s6733_s29  ;;  %v4553_v18 = vld [vmem:[%s13192_s4 + $0x38] sm:$0xff]  ;;  %v14342_v58 = vld [vmem:[#allocation67_spill] sm:$0xff] }
 0x657   : > { %v10512_v12 = vmul.f32 %v9487_v32, %v14335_v14  ;;  %v4129_v0 = vmul.f32 %v9583_v51, %v14289_v29  ;;  %v10523_v8 = vmul.f32 %v9487_v32, %v14337_v40  ;;  %v10527_v49 = vmul.f32 %v9487_v32, %v14233_v37  ;;  %4349 = vrot.lane.b32.xlu1 %v4239_v11, %s6733_s29 }
 0x658   : > { %14332 = vst [vmem:[#allocation212_spill] sm:$0xff] %v10493_v41  ;;  %14333 = vst [vmem:[#allocation214_spill] sm:$0xff] %v10504_v42  ;;  %v14336_v41 = vld [vmem:[#allocation71_spill] sm:$0xff]  ;;  %v10538_v29 = vmul.f32 %v9603_v53, %v3702_v23  ;;  %v10541_v42 = vmul.f32 %v9603_v53, %v3703_v21  ;;  %v3679_v61 = vmul.f32 %v9487_v32, %v14342_v58  ;;  %v10556_v21 = vpop.permute.xlu1 %3757 }
 0x659   : > { %14334 = vst [vmem:[#allocation62_spill] sm:$0xff] %v10508_v57  ;;  %v10516_v56 = vmul.f32 %v9487_v32, %v14336_v41  ;;  %v10531_v57 = vmul.f32 %v9427_v28, %v7579_v9  ;;  %14341 = vst [vmem:[#allocation218_spill] sm:$0xff] %v10545_v36  ;;  %v4134_v11 = vmul.f32 %v9569_v33, %v14327_v54 }
 0x65a   : > { %14339 = vst [vmem:[#allocation211_spill] sm:$0xff] %v10538_v29  ;;  %14340 = vst [vmem:[#allocation219_spill] sm:$0xff] %v10541_v42  ;;  %v4135_v47 = vmul.f32 %v9583_v51, %v14335_v14  ;;  %v4241_v4 = vmul.f32 %v9900_v50, %v4129_v0  ;;  %v4137_v23 = vmul.f32 %v9569_v33, %v14329_v2  ;;  %v10566_v14 = vpop.permute.xlu0 %826  ;;  %4599 = vperm.xlu0 %6564, %v4553_v18   ;;  %v14344_v0 = vld [vmem:[#allocation18_spill] sm:$0xff]  ;;  %v4552_v18 = vld [vmem:[%s13192_s4 + $0x30] sm:$0xff] }
 0x65b   : > { %14338 = vst [vmem:[#allocation210_spill] sm:$0xff] %v10531_v57  ;;  %14343 = vst [vmem:[#allocation220_spill] sm:$0xff] %v10556_v21  ;;  %v4138_v53 = vmul.f32 %v9583_v51, %v14336_v41  ;;  %v4146_v36 = vmul.f32 %v9569_v33, %v14232_v27  ;;  %v4147_v29 = vmul.f32 %v9583_v51, %v14233_v37 }
 0x65c   : > { %v4131_v54 = vmul.f32 %v9569_v33, %v14312_v55  ;;  %v4132_v50 = vmul.f32 %v9583_v51, %v14342_v58  ;;  %v4149_v2 = vmul.f32 %v9569_v33, %v7579_v9  ;;  %v4150_v41 = vmul.f32 %v9583_v51, %v7588_v25  ;;  %4353 = vrot.lane.b32.xlu1 %v4241_v4, %s6733_s29 }
 0x65d   : > { %v884_v27 = vmul.f32 %v10407_v16, %v14344_v0  ;;  %v4158_v37 = vmul.f32 %v9569_v33, %v14238_v52  ;;  %v4159_v55 = vmul.f32 %v9583_v51, %v14239_v13  ;;  %v10583_v58 = vmul.f32 %v9569_v33, %v14330_v46 }
 0x65e   : > { %v3791_v9 = vmul.f32 %v14328_v7, %v3679_v61  ;;  %v10591_v42 = vmul.f32 %v9583_v51, %v14337_v40  ;;  %v10595_v4 = vmul.f32 %v9569_v33, %v14326_v24  ;;  %v10599_v21 = vmul.f32 %v9583_v51, %v14322_v38  ;;  %v14346_v61 = vld [vmem:[#allocation21_spill] sm:$0xff]  ;;  %v14349_v38 = vld [vmem:[#allocation47_spill] sm:$0xff] }
 0x65f   : > { %v10603_v46 = vmul.f32 %v9487_v32, %v7588_v25  ;;  %v885_v57 = vmul.f32 %v10407_v16, %v14346_v61  ;;  %v10609_v48 = vmul.f32 %v9427_v28, %v14236_v5  ;;  %v10613_v40 = vmul.f32 %v9487_v32, %v14237_v44 }
 0x660   : > { %v10617_v24 = vmul.f32 %v9569_v33, %v14236_v5  ;;  %3906 = vrot.lane.b32.xlu0 %v3791_v9, %s6732_s26  ;;  %v1385_v25 = vadd.f32 %v14349_v38, %v884_v27  ;;  %v10625_v61 = vmul.f32 %v9583_v51, %v14237_v44  ;;  %4594 = vperm.xlu1 %6565, %v4552_v18   ;;  %v14350_v9 = vld [vmem:[#allocation20_spill] sm:$0xff]  ;;  %v10639_v38 = vpop.permute.xlu0 %836  ;;  %v14358_v18 = vld [vmem:[#allocation22_spill] sm:$0xff] }
 0x661   : > { %14345 = vst [vmem:[#allocation216_spill] sm:$0xff] %v10603_v46  ;;  %14347 = vst [vmem:[#allocation217_spill] sm:$0xff] %v10609_v48  ;;  %v10621_v46 = vpop.permute.xlu1 %3761  ;;  %v10629_v48 = vmul.f32 %v9427_v28, %v14238_v52  ;;  %v3793_v5 = vmul.f32 %v9982_v3, %v10472_v39  ;;  %v886_v27 = vmul.f32 %v10407_v16, %v14350_v9 }
 0x662   : > { %14348 = vst [vmem:[#allocation225_spill] sm:$0xff] %v10613_v40  ;;  %v10633_v40 = vmul.f32 %v9487_v32, %v14239_v13  ;;  %v10643_v44 = vmul.f32 %v9569_v33, %v14234_v35  ;;  %v10647_v28 = vmul.f32 %v9583_v51, %v14235_v26  ;;  %v10650_v32 = vmul.f32 %v9995_v6, %v4134_v11  ;;  %v14352_v26 = vld [vmem:[#allocation81_spill] sm:$0xff]  ;;  %v14354_v11 = vld [vmem:[#allocation15_spill] sm:$0xff] }
 0x663   : > { %v10653_v13 = vmul.f32 %v9995_v6, %v4135_v47  ;;  %v10657_v52 = vmul.f32 %v9995_v6, %v9613_v1  ;;  %v3792_v16 = vmul.f32 %v14328_v7, %v9489_v15  ;;  %v10662_v33 = vmul.f32 %v10080_v19, %v4137_v23 }
 0x664   : > { %v10665_v35 = vmul.f32 %v10080_v19, %v4138_v53  ;;  %v10669_v51 = vmul.f32 %v10080_v19, %v9613_v1  ;;  %v1386_v47 = vadd.f32 %v14352_v26, %v885_v57  ;;  %3910 = vrot.lane.b32.xlu0 %v3793_v5, %s6732_s26  ;;  %v3794_v6 = vmul.f32 %v9982_v3, %v10512_v12  ;;  %v14357_v53 = vld [vmem:[#allocation77_spill] sm:$0xff]  ;;  %v14359_v5 = vld [vmem:[#allocation127_spill] sm:$0xff] }
 0x665   : > { %v3795_v39 = vmul.f32 %v9982_v3, %v9489_v15  ;;  %v10678_v7 = vmul.f32 %v10175_v20, %v4146_v36  ;;  %v1838_v23 = vadd.f32 %v14354_v11, %v1385_v25  ;;  %3904 = vrot.lane.b32.xlu1 %v10478_v62, %s6732_s26  ;;  %v10684_v19 = vmul.f32 %v10175_v20, %v4147_v29  ;;  %v10702_v29 = vpop.permute.xlu1 %4214 }
 0x666   : > { %14351 = vst [vmem:[#allocation224_spill] sm:$0xff] %v10669_v51  ;;  %v10688_v57 = vmul.f32 %v10175_v20, %v9613_v1  ;;  %v1387_v12 = vadd.f32 %v14357_v53, %v886_v27  ;;  %v891_v3 = vmul.f32 %v10490_v43, %v14358_v18  ;;  %v4243_v36 = vmul.f32 %v14359_v5, %v4131_v54  ;;  %v14362_v27 = vld [vmem:[#allocation13_spill] sm:$0xff]  ;;  %v14363_v54 = vld [vmem:[#allocation23_spill] sm:$0xff]  ;;  %v847_v53 = vpop.permute.xlu0 %846  ;;  %v14392_v51 = vld [vmem:[#allocation60_spill] sm:$0xff] }
 0x667   : > { %14353 = vst [vmem:[#allocation226_spill] sm:$0xff] %v10678_v7  ;;  %14355 = vst [vmem:[#allocation222_spill] sm:$0xff] %v10684_v19  ;;  %v4244_v9 = vmul.f32 %v14359_v5, %v4132_v50  ;;  %v10697_v25 = vmul.f32 %v14359_v5, %v9613_v1  ;;  %v10700_v62 = vmul.f32 %v10242_v31, %v4149_v2  ;;  %v14391_v7 = vld [vmem:[#allocation28_spill] sm:$0xff] }
 0x668   : > { %14356 = vst [vmem:[#allocation223_spill] sm:$0xff] %v10688_v57  ;;  %v10705_v20 = vmul.f32 %v10242_v31, %v4150_v41  ;;  %v1839_v26 = vadd.f32 %v14362_v27, %v1386_v47  ;;  %v890_v11 = vmul.f32 %v10490_v43, %v14344_v0  ;;  %v892_v50 = vmul.f32 %v10490_v43, %v14363_v54  ;;  %v14366_v41 = vld [vmem:[#allocation24_spill] sm:$0xff]  ;;  %v14367_v47 = vld [vmem:[#allocation11_spill] sm:$0xff]  ;;  %v14371_v54 = vld [vmem:[#allocation46_spill] sm:$0xff] }
 0x669   : > { %14360 = vst [vmem:[#allocation231_spill] sm:$0xff] %v10700_v62  ;;  %3914 = vrot.lane.b32.xlu0 %v3795_v39, %s6732_s26  ;;  %v10715_v2 = vmul.f32 %v10242_v31, %v9613_v1  ;;  %v10718_v18 = vmul.f32 %v10325_v17, %v4158_v37  ;;  %v897_v5 = vmul.f32 %v10566_v14, %v14366_v41  ;;  %v14370_v39 = vld [vmem:[#allocation33_spill] sm:$0xff]  ;;  %v14372_v37 = vld [vmem:[#allocation134_spill] sm:$0xff] }
 0x66a   : > { %14361 = vst [vmem:[#allocation230_spill] sm:$0xff] %v10705_v20  ;;  %3908 = vrot.lane.b32.xlu1 %v3792_v16, %s6732_s26  ;;  %v2289_v27 = vadd.f32 %v14367_v47, %v1838_v23  ;;  %v10725_v62 = vmul.f32 %v10325_v17, %v4159_v55  ;;  %v10729_v43 = vmul.f32 %v10325_v17, %v9613_v1  ;;  %v14373_v23 = vld [vmem:[#allocation146_spill] sm:$0xff]  ;;  %v10762_v20 = vpop.permute.xlu1 %3769 }
 0x66b   : > { %14364 = vst [vmem:[#allocation232_spill] sm:$0xff] %v10715_v2  ;;  %14365 = vst [vmem:[#allocation228_spill] sm:$0xff] %v10718_v18  ;;  %v1840_v31 = vadd.f32 %v14370_v39, %v1387_v12  ;;  %v1392_v2 = vadd.f32 %v14371_v54, %v891_v3  ;;  %v10735_v18 = vmul.f32 %v14372_v37, %v10484_v30  ;;  %v14374_v3 = vld [vmem:[#allocation52_spill] sm:$0xff]  ;;  %v14390_v57 = vld [vmem:[#allocation90_spill] sm:$0xff] }
 0x66c   : > { %14368 = vst [vmem:[#allocation229_spill] sm:$0xff] %v10725_v62  ;;  %14369 = vst [vmem:[#allocation237_spill] sm:$0xff] %v10729_v43  ;;  %v10739_v16 = vmul.f32 %v14372_v37, %v10516_v56  ;;  %v10743_v55 = vmul.f32 %v14372_v37, %v9489_v15  ;;  %v10747_v17 = vmul.f32 %v14373_v23, %v10488_v60  ;;  %v14375_v30 = vld [vmem:[#allocation76_spill] sm:$0xff]  ;;  %v14377_v37 = vld [vmem:[#allocation25_spill] sm:$0xff] }
 0x66d   : > { %v10751_v12 = vmul.f32 %v14373_v23, %v10523_v8  ;;  %v2290_v41 = vadd.f32 %v14374_v3, %v1839_v26  ;;  %v1391_v47 = vadd.f32 %v14375_v30, %v890_v11  ;;  %v14376_v39 = vld [vmem:[#allocation84_spill] sm:$0xff]  ;;  %4359 = vrot.lane.b32.xlu0 %v4244_v9, %s6733_s29  ;;  %v896_v56 = vmul.f32 %v10566_v14, %v14344_v0  ;;  %v14379_v8 = vld [vmem:[#allocation182_spill] sm:$0xff] }
 0x66e   : > { %v1393_v54 = vadd.f32 %v14376_v39, %v892_v50  ;;  %v898_v62 = vmul.f32 %v10566_v14, %v14377_v37  ;;  %v14378_v60 = vld [vmem:[#allocation4_spill] sm:$0xff]  ;;  %3912 = vrot.lane.b32.xlu1 %v3794_v6, %s6732_s26  ;;  %v2638_v26 = vadd.f32 %v14379_v8, %v2289_v27  ;;  %v10768_v11 = vmul.f32 %v14373_v23, %v9489_v15  ;;  %v14380_v50 = vld [vmem:[#allocation135_spill] sm:$0xff]  ;;  %v14382_v39 = vld [vmem:[#allocation26_spill] sm:$0xff]  ;;  %v857_v14 = vpop.permute.xlu0 %856 }
 0x66f   : > { %v1398_v43 = vadd.f32 %v14378_v60, %v897_v5  ;;  %v2291_v9 = vadd.f32 %v14380_v50, %v1840_v31  ;;  %v14381_v3 = vld [vmem:[#allocation80_spill] sm:$0xff]  ;;  %v903_v19 = vmul.f32 %v10639_v38, %v14382_v39  ;;  %v10776_v5 = vmul.f32 %v10308_v22, %v10583_v58  ;;  %v14386_v37 = vld [vmem:[#allocation82_spill] sm:$0xff] }
 0x670   : > { %v1845_v30 = vadd.f32 %v14381_v3, %v1392_v2  ;;  %v10780_v6 = vmul.f32 %v10308_v22, %v10591_v42  ;;  %v10784_v27 = vmul.f32 %v10308_v22, %v9613_v1  ;;  %v902_v31 = vmul.f32 %v10639_v38, %v14344_v0  ;;  %v14385_v2 = vld [vmem:[#allocation39_spill] sm:$0xff]  ;;  %v14387_v8 = vld [vmem:[#allocation290_spill] sm:$0xff]  ;;  %v14388_v58 = vld [vmem:[#allocation56_spill] sm:$0xff] }
 0x671   : > { %v1844_v23 = vadd.f32 %v14385_v2, %v1391_v47  ;;  %v1846_v60 = vadd.f32 %v14386_v37, %v1393_v54  ;;  %v904_v50 = vmul.f32 %v10639_v38, %v14387_v8  ;;  %4363 = vrot.lane.b32.xlu0 %v10650_v32, %s6733_s29  ;;  %v2639_v42 = vadd.f32 %v14388_v58, %v2290_v41  ;;  %v14389_v3 = vld [vmem:[#allocation3_spill] sm:$0xff]  ;;  %v14393_v2 = vld [vmem:[#allocation98_spill] sm:$0xff]  ;;  %v14395_v8 = vld [vmem:[#allocation181_spill] sm:$0xff] }
 0x672   : > { %14383 = vst [vmem:[#allocation236_spill] sm:$0xff] %v10780_v6  ;;  %14384 = vst [vmem:[#allocation238_spill] sm:$0xff] %v10784_v27  ;;  %v1397_v39 = vadd.f32 %v14389_v3, %v896_v56  ;;  %v1399_v22 = vadd.f32 %v14390_v57, %v898_v62  ;;  %v1851_v6 = vadd.f32 %v14391_v7, %v1398_v43  ;;  %4357 = vrot.lane.b32.xlu1 %v4243_v36, %s6733_s29  ;;  %v14394_v37 = vld [vmem:[#allocation86_spill] sm:$0xff]  ;;  %v14398_v62 = vld [vmem:[#allocation293_spill] sm:$0xff]  ;;  %v10814_v43 = vpop.permute.xlu1 %4218 }
 0x673   : > { %v3139_v47 = vadd.f32 %v14392_v51, %v2638_v26  ;;  %v2296_v54 = vadd.f32 %v14393_v2, %v1845_v30  ;;  %v1404_v27 = vadd.f32 %v14394_v37, %v903_v19  ;;  %v908_v38 = vmul.f32 %v847_v53, %v14344_v0  ;;  %v14397_v7 = vld [vmem:[#allocation38_spill] sm:$0xff]  ;;  %v14402_v3 = vld [vmem:[#allocation83_spill] sm:$0xff]  ;;  %v14403_v2 = vld [vmem:[#allocation88_spill] sm:$0xff] }
 0x674   : > { %v2640_v32 = vadd.f32 %v14395_v8, %v2291_v9  ;;  %v10806_v41 = vmul.f32 %v10392_v45, %v10501_v63  ;;  %v10810_v57 = vmul.f32 %v10392_v45, %v10527_v49  ;;  %v1403_v36 = vadd.f32 %v14397_v7, %v902_v31  ;;  %v14399_v56 = vld [vmem:[#allocation94_spill] sm:$0xff]  ;;  %v867_v63 = vpop.permute.xlu0 %866 }
 0x675   : > { %v909_v51 = vmul.f32 %v847_v53, %v14398_v62  ;;  %v10818_v19 = vmul.f32 %v10392_v45, %v9489_v15  ;;  %v1405_v26 = vadd.f32 %v14399_v56, %v904_v50  ;;  %v14400_v9 = vld [vmem:[#allocation294_spill] sm:$0xff]  ;;  %4367 = vrot.lane.b32.xlu0 %v10657_v52, %s6733_s29  ;;  %v1850_v31 = vadd.f32 %v14402_v3, %v1397_v39  ;;  %v4555_v45 = vld [vmem:[%s13192_s4 + $0x48] sm:$0xff]  ;;  %v14409_v56 = vld [vmem:[#allocation87_spill] sm:$0xff] }
 0x676   : > { %14396 = vst [vmem:[#allocation234_spill] sm:$0xff] %v10810_v57  ;;  %v910_v30 = vmul.f32 %v847_v53, %v14400_v9  ;;  %v14401_v49 = vld [vmem:[#allocation122_spill] sm:$0xff]  ;;  %v10827_v37 = vadd.f32 %v14403_v2, %v1399_v22  ;;  %4361 = vrot.lane.b32.xlu1 %v10697_v25, %s6733_s29  ;;  %v10836_v53 = vadd.f32 %v14270_v10, %v3139_v47  ;;  %v14407_v39 = vld [vmem:[#allocation48_spill] sm:$0xff] }
 0x677   : > { %v3140_v58 = vadd.f32 %v14401_v49, %v2639_v42  ;;  %v14404_v8 = vld [vmem:[#allocation106_spill] sm:$0xff]  ;;  %v10841_v42 = vmul.f32 %v10474_v59, %v10595_v4  ;;  %v1409_v22 = vadd.f32 %v14407_v39, %v908_v38  ;;  %v10846_v9 = vadd.f32 %v14409_v56, %v1403_v36  ;;  %v10857_v49 = vpop.permute.xlu1 %4564  ;;  %v14413_v4 = vld [vmem:[#allocation8_spill] sm:$0xff]  ;;  %v14419_v56 = vld [vmem:[#allocation99_spill] sm:$0xff] }
 0x678   : > { %v2302_v7 = vadd.f32 %v14404_v8, %v1851_v6  ;;  %v14405_v52 = vld [vmem:[#allocation6_spill] sm:$0xff]  ;;  %v10850_v25 = vmul.f32 %v10474_v59, %v10599_v21  ;;  %v10854_v10 = vmul.f32 %v10474_v59, %v9613_v1  ;;  %v10860_v3 = vadd.f32 %v14413_v4, %v1405_v26  ;;  %v14414_v38 = vld [vmem:[#allocation100_spill] sm:$0xff]  ;;  %v14415_v21 = vld [vmem:[#allocation295_spill] sm:$0xff] }
 0x679   : > { %v1857_v50 = vadd.f32 %v14405_v52, %v1404_v27  ;;  %14406 = vst [vmem:[#allocation235_spill] sm:$0xff] %v10841_v42  ;;  %v14408_v62 = vld [vmem:[#allocation118_spill] sm:$0xff]  ;;  %v14412_v27 = vld [vmem:[#allocation89_spill] sm:$0xff]  ;;  %v914_v36 = vmul.f32 %v857_v14, %v14344_v0  ;;  %4609 = vperm.xlu0 %6564, %v4555_v45   ;;  %v10865_v2 = vadd.f32 %v10306_v34, %v3140_v58  ;;  %v14416_v52 = vld [vmem:[#allocation79_spill] sm:$0xff]  ;;  %v877_v45 = vpop.permute.xlu0 %876 }
 0x67a   : > { %v3141_v6 = vadd.f32 %v14408_v62, %v2640_v32  ;;  %14410 = vst [vmem:[#allocation243_spill] sm:$0xff] %v10850_v25  ;;  %14411 = vst [vmem:[#allocation242_spill] sm:$0xff] %v10854_v10  ;;  %v1410_v47 = vadd.f32 %v14412_v27, %v909_v51  ;;  %v1411_v32 = vadd.f32 %v14414_v38, %v910_v30  ;;  %4365 = vrot.lane.b32.xlu1 %v10653_v13, %s6733_s29  ;;  %v14417_v51 = vld [vmem:[#allocation101_spill] sm:$0xff]  ;;  %v14418_v62 = vld [vmem:[#allocation114_spill] sm:$0xff] }
 0x67b   : > { %v915_v8 = vmul.f32 %v857_v14, %v14415_v21  ;;  %v916_v59 = vmul.f32 %v857_v14, %v14416_v52  ;;  %v2295_v39 = vadd.f32 %v14417_v51, %v1844_v23  ;;  %v2645_v26 = vadd.f32 %v14418_v62, %v2296_v54  ;;  %v14420_v30 = vld [vmem:[#allocation95_spill] sm:$0xff]  ;;  %v14421_v58 = vld [vmem:[#allocation172_spill] sm:$0xff]  ;;  %v14422_v14 = vld [vmem:[#allocation141_spill] sm:$0xff]  ;;  %v10909_v10 = vpop.permute.xlu1 %4569 }
 0x67c   : > { %v2308_v27 = vadd.f32 %v14419_v56, %v1857_v50  ;;  %v10875_v4 = vadd.f32 %v14420_v30, %v1409_v22  ;;  %v4554_v34 = vld [vmem:[%s13192_s4 + $0x40] sm:$0xff]  ;;  %v10881_v38 = vadd.f32 %v14421_v58, %v3141_v6  ;;  %v2297_v21 = vadd.f32 %v14422_v14, %v1846_v60  ;;  %v14424_v23 = vld [vmem:[#allocation210_spill] sm:$0xff]  ;;  %v14425_v54 = vld [vmem:[#allocation220_spill] sm:$0xff] }
 0x67d   : > { %v14423_v13 = vld [vmem:[#allocation51_spill] sm:$0xff]  ;;  %v10889_v51 = vmul.f32 %v14425_v54, %v14424_v23  ;;  %v14427_v50 = vld [vmem:[#allocation216_spill] sm:$0xff]  ;;  %v10897_v62 = vmul.f32 %v14425_v54, %v9489_v15  ;;  %v14430_v56 = vld [vmem:[#allocation97_spill] sm:$0xff]  ;;  %3918 = vrot.lane.b32.xlu0 %v10739_v16, %s6732_s26  ;;  %v10915_v42 = vpop.permute.xlu0 %3868 }
 0x67e   : > { %v10885_v52 = vadd.f32 %v14423_v13, %v1410_v47  ;;  %v10893_v22 = vmul.f32 %v14425_v54, %v14427_v50  ;;  %v10900_v6 = vadd.f32 %v14430_v56, %v1411_v32  ;;  %v14431_v30 = vld [vmem:[#allocation16_spill] sm:$0xff]  ;;  %v14432_v58 = vld [vmem:[#allocation45_spill] sm:$0xff]  ;;  %4604 = vperm.xlu1 %6565, %v4554_v34   ;;  %v14439_v16 = vld [vmem:[#allocation183_spill] sm:$0xff] }
 0x67f   : > { %14426 = vst [vmem:[#allocation244_spill] sm:$0xff] %v10889_v51  ;;  %14429 = vst [vmem:[#allocation241_spill] sm:$0xff] %v10897_v62  ;;  %v1415_v60 = vadd.f32 %v14431_v30, %v914_v36  ;;  %v921_v47 = vmul.f32 %v867_v63, %v14432_v58  ;;  %v14433_v14 = vld [vmem:[#allocation41_spill] sm:$0xff]  ;;  %v14434_v23 = vld [vmem:[#allocation92_spill] sm:$0xff]  ;;  %v920_v36 = vmul.f32 %v867_v63, %v14344_v0 }
 0x680   : > { %14428 = vst [vmem:[#allocation240_spill] sm:$0xff] %v10893_v22  ;;  %v2301_v13 = vadd.f32 %v14433_v14, %v1850_v31  ;;  %v1416_v51 = vadd.f32 %v14434_v23, %v915_v8  ;;  %v14435_v50 = vld [vmem:[#allocation104_spill] sm:$0xff]  ;;  %v14437_v32 = vld [vmem:[#allocation113_spill] sm:$0xff]  ;;  %v2646_v25 = vadd.f32 %v14439_v16, %v2297_v21  ;;  %v14440_v31 = vld [vmem:[#allocation27_spill] sm:$0xff] }
 0x681   : > { %v1417_v22 = vadd.f32 %v14435_v50, %v916_v59  ;;  %v14436_v54 = vld [vmem:[#allocation184_spill] sm:$0xff]  ;;  %v3146_v56 = vadd.f32 %v14437_v32, %v2645_v26  ;;  %v2651_v14 = vadd.f32 %v14440_v31, %v2302_v7  ;;  %v14441_v8 = vld [vmem:[#allocation217_spill] sm:$0xff]  ;;  %v14446_v26 = vld [vmem:[#allocation78_spill] sm:$0xff]  ;;  %3922 = vrot.lane.b32.xlu0 %v10747_v17, %s6732_s26 }
 0x682   : > { %v2644_v62 = vadd.f32 %v14436_v54, %v2295_v39  ;;  %v14438_v30 = vld [vmem:[#allocation296_spill] sm:$0xff]  ;;  %v10921_v59 = vmul.f32 %v10621_v46, %v14441_v8  ;;  %v14443_v34 = vld [vmem:[#allocation225_spill] sm:$0xff]  ;;  %v10929_v39 = vmul.f32 %v10621_v46, %v9489_v15  ;;  %v14447_v50 = vld [vmem:[#allocation10_spill] sm:$0xff]  ;;  %3916 = vrot.lane.b32.xlu1 %v10735_v18, %s6732_s26  ;;  %v3871_v18 = vpop.permute.xlu1 %3870 }
 0x683   : > { %v922_v58 = vmul.f32 %v867_v63, %v14438_v30  ;;  %v10925_v23 = vmul.f32 %v10621_v46, %v14443_v34  ;;  %v927_v63 = vmul.f32 %v877_v45, %v14446_v26  ;;  %v10933_v54 = vadd.f32 %v14447_v50, %v1415_v60  ;;  %v14448_v21 = vld [vmem:[#allocation31_spill] sm:$0xff]  ;;  %v14449_v7 = vld [vmem:[#allocation85_spill] sm:$0xff]  ;;  %v14456_v17 = vld [vmem:[#allocation108_spill] sm:$0xff] }
 0x684   : > { %14442 = vst [vmem:[#allocation249_spill] sm:$0xff] %v10921_v59  ;;  %14445 = vst [vmem:[#allocation250_spill] sm:$0xff] %v10929_v39  ;;  %v1422_v32 = vadd.f32 %v14448_v21, %v921_v47  ;;  %v928_v30 = vmul.f32 %v877_v45, %v14449_v7  ;;  %v14450_v16 = vld [vmem:[#allocation187_spill] sm:$0xff]  ;;  %v14451_v8 = vld [vmem:[#allocation53_spill] sm:$0xff] }
 0x685   : > { %14444 = vst [vmem:[#allocation248_spill] sm:$0xff] %v10925_v23  ;;  %v2650_v31 = vadd.f32 %v14450_v16, %v2301_v13  ;;  %v10941_v34 = vadd.f32 %v14451_v8, %v1416_v51  ;;  %v14452_v23 = vld [vmem:[#allocation115_spill] sm:$0xff]  ;;  %v14455_v21 = vld [vmem:[#allocation5_spill] sm:$0xff]  ;;  %v1423_v39 = vadd.f32 %v14456_v17, %v922_v58  ;;  %v926_v13 = vmul.f32 %v877_v45, %v14344_v0  ;;  %v3873_v51 = vpop.permute.xlu0 %3872  ;;  %v14459_v59 = vld [vmem:[#allocation124_spill] sm:$0xff] }
 0x686   : > { %v1870_v46 = vadd.f32 %v14452_v23, %v1417_v22  ;;  %v14453_v60 = vld [vmem:[#allocation215_spill] sm:$0xff]  ;;  %v10950_v7 = vadd.f32 %v14455_v21, %v920_v36  ;;  %v14457_v16 = vld [vmem:[#allocation169_spill] sm:$0xff]  ;;  %v14458_v22 = vld [vmem:[#allocation50_spill] sm:$0xff]  ;;  %v3147_v57 = vadd.f32 %v14459_v59, %v2646_v25  ;;  %v10968_v0 = vmul.f32 %v10702_v29, %v10617_v24  ;;  %3926 = vrot.lane.b32.xlu0 %v10768_v11, %s6732_s26 }
 0x687   : > { %v3145_v26 = vadd.f32 %v14453_v60, %v2644_v62  ;;  %v14454_v47 = vld [vmem:[#allocation147_spill] sm:$0xff]  ;;  %v10955_v8 = vadd.f32 %v14457_v16, %v3146_v56  ;;  %v1428_v23 = vadd.f32 %v14458_v22, %v927_v63  ;;  %v14462_v36 = vld [vmem:[#allocation40_spill] sm:$0xff]  ;;  %v14464_v45 = vld [vmem:[#allocation221_spill] sm:$0xff]  ;;  %v10975_v25 = vmul.f32 %v10702_v29, %v10625_v61  ;;  %3920 = vrot.lane.b32.xlu1 %v10743_v55, %s6732_s26 }
 0x688   : > { %v2303_v50 = vadd.f32 %v14454_v47, %v10827_v37  ;;  %v14460_v62 = vld [vmem:[#allocation55_spill] sm:$0xff]  ;;  %v14461_v37 = vld [vmem:[#allocation116_spill] sm:$0xff]  ;;  %v10963_v21 = vadd.f32 %v14462_v36, %v1422_v32  ;;  %v3151_v56 = vadd.f32 %v14464_v45, %v2650_v31  ;;  %v14466_v59 = vld [vmem:[#allocation153_spill] sm:$0xff] }
 0x689   : > { %v2307_v60 = vadd.f32 %v14460_v62, %v10846_v9  ;;  %v2657_v47 = vadd.f32 %v14461_v37, %v2308_v27  ;;  %v14463_v58 = vld [vmem:[#allocation112_spill] sm:$0xff]  ;;  %v10979_v9 = vmul.f32 %v10702_v29, %v9613_v1  ;;  %v14465_v27 = vld [vmem:[#allocation186_spill] sm:$0xff]  ;;  %v2309_v63 = vadd.f32 %v14466_v59, %v10860_v3  ;;  %v14467_v11 = vld [vmem:[#allocation121_spill] sm:$0xff]  ;;  %v10992_v61 = vpop.permute.xlu0 %3876 }
 0x68a   : > { %v1429_v17 = vadd.f32 %v14463_v58, %v928_v30  ;;  %v2652_v24 = vadd.f32 %v14465_v27, %v2303_v50  ;;  %v10987_v32 = vadd.f32 %v14467_v11, %v1423_v39  ;;  %v14468_v30 = vld [vmem:[#allocation7_spill] sm:$0xff]  ;;  %v14469_v16 = vld [vmem:[#allocation273_spill] sm:$0xff]  ;;  %v14471_v55 = vld [vmem:[#allocation30_spill] sm:$0xff]  ;;  %v3875_v50 = vpop.permute.xlu1 %3874 }
 0x68b   : > { %v10990_v31 = vadd.f32 %v14468_v30, %v926_v13  ;;  %v10995_v29 = vadd.f32 %v14469_v16, %v3145_v26  ;;  %v14470_v22 = vld [vmem:[#allocation125_spill] sm:$0xff]  ;;  %v10999_v37 = vadd.f32 %v14471_v55, %v1428_v23  ;;  %v14472_v36 = vld [vmem:[#allocation178_spill] sm:$0xff]  ;;  %v14473_v3 = vld [vmem:[#allocation191_spill] sm:$0xff]  ;;  %3924 = vrot.lane.b32.xlu1 %v10751_v12, %s6732_s26 }
 0x68c   : > { %v3152_v62 = vadd.f32 %v14470_v22, %v2651_v14  ;;  %v11002_v58 = vadd.f32 %v14472_v36, %v3147_v57  ;;  %v2656_v39 = vadd.f32 %v14473_v3, %v2307_v60  ;;  %v14474_v45 = vld [vmem:[#allocation119_spill] sm:$0xff]  ;;  %v14478_v14 = vld [vmem:[#allocation42_spill] sm:$0xff]  ;;  %v14479_v16 = vld [vmem:[#allocation105_spill] sm:$0xff]  ;;  %v4045_v60 = vadd.f32 %v10915_v42, %v10836_v53 }
 0x68d   : > { %v3158_v27 = vadd.f32 %v14474_v45, %v2657_v47  ;;  %v14475_v13 = vld [vmem:[#allocation131_spill] sm:$0xff]  ;;  %v2313_v23 = vadd.f32 %v14478_v14, %v10875_v4  ;;  %v2314_v57 = vadd.f32 %v14479_v16, %v10885_v52  ;;  %v14481_v22 = vld [vmem:[#allocation190_spill] sm:$0xff]  ;;  %v11028_v3 = vmul.f32 %v10762_v20, %v10629_v48  ;;  %v4322_v52 = vpop.permute.xlu0 %4321  ;;  %v14486_v12 = vld [vmem:[#allocation165_spill] sm:$0xff] }
 0x68e   : > { %v11007_v59 = vadd.f32 %v14475_v13, %v1429_v17  ;;  %v14476_v11 = vld [vmem:[#allocation151_spill] sm:$0xff]  ;;  %v2658_v55 = vadd.f32 %v14481_v22, %v2309_v63  ;;  %v11032_v4 = vmul.f32 %v10762_v20, %v10633_v40  ;;  %v2321_v13 = vadd.f32 %v14486_v12, %v1870_v46  ;;  %v14489_v48 = vld [vmem:[#allocation193_spill] sm:$0xff] }
 0x68f   : > { %3481 = vrot.lane.b32.xlu0 %v14476_v11, %s6728_s18  ;;  %v14477_v26 = vld [vmem:[#allocation279_spill] sm:$0xff]  ;;  %14483 = vst [vmem:[#allocation255_spill] sm:$0xff] %v11028_v3  ;;  %v4498_v63 = vadd.f32 %v4322_v52, %v4045_v60  ;;  %v11044_v14 = vadd.f32 %v14489_v48, %v3158_v27  ;;  %v3965_v40 = vsel %vm3964_vm12, %v10915_v42, %v3871_v18  ;;  %v14495_v27 = vld [vmem:[#allocation188_spill] sm:$0xff] }
 0x690   : > { %v11012_v30 = vadd.f32 %v14477_v26, %v3151_v56  ;;  %v14480_v47 = vld [vmem:[#allocation123_spill] sm:$0xff]  ;;  %14484 = vst [vmem:[#allocation254_spill] sm:$0xff] %v11032_v4  ;;  %v3966_v16 = vsel %vm3964_vm12, %v3871_v18, %v3873_v51  ;;  %v11065_v18 = vmul.f32 %v10814_v43, %v10643_v44  ;;  %v14502_v44 = vld [vmem:[#allocation285_spill] sm:$0xff] }
 0x691   : > { %v3153_v17 = vadd.f32 %v14480_v47, %v2652_v24  ;;  %v14482_v36 = vld [vmem:[#allocation159_spill] sm:$0xff]  ;;  %v11040_v24 = vmul.f32 %v10762_v20, %v9489_v15  ;;  %14490 = vst [vmem:[#allocation247_spill] sm:$0xff] %v11044_v14  ;;  %v11054_v20 = vadd.f32 %v10857_v49, %v4498_v63  ;;  %v4326_v12 = vpop.permute.xlu0 %4325  ;;  %v14501_v63 = vld [vmem:[#allocation198_spill] sm:$0xff] }
 0x692   : > { %v2315_v56 = vadd.f32 %v14482_v36, %v10900_v6  ;;  %v14485_v53 = vld [vmem:[#allocation175_spill] sm:$0xff]  ;;  %v3879_v6 = vpop.permute.xlu1 %3878  ;;  %v14496_v36 = vld [vmem:[#allocation129_spill] sm:$0xff]  ;;  %14498 = vst [vmem:[#allocation256_spill] sm:$0xff] %v11065_v18 }
 0x693   : > { %v11035_v45 = vadd.f32 %v14485_v53, %v3152_v62  ;;  %14487 = vst [vmem:[#allocation246_spill] sm:$0xff] %v11040_v24  ;;  %v14488_v11 = vld [vmem:[#allocation227_spill] sm:$0xff]  ;;  %v14491_v62 = vld [vmem:[#allocation161_spill] sm:$0xff]  ;;  %v11059_v60 = vadd.f32 %v14495_v27, %v3153_v17  ;;  %v3159_v42 = vadd.f32 %v14496_v36, %v2658_v55  ;;  %v14497_v53 = vld [vmem:[#allocation194_spill] sm:$0xff]  ;;  %v2670_v17 = vadd.f32 %v14501_v63, %v2321_v13 }
 0x694   : > { %v3157_v26 = vadd.f32 %v14488_v11, %v2656_v39  ;;  %3485 = vrot.lane.b32.xlu0 %v14491_v62, %s6728_s18  ;;  %v14492_v46 = vld [vmem:[#allocation195_spill] sm:$0xff]  ;;  %v14494_v39 = vld [vmem:[#allocation145_spill] sm:$0xff]  ;;  %v2664_v51 = vadd.f32 %v14497_v53, %v2315_v56  ;;  %v4046_v11 = vadd.f32 %v3965_v40, %v10865_v2  ;;  %v4047_v55 = vadd.f32 %v3966_v16, %v10881_v38 }
 0x695   : > { %v2662_v47 = vadd.f32 %v14492_v46, %v2313_v23  ;;  %v14493_v22 = vld [vmem:[#allocation111_spill] sm:$0xff]  ;;  %3479 = vrot.lane.b32.xlu1 %v14494_v39, %s6728_s18  ;;  %v11069_v23 = vmul.f32 %v10814_v43, %v10647_v28  ;;  %v4738_v56 = vmul.f32 0.70710677, %v11054_v20  ;;  %v14505_v13 = vld [vmem:[#allocation133_spill] sm:$0xff]  ;;  %v3967_v2 = vsel %vm3964_vm12, %v3875_v50, %v10992_v61  ;;  %v4330_v27 = vpop.permute.xlu0 %4329 }
 0x696   : > { %v2663_v15 = vadd.f32 %v14493_v22, %v2314_v57  ;;  %v11073_v57 = vmul.f32 %v10814_v43, %v9613_v1  ;;  %v4324_v48 = vpop.permute.xlu1 %4323  ;;  %v11080_v62 = vadd.f32 %v14502_v44, %v3157_v26  ;;  %v14504_v1 = vld [vmem:[#allocation233_spill] sm:$0xff]  ;;  %v14506_v26 = vld [vmem:[#allocation156_spill] sm:$0xff] }
 0x697   : > { %14499 = vst [vmem:[#allocation252_spill] sm:$0xff] %v11069_v23  ;;  %v4418_v28 = vsel %vm4417_vm13, %v4322_v52, %v4324_v48  ;;  %v4419_v46 = vsel %vm4417_vm13, %v4324_v48, %v4326_v12  ;;  %v3163_v43 = vadd.f32 %v14504_v1, %v2662_v47  ;;  %v11090_v38 = vclamps-f32 %v4738_v56, 4.0  ;;  %v14507_v52 = vld [vmem:[#allocation173_spill] sm:$0xff]  ;;  %v14511_v12 = vld [vmem:[#allocation128_spill] sm:$0xff]  ;;  %v14514_v56 = vld [vmem:[#allocation103_spill] sm:$0xff] }
 0x698   : > { %14500 = vst [vmem:[#allocation253_spill] sm:$0xff] %v11073_v57  ;;  %14503 = vst [vmem:[#allocation257_spill] sm:$0xff] %v11080_v62  ;;  %4371 = vrot.lane.b32.xlu0 %v10665_v35, %s6733_s29  ;;  %v3164_v22 = vadd.f32 %v14505_v13, %v2663_v15  ;;  %v4499_v40 = vadd.f32 %v4418_v28, %v4046_v11  ;;  %v4500_v16 = vadd.f32 %v4419_v46, %v4047_v55  ;;  %v14508_v36 = vld [vmem:[#allocation197_spill] sm:$0xff]  ;;  %v14510_v35 = vld [vmem:[#allocation130_spill] sm:$0xff] }
 0x699   : > { %3483 = vrot.lane.b32.xlu1 %v14506_v26, %s6728_s18  ;;  %v4048_v39 = vadd.f32 %v3875_v50, %v14507_v52  ;;  %v11096_v53 = vadd.f32 %v14508_v36, %v3159_v42  ;;  %v3165_v47 = vadd.f32 %v14510_v35, %v2664_v51  ;;  %v11100_v15 = vadd.f32 %v14511_v12, %v2670_v17  ;;  %v14515_v48 = vld [vmem:[#allocation174_spill] sm:$0xff]  ;;  %v14517_v13 = vld [vmem:[#allocation19_spill] sm:$0xff]  ;;  %v14544_v18 = vld [vmem:[#allocation109_spill] sm:$0xff] }
 0x69a   : > { %v11104_v63 = vmul.f32 %v11090_v38, %v11090_v38  ;;  %v11107_v11 = vadd.f32 %v10857_v49, %v4499_v40  ;;  %v11110_v55 = vadd.f32 %v10857_v49, %v4500_v16  ;;  %v4328_v50 = vpop.permute.xlu1 %4327  ;;  %v2319_v42 = vadd.f32 %v14514_v56, %v10933_v54  ;;  %v14516_v28 = vld [vmem:[#allocation54_spill] sm:$0xff] }
 0x69b   : > { %14509 = vst [vmem:[#allocation258_spill] sm:$0xff] %v11096_v53  ;;  %14512 = vst [vmem:[#allocation35_spill] sm:$0xff] %v11100_v15  ;;  %v4049_v44 = vadd.f32 %v3967_v2, %v14515_v48  ;;  %v4420_v51 = vsel %vm4417_vm13, %v4328_v50, %v4330_v27  ;;  %v4501_v17 = vadd.f32 %v4328_v50, %v4048_v39  ;;  %v14519_v2 = vld [vmem:[#allocation201_spill] sm:$0xff]  ;;  %v14525_v56 = vld [vmem:[#allocation58_spill] sm:$0xff] }
 0x69c   : > { %14513 = vst [vmem:[#allocation12_spill] sm:$0xff] %v11104_v63  ;;  %4375 = vrot.lane.b32.xlu0 %v10776_v5, %s6733_s29  ;;  %v2320_v46 = vadd.f32 %v14516_v28, %v10941_v34  ;;  %v4930_v1 = vmul.f32 -2.7261424e-10, %v11104_v63  ;;  %v4739_v49 = vmul.f32 0.70710677, %v11107_v11  ;;  %v11125_v54 = vadd.f32 %v14517_v13, %v3163_v43  ;;  %v14523_v43 = vld [vmem:[#allocation199_spill] sm:$0xff] }
 0x69d   : > { %4369 = vrot.lane.b32.xlu1 %v10662_v33, %s6733_s29  ;;  %v11128_v40 = vadd.f32 %v14519_v2, %v3164_v22  ;;  %v3968_v16 = vsel %vm3964_vm12, %v10992_v61, %v3879_v6  ;;  %v4740_v5 = vmul.f32 0.70710677, %v11110_v55  ;;  %v4502_v26 = vadd.f32 %v4420_v51, %v4049_v44  ;;  %v14521_v33 = vld [vmem:[#allocation205_spill] sm:$0xff]  ;;  %v14524_v6 = vld [vmem:[#allocation238_spill] sm:$0xff]  ;;  %v14527_v28 = vld [vmem:[#allocation224_spill] sm:$0xff] }
 0x69e   : > { %14518 = vst [vmem:[#allocation36_spill] sm:$0xff] %v11125_v54  ;;  %v11134_v34 = vadd.f32 %v10909_v10, %v4501_v17  ;;  %v4978_v52 = vadd.f32 2.7706815e-08, %v4930_v1  ;;  %v11136_v39 = vclamps-f32 %v4739_v49, 4.0  ;;  %v4332_v36 = vpop.permute.xlu1 %4331  ;;  %v11139_v35 = vadd.f32 %v14521_v33, %v3165_v47  ;;  %v14526_v51 = vld [vmem:[#allocation170_spill] sm:$0xff]  ;;  %v14528_v2 = vld [vmem:[#allocation93_spill] sm:$0xff] }
 0x69f   : > { %14520 = vst [vmem:[#allocation29_spill] sm:$0xff] %v11128_v40  ;;  %v2668_v12 = vadd.f32 %v14523_v43, %v2319_v42  ;;  %v11142_v22 = vclamps-f32 %v4740_v5, 4.0  ;;  %v11145_v50 = vadd.f32 %v10909_v10, %v4502_v26  ;;  %v2669_v48 = vadd.f32 %v14525_v56, %v2320_v46  ;;  %v4557_v1 = vld [vmem:[%s13192_s4 + $0x58] sm:$0xff] }
 0x6a0   : > { %14522 = vst [vmem:[#allocation14_spill] sm:$0xff] %v11139_v35  ;;  %v4741_v61 = vmul.f32 0.70710677, %v11134_v34  ;;  %4379 = vrot.lane.b32.xlu0 %v14524_v6, %s6733_s29  ;;  %v5026_v44 = vmul.f32 %v4978_v52, %v11104_v63  ;;  %v4050_v17 = vadd.f32 %v3968_v16, %v14526_v51  ;;  %v11155_v47 = vmul.f32 %v11136_v39, %v11136_v39  ;;  %v14529_v52 = vld [vmem:[#allocation239_spill] sm:$0xff]  ;;  %v14531_v51 = vld [vmem:[#allocation236_spill] sm:$0xff]  ;;  %v14535_v15 = vld [vmem:[#allocation214_spill] sm:$0xff] }
 0x6a1   : > { %v4421_v42 = vsel %vm4417_vm13, %v4330_v27, %v4332_v36  ;;  %4373 = vrot.lane.b32.xlu1 %v14527_v28, %s6733_s29  ;;  %v11165_v46 = vmul.f32 %v11142_v22, %v11142_v22  ;;  %v4742_v49 = vmul.f32 0.70710677, %v11145_v50  ;;  %v1874_v16 = vadd.f32 %v14528_v2, %v10950_v7  ;;  %v14533_v2 = vld [vmem:[#allocation110_spill] sm:$0xff] }
 0x6a2   : > { %v11168_v13 = vclamps-f32 %v4741_v61, 4.0  ;;  %v5074_v5 = vadd.f32 -2.101024e-06, %v5026_v44  ;;  %v4931_v27 = vmul.f32 -2.7261424e-10, %v11155_v47  ;;  %v4503_v26 = vadd.f32 %v4421_v42, %v4050_v17  ;;  %v11246_v23 = vpop.permute.xlu1 %4579 }
 0x6a3   : > { %v3169_v36 = vadd.f32 %v14529_v52, %v2668_v12  ;;  %v4932_v33 = vmul.f32 -2.7261424e-10, %v11165_v46  ;;  %v11175_v43 = vclamps-f32 %v4742_v49, 4.0  ;;  %v5508_v61 = vmul.f32 -1.45660715e-05, %v11165_v46  ;;  %v14532_v12 = vld [vmem:[#allocation132_spill] sm:$0xff] }
 0x6a4   : > { %v11179_v6 = vmul.f32 %v11168_v13, %v11168_v13  ;;  %4619 = vperm.xlu0 %6564, %v4557_v1   ;;  %v5122_v56 = vmul.f32 %v5074_v5, %v11104_v63  ;;  %v4979_v7 = vadd.f32 2.7706815e-08, %v4931_v27  ;;  %v11184_v44 = vadd.f32 %v10909_v10, %v4503_v26  ;;  %v4556_v49 = vld [vmem:[%s13192_s4 + $0x50] sm:$0xff] }
 0x6a5   : > { %4377 = vrot.lane.b32.xlu1 %v14531_v51, %s6733_s29  ;;  %v11189_v17 = vadd.f32 %v14532_v12, %v2669_v48  ;;  %v4980_v42 = vadd.f32 2.7706815e-08, %v4932_v33  ;;  %v11193_v28 = vmul.f32 %v11175_v43, %v11175_v43  ;;  %v2325_v10 = vadd.f32 %v14533_v2, %v1874_v16  ;;  %v14534_v48 = vld [vmem:[#allocation57_spill] sm:$0xff] }
 0x6a6   : > { %14530 = vst [vmem:[#allocation34_spill] sm:$0xff] %v11179_v6  ;;  %v4933_v1 = vmul.f32 -2.7261424e-10, %v11179_v6  ;;  %v5170_v5 = vadd.f32 -5.6925062e-05, %v5122_v56  ;;  %v5027_v27 = vmul.f32 %v4979_v7, %v11155_v47  ;;  %v2326_v52 = vadd.f32 %v14534_v48, %v10963_v21  ;;  %v14536_v7 = vld [vmem:[#allocation171_spill] sm:$0xff]  ;;  %v3881_v62 = vpop.permute.xlu1 %3880 }
 0x6a7   : > { %v4743_v26 = vmul.f32 0.70710677, %v11184_v44  ;;  %v5028_v33 = vmul.f32 %v4980_v42, %v11165_v46  ;;  %v4934_v51 = vmul.f32 -2.7261424e-10, %v11193_v28  ;;  %v5556_v35 = vadd.f32 -0.00021337405, %v5508_v61  ;;  %v11222_v61 = vpop.permute.xlu0 %4574 }
 0x6a8   : > { %v4981_v12 = vadd.f32 2.7706815e-08, %v4933_v1  ;;  %3930 = vrot.lane.b32.xlu0 %v14535_v15, %s6732_s26  ;;  %v5218_v40 = vmul.f32 %v5170_v5, %v11104_v63  ;;  %v5075_v16 = vadd.f32 -2.101024e-06, %v5027_v27  ;;  %v2327_v2 = vadd.f32 %v14536_v7, %v10987_v32  ;;  %v14537_v48 = vld [vmem:[#allocation49_spill] sm:$0xff]  ;;  %v14540_v32 = vld [vmem:[#allocation107_spill] sm:$0xff] }
 0x6a9   : > { %v11209_v56 = vclamps-f32 %v4743_v26, 4.0  ;;  %4614 = vperm.xlu1 %6565, %v4556_v49   ;;  %v5076_v54 = vadd.f32 -2.101024e-06, %v5028_v33  ;;  %v4982_v21 = vadd.f32 2.7706815e-08, %v4934_v51  ;;  %v11215_v57 = vadd.f32 %v14537_v48, %v3169_v36  ;;  %v14539_v49 = vld [vmem:[#allocation9_spill] sm:$0xff] }
 0x6aa   : > { %v5029_v42 = vmul.f32 %v4981_v12, %v11179_v6  ;;  %v5123_v1 = vmul.f32 %v5075_v16, %v11155_v47  ;;  %v1880_v5 = vadd.f32 %v14539_v49, %v10990_v31  ;;  %v2332_v27 = vadd.f32 %v14540_v32, %v10999_v37  ;;  %v14541_v31 = vld [vmem:[#allocation212_spill] sm:$0xff]  ;;  %v14542_v37 = vld [vmem:[#allocation177_spill] sm:$0xff] }
 0x6ab   : > { %14538 = vst [vmem:[#allocation37_spill] sm:$0xff] %v11215_v57  ;;  %v11220_v15 = vmul.f32 %v11209_v56, %v11209_v56  ;;  %v5124_v26 = vmul.f32 %v5076_v54, %v11165_v46  ;;  %v5030_v33 = vmul.f32 %v4982_v21, %v11193_v28  ;;  %v5604_v51 = vmul.f32 %v5556_v35, %v11165_v46  ;;  %v11240_v57 = vpop.permute.xlu0 %3882 }
 0x6ac   : > { %v5077_v36 = vadd.f32 -2.101024e-06, %v5029_v42  ;;  %3934 = vrot.lane.b32.xlu0 %v10806_v41, %s6732_s26  ;;  %v5266_v12 = vadd.f32 -0.00073499064, %v5218_v40  ;;  %v2333_v48 = vadd.f32 %v14542_v37, %v11007_v59  ;;  %v5171_v54 = vadd.f32 -5.6925062e-05, %v5123_v1 }
 0x6ad   : > { %v4935_v16 = vmul.f32 -2.7261424e-10, %v11220_v15  ;;  %v5511_v7 = vmul.f32 -1.45660715e-05, %v11220_v15  ;;  %3928 = vrot.lane.b32.xlu1 %v14541_v31, %s6732_s26  ;;  %v5172_v49 = vadd.f32 -5.6925062e-05, %v5124_v26  ;;  %v2331_v53 = vadd.f32 %v14544_v18, %v1880_v5 }
 0x6ae   : > { %v5078_v21 = vadd.f32 -2.101024e-06, %v5030_v33  ;;  %v5125_v42 = vmul.f32 %v5077_v36, %v11179_v6  ;;  %v14543_v40 = vld [vmem:[#allocation203_spill] sm:$0xff]  ;;  %v5652_v59 = vadd.f32 -0.001682827, %v5604_v51  ;;  %v5314_v1 = vmul.f32 %v5266_v12, %v11104_v63  ;;  %v14546_v18 = vld [vmem:[#allocation117_spill] sm:$0xff] }
 0x6af   : > { %v4983_v32 = vadd.f32 2.7706815e-08, %v4935_v16  ;;  %v5559_v41 = vadd.f32 -0.00021337405, %v5511_v7  ;;  %v2674_v35 = vadd.f32 %v14543_v40, %v2325_v10  ;;  %v5220_v4 = vmul.f32 %v5172_v49, %v11165_v46  ;;  %v14545_v10 = vld [vmem:[#allocation62_spill] sm:$0xff]  ;;  %v14548_v37 = vld [vmem:[#allocation120_spill] sm:$0xff]  ;;  %v11261_v40 = vpop.permute.xlu0 %3886 }
 0x6b0   : > { %v5126_v31 = vmul.f32 %v5078_v21, %v11193_v28  ;;  %v5173_v14 = vadd.f32 -5.6925062e-05, %v5125_v42  ;;  %3938 = vrot.lane.b32.xlu0 %v10818_v19, %s6732_s26  ;;  %v2675_v5 = vadd.f32 %v14546_v18, %v2326_v52  ;;  %v5219_v36 = vmul.f32 %v5171_v54, %v11155_v47  ;;  %v14547_v16 = vld [vmem:[#allocation202_spill] sm:$0xff]  ;;  %v14557_v18 = vld [vmem:[#allocation59_spill] sm:$0xff] }
 0x6b1   : > { %v5031_v26 = vmul.f32 %v4983_v32, %v11220_v15  ;;  %v5607_v33 = vmul.f32 %v5559_v41, %v11220_v15  ;;  %3932 = vrot.lane.b32.xlu1 %v14545_v10, %s6732_s26  ;;  %v2676_v7 = vadd.f32 %v14547_v16, %v2327_v2  ;;  %v2681_v49 = vadd.f32 %v14548_v37, %v2332_v27  ;;  %v14549_v21 = vld [vmem:[#allocation206_spill] sm:$0xff]  ;;  %v14551_v2 = vld [vmem:[#allocation213_spill] sm:$0xff]  ;;  %v14553_v27 = vld [vmem:[#allocation207_spill] sm:$0xff] }
 0x6b2   : > { %v2682_v19 = vadd.f32 %v14549_v21, %v2333_v48  ;;  %v5268_v51 = vadd.f32 -0.00073499064, %v5220_v4  ;;  %v5174_v42 = vadd.f32 -5.6925062e-05, %v5126_v31  ;;  %v5221_v12 = vmul.f32 %v5173_v14, %v11179_v6  ;;  %v14550_v10 = vld [vmem:[#allocation154_spill] sm:$0xff] }
 0x6b3   : > { %v5079_v32 = vadd.f32 -2.101024e-06, %v5031_v26  ;;  %v5655_v41 = vadd.f32 -0.001682827, %v5607_v33  ;;  %v5700_v52 = vmul.f32 %v5652_v59, %v11165_v46  ;;  %v11268_v54 = vadd.f32 %v14551_v2, %v11189_v17  ;;  %v14554_v14 = vld [vmem:[#allocation234_spill] sm:$0xff]  ;;  %v14555_v26 = vld [vmem:[#allocation245_spill] sm:$0xff] }
 0x6b4   : > { %3489 = vrot.lane.b32.xlu0 %v14550_v10, %s6728_s18  ;;  %v2680_v48 = vadd.f32 %v14553_v27, %v2331_v53  ;;  %v5362_v4 = vadd.f32 -0.0029546, %v5314_v1  ;;  %v11275_v33 = vadd.f32 %v14555_v26, %v2674_v35  ;;  %v11278_v16 = vadd.f32 %v14557_v18, %v2675_v5  ;;  %v14559_v59 = vld [vmem:[#allocation138_spill] sm:$0xff]  ;;  %v14561_v17 = vld [vmem:[#allocation140_spill] sm:$0xff]  ;;  %v14563_v53 = vld [vmem:[#allocation139_spill] sm:$0xff] }
 0x6b5   : > { %14552 = vst [vmem:[#allocation32_spill] sm:$0xff] %v11268_v54  ;;  %v5127_v31 = vmul.f32 %v5079_v32, %v11220_v15  ;;  %3936 = vrot.lane.b32.xlu1 %v14554_v14, %s6732_s26  ;;  %v5267_v37 = vadd.f32 -0.00073499064, %v5219_v36  ;;  %v11281_v21 = vadd.f32 %v14559_v59, %v2676_v7  ;;  %v11284_v10 = vadd.f32 %v14561_v17, %v2681_v49  ;;  %v11291_v14 = vpop.permute.xlu0 %3890  ;;  %v3885_v36 = vpop.permute.xlu1 %3884  ;;  %v14565_v7 = vld [vmem:[#allocation157_spill] sm:$0xff]  ;;  %v14566_v18 = vld [vmem:[#allocation251_spill] sm:$0xff] }
 0x6b6   : > { %14556 = vst [vmem:[#allocation259_spill] sm:$0xff] %v11275_v33  ;;  %14558 = vst [vmem:[#allocation260_spill] sm:$0xff] %v11278_v16  ;;  %v11287_v1 = vadd.f32 %v14563_v53, %v2682_v19  ;;  %v5316_v32 = vmul.f32 %v5268_v51, %v11165_v46  ;;  %v5222_v2 = vmul.f32 %v5174_v42, %v11193_v28  ;;  %v5269_v27 = vadd.f32 -0.00073499064, %v5221_v12 }
 0x6b7   : > { %14560 = vst [vmem:[#allocation262_spill] sm:$0xff] %v11281_v21  ;;  %14562 = vst [vmem:[#allocation64_spill] sm:$0xff] %v11284_v10  ;;  %v5175_v35 = vadd.f32 -5.6925062e-05, %v5127_v31  ;;  %v5703_v5 = vmul.f32 %v5655_v41, %v11220_v15  ;;  %v5748_v26 = vadd.f32 -0.0073733293, %v5700_v52  ;;  %v11298_v19 = vadd.f32 %v14566_v18, %v2680_v48 }
 0x6b8   : > { %14564 = vst [vmem:[#allocation261_spill] sm:$0xff] %v11287_v1  ;;  %3493 = vrot.lane.b32.xlu0 %v14565_v7, %s6728_s18  ;;  %v5506_v49 = vmul.f32 -1.45660715e-05, %v11104_v63  ;;  %v11301_v51 = vmul.f32 0.5, %v11054_v20  ;;  %v5410_v42 = vmul.f32 %v5362_v4, %v11104_v63  ;;  %v11305_v12 = vmul.f32 0.5, %v11107_v11  ;;  %v14570_v41 = vld [vmem:[#allocation155_spill] sm:$0xff] }
 0x6b9   : > { %14567 = vst [vmem:[#allocation63_spill] sm:$0xff] %v11298_v19  ;;  %3487 = vrot.lane.b32.xlu1 %v14570_v41, %s6728_s18  ;;  %v5507_v31 = vmul.f32 -1.45660715e-05, %v11155_v47  ;;  %v11311_v52 = vmul.f32 0.5, %v11110_v55  ;;  %v5315_v59 = vmul.f32 %v5267_v37, %v11155_v47  ;;  %v5223_v48 = vmul.f32 %v5175_v35, %v11220_v15  ;;  %v4336_v7 = vpop.permute.xlu0 %4335  ;;  %v3889_v55 = vpop.permute.xlu1 %3888  ;;  %v14573_v1 = vld [vmem:[#allocation166_spill] sm:$0xff]  ;;  %v14575_v19 = vld [vmem:[#allocation179_spill] sm:$0xff] }
 0x6ba   : > { %14568 = vst [vmem:[#allocation264_spill] sm:$0xff] %v11301_v51  ;;  %14569 = vst [vmem:[#allocation263_spill] sm:$0xff] %v11305_v12  ;;  %v5510_v20 = vmul.f32 -1.45660715e-05, %v11193_v28  ;;  %v5364_v17 = vadd.f32 -0.0029546, %v5316_v32  ;;  %v5317_v53 = vmul.f32 %v5269_v27, %v11179_v6  ;;  %v5796_v37 = vmul.f32 %v5748_v26, %v11165_v46 }
 0x6bb   : > { %v11317_v4 = vmul.f32 0.5, %v11134_v34  ;;  %v5270_v11 = vadd.f32 -0.00073499064, %v5222_v2  ;;  %v11321_v18 = vmul.f32 0.5, %v11145_v50  ;;  %v5751_v41 = vadd.f32 -0.0073733293, %v5703_v5 }
 0x6bc   : > { %3497 = vrot.lane.b32.xlu0 %v14573_v1, %s6728_s18  ;;  %v11326_v35 = vadd.f32 -0.00021337405, %v5506_v49  ;;  %v5458_v32 = vadd.f32 -0.016096033, %v5410_v42  ;;  %v11329_v34 = vmul.f32 0.5, %v11184_v44  ;;  %v3969_v2 = vsel %vm3964_vm12, %v3881_v62, %v11240_v57  ;;  %v14574_v27 = vld [vmem:[#allocation152_spill] sm:$0xff] }
 0x6bd   : > { %14571 = vst [vmem:[#allocation271_spill] sm:$0xff] %v11317_v4  ;;  %14572 = vst [vmem:[#allocation268_spill] sm:$0xff] %v11321_v18  ;;  %3491 = vrot.lane.b32.xlu1 %v14574_v27, %s6728_s18  ;;  %v5555_v50 = vadd.f32 -0.00021337405, %v5507_v31  ;;  %v5363_v5 = vadd.f32 -0.0029546, %v5315_v59  ;;  %v4054_v1 = vadd.f32 %v11261_v40, %v14575_v19  ;;  %v5412_v26 = vmul.f32 %v5364_v17, %v11165_v46  ;;  %v4340_v16 = vpop.permute.xlu0 %4339  ;;  %v4334_v59 = vpop.permute.xlu1 %4333 }
 0x6be   : > { %v5271_v10 = vadd.f32 -0.00073499064, %v5223_v48  ;;  %v11337_v21 = vadd.f32 -0.00021337405, %v5510_v20  ;;  %v5318_v49 = vmul.f32 %v5270_v11, %v11193_v28  ;;  %v5365_v44 = vadd.f32 -0.0029546, %v5317_v53 }
 0x6bf   : > { %v4051_v42 = vadd.f32 %v3881_v62, %v10995_v29  ;;  %v5799_v33 = vmul.f32 %v5751_v41, %v11220_v15  ;;  %v4052_v27 = vadd.f32 %v3969_v2, %v10955_v8  ;;  %v4507_v31 = vadd.f32 %v4340_v16, %v4054_v1  ;;  %v14576_v48 = vld [vmem:[#allocation243_spill] sm:$0xff] }
 0x6c0   : > { %4383 = vrot.lane.b32.xlu0 %v14576_v48, %s6733_s29  ;;  %v5844_v19 = vadd.f32 -0.014264739, %v5796_v37  ;;  %v11347_v20 = vmul.f32 %v11090_v38, %v5458_v32  ;;  %v3970_v46 = vsel %vm3964_vm12, %v11240_v57, %v3885_v36  ;;  %v4422_v17 = vsel %vm4417_vm13, %v4334_v59, %v4336_v7  ;;  %v14578_v62 = vld [vmem:[#allocation167_spill] sm:$0xff] }
 0x6c1   : > { %v4504_v29 = vadd.f32 %v4334_v59, %v4051_v42  ;;  %3495 = vrot.lane.b32.xlu1 %v14578_v62, %s6728_s18  ;;  %v5411_v8 = vmul.f32 %v5363_v5, %v11155_v47  ;;  %v5319_v11 = vmul.f32 %v5271_v10, %v11220_v15  ;;  %v11357_v53 = vadd.f32 %v11246_v23, %v4507_v31  ;;  %v4344_v36 = vpop.permute.xlu0 %4343  ;;  %v4338_v10 = vpop.permute.xlu1 %4337  ;;  %v14579_v31 = vld [vmem:[#allocation226_spill] sm:$0xff] }
 0x6c2   : > { %14577 = vst [vmem:[#allocation270_spill] sm:$0xff] %v11347_v20  ;;  %v4505_v41 = vadd.f32 %v4422_v17, %v4052_v27  ;;  %v5460_v37 = vadd.f32 -0.016096033, %v5412_v26  ;;  %v5366_v38 = vadd.f32 -0.0029546, %v5318_v49  ;;  %v5413_v32 = vmul.f32 %v5365_v44, %v11179_v6 }
 0x6c3   : > { %v11361_v57 = vadd.f32 %v11222_v61, %v4504_v29  ;;  %v5847_v2 = vadd.f32 -0.014264739, %v5799_v33  ;;  %v4053_v1 = vadd.f32 %v3970_v46, %v11002_v58  ;;  %v4747_v42 = vmul.f32 0.70710677, %v11357_v53  ;;  %v14580_v58 = vld [vmem:[#allocation235_spill] sm:$0xff] }
 0x6c4   : > { %v11366_v5 = vadd.f32 %v11222_v61, %v4505_v41  ;;  %4387 = vrot.lane.b32.xlu0 %v14579_v31, %s6733_s29  ;;  %v3971_v26 = vsel %vm3964_vm12, %v11261_v40, %v3889_v55  ;;  %v3972_v49 = vsel %vm3964_vm12, %v3889_v55, %v11291_v14  ;;  %v4423_v33 = vsel %vm4417_vm13, %v4336_v7, %v4338_v10  ;;  %v14583_v55 = vld [vmem:[#allocation180_spill] sm:$0xff] }
 0x6c5   : > { %v4744_v44 = vmul.f32 0.70710677, %v11361_v57  ;;  %4381 = vrot.lane.b32.xlu1 %v14580_v58, %s6733_s29  ;;  %v5367_v27 = vadd.f32 -0.0029546, %v5319_v11  ;;  %v11378_v59 = vclamps-f32 %v4747_v42, 4.0  ;;  %v4506_v46 = vadd.f32 %v4423_v33, %v4053_v1  ;;  %v11384_v40 = vpop.permute.xlu0 %4589  ;;  %v4342_v1 = vpop.permute.xlu1 %4341  ;;  %v14587_v42 = vld [vmem:[#allocation176_spill] sm:$0xff] }
 0x6c6   : > { %v4745_v48 = vmul.f32 0.70710677, %v11366_v5  ;;  %v5414_v17 = vmul.f32 %v5366_v38, %v11193_v28  ;;  %6576 = vrcp.f32 %v5844_v19  ;;  %v5603_v14 = vmul.f32 %v5555_v50, %v11155_v47  ;;  %v14586_v38 = vld [vmem:[#allocation223_spill] sm:$0xff] }
 0x6c7   : > { %14581 = vst [vmem:[#allocation265_spill] sm:$0xff] %v11378_v59  ;;  %v11382_v29 = vclamps-f32 %v4744_v44, 4.0  ;;  %v4055_v7 = vadd.f32 %v3971_v26, %v14583_v55  ;;  %v11390_v62 = vmul.f32 %v11378_v59, %v11378_v59  ;;  %v11395_v41 = vadd.f32 %v11222_v61, %v4506_v46  ;;  %v14589_v26 = vld [vmem:[#allocation242_spill] sm:$0xff]  ;;  %v4559_v61 = vld [vmem:[%s13192_s4 + $0x68] sm:$0xff] }
 0x6c8   : > { %v11392_v11 = vclamps-f32 %v4745_v48, 4.0  ;;  %4391 = vrot.lane.b32.xlu0 %v14586_v38, %s6733_s29  ;;  %v4056_v10 = vadd.f32 %v3972_v49, %v14587_v42  ;;  %v4424_v19 = vsel %vm4417_vm13, %v4340_v16, %v4342_v1  ;;  %v4425_v31 = vsel %vm4417_vm13, %v4342_v1, %v4344_v36 }
 0x6c9   : > { %14582 = vst [vmem:[#allocation266_spill] sm:$0xff] %v11382_v29  ;;  %14584 = vst [vmem:[#allocation267_spill] sm:$0xff] %v11390_v62  ;;  %v11402_v50 = vmul.f32 %v11382_v29, %v11382_v29  ;;  %4385 = vrot.lane.b32.xlu1 %v14589_v26, %s6733_s29  ;;  %v5415_v44 = vmul.f32 %v5367_v27, %v11220_v15  ;;  %6578 = vrcp.f32 %v5847_v2  ;;  %v4939_v49 = vmul.f32 -2.7261424e-10, %v11390_v62  ;;  %v11419_v46 = vpop.permute.xlu0 %3894  ;;  %v11425_v27 = vpop.permute.xlu1 %4584 }
 0x6ca   : > { %14585 = vst [vmem:[#allocation269_spill] sm:$0xff] %v11392_v11  ;;  %v11415_v33 = vmul.f32 %v11392_v11, %v11392_v11  ;;  %v4746_v36 = vmul.f32 0.70710677, %v11395_v41  ;;  %v4508_v58 = vadd.f32 %v4424_v19, %v4055_v7  ;;  %v4509_v48 = vadd.f32 %v4425_v31, %v4056_v10 }
 0x6cb   : > { %14588 = vst [vmem:[#allocation277_spill] sm:$0xff] %v11402_v50  ;;  %v4936_v16 = vmul.f32 -2.7261424e-10, %v11402_v50  ;;  %v11421_v55 = vadd.f32 -0.016096033, %v5411_v8  ;;  %v5892_v1 = vmul.f32 %v11142_v22, %v5460_v37  ;;  %v14590_v8 = vld [vmem:[#allocation222_spill] sm:$0xff] }
 0x6cc   : > { %v4987_v15 = vadd.f32 2.7706815e-08, %v4939_v49  ;;  %v4937_v2 = vmul.f32 -2.7261424e-10, %v11415_v33  ;;  %4629 = vperm.xlu0 %6564, %v4559_v61   ;;  %v11427_v42 = vclamps-f32 %v4746_v36, 4.0  ;;  %v11430_v26 = vadd.f32 %v11246_v23, %v4508_v58  ;;  %v4558_v22 = vld [vmem:[%s13192_s4 + $0x60] sm:$0xff] }
 0x6cd   : > { %v4984_v38 = vadd.f32 2.7706815e-08, %v4936_v16  ;;  %v11433_v7 = vadd.f32 %v11246_v23, %v4509_v48  ;;  %4389 = vrot.lane.b32.xlu1 %v14590_v8, %s6733_s29  ;;  %v5461_v37 = vadd.f32 -0.016096033, %v5413_v32  ;;  %v5462_v10 = vadd.f32 -0.016096033, %v5414_v17  ;;  %v11446_v23 = vpop.permute.xlu0 %3898  ;;  %v11451_v17 = vpop.permute.xlu1 %3892 }
 0x6ce   : > { %v5035_v19 = vmul.f32 %v4987_v15, %v11390_v62  ;;  %v4985_v31 = vadd.f32 2.7706815e-08, %v4937_v2  ;;  %v5463_v61 = vadd.f32 -0.016096033, %v5415_v44  ;;  %v11444_v16 = vmul.f32 %v11427_v42, %v11427_v42  ;;  %v14591_v44 = vld [vmem:[#allocation240_spill] sm:$0xff] }
 0x6cf   : > { %v5032_v49 = vmul.f32 %v4984_v38, %v11402_v50  ;;  %v5651_v36 = vadd.f32 -0.001682827, %v5603_v14  ;;  %v4748_v8 = vmul.f32 0.70710677, %v11430_v26  ;;  %v4749_v32 = vmul.f32 0.70710677, %v11433_v7 }
 0x6d0   : > { %v5083_v58 = vadd.f32 -2.101024e-06, %v5035_v19  ;;  %v5033_v48 = vmul.f32 %v4985_v31, %v11415_v33  ;;  %3942 = vrot.lane.b32.xlu0 %v14591_v44, %s6732_s26  ;;  %v6577_v15 = vpop.eup %6576  ;;  %v4938_v38 = vmul.f32 -2.7261424e-10, %v11444_v16  ;;  %v5514_v54 = vmul.f32 -1.45660715e-05, %v11444_v16 }
 0x6d1   : > { %v5080_v2 = vadd.f32 -2.101024e-06, %v5032_v49  ;;  %4624 = vperm.xlu1 %6565, %v4558_v22   ;;  %v5606_v14 = vmul.f32 %v11337_v21, %v11193_v28  ;;  %v11460_v4 = vclamps-f32 %v4748_v8, 4.0  ;;  %v11462_v51 = vclamps-f32 %v4749_v32, 4.0  ;;  %v11466_v12 = vpop.permute.xlu0 %3902  ;;  %v14596_v8 = vld [vmem:[#allocation244_spill] sm:$0xff] }
 0x6d2   : > { %v5131_v19 = vmul.f32 %v5083_v58, %v11390_v62  ;;  %v5081_v31 = vadd.f32 -2.101024e-06, %v5033_v48  ;;  %v5895_v20 = vmul.f32 %v11209_v56, %v5463_v61  ;;  %v4986_v49 = vadd.f32 2.7706815e-08, %v4938_v38  ;;  %v11477_v48 = vpop.permute.xlu1 %3896  ;;  %v14595_v56 = vld [vmem:[#allocation249_spill] sm:$0xff] }
 0x6d3   : > { %14592 = vst [vmem:[#allocation274_spill] sm:$0xff] %v11460_v4  ;;  %14593 = vst [vmem:[#allocation276_spill] sm:$0xff] %v11462_v51  ;;  %v5128_v44 = vmul.f32 %v5080_v2, %v11402_v50  ;;  %v5562_v18 = vadd.f32 -0.00021337405, %v5514_v54  ;;  %v6579_v24 = vpop.eup %6578  ;;  %v11471_v21 = vmul.f32 %v11460_v4, %v11460_v4  ;;  %v11475_v58 = vmul.f32 %v11462_v51, %v11462_v51 }
 0x6d4   : > { %v5179_v22 = vadd.f32 -5.6925062e-05, %v5131_v19  ;;  %v5129_v11 = vmul.f32 %v5081_v31, %v11415_v33  ;;  %3946 = vrot.lane.b32.xlu0 %v14595_v56, %s6732_s26  ;;  %v5034_v61 = vmul.f32 %v4986_v49, %v11444_v16  ;;  %v5654_v32 = vadd.f32 -0.001682827, %v5606_v14 }
 0x6d5   : > { %14594 = vst [vmem:[#allocation272_spill] sm:$0xff] %v11475_v58  ;;  %v5176_v54 = vadd.f32 -5.6925062e-05, %v5128_v44  ;;  %3940 = vrot.lane.b32.xlu1 %v14596_v8, %s6732_s26  ;;  %v5509_v2 = vmul.f32 -1.45660715e-05, %v11179_v6  ;;  %v5610_v38 = vmul.f32 %v5562_v18, %v11444_v16  ;;  %v5699_v51 = vmul.f32 %v5651_v36, %v11155_v47  ;;  %v11490_v29 = vpop.permute.xlu0 %4347  ;;  %v14597_v18 = vld [vmem:[#allocation250_spill] sm:$0xff] }
 0x6d6   : > { %v4940_v19 = vmul.f32 -2.7261424e-10, %v11471_v21  ;;  %v4941_v31 = vmul.f32 -2.7261424e-10, %v11475_v58  ;;  %v5949_v4 = vmul.f32 %v6579_v24, %v5895_v20  ;;  %v5227_v56 = vmul.f32 %v5179_v22, %v11390_v62  ;;  %v11492_v59 = vpop.permute.xlu1 %3900  ;;  %v14601_v36 = vld [vmem:[#allocation241_spill] sm:$0xff] }
 0x6d7   : > { %v5082_v44 = vadd.f32 -2.101024e-06, %v5034_v61  ;;  %v5943_v49 = vmul.f32 %v6577_v15, %v5892_v1  ;;  %v5177_v3 = vadd.f32 -5.6925062e-05, %v5129_v11  ;;  %v5602_v6 = vmul.f32 %v11326_v35, %v11104_v63 }
 0x6d8   : > { %v4988_v8 = vadd.f32 2.7706815e-08, %v4940_v19  ;;  %v4989_v14 = vadd.f32 2.7706815e-08, %v4941_v31  ;;  %3950 = vrot.lane.b32.xlu0 %v14597_v18, %s6732_s26  ;;  %v11500_v24 = vmul.f32 %v11136_v39, %v11421_v55  ;;  %v11503_v20 = vmul.f32 %v11168_v13, %v5461_v37 }
 0x6d9   : > { %v11506_v1 = vmul.f32 %v11175_v43, %v5462_v10  ;;  %v5224_v11 = vmul.f32 %v5176_v54, %v11402_v50  ;;  %3944 = vrot.lane.b32.xlu1 %v14601_v36, %s6732_s26  ;;  %v5130_v15 = vmul.f32 %v5082_v44, %v11444_v16  ;;  %v5658_v22 = vadd.f32 -0.001682827, %v5610_v38  ;;  %v11513_v55 = vpop.permute.xlu0 %4351  ;;  %v14603_v44 = vld [vmem:[#allocation162_spill] sm:$0xff] }
 0x6da   : > { %14598 = vst [vmem:[#allocation283_spill] sm:$0xff] %v11500_v24  ;;  %14599 = vst [vmem:[#allocation280_spill] sm:$0xff] %v11503_v20  ;;  %v5702_v35 = vmul.f32 %v5654_v32, %v11193_v28  ;;  %v5747_v61 = vadd.f32 -0.0073733293, %v5699_v51  ;;  %v6039_v19 = vadd.f32 1.0, %v5949_v4  ;;  %v6036_v13 = vadd.f32 1.0, %v5943_v49  ;;  %v4346_v31 = vpop.permute.xlu1 %4345 }
 0x6db   : > { %14600 = vst [vmem:[#allocation275_spill] sm:$0xff] %v11506_v1  ;;  %v5275_v39 = vadd.f32 -0.00073499064, %v5227_v56  ;;  %v11515_v37 = vadd.f32 -0.00021337405, %v5509_v2  ;;  %v5225_v43 = vmul.f32 %v5177_v3, %v11415_v33  ;;  %v5036_v10 = vmul.f32 %v4988_v8, %v11471_v21  ;;  %v14608_v2 = vld [vmem:[#allocation248_spill] sm:$0xff] }
 0x6dc   : > { %v5037_v54 = vmul.f32 %v4989_v14, %v11475_v58  ;;  %3501 = vrot.lane.b32.xlu0 %v14603_v44, %s6728_s18  ;;  %v11522_v38 = vadd.f32 -0.001682827, %v5602_v6  ;;  %v11525_v51 = vmul.f32 0.5, %v11357_v53  ;;  %v11528_v4 = vmul.f32 0.5, %v11361_v57 }
 0x6dd   : > { %14602 = vst [vmem:[#allocation282_spill] sm:$0xff] %v11515_v37  ;;  %v11531_v32 = vmul.f32 0.5, %v11366_v5  ;;  %v5272_v3 = vadd.f32 -0.00073499064, %v5224_v11  ;;  %3948 = vrot.lane.b32.xlu1 %v14608_v2, %s6732_s26  ;;  %v5178_v56 = vadd.f32 -5.6925062e-05, %v5130_v15  ;;  %v5706_v49 = vmul.f32 %v5658_v22, %v11444_v16  ;;  %v11548_v14 = vpop.permute.xlu0 %4355 }
 0x6de   : > { %14604 = vst [vmem:[#allocation65_spill] sm:$0xff] %v11522_v38  ;;  %14605 = vst [vmem:[#allocation278_spill] sm:$0xff] %v11525_v51  ;;  %v11536_v8 = vadd.f32 -0.0073733293, %v5702_v35  ;;  %v11539_v6 = vmul.f32 %v5747_v61, %v11155_v47  ;;  %v11542_v53 = vmul.f32 %v6039_v19, %v11329_v34  ;;  %v5323_v57 = vmul.f32 %v5275_v39, %v11390_v62  ;;  %v4350_v22 = vpop.permute.xlu1 %4349  ;;  %v14609_v34 = vld [vmem:[#allocation168_spill] sm:$0xff]  ;;  %v14611_v61 = vld [vmem:[#allocation185_spill] sm:$0xff] }
 0x6df   : > { %14606 = vst [vmem:[#allocation281_spill] sm:$0xff] %v11528_v4  ;;  %14607 = vst [vmem:[#allocation289_spill] sm:$0xff] %v11531_v32  ;;  %v11546_v5 = vmul.f32 0.5, %v11395_v41  ;;  %v11551_v18 = vmul.f32 %v6036_v13, %v11311_v52  ;;  %v5273_v11 = vadd.f32 -0.00073499064, %v5225_v43  ;;  %v3973_v47 = vsel %vm3964_vm12, %v11451_v17, %v11419_v46  ;;  %v14612_v19 = vld [vmem:[#allocation160_spill] sm:$0xff] }
 0x6e0   : > { %v5084_v36 = vadd.f32 -2.101024e-06, %v5036_v10  ;;  %v5085_v15 = vadd.f32 -2.101024e-06, %v5037_v54  ;;  %3505 = vrot.lane.b32.xlu0 %v14609_v34, %s6728_s18  ;;  %v5320_v35 = vmul.f32 %v5272_v3, %v11402_v50  ;;  %v11560_v41 = vmul.f32 0.5, %v11430_v26  ;;  %v14625_v32 = vld [vmem:[#allocation219_spill] sm:$0xff] }
 0x6e1   : > { %v4060_v52 = vadd.f32 %v11446_v23, %v14611_v61  ;;  %3499 = vrot.lane.b32.xlu1 %v14612_v19, %s6728_s18  ;;  %v11567_v39 = vmul.f32 -1.45660715e-05, %v11415_v33  ;;  %v5226_v13 = vmul.f32 %v5178_v56, %v11444_v16  ;;  %v5754_v43 = vadd.f32 -0.0073733293, %v5706_v49  ;;  %v11580_v34 = vpop.permute.xlu0 %4599  ;;  %v14615_v61 = vld [vmem:[#allocation158_spill] sm:$0xff]  ;;  %v14628_v37 = vld [vmem:[#allocation255_spill] sm:$0xff] }
 0x6e2   : > { %14610 = vst [vmem:[#allocation286_spill] sm:$0xff] %v11560_v41  ;;  %v11571_v10 = vmul.f32 0.5, %v11433_v7  ;;  %v4057_v54 = vadd.f32 %v11451_v17, %v11012_v30  ;;  %v5371_v26 = vadd.f32 -0.0029546, %v5323_v57  ;;  %v4058_v44 = vadd.f32 %v3973_v47, %v11035_v45  ;;  %v4354_v17 = vpop.permute.xlu1 %4353  ;;  %v14614_v45 = vld [vmem:[#allocation163_spill] sm:$0xff] }
 0x6e3   : > { %v3974_v3 = vsel %vm3964_vm12, %v11419_v46, %v11477_v48  ;;  %v4513_v2 = vadd.f32 %v11513_v55, %v4060_v52  ;;  %v5321_v56 = vmul.f32 %v5273_v11, %v11415_v33  ;;  %v5132_v49 = vmul.f32 %v5084_v36, %v11471_v21 }
 0x6e4   : > { %14613 = vst [vmem:[#allocation284_spill] sm:$0xff] %v11571_v10  ;;  %v5133_v7 = vmul.f32 %v5085_v15, %v11475_v58  ;;  %v4426_v30 = vsel %vm4417_vm13, %v4346_v31, %v11490_v29  ;;  %3509 = vrot.lane.b32.xlu0 %v14614_v45, %s6728_s18  ;;  %v5368_v57 = vadd.f32 -0.0029546, %v5320_v35  ;;  %v4510_v48 = vadd.f32 %v4346_v31, %v4057_v54 }
 0x6e5   : > { %v11590_v46 = vadd.f32 %v11384_v40, %v4513_v2  ;;  %v4511_v47 = vadd.f32 %v4426_v30, %v4058_v44  ;;  %3503 = vrot.lane.b32.xlu1 %v14615_v61, %s6728_s18  ;;  %v5274_v11 = vadd.f32 -0.00073499064, %v5226_v13  ;;  %v5802_v36 = vmul.f32 %v5754_v43, %v11444_v16  ;;  %v11606_v44 = vpop.permute.xlu0 %3906 }
 0x6e6   : > { %v4059_v15 = vadd.f32 %v3974_v3, %v11059_v60  ;;  %v4427_v52 = vsel %vm4417_vm13, %v11490_v29, %v4350_v22  ;;  %v5419_v19 = vmul.f32 %v5371_v26, %v11390_v62  ;;  %v3975_v35 = vsel %vm3964_vm12, %v11446_v23, %v11492_v59  ;;  %v11611_v29 = vpop.permute.xlu1 %4594  ;;  %v14616_v22 = vld [vmem:[#allocation230_spill] sm:$0xff] }
 0x6e7   : > { %v4753_v31 = vmul.f32 0.70710677, %v11590_v46  ;;  %v11604_v54 = vadd.f32 %v11425_v27, %v4510_v48  ;;  %v5180_v13 = vadd.f32 -5.6925062e-05, %v5132_v49  ;;  %v5181_v43 = vadd.f32 -5.6925062e-05, %v5133_v7 }
 0x6e8   : > { %v11609_v60 = vadd.f32 %v11425_v27, %v4511_v47  ;;  %v4512_v3 = vadd.f32 %v4427_v52, %v4059_v15  ;;  %4395 = vrot.lane.b32.xlu0 %v14616_v22, %s6733_s29  ;;  %v5369_v26 = vadd.f32 -0.0029546, %v5321_v56  ;;  %v11616_v23 = vmul.f32 %v5368_v57, %v11402_v50  ;;  %v14617_v49 = vld [vmem:[#allocation164_spill] sm:$0xff]  ;;  %v14618_v56 = vld [vmem:[#allocation189_spill] sm:$0xff]  ;;  %v14629_v62 = vld [vmem:[#allocation266_spill] sm:$0xff] }
 0x6e9   : > { %v11618_v2 = vclamps-f32 %v4753_v31, 4.0  ;;  %v4750_v30 = vmul.f32 0.70710677, %v11604_v54  ;;  %3507 = vrot.lane.b32.xlu1 %v14617_v49, %s6728_s18  ;;  %v5322_v7 = vmul.f32 %v5274_v11, %v11444_v16  ;;  %v5850_v45 = vadd.f32 -0.014264739, %v5802_v36  ;;  %v11638_v31 = vpop.permute.xlu0 %3910  ;;  %v14622_v49 = vld [vmem:[#allocation192_spill] sm:$0xff] }
 0x6ea   : > { %v3976_v48 = vsel %vm3964_vm12, %v11492_v59, %v11466_v12  ;;  %v4751_v47 = vmul.f32 0.70710677, %v11609_v60  ;;  %v4061_v61 = vadd.f32 %v3975_v35, %v14618_v56  ;;  %v11636_v52 = vadd.f32 %v11425_v27, %v4512_v3  ;;  %v11646_v35 = vpop.permute.xlu1 %3904  ;;  %v14621_v3 = vld [vmem:[#allocation231_spill] sm:$0xff] }
 0x6eb   : > { %v11631_v57 = vmul.f32 %v11618_v2, %v11618_v2  ;;  %v11633_v15 = vclamps-f32 %v4750_v30, 4.0  ;;  %v5228_v11 = vmul.f32 %v5180_v13, %v11471_v21  ;;  %v5229_v36 = vmul.f32 %v5181_v43, %v11475_v58 }
 0x6ec   : > { %v11642_v12 = vclamps-f32 %v4751_v47, 4.0  ;;  %v4428_v59 = vsel %vm4417_vm13, %v11513_v55, %v4354_v17  ;;  %4399 = vrot.lane.b32.xlu0 %v10968_v0, %s6733_s29  ;;  %v4752_v13 = vmul.f32 0.70710677, %v11636_v52  ;;  %v4429_v43 = vsel %vm4417_vm13, %v4354_v17, %v11548_v14 }
 0x6ed   : > { %14619 = vst [vmem:[#allocation288_spill] sm:$0xff] %v11631_v57  ;;  %v4945_v22 = vmul.f32 -2.7261424e-10, %v11631_v57  ;;  %v11653_v27 = vmul.f32 %v11633_v15, %v11633_v15  ;;  %4393 = vrot.lane.b32.xlu1 %v14621_v3, %s6733_s29  ;;  %v11660_v55 = vadd.f32 -0.016096033, %v5419_v19  ;;  %v4062_v47 = vadd.f32 %v3976_v48, %v14622_v49 }
 0x6ee   : > { %v5370_v30 = vadd.f32 -0.0029546, %v5322_v7  ;;  %v11665_v0 = vmul.f32 %v11642_v12, %v11642_v12  ;;  %v11668_v51 = vclamps-f32 %v4752_v13, 4.0  ;;  %v4514_v4 = vadd.f32 %v4428_v59, %v4061_v61  ;;  %v11671_v19 = vpop.permute.xlu1 %3908  ;;  %v11683_v61 = vpop.permute.xlu0 %3914 }
 0x6ef   : > { %14620 = vst [vmem:[#allocation43_spill] sm:$0xff] %v11653_v27  ;;  %v4993_v56 = vadd.f32 2.7706815e-08, %v4945_v22  ;;  %v4942_v10 = vmul.f32 -2.7261424e-10, %v11653_v27  ;;  %v4515_v3 = vadd.f32 %v4429_v43, %v4062_v47  ;;  %6580 = vrcp.f32 %v5850_v45 }
 0x6f0   : > { %14623 = vst [vmem:[#allocation291_spill] sm:$0xff] %v11665_v0  ;;  %v5276_v20 = vadd.f32 -0.00073499064, %v5228_v11  ;;  %v5277_v14 = vadd.f32 -0.00073499064, %v5229_v36  ;;  %4403 = vrot.lane.b32.xlu0 %v10979_v9, %s6733_s29  ;;  %v11678_v22 = vmul.f32 %v11668_v51, %v11668_v51  ;;  %v11681_v13 = vadd.f32 %v11384_v40, %v4514_v4  ;;  %v14624_v11 = vld [vmem:[#allocation232_spill] sm:$0xff] }
 0x6f1   : > { %v4943_v17 = vmul.f32 -2.7261424e-10, %v11665_v0  ;;  %v5041_v7 = vmul.f32 %v4993_v56, %v11631_v57  ;;  %v4990_v48 = vadd.f32 2.7706815e-08, %v4942_v10  ;;  %4397 = vrot.lane.b32.xlu1 %v14624_v11, %s6733_s29  ;;  %v4561_v36 = vld [vmem:[%s13192_s4 + $0x78] sm:$0xff]  ;;  %v5418_v9 = vmul.f32 %v5370_v30, %v11444_v16 }
 0x6f2   : > { %v11692_v59 = vadd.f32 %v11384_v40, %v4515_v3  ;;  %v4944_v49 = vmul.f32 -2.7261424e-10, %v11678_v22  ;;  %v5520_v47 = vmul.f32 -1.45660715e-05, %v11678_v22  ;;  %v5417_v56 = vmul.f32 %v5369_v26, %v11415_v33  ;;  %v11701_v45 = vpop.permute.xlu1 %3912 }
 0x6f3   : > { %v4991_v10 = vadd.f32 2.7706815e-08, %v4943_v17  ;;  %v5089_v43 = vadd.f32 -2.101024e-06, %v5041_v7  ;;  %v5038_v4 = vmul.f32 %v4990_v48, %v11653_v27  ;;  %v5324_v11 = vmul.f32 %v5276_v20, %v11471_v21 }
 0x6f4   : > { %v4754_v16 = vmul.f32 0.70710677, %v11681_v13  ;;  %4639 = vperm.xlu0 %6564, %v4561_v36   ;;  %v5325_v40 = vmul.f32 %v5277_v14, %v11475_v58  ;;  %v4992_v17 = vadd.f32 2.7706815e-08, %v4944_v49  ;;  %v5568_v3 = vadd.f32 -0.00021337405, %v5520_v47  ;;  %v11716_v47 = vpop.permute.xlu0 %4359 }
 0x6f5   : > { %v5039_v41 = vmul.f32 %v4991_v10, %v11665_v0  ;;  %v5086_v30 = vadd.f32 -2.101024e-06, %v5038_v4  ;;  %4401 = vrot.lane.b32.xlu1 %v10975_v25, %s6733_s29  ;;  %v5137_v7 = vmul.f32 %v5089_v43, %v11631_v57  ;;  %v4755_v20 = vmul.f32 0.70710677, %v11692_v59  ;;  %v4560_v10 = vld [vmem:[%s13192_s4 + $0x70] sm:$0xff] }
 0x6f6   : > { %v11708_v48 = vclamps-f32 %v4754_v16, 4.0  ;;  %v5466_v36 = vadd.f32 -0.016096033, %v5418_v9  ;;  %v5040_v4 = vmul.f32 %v4992_v17, %v11678_v22  ;;  %v5616_v49 = vmul.f32 %v5568_v3, %v11678_v22  ;;  %v4358_v24 = vpop.permute.xlu1 %4357 }
 0x6f7   : > { %v5087_v26 = vadd.f32 -2.101024e-06, %v5039_v41  ;;  %v5134_v14 = vmul.f32 %v5086_v30, %v11653_v27  ;;  %v5464_v25 = vadd.f32 -0.016096033, %v11616_v23  ;;  %v5372_v41 = vadd.f32 -0.0029546, %v5324_v11 }
 0x6f8   : > { %v11719_v43 = vclamps-f32 %v4755_v20, 4.0  ;;  %v11723_v16 = vmul.f32 %v11708_v48, %v11708_v48  ;;  %3954 = vrot.lane.b32.xlu0 %v14625_v32, %s6732_s26  ;;  %v5465_v9 = vadd.f32 -0.016096033, %v5417_v56  ;;  %v5373_v30 = vadd.f32 -0.0029546, %v5325_v40 }
 0x6f9   : > { %v5088_v1 = vadd.f32 -2.101024e-06, %v5040_v4  ;;  %4634 = vperm.xlu1 %6565, %v4560_v10   ;;  %v5185_v3 = vadd.f32 -5.6925062e-05, %v5137_v7  ;;  %v5135_v23 = vmul.f32 %v5087_v26, %v11665_v0  ;;  %v5898_v38 = vmul.f32 %v11427_v42, %v5466_v36  ;;  %v6581_v10 = vpop.eup %6580  ;;  %v14626_v4 = vld [vmem:[#allocation265_spill] sm:$0xff] }
 0x6fa   : > { %v11732_v11 = vmul.f32 %v11719_v43, %v11719_v43  ;;  %v4946_v20 = vmul.f32 -2.7261424e-10, %v11723_v16  ;;  %v5182_v32 = vadd.f32 -5.6925062e-05, %v5134_v14  ;;  %v5664_v40 = vadd.f32 -0.001682827, %v5616_v49  ;;  %v11752_v49 = vpop.permute.xlu0 %4363 }
 0x6fb   : > { %v5136_v56 = vmul.f32 %v5088_v1, %v11678_v22  ;;  %v11739_v17 = vmul.f32 %v14626_v4, %v11660_v55  ;;  %v5420_v7 = vmul.f32 %v5372_v41, %v11471_v21  ;;  %v11746_v50 = vmul.f32 %v14629_v62, %v5464_v25  ;;  %v14631_v42 = vld [vmem:[#allocation269_spill] sm:$0xff]  ;;  %v14633_v55 = vld [vmem:[#allocation211_spill] sm:$0xff] }
 0x6fc   : > { %v4947_v26 = vmul.f32 -2.7261424e-10, %v11732_v11  ;;  %v4994_v63 = vadd.f32 2.7706815e-08, %v4946_v20  ;;  %3958 = vrot.lane.b32.xlu0 %v14628_v37, %s6732_s26  ;;  %v11749_v36 = vmul.f32 %v14631_v42, %v5465_v9  ;;  %v5421_v1 = vmul.f32 %v5373_v30, %v11475_v58 }
 0x6fd   : > { %14627 = vst [vmem:[#allocation44_spill] sm:$0xff] %v11739_v17  ;;  %14630 = vst [vmem:[#allocation287_spill] sm:$0xff] %v11746_v50  ;;  %v5184_v14 = vadd.f32 -5.6925062e-05, %v5136_v56  ;;  %3952 = vrot.lane.b32.xlu1 %v14633_v55, %s6732_s26  ;;  %v5233_v41 = vmul.f32 %v5185_v3, %v11631_v57  ;;  %v5183_v20 = vadd.f32 -5.6925062e-05, %v5135_v23  ;;  %v5955_v17 = vmul.f32 %v6581_v10, %v5898_v38  ;;  %v4362_v3 = vpop.permute.xlu1 %4361 }
 0x6fe   : > { %14632 = vst [vmem:[#allocation66_spill] sm:$0xff] %v11749_v36  ;;  %v4995_v4 = vadd.f32 2.7706815e-08, %v4947_v26  ;;  %v5042_v37 = vmul.f32 %v4994_v63, %v11723_v16  ;;  %v11759_v62 = vmul.f32 0.5, %v11590_v46  ;;  %v5230_v25 = vmul.f32 %v5182_v32, %v11653_v27  ;;  %v14636_v23 = vld [vmem:[#allocation246_spill] sm:$0xff]  ;;  %v14638_v32 = vld [vmem:[#allocation196_spill] sm:$0xff] }
 0x6ff   : > { %v5712_v9 = vmul.f32 %v5664_v40, %v11678_v22  ;;  %v5468_v30 = vadd.f32 -0.016096033, %v5420_v7  ;;  %v11764_v56 = vmul.f32 0.5, %v11604_v54  ;;  %v11769_v63 = vadd.f32 -0.016096033, %v5421_v1  ;;  %v14639_v54 = vld [vmem:[#allocation218_spill] sm:$0xff] }
 0x700   : > { %14634 = vst [vmem:[#allocation17_spill] sm:$0xff] %v11759_v62  ;;  %v5043_v42 = vmul.f32 %v4995_v4, %v11732_v11  ;;  %v5090_v55 = vadd.f32 -2.101024e-06, %v5042_v37  ;;  %3962 = vrot.lane.b32.xlu0 %v14636_v23, %s6732_s26  ;;  %v11772_v38 = vmul.f32 0.5, %v11609_v60  ;;  %v5232_v46 = vmul.f32 %v5184_v14, %v11678_v22  ;;  %v4368_v23 = vpop.permute.xlu0 %4367 }
 0x701   : > { %14635 = vst [vmem:[#allocation292_spill] sm:$0xff] %v11764_v56  ;;  %v4066_v40 = vadd.f32 %v11638_v31, %v14638_v32  ;;  %3956 = vrot.lane.b32.xlu1 %v14639_v54, %s6732_s26  ;;  %v5281_v10 = vadd.f32 -0.00073499064, %v5233_v41  ;;  %v5231_v7 = vmul.f32 %v5183_v20, %v11665_v0  ;;  %v3977_v1 = vsel %vm3964_vm12, %v11646_v35, %v11606_v44  ;;  %v14640_v32 = vld [vmem:[#allocation274_spill] sm:$0xff]  ;;  %v14642_v54 = vld [vmem:[#allocation257_spill] sm:$0xff]  ;;  %v14643_v56 = vld [vmem:[#allocation252_spill] sm:$0xff] }
 0x702   : > { %14637 = vst [vmem:[#allocation75_spill] sm:$0xff] %v11772_v38  ;;  %v5091_v26 = vadd.f32 -2.101024e-06, %v5043_v42  ;;  %v11783_v4 = vadd.f32 1.0, %v5955_v17  ;;  %v5278_v60 = vadd.f32 -0.00073499064, %v5230_v25  ;;  %v11789_v62 = vmul.f32 %v14640_v32, %v5468_v30 }
 0x703   : > { %v11786_v37 = vmul.f32 0.5, %v11636_v52  ;;  %v5760_v14 = vadd.f32 -0.0073733293, %v5712_v9  ;;  %v5138_v41 = vmul.f32 %v5090_v55, %v11723_v16  ;;  %v4063_v20 = vadd.f32 %v11646_v35, %v14642_v54  ;;  %v14644_v25 = vld [vmem:[#allocation247_spill] sm:$0xff]  ;;  %v14645_v30 = vld [vmem:[#allocation254_spill] sm:$0xff] }
 0x704   : > { %14641 = vst [vmem:[#allocation74_spill] sm:$0xff] %v11789_v62  ;;  %v4519_v42 = vadd.f32 %v11752_v49, %v4066_v40  ;;  %4407 = vrot.lane.b32.xlu0 %v14643_v56, %s6733_s29  ;;  %v5280_v17 = vadd.f32 -0.00073499064, %v5232_v46  ;;  %v4064_v38 = vadd.f32 %v3977_v1, %v14644_v25  ;;  %v3978_v52 = vsel %vm3964_vm12, %v11606_v44, %v11671_v19  ;;  %v4366_v46 = vpop.permute.xlu1 %4365  ;;  %v14646_v25 = vld [vmem:[#allocation258_spill] sm:$0xff] }
 0x705   : > { %v4430_v9 = vsel %vm4417_vm13, %v4358_v24, %v11716_v47  ;;  %3960 = vrot.lane.b32.xlu1 %v14645_v30, %s6732_s26  ;;  %v5329_v35 = vmul.f32 %v5281_v10, %v11631_v57  ;;  %v5279_v55 = vadd.f32 -0.00073499064, %v5231_v7  ;;  %v5139_v40 = vmul.f32 %v5091_v26, %v11732_v11  ;;  %v14647_v26 = vld [vmem:[#allocation228_spill] sm:$0xff] }
 0x706   : > { %v11808_v56 = vadd.f32 %v11580_v34, %v4519_v42  ;;  %v5326_v1 = vmul.f32 %v5278_v60, %v11653_v27  ;;  %v5808_v32 = vmul.f32 %v5760_v14, %v11678_v22  ;;  %v4516_v44 = vadd.f32 %v4358_v24, %v4063_v20 }
 0x707   : > { %v4517_v19 = vadd.f32 %v4430_v9, %v4064_v38  ;;  %v5186_v54 = vadd.f32 -5.6925062e-05, %v5138_v41  ;;  %v4065_v50 = vadd.f32 %v3978_v52, %v14646_v25  ;;  %v3979_v10 = vsel %vm3964_vm12, %v11638_v31, %v11701_v45  ;;  %v11829_v41 = vpop.permute.xlu0 %4609  ;;  %v14648_v31 = vld [vmem:[#allocation256_spill] sm:$0xff]  ;;  %v14649_v9 = vld [vmem:[#allocation61_spill] sm:$0xff] }
 0x708   : > { %v3980_v7 = vsel %vm3964_vm12, %v11701_v45, %v11683_v61  ;;  %4411 = vrot.lane.b32.xlu0 %v14647_v26, %s6733_s29  ;;  %v5328_v60 = vmul.f32 %v5280_v17, %v11678_v22  ;;  %v4759_v14 = vmul.f32 0.70710677, %v11808_v56  ;;  %v11824_v24 = vadd.f32 %v11611_v29, %v4516_v44 }
 0x709   : > { %v11827_v38 = vadd.f32 %v11611_v29, %v4517_v19  ;;  %4405 = vrot.lane.b32.xlu1 %v14648_v31, %s6733_s29  ;;  %v5377_v20 = vadd.f32 -0.0029546, %v5329_v35  ;;  %v5327_v61 = vmul.f32 %v5279_v55, %v11665_v0  ;;  %v5187_v45 = vadd.f32 -5.6925062e-05, %v5139_v40  ;;  %v11844_v55 = vpop.permute.xlu1 %4604  ;;  %v14651_v40 = vld [vmem:[#allocation237_spill] sm:$0xff] }
 0x70a   : > { %v4431_v42 = vsel %vm4417_vm13, %v11716_v47, %v4362_v3  ;;  %v5374_v17 = vadd.f32 -0.0029546, %v5326_v1  ;;  %v5856_v52 = vadd.f32 -0.014264739, %v5808_v32  ;;  %v4067_v30 = vadd.f32 %v3979_v10, %v14649_v9  ;;  %14650 = vst [vmem:[#allocation68_spill] sm:$0xff] %v11844_v55 }
 0x70b   : > { %v11837_v44 = vclamps-f32 %v4759_v14, 4.0  ;;  %v5234_v19 = vmul.f32 %v5186_v54, %v11723_v16  ;;  %v4756_v25 = vmul.f32 0.70710677, %v11824_v24  ;;  %v4757_v26 = vmul.f32 0.70710677, %v11827_v38  ;;  %v14653_v54 = vld [vmem:[#allocation253_spill] sm:$0xff] }
 0x70c   : > { %v4432_v35 = vsel %vm4417_vm13, %v11752_v49, %v4366_v46  ;;  %4415 = vrot.lane.b32.xlu0 %v14651_v40, %s6733_s29  ;;  %v5376_v47 = vadd.f32 -0.0029546, %v5328_v60  ;;  %v4518_v1 = vadd.f32 %v4431_v42, %v4065_v50  ;;  %v4433_v32 = vsel %vm4417_vm13, %v4366_v46, %v4368_v23  ;;  %v14654_v49 = vld [vmem:[#allocation200_spill] sm:$0xff]  ;;  %v11865_v42 = vpop.permute.xlu0 %3918 }
 0x70d   : > { %v11850_v3 = vmul.f32 %v11837_v44, %v11837_v44  ;;  %4409 = vrot.lane.b32.xlu1 %v14653_v54, %s6733_s29  ;;  %v5375_v10 = vadd.f32 -0.0029546, %v5327_v61  ;;  %v5235_v14 = vmul.f32 %v5187_v45, %v11732_v11  ;;  %v4068_v31 = vadd.f32 %v3980_v7, %v14654_v49 }
 0x70e   : > { %v11857_v9 = vclamps-f32 %v4756_v25, 4.0  ;;  %v11860_v60 = vclamps-f32 %v4757_v26, 4.0  ;;  %v11863_v58 = vadd.f32 %v11611_v29, %v4518_v1  ;;  %v4520_v50 = vadd.f32 %v4432_v35, %v4067_v30  ;;  %v14659_v30 = vld [vmem:[#allocation229_spill] sm:$0xff] }
 0x70f   : > { %14652 = vst [vmem:[#allocation102_spill] sm:$0xff] %v11850_v3  ;;  %v4951_v40 = vmul.f32 -2.7261424e-10, %v11850_v3  ;;  %6582 = vrcp.f32 %v5856_v52  ;;  %v5282_v23 = vadd.f32 -0.00073499064, %v5234_v19  ;;  %v4521_v61 = vadd.f32 %v4433_v32, %v4068_v31 }
 0x710   : > { %14655 = vst [vmem:[#allocation70_spill] sm:$0xff] %v11857_v9  ;;  %14656 = vst [vmem:[#allocation72_spill] sm:$0xff] %v11860_v60  ;;  %v11869_v46 = vmul.f32 %v11857_v9, %v11857_v9  ;;  %v14658_v7 = vpack.c.bf16 %v11542_v53, %v11551_v18  ;;  %v5424_v45 = vmul.f32 %v5376_v47, %v11678_v22  ;;  %v4758_v52 = vmul.f32 0.70710677, %v11863_v58  ;;  %v11886_v18 = vpop.permute.xlu1 %3916 }
 0x711   : > { %v4999_v25 = vadd.f32 2.7706815e-08, %v4951_v40  ;;  %v11878_v29 = vmul.f32 %v11860_v60, %v11860_v60  ;;  %4413 = vrot.lane.b32.xlu1 %v14659_v30, %s6733_s29  ;;  %v5425_v19 = vmul.f32 %v5377_v20, %v11631_v57  ;;  %v5422_v26 = vmul.f32 %v5374_v17, %v11653_v27 }
 0x712   : > { %14657 = vst [vmem:[#allocation96_spill] sm:$0xff] %v11869_v46  ;;  %6222 = vrot.lane.b32.xlu0 %v14658_v7, %s6730_s25  ;;  %v5283_v35 = vadd.f32 -0.00073499064, %v5235_v14  ;;  %v4948_v53 = vmul.f32 -2.7261424e-10, %v11869_v46  ;;  %v11890_v1 = vclamps-f32 %v4758_v52, 4.0  ;;  %v11893_v32 = vadd.f32 %v11580_v34, %v4520_v50 }
 0x713   : > { %v5047_v22 = vmul.f32 %v4999_v25, %v11850_v3  ;;  %v4949_v47 = vmul.f32 -2.7261424e-10, %v11878_v29  ;;  %v5423_v54 = vmul.f32 %v5375_v10, %v11665_v0  ;;  %v5330_v20 = vmul.f32 %v5282_v23, %v11723_v16  ;;  %v11904_v25 = vpop.permute.xlu0 %3922 }
 0x714   : > { %14660 = vst [vmem:[#allocation69_spill] sm:$0xff] %v11890_v1  ;;  %v4996_v49 = vadd.f32 2.7706815e-08, %v4948_v53  ;;  %v11898_v17 = vadd.f32 %v11580_v34, %v4521_v61  ;;  %v5472_v14 = vadd.f32 -0.016096033, %v5424_v45  ;;  %v11902_v7 = vmul.f32 %v11890_v1, %v11890_v1 }
 0x715   : > { %v5095_v31 = vadd.f32 -2.101024e-06, %v5047_v22  ;;  %v4997_v40 = vadd.f32 2.7706815e-08, %v4949_v47  ;;  %v5331_v50 = vmul.f32 %v5283_v35, %v11732_v11  ;;  %v4760_v10 = vmul.f32 0.70710677, %v11893_v32  ;;  %v3921_v35 = vpop.permute.xlu1 %3920 }
 0x716   : > { %v5044_v52 = vmul.f32 %v4996_v49, %v11869_v46  ;;  %v4761_v23 = vmul.f32 0.70710677, %v11898_v17  ;;  %v4950_v45 = vmul.f32 -2.7261424e-10, %v11902_v7  ;;  %v5526_v30 = vmul.f32 -1.45660715e-05, %v11902_v7 }
 0x717   : > { %v5143_v34 = vmul.f32 %v5095_v31, %v11850_v3  ;;  %v5045_v61 = vmul.f32 %v4997_v40, %v11878_v29  ;;  %v5378_v53 = vadd.f32 -0.0029546, %v5330_v20  ;;  %v11914_v47 = vclamps-f32 %v4760_v10, 4.0 }
 0x718   : > { %v5092_v22 = vadd.f32 -2.101024e-06, %v5044_v52  ;;  %v11916_v57 = vclamps-f32 %v4761_v23, 4.0  ;;  %v5904_v49 = vmul.f32 %v11668_v51, %v5472_v14  ;;  %v4998_v60 = vadd.f32 2.7706815e-08, %v4950_v45  ;;  %v11931_v23 = vpop.permute.xlu0 %3926 }
 0x719   : > { %14661 = vst [vmem:[#allocation71_spill] sm:$0xff] %v11914_v47  ;;  %v5191_v27 = vadd.f32 -5.6925062e-05, %v5143_v34  ;;  %v5093_v0 = vadd.f32 -2.101024e-06, %v5045_v61  ;;  %v6583_v9 = vpop.eup %6582  ;;  %v11922_v1 = vmul.f32 %v11914_v47, %v11914_v47  ;;  %v14663_v34 = vld [vmem:[#allocation276_spill] sm:$0xff]  ;;  %v11944_v55 = vpop.permute.xlu1 %3924 }
 0x71a   : > { %14662 = vst [vmem:[#allocation73_spill] sm:$0xff] %v11916_v57  ;;  %v5140_v31 = vmul.f32 %v5092_v22, %v11869_v46  ;;  %v5574_v40 = vadd.f32 -0.00021337405, %v5526_v30  ;;  %v11926_v20 = vmul.f32 %v11916_v57, %v11916_v57  ;;  %v5379_v52 = vadd.f32 -0.0029546, %v5331_v50 }
 0x71b   : > { %v5239_v10 = vmul.f32 %v5191_v27, %v11850_v3  ;;  %v5141_v51 = vmul.f32 %v5093_v0, %v11878_v29  ;;  %v5046_v14 = vmul.f32 %v4998_v60, %v11902_v7  ;;  %v11935_v61 = vmul.f32 %v14663_v34, %v11769_v63 }
 0x71c   : > { %v5188_v45 = vadd.f32 -5.6925062e-05, %v5140_v31  ;;  %v5622_v30 = vmul.f32 %v5574_v40, %v11902_v7  ;;  %v4952_v22 = vmul.f32 -2.7261424e-10, %v11922_v1  ;;  %v5473_v57 = vadd.f32 -0.016096033, %v5425_v19 }
 0x71d   : > { %v5470_v47 = vadd.f32 -0.016096033, %v5422_v26  ;;  %v5967_v50 = vmul.f32 %v6583_v9, %v5904_v49  ;;  %v4953_v27 = vmul.f32 -2.7261424e-10, %v11926_v20  ;;  %v11942_v0 = vmul.f32 %v11783_v4, %v11546_v5 }
 0x71e   : > { %v5287_v60 = vadd.f32 -0.00073499064, %v5239_v10  ;;  %v5189_v62 = vadd.f32 -5.6925062e-05, %v5141_v51  ;;  %v5094_v36 = vadd.f32 -2.101024e-06, %v5046_v14  ;;  %v5426_v31 = vmul.f32 %v5378_v53, %v11723_v16  ;;  %v3482_v51 = vpop.permute.xlu0 %3481 }
 0x71f   : > { %v5471_v63 = vadd.f32 -0.016096033, %v5423_v54  ;;  %v5427_v40 = vmul.f32 %v5379_v52, %v11732_v11  ;;  %v5236_v19 = vmul.f32 %v5188_v45, %v11869_v46  ;;  %v11950_v9 = vmul.f32 0.5, %v11681_v13 }
 0x720   : > { %v11953_v26 = vmul.f32 0.5, %v11692_v59  ;;  %v5670_v5 = vadd.f32 -0.001682827, %v5622_v30  ;;  %v5000_v4 = vadd.f32 2.7706815e-08, %v4952_v22  ;;  %v11956_v49 = vmul.f32 %v11618_v2, %v5473_v57  ;;  %v11978_v22 = vpop.permute.xlu1 %3479 }
 0x721   : > { %v11959_v10 = vmul.f32 %v11633_v15, %v5470_v47  ;;  %v6048_v54 = vadd.f32 1.0, %v5967_v50  ;;  %v5001_v53 = vadd.f32 2.7706815e-08, %v4953_v27  ;;  %v11962_v52 = vmul.f32 0.5, %v11808_v56 }
 0x722   : > { %14664 = vst [vmem:[#allocation67_spill] sm:$0xff] %v11956_v49  ;;  %v5335_v13 = vmul.f32 %v5287_v60, %v11850_v3  ;;  %v5237_v14 = vmul.f32 %v5189_v62, %v11878_v29  ;;  %v5142_v59 = vmul.f32 %v5094_v36, %v11902_v7  ;;  %v11968_v34 = vmul.f32 %v11642_v12, %v5471_v63 }
 0x723   : > { %14665 = vst [vmem:[#allocation18_spill] sm:$0xff] %v11959_v10  ;;  %14666 = vst [vmem:[#allocation21_spill] sm:$0xff] %v11962_v52  ;;  %v5474_v2 = vadd.f32 -0.016096033, %v5426_v31  ;;  %v5475_v57 = vadd.f32 -0.016096033, %v5427_v40  ;;  %v5718_v56 = vmul.f32 %v5670_v5, %v11902_v7  ;;  %v5048_v30 = vmul.f32 %v5000_v4, %v11922_v1 }
 0x724   : > { %v5284_v45 = vadd.f32 -0.00073499064, %v5236_v19  ;;  %v11971_v15 = vmul.f32 0.5, %v11824_v24  ;;  %v11974_v47 = vmul.f32 0.5, %v11827_v38  ;;  %v11981_v36 = vmul.f32 %v6048_v54, %v11786_v37  ;;  %v14669_v31 = vld [vmem:[#allocation204_spill] sm:$0xff]  ;;  %v3486_v19 = vpop.permute.xlu0 %3485 }
 0x725   : > { %v11984_v12 = vmul.f32 0.5, %v11863_v58  ;;  %v5049_v62 = vmul.f32 %v5001_v53, %v11926_v20  ;;  %v3981_v24 = vsel %vm3964_vm12, %v11886_v18, %v11865_v42  ;;  %v5383_v38 = vadd.f32 -0.0029546, %v5335_v13  ;;  %v14673_v53 = vld [vmem:[#allocation29_spill] sm:$0xff] }
 0x726   : > { %14667 = vst [vmem:[#allocation47_spill] sm:$0xff] %v11971_v15  ;;  %14668 = vst [vmem:[#allocation20_spill] sm:$0xff] %v11974_v47  ;;  %v5285_v50 = vadd.f32 -0.00073499064, %v5237_v14  ;;  %v5190_v27 = vadd.f32 -5.6925062e-05, %v5142_v59  ;;  %v3982_v60 = vsel %vm3964_vm12, %v11865_v42, %v3921_v35  ;;  %v11993_v63 = vmul.f32 %v11708_v48, %v5474_v2 }
 0x727   : > { %v11996_v37 = vmul.f32 %v11719_v43, %v5475_v57  ;;  %v5332_v58 = vmul.f32 %v5284_v45, %v11869_v46  ;;  %v12001_v40 = vadd.f32 %v11904_v25, %v14669_v31  ;;  %v5766_v5 = vadd.f32 -0.0073733293, %v5718_v56  ;;  %v14672_v35 = vld [vmem:[#allocation36_spill] sm:$0xff]  ;;  %v14674_v14 = vld [vmem:[#allocation14_spill] sm:$0xff]  ;;  %v3484_v56 = vpop.permute.xlu1 %3483 }
 0x728   : > { %v12004_v4 = vmul.f32 0.5, %v11893_v32  ;;  %v12007_v54 = vmul.f32 0.5, %v11898_v17  ;;  %v5096_v42 = vadd.f32 -2.101024e-06, %v5048_v30  ;;  %v5097_v48 = vadd.f32 -2.101024e-06, %v5049_v62 }
 0x729   : > { %v12011_v43 = vadd.f32 %v11886_v18, %v14672_v35  ;;  %v12014_v13 = vadd.f32 %v3981_v24, %v14673_v53  ;;  %v12017_v59 = vadd.f32 %v3982_v60, %v14674_v14  ;;  %v5431_v2 = vmul.f32 %v5383_v38, %v11850_v3  ;;  %v14675_v17 = vld [vmem:[#allocation126_spill] sm:$0xff]  ;;  %v12037_v53 = vpop.permute.xlu0 %4371 }
 0x72a   : > { %14670 = vst [vmem:[#allocation81_spill] sm:$0xff] %v12004_v4  ;;  %14671 = vst [vmem:[#allocation15_spill] sm:$0xff] %v12007_v54  ;;  %v5333_v32 = vmul.f32 %v5285_v50, %v11878_v29  ;;  %v5238_v57 = vmul.f32 %v5190_v27, %v11902_v7  ;;  %v12023_v45 = vadd.f32 %v3482_v51, %v14675_v17  ;;  %v5380_v30 = vadd.f32 -0.0029546, %v5332_v58 }
 0x72b   : > { %v3983_v18 = vsel %vm3964_vm12, %v11904_v25, %v11944_v55  ;;  %v5516_v62 = vmul.f32 -1.45660715e-05, %v11471_v21  ;;  %v5561_v24 = vadd.f32 -0.00021337405, %v11567_v39  ;;  %v5814_v60 = vmul.f32 %v5766_v5, %v11902_v7 }
 0x72c   : > { %14676 = vst [vmem:[#allocation77_spill] sm:$0xff] %v12023_v45  ;;  %v5144_v38 = vmul.f32 %v5096_v42, %v11922_v1  ;;  %v5798_v50 = vmul.f32 %v11536_v8, %v11193_v28  ;;  %v5843_v27 = vadd.f32 -0.014264739, %v11539_v6  ;;  %v5145_v31 = vmul.f32 %v5097_v48, %v11926_v20 }
 0x72d   : > { %v5564_v58 = vadd.f32 -0.00021337405, %v5516_v62  ;;  %v5609_v35 = vmul.f32 %v5561_v24, %v11415_v33  ;;  %v3534_v25 = vsel %vm3511_vm11, %v3482_v51, %v3484_v56  ;;  %v5479_v14 = vadd.f32 -0.016096033, %v5431_v2  ;;  %v14677_v51 = vld [vmem:[#allocation137_spill] sm:$0xff] }
 0x72e   : > { %v5381_v39 = vadd.f32 -0.0029546, %v5333_v32  ;;  %v5846_v17 = vadd.f32 -0.014264739, %v5798_v50  ;;  %6584 = vrcp.f32 %v5843_v27  ;;  %v5286_v5 = vadd.f32 -0.00073499064, %v5238_v57 }
 0x72f   : > { %v5612_v42 = vmul.f32 %v5564_v58, %v11471_v21  ;;  %v5657_v52 = vadd.f32 -0.001682827, %v5609_v35  ;;  %v12042_v28 = vsel %vm3511_vm11, %v3484_v56, %v3486_v19  ;;  %v5428_v8 = vmul.f32 %v5380_v30, %v11869_v46  ;;  %v14679_v62 = vld [vmem:[#allocation277_spill] sm:$0xff]  ;;  %v14680_v50 = vld [vmem:[#allocation267_spill] sm:$0xff]  ;;  %v14681_v27 = vld [vmem:[#allocation34_spill] sm:$0xff] }
 0x730   : > { %v12048_v6 = vsel %vm3964_vm12, %v11944_v55, %v11931_v23  ;;  %6586 = vrcp.f32 %v5846_v17  ;;  %v12051_v48 = vadd.f32 %v3534_v25, %v14677_v51  ;;  %v12053_v2 = vadd.f32 -0.014264739, %v5814_v60  ;;  %v14682_v58 = vld [vmem:[#allocation282_spill] sm:$0xff]  ;;  %v12064_v17 = vpop.permute.xlu0 %4375  ;;  %v14684_v51 = vld [vmem:[#allocation208_spill] sm:$0xff] }
 0x731   : > { %v5660_v32 = vadd.f32 -0.001682827, %v5612_v42  ;;  %v5705_v57 = vmul.f32 %v5657_v52, %v11415_v33  ;;  %v5512_v24 = vmul.f32 -1.45660715e-05, %v14679_v62  ;;  %v5192_v19 = vadd.f32 -5.6925062e-05, %v5144_v38 }
 0x732   : > { %14678 = vst [vmem:[#allocation22_spill] sm:$0xff] %v12051_v48  ;;  %v5193_v56 = vadd.f32 -5.6925062e-05, %v5145_v31  ;;  %v5515_v30 = vmul.f32 -1.45660715e-05, %v14680_v50  ;;  %v5605_v35 = vmul.f32 %v14682_v58, %v14681_v27  ;;  %v12061_v55 = vmul.f32 %v11837_v44, %v5479_v14  ;;  %v14702_v48 = vld [vmem:[#allocation280_spill] sm:$0xff] }
 0x733   : > { %v5708_v23 = vmul.f32 %v5660_v32, %v11471_v21  ;;  %v5753_v25 = vadd.f32 -0.0073733293, %v5705_v57  ;;  %v5560_v60 = vadd.f32 -0.00021337405, %v5512_v24  ;;  %v5429_v52 = vmul.f32 %v5381_v39, %v11878_v29  ;;  %v14685_v32 = vld [vmem:[#allocation12_spill] sm:$0xff]  ;;  %v14686_v57 = vld [vmem:[#allocation65_spill] sm:$0xff] }
 0x734   : > { %14683 = vst [vmem:[#allocation127_spill] sm:$0xff] %v12061_v55  ;;  %v5334_v42 = vmul.f32 %v5286_v5, %v11902_v7  ;;  %v5563_v38 = vadd.f32 -0.00021337405, %v5515_v30  ;;  %v5653_v31 = vadd.f32 -0.001682827, %v5605_v35  ;;  %v12069_v15 = vadd.f32 %v3983_v18, %v14684_v51 }
 0x735   : > { %v5756_v54 = vadd.f32 -0.0073733293, %v5708_v23  ;;  %v5801_v58 = vmul.f32 %v5753_v25, %v11415_v33  ;;  %v5608_v44 = vmul.f32 %v5560_v60, %v14679_v62  ;;  %v5698_v24 = vmul.f32 %v14686_v57, %v14685_v32  ;;  %v14687_v57 = vld [vmem:[#allocation283_spill] sm:$0xff] }
 0x736   : > { %v5611_v14 = vmul.f32 %v5563_v38, %v14680_v50  ;;  %v5701_v55 = vmul.f32 %v5653_v31, %v14681_v27  ;;  %v4525_v39 = vadd.f32 %v12064_v17, %v12001_v40  ;;  %v12079_v5 = vadd.f32 -0.016096033, %v5428_v8  ;;  %v4370_v40 = vpop.permute.xlu1 %4369 }
 0x737   : > { %v5804_v18 = vmul.f32 %v5756_v54, %v11471_v21  ;;  %v5849_v30 = vadd.f32 -0.014264739, %v5801_v58  ;;  %v5656_v35 = vadd.f32 -0.001682827, %v5608_v44  ;;  %v5746_v25 = vadd.f32 -0.0073733293, %v5698_v24 }
 0x738   : > { %v6585_v23 = vpop.eup %6584  ;;  %v5659_v33 = vadd.f32 -0.001682827, %v5611_v14  ;;  %v5749_v60 = vadd.f32 -0.0073733293, %v5701_v55  ;;  %v12083_v38 = vadd.f32 %v11829_v41, %v4525_v39  ;;  %v5240_v47 = vmul.f32 %v5192_v19, %v11922_v1  ;;  %v14688_v55 = vld [vmem:[#allocation275_spill] sm:$0xff] }
 0x739   : > { %v5852_v51 = vadd.f32 -0.014264739, %v5804_v18  ;;  %6588 = vrcp.f32 %v5849_v30  ;;  %v5941_v31 = vmul.f32 %v6585_v23, %v14687_v57  ;;  %v5704_v4 = vmul.f32 %v5656_v35, %v14679_v62  ;;  %v14689_v57 = vld [vmem:[#allocation263_spill] sm:$0xff] }
 0x73a   : > { %v6587_v8 = vpop.eup %6586  ;;  %v5707_v21 = vmul.f32 %v5659_v33, %v14680_v50  ;;  %v5794_v54 = vmul.f32 %v5746_v25, %v14685_v32  ;;  %v5797_v58 = vmul.f32 %v5749_v60, %v14681_v27  ;;  %v4434_v35 = vsel %vm4417_vm13, %v4370_v40, %v12037_v53  ;;  %v14690_v60 = vld [vmem:[#allocation268_spill] sm:$0xff] }
 0x73b   : > { %6590 = vrcp.f32 %v5852_v51  ;;  %v5947_v44 = vmul.f32 %v6587_v8, %v14688_v55  ;;  %v6035_v14 = vadd.f32 1.0, %v5941_v31  ;;  %v5752_v24 = vadd.f32 -0.0073733293, %v5704_v4 }
 0x73c   : > { %v5755_v39 = vadd.f32 -0.0073733293, %v5707_v21  ;;  %v5842_v18 = vadd.f32 -0.014264739, %v5794_v54  ;;  %v5845_v30 = vadd.f32 -0.014264739, %v5797_v58  ;;  %v4522_v25 = vadd.f32 %v4370_v40, %v12011_v43 }
 0x73d   : > { %v6038_v23 = vadd.f32 1.0, %v5947_v44  ;;  %v6083_v19 = vmul.f32 %v6035_v14, %v14689_v57  ;;  %v5800_v33 = vmul.f32 %v5752_v24, %v14679_v62  ;;  %v4765_v32 = vmul.f32 0.70710677, %v12083_v38  ;;  %v14691_v58 = vld [vmem:[#allocation68_spill] sm:$0xff]  ;;  %v14695_v57 = vld [vmem:[#allocation209_spill] sm:$0xff] }
 0x73e   : > { %v5803_v27 = vmul.f32 %v5755_v39, %v14680_v50  ;;  %6592 = vrcp.f32 %v5842_v18  ;;  %v4523_v4 = vadd.f32 %v4434_v35, %v12014_v13  ;;  %v5241_v21 = vmul.f32 %v5193_v56, %v11926_v20 }
 0x73f   : > { %v6086_v51 = vmul.f32 %v6038_v23, %v14690_v60  ;;  %v5848_v31 = vadd.f32 -0.014264739, %v5800_v33  ;;  %6594 = vrcp.f32 %v5845_v30  ;;  %v12101_v8 = vclamps-f32 %v4765_v32, 4.0  ;;  %v14693_v30 = vld [vmem:[#allocation66_spill] sm:$0xff] }
 0x740   : > { %v5851_v54 = vadd.f32 -0.014264739, %v5803_v27  ;;  %v12105_v62 = vadd.f32 %v14691_v58, %v4522_v25  ;;  %v12108_v55 = vadd.f32 %v14691_v58, %v4523_v4  ;;  %v12110_v50 = vadd.f32 -0.016096033, %v5429_v52  ;;  %v14697_v25 = vld [vmem:[#allocation74_spill] sm:$0xff] }
 0x741   : > { %v6135_v43 = vpack.c.bf16 %v6086_v51, %v6083_v19  ;;  %6596 = vrcp.f32 %v5848_v31  ;;  %v12114_v13 = vmul.f32 %v12101_v8, %v12101_v8  ;;  %v5382_v40 = vadd.f32 -0.0029546, %v5334_v42 }
 0x742   : > { %14692 = vst [vmem:[#allocation13_spill] sm:$0xff] %v12108_v55  ;;  %v5288_v44 = vadd.f32 -0.00073499064, %v5240_v47  ;;  %6598 = vrcp.f32 %v5851_v54  ;;  %v4762_v56 = vmul.f32 0.70710677, %v12105_v62  ;;  %v12128_v19 = vadd.f32 %v12048_v6, %v14695_v57  ;;  %v14698_v54 = vld [vmem:[#allocation272_spill] sm:$0xff] }
 0x743   : > { %v6589_v14 = vpop.eup %6588  ;;  %6600 = vrcp.f32 %v12053_v2  ;;  %6220 = vrot.lane.b32.xlu1 %v6135_v43, %s6730_s25  ;;  %v4957_v24 = vmul.f32 -2.7261424e-10, %v12114_v13  ;;  %v5533_v52 = vmul.f32 -1.45660715e-05, %v12114_v13  ;;  %v4763_v39 = vmul.f32 0.70710677, %v12108_v55 }
 0x744   : > { %v5289_v18 = vadd.f32 -0.00073499064, %v5241_v21  ;;  %v5953_v35 = vmul.f32 %v6589_v14, %v14693_v30  ;;  %v12123_v23 = vclamps-f32 %v4762_v56, 4.0  ;;  %v5523_v47 = vmul.f32 -1.45660715e-05, %v11732_v11 }
 0x745   : > { %v6591_v42 = vpop.eup %6590  ;;  %v5005_v2 = vadd.f32 2.7706815e-08, %v4957_v24  ;;  %v5581_v33 = vadd.f32 -0.00021337405, %v5533_v52  ;;  %v12130_v32 = vclamps-f32 %v4763_v39, 4.0  ;;  %v5430_v27 = vmul.f32 %v5382_v40, %v11902_v7  ;;  %v14699_v39 = vld [vmem:[#allocation270_spill] sm:$0xff] }
 0x746   : > { %14694 = vst [vmem:[#allocation23_spill] sm:$0xff] %v12123_v23  ;;  %v5959_v4 = vmul.f32 %v6591_v42, %v14697_v25  ;;  %v6041_v60 = vadd.f32 1.0, %v5953_v35  ;;  %v12136_v51 = vmul.f32 %v12123_v23, %v12123_v23  ;;  %v5517_v43 = vmul.f32 -1.45660715e-05, %v14698_v54  ;;  %v14701_v25 = vld [vmem:[#allocation286_spill] sm:$0xff] }
 0x747   : > { %14696 = vst [vmem:[#allocation24_spill] sm:$0xff] %v12130_v32  ;;  %v5053_v31 = vmul.f32 %v5005_v2, %v12114_v13  ;;  %v5629_v21 = vmul.f32 %v5581_v33, %v12114_v13  ;;  %v12142_v6 = vmul.f32 %v12130_v32, %v12130_v32  ;;  %v5336_v7 = vmul.f32 %v5288_v44, %v11922_v1  ;;  %v14700_v2 = vld [vmem:[#allocation289_spill] sm:$0xff] }
 0x748   : > { %v6593_v56 = vpop.eup %6592  ;;  %v6044_v40 = vadd.f32 1.0, %v5959_v4  ;;  %v4954_v14 = vmul.f32 -2.7261424e-10, %v12136_v51  ;;  %v5571_v24 = vadd.f32 -0.00021337405, %v5523_v47  ;;  %v6089_v33 = vmul.f32 %v6041_v60, %v14700_v2  ;;  %v14704_v60 = vld [vmem:[#allocation44_spill] sm:$0xff] }
 0x749   : > { %v6595_v52 = vpop.eup %6594  ;;  %v5939_v30 = vmul.f32 %v6593_v56, %v14699_v39  ;;  %v5101_v35 = vadd.f32 -2.101024e-06, %v5053_v31  ;;  %v5677_v42 = vadd.f32 -0.001682827, %v5629_v21  ;;  %v4955_v57 = vmul.f32 -2.7261424e-10, %v12142_v6 }
 0x74a   : > { %v6092_v55 = vmul.f32 %v6044_v40, %v14701_v25  ;;  %v5945_v45 = vmul.f32 %v6595_v52, %v14702_v48  ;;  %v5002_v49 = vadd.f32 2.7706815e-08, %v4954_v14  ;;  %v5478_v44 = vadd.f32 -0.016096033, %v5430_v27  ;;  %v14703_v56 = vld [vmem:[#allocation287_spill] sm:$0xff]  ;;  %v4374_v27 = vpop.permute.xlu1 %4373 }
 0x74b   : > { %v6597_v10 = vpop.eup %6596  ;;  %v5337_v4 = vmul.f32 %v5289_v18, %v11926_v20  ;;  %v6034_v3 = vadd.f32 1.0, %v5939_v30  ;;  %v5565_v47 = vadd.f32 -0.00021337405, %v5517_v43  ;;  %v5149_v39 = vmul.f32 %v5101_v35, %v12114_v13  ;;  %v14705_v43 = vld [vmem:[#allocation264_spill] sm:$0xff] }
 0x74c   : > { %v6599_v32 = vpop.eup %6598  ;;  %v6138_v46 = vpack.c.bf16 %v6092_v55, %v6089_v33  ;;  %v5951_v31 = vmul.f32 %v6597_v10, %v14703_v56  ;;  %v6037_v21 = vadd.f32 1.0, %v5945_v45  ;;  %v5725_v40 = vmul.f32 %v5677_v42, %v12114_v13  ;;  %v14706_v55 = vld [vmem:[#allocation271_spill] sm:$0xff]  ;;  %v14707_v45 = vld [vmem:[#allocation69_spill] sm:$0xff] }
 0x74d   : > { %v6601_v23 = vpop.eup %6600  ;;  %v5957_v2 = vmul.f32 %v6599_v32, %v14704_v60  ;;  %v5003_v48 = vadd.f32 2.7706815e-08, %v4955_v57  ;;  %v5619_v14 = vmul.f32 %v5571_v24, %v11732_v11  ;;  %v6082_v52 = vmul.f32 %v6034_v3, %v14705_v43  ;;  %v14708_v56 = vld [vmem:[#allocation281_spill] sm:$0xff] }
 0x74e   : > { %6226 = vrot.lane.b32.xlu0 %v6138_v46, %s6730_s25  ;;  %v6040_v18 = vadd.f32 1.0, %v5951_v31  ;;  %v6085_v30 = vmul.f32 %v6037_v21, %v14706_v55  ;;  %v5050_v10 = vmul.f32 %v5002_v49, %v12136_v51  ;;  %v5910_v35 = vmul.f32 %v14707_v45, %v5478_v44  ;;  %v14709_v46 = vld [vmem:[#allocation278_spill] sm:$0xff]  ;;  %v14710_v44 = vld [vmem:[#allocation91_spill] sm:$0xff] }
 0x74f   : > { %v5384_v33 = vadd.f32 -0.0029546, %v5336_v7  ;;  %v5385_v25 = vadd.f32 -0.0029546, %v5337_v4  ;;  %v6043_v32 = vadd.f32 1.0, %v5957_v2  ;;  %v4435_v24 = vsel %vm4417_vm13, %v12037_v53, %v4374_v27 }
 0x750   : > { %v6088_v42 = vmul.f32 %v6040_v18, %v14708_v56  ;;  %v6134_v57 = vpack.c.bf16 %v6085_v30, %v6082_v52  ;;  %v5197_v60 = vadd.f32 -5.6925062e-05, %v5149_v39  ;;  %v5051_v3 = vmul.f32 %v5003_v48, %v12142_v6 }
 0x751   : > { %v6091_v31 = vmul.f32 %v6043_v32, %v14709_v46  ;;  %v5530_v21 = vmul.f32 -1.45660715e-05, %v12136_v51  ;;  %v5613_v49 = vmul.f32 %v5565_v47, %v14698_v54  ;;  %v3533_v7 = vsel %vm3511_vm11, %v14710_v44, %v11978_v22  ;;  %v14711_v22 = vld [vmem:[#allocation70_spill] sm:$0xff] }
 0x752   : > { %6218 = vrot.lane.b32.xlu1 %v6134_v57, %s6730_s25  ;;  %v5773_v4 = vadd.f32 -0.0073733293, %v5725_v40  ;;  %v5098_v2 = vadd.f32 -2.101024e-06, %v5050_v10  ;;  %v5667_v39 = vadd.f32 -0.001682827, %v5619_v14  ;;  %v5432_v18 = vmul.f32 %v5384_v33, %v11922_v1 }
 0x753   : > { %v5433_v53 = vmul.f32 %v5385_v25, %v11926_v20  ;;  %v6137_v27 = vpack.c.bf16 %v6091_v31, %v6088_v42  ;;  %v4524_v48 = vadd.f32 %v4435_v24, %v12017_v59  ;;  %v5979_v43 = vmul.f32 %v6601_v23, %v5910_v35  ;;  %v14712_v40 = vld [vmem:[#allocation35_spill] sm:$0xff]  ;;  %v4380_v25 = vpop.permute.xlu0 %4379  ;;  %v14713_v31 = vld [vmem:[#allocation72_spill] sm:$0xff] }
 0x754   : > { %v5245_v52 = vmul.f32 %v5197_v60, %v12114_v13  ;;  %v5531_v47 = vmul.f32 -1.45660715e-05, %v12142_v6  ;;  %v5715_v55 = vmul.f32 %v5667_v39, %v11732_v11  ;;  %v12182_v30 = vmul.f32 %v14711_v22, %v12079_v5 }
 0x755   : > { %v12185_v14 = vadd.f32 %v3533_v7, %v14712_v40  ;;  %6224 = vrot.lane.b32.xlu0 %v6137_v27, %s6730_s25  ;;  %v5099_v10 = vadd.f32 -2.101024e-06, %v5051_v3  ;;  %v5661_v45 = vadd.f32 -0.001682827, %v5613_v49  ;;  %v5821_v59 = vmul.f32 %v5773_v4, %v12114_v13  ;;  %v14714_v49 = vld [vmem:[#allocation136_spill] sm:$0xff]  ;;  %v4378_v4 = vpop.permute.xlu1 %4377 }
 0x756   : > { %v5146_v23 = vmul.f32 %v5098_v2, %v12136_v51  ;;  %v5578_v35 = vadd.f32 -0.00021337405, %v5530_v21  ;;  %v5763_v33 = vadd.f32 -0.0073733293, %v5715_v55  ;;  %v5480_v32 = vadd.f32 -0.016096033, %v5432_v18 }
 0x757   : > { %v5481_v56 = vadd.f32 -0.016096033, %v5433_v53  ;;  %v5709_v42 = vmul.f32 %v5661_v45, %v14698_v54  ;;  %v4668_v5 = vadd.f32 %v14691_v58, %v4524_v48  ;;  %v6054_v57 = vadd.f32 1.0, %v5979_v43  ;;  %v14715_v53 = vld [vmem:[#allocation71_spill] sm:$0xff]  ;;  %v12215_v55 = vpop.permute.xlu0 %4619 }
 0x758   : > { %v5293_v60 = vadd.f32 -0.00073499064, %v5245_v52  ;;  %v5579_v24 = vadd.f32 -0.00021337405, %v5531_v47  ;;  %v5811_v46 = vmul.f32 %v5763_v33, %v11732_v11  ;;  %v12195_v3 = vmul.f32 %v14713_v31, %v12110_v50  ;;  %v14716_v11 = vld [vmem:[#allocation73_spill] sm:$0xff] }
 0x759   : > { %v12199_v21 = vadd.f32 %v12042_v28, %v14714_v49  ;;  %v5147_v44 = vmul.f32 %v5099_v10, %v12142_v6  ;;  %v5757_v7 = vadd.f32 -0.0073733293, %v5709_v42  ;;  %v5869_v2 = vadd.f32 -0.014264739, %v5821_v59 }
 0x75a   : > { %v5194_v39 = vadd.f32 -5.6925062e-05, %v5146_v23  ;;  %v5626_v58 = vmul.f32 %v5578_v35, %v12136_v51  ;;  %v5859_v18 = vadd.f32 -0.014264739, %v5811_v46  ;;  %v12204_v27 = vmul.f32 %v14715_v53, %v5480_v32  ;;  %v14717_v35 = vld [vmem:[#allocation291_spill] sm:$0xff] }
 0x75b   : > { %v12207_v48 = vmul.f32 %v14716_v11, %v5481_v56  ;;  %v5805_v50 = vmul.f32 %v5757_v7, %v14698_v54  ;;  %v4764_v43 = vmul.f32 0.70710677, %v4668_v5  ;;  %v12211_v28 = vmul.f32 %v6054_v57, %v11984_v12  ;;  %v12232_v56 = vpop.permute.xlu1 %4614 }
 0x75c   : > { %v5341_v52 = vmul.f32 %v5293_v60, %v12114_v13  ;;  %v5627_v47 = vmul.f32 %v5579_v24, %v12142_v6  ;;  %6602 = vrcp.f32 %v5859_v18  ;;  %v12218_v22 = vmul.f32 0.5, %v12083_v38 }
 0x75d   : > { %v5195_v40 = vadd.f32 -5.6925062e-05, %v5147_v44  ;;  %v5853_v10 = vadd.f32 -0.014264739, %v5805_v50  ;;  %v12220_v45 = vclamps-f32 %v4764_v43, 4.0  ;;  %6604 = vrcp.f32 %v5869_v2 }
 0x75e   : > { %v5242_v54 = vmul.f32 %v5194_v39, %v12136_v51  ;;  %v5674_v59 = vadd.f32 -0.001682827, %v5626_v58  ;;  %v4436_v12 = vsel %vm4417_vm13, %v12064_v17, %v4378_v4  ;;  %v5519_v33 = vmul.f32 -1.45660715e-05, %v14717_v35 }
 0x75f   : > { %v12227_v23 = vmul.f32 %v12220_v45, %v12220_v45  ;;  %v5522_v38 = vmul.f32 -1.45660715e-05, %v11723_v16  ;;  %v4437_v32 = vsel %vm4417_vm13, %v4378_v4, %v4380_v25  ;;  %v5389_v42 = vadd.f32 -0.0029546, %v5341_v52  ;;  %v12242_v4 = vpop.permute.xlu0 %3930 }
 0x760   : > { %v12235_v57 = vmul.f32 0.5, %v12105_v62  ;;  %v5675_v60 = vadd.f32 -0.001682827, %v5627_v47  ;;  %6606 = vrcp.f32 %v5853_v10  ;;  %v5243_v17 = vmul.f32 %v5195_v40, %v12142_v6  ;;  %v12258_v47 = vpop.permute.xlu1 %3928 }
 0x761   : > { %v4956_v24 = vmul.f32 -2.7261424e-10, %v12227_v23  ;;  %v5567_v46 = vadd.f32 -0.00021337405, %v5519_v33  ;;  %v4526_v31 = vadd.f32 %v4436_v12, %v12069_v15  ;;  %v5290_v49 = vadd.f32 -0.00073499064, %v5242_v54 }
 0x762   : > { %14718 = vst [vmem:[#allocation11_spill] sm:$0xff] %v12235_v57  ;;  %v5532_v44 = vmul.f32 -1.45660715e-05, %v12227_v23  ;;  %v5570_v7 = vadd.f32 -0.00021337405, %v5522_v38  ;;  %v4527_v25 = vadd.f32 %v4437_v32, %v12128_v19  ;;  %v5722_v62 = vmul.f32 %v5674_v59, %v12136_v51 }
 0x763   : > { %v5004_v2 = vadd.f32 2.7706815e-08, %v4956_v24  ;;  %v5615_v39 = vmul.f32 %v5567_v46, %v14717_v35  ;;  %v12247_v58 = vadd.f32 %v11829_v41, %v4526_v31  ;;  %v5437_v18 = vmul.f32 %v5389_v42, %v12114_v13  ;;  %v12267_v46 = vpop.permute.xlu0 %3934 }
 0x764   : > { %v5723_v15 = vmul.f32 %v5675_v60, %v12142_v6  ;;  %v5618_v53 = vmul.f32 %v5570_v7, %v11723_v16  ;;  %v12253_v11 = vadd.f32 %v11829_v41, %v4527_v25  ;;  %v5291_v19 = vadd.f32 -0.00073499064, %v5243_v17  ;;  %v14719_v17 = vld [vmem:[#allocation43_spill] sm:$0xff] }
 0x765   : > { %v12255_v50 = vmul.f32 0.5, %v4668_v5  ;;  %v5052_v43 = vmul.f32 %v5004_v2, %v12227_v23  ;;  %v5663_v52 = vadd.f32 -0.001682827, %v5615_v39  ;;  %v5338_v10 = vmul.f32 %v5290_v49, %v12136_v51 }
 0x766   : > { %v6603_v40 = vpop.eup %6602  ;;  %v5580_v54 = vadd.f32 -0.00021337405, %v5532_v44  ;;  %v5666_v13 = vadd.f32 -0.001682827, %v5618_v53  ;;  %v4766_v59 = vmul.f32 0.70710677, %v12247_v58  ;;  %v5339_v31 = vmul.f32 %v5291_v19, %v12142_v6 }
 0x767   : > { %v5770_v12 = vadd.f32 -0.0073733293, %v5722_v62  ;;  %v5973_v33 = vmul.f32 %v6603_v40, %v11996_v37  ;;  %v5100_v41 = vadd.f32 -2.101024e-06, %v5052_v43  ;;  %v5711_v38 = vmul.f32 %v5663_v52, %v14717_v35  ;;  %v6605_v5 = vpop.eup %6604  ;;  %v12278_v40 = vpop.permute.xlu1 %3932 }
 0x768   : > { %v5485_v32 = vadd.f32 -0.016096033, %v5437_v18  ;;  %v5714_v42 = vmul.f32 %v5666_v13, %v11723_v16  ;;  %v4767_v60 = vmul.f32 0.70710677, %v12253_v11  ;;  %v5518_v24 = vmul.f32 -1.45660715e-05, %v14719_v17 }
 0x769   : > { %v5771_v49 = vadd.f32 -0.0073733293, %v5723_v15  ;;  %v6051_v44 = vadd.f32 1.0, %v5973_v33  ;;  %v5148_v7 = vmul.f32 %v5100_v41, %v12227_v23  ;;  %v5628_v25 = vmul.f32 %v5580_v54, %v12227_v23  ;;  %v14720_v13 = vld [vmem:[#allocation288_spill] sm:$0xff] }
 0x76a   : > { %v6607_v37 = vpop.eup %6606  ;;  %v5759_v62 = vadd.f32 -0.0073733293, %v5711_v38  ;;  %v5762_v2 = vadd.f32 -0.0073733293, %v5714_v42  ;;  %v12272_v39 = vclamps-f32 %v4766_v59, 4.0  ;;  %v12276_v52 = vclamps-f32 %v4767_v60, 4.0 }
 0x76b   : > { %v6099_v18 = vmul.f32 %v6051_v44, %v11953_v26  ;;  %v5961_v53 = vmul.f32 %v6607_v37, %v11935_v61  ;;  %v5196_v43 = vadd.f32 -5.6925062e-05, %v5148_v7  ;;  %v5521_v33 = vmul.f32 -1.45660715e-05, %v14720_v13  ;;  %v12286_v7 = vpop.permute.xlu0 %3938 }
 0x76c   : > { %v5807_v15 = vmul.f32 %v5759_v62, %v14717_v35  ;;  %v5810_v19 = vmul.f32 %v5762_v2, %v11723_v16  ;;  %v5566_v54 = vadd.f32 -0.00021337405, %v5518_v24  ;;  %v5386_v41 = vadd.f32 -0.0029546, %v5338_v10  ;;  %v14721_v16 = vld [vmem:[#allocation284_spill] sm:$0xff]  ;;  %v12303_v2 = vpop.permute.xlu1 %3936 }
 0x76d   : > { %v5818_v59 = vmul.f32 %v5770_v12, %v12136_v51  ;;  %v6142_v38 = vpack.c.bf16 %v6099_v18, %v11981_v36  ;;  %v6045_v26 = vadd.f32 1.0, %v5961_v53  ;;  %v5244_v61 = vmul.f32 %v5196_v43, %v12227_v23 }
 0x76e   : > { %v5676_v42 = vadd.f32 -0.001682827, %v5628_v25  ;;  %v5855_v60 = vadd.f32 -0.014264739, %v5807_v15  ;;  %v5858_v44 = vadd.f32 -0.014264739, %v5810_v19  ;;  %v5917_v35 = vmul.f32 %v12101_v8, %v5485_v32 }
 0x76f   : > { %6234 = vrot.lane.b32.xlu0 %v6142_v38, %s6730_s25  ;;  %v6093_v37 = vmul.f32 %v6045_v26, %v14721_v16  ;;  %v12293_v10 = vmul.f32 %v12272_v39, %v12272_v39  ;;  %v12297_v36 = vmul.f32 %v12276_v52, %v12276_v52  ;;  %v5819_v12 = vmul.f32 %v5771_v49, %v12142_v6 }
 0x770   : > { %6608 = vrcp.f32 %v5855_v60  ;;  %v5569_v24 = vadd.f32 -0.00021337405, %v5521_v33  ;;  %v5614_v25 = vmul.f32 %v5566_v54, %v14719_v17  ;;  %v5387_v62 = vadd.f32 -0.0029546, %v5339_v31  ;;  %v12311_v60 = vpop.permute.xlu0 %3489 }
 0x771   : > { %v6139_v8 = vpack.c.bf16 %v6093_v37, %v11942_v0  ;;  %6610 = vrcp.f32 %v5858_v44  ;;  %v4958_v32 = vmul.f32 -2.7261424e-10, %v12293_v10  ;;  %v5292_v18 = vadd.f32 -0.00073499064, %v5244_v61  ;;  %14722 = vst [vmem:[#allocation33_spill] sm:$0xff] %v12311_v60 }
 0x772   : > { %v5724_v53 = vmul.f32 %v5676_v42, %v12227_v23  ;;  %v4959_v43 = vmul.f32 -2.7261424e-10, %v12297_v36  ;;  %v5535_v15 = vmul.f32 -1.45660715e-05, %v12297_v36  ;;  %v5866_v49 = vadd.f32 -0.014264739, %v5818_v59 }
 0x773   : > { %6228 = vrot.lane.b32.xlu1 %v6139_v8, %s6730_s25  ;;  %v5006_v19 = vadd.f32 2.7706815e-08, %v4958_v32  ;;  %v5617_v31 = vmul.f32 %v5569_v24, %v14720_v13  ;;  %v5662_v33 = vadd.f32 -0.001682827, %v5614_v25  ;;  %v5434_v0 = vmul.f32 %v5386_v41, %v12136_v51  ;;  %v12320_v32 = vpop.permute.xlu1 %3487 }
 0x774   : > { %v5867_v54 = vadd.f32 -0.014264739, %v5819_v12  ;;  %v5007_v38 = vadd.f32 2.7706815e-08, %v4959_v43  ;;  %v5583_v26 = vadd.f32 -0.00021337405, %v5535_v15  ;;  %v5993_v61 = vmul.f32 %v6605_v5, %v5917_v35 }
 0x775   : > { %v5054_v42 = vmul.f32 %v5006_v19, %v12293_v10  ;;  %v5665_v44 = vadd.f32 -0.001682827, %v5617_v31  ;;  %v5710_v16 = vmul.f32 %v5662_v33, %v14719_v17  ;;  %v5340_v59 = vmul.f32 %v5292_v18, %v12227_v23  ;;  %14723 = vst [vmem:[#allocation46_spill] sm:$0xff] %v12320_v32 }
 0x776   : > { %v5772_v37 = vadd.f32 -0.0073733293, %v5724_v53  ;;  %v5055_v8 = vmul.f32 %v5007_v38, %v12297_v36  ;;  %v5631_v24 = vmul.f32 %v5583_v26, %v12297_v36  ;;  %v5534_v51 = vmul.f32 -1.45660715e-05, %v12293_v10 }
 0x777   : > { %v5102_v25 = vadd.f32 -2.101024e-06, %v5054_v42  ;;  %v5713_v41 = vmul.f32 %v5665_v44, %v14720_v13  ;;  %v5758_v12 = vadd.f32 -0.0073733293, %v5710_v16  ;;  %v5435_v5 = vmul.f32 %v5387_v62, %v12142_v6  ;;  %v12328_v44 = vpop.permute.xlu0 %3493 }
 0x778   : > { %v5482_v35 = vadd.f32 -0.016096033, %v5434_v0  ;;  %v5103_v43 = vadd.f32 -2.101024e-06, %v5055_v8  ;;  %v5679_v15 = vadd.f32 -0.001682827, %v5631_v24  ;;  %6612 = vrcp.f32 %v5866_v49 }
 0x779   : > { %v5150_v18 = vmul.f32 %v5102_v25, %v12293_v10  ;;  %v5761_v53 = vadd.f32 -0.0073733293, %v5713_v41  ;;  %v5806_v19 = vmul.f32 %v5758_v12, %v14719_v17  ;;  %v5388_v33 = vadd.f32 -0.0029546, %v5340_v59  ;;  %14724 = vst [vmem:[#allocation134_spill] sm:$0xff] %v12328_v44  ;;  %v12335_v12 = vpop.permute.xlu1 %3491 }
 0x77a   : > { %v6609_v31 = vpop.eup %6608  ;;  %v5820_v38 = vmul.f32 %v5772_v37, %v12227_v23  ;;  %v5151_v26 = vmul.f32 %v5103_v43, %v12297_v36  ;;  %v5727_v42 = vmul.f32 %v5679_v15, %v12297_v36  ;;  %v5582_v0 = vadd.f32 -0.00021337405, %v5534_v51  ;;  %14725 = vst [vmem:[#allocation146_spill] sm:$0xff] %v12335_v12 }
 0x77b   : > { %v6611_v6 = vpop.eup %6610  ;;  %v5965_v62 = vmul.f32 %v6609_v31, %v11968_v34  ;;  %v5809_v49 = vmul.f32 %v5761_v53, %v14720_v13  ;;  %v5854_v16 = vadd.f32 -0.014264739, %v5806_v19  ;;  %6614 = vrcp.f32 %v5867_v54 }
 0x77c   : > { %v5971_v17 = vmul.f32 %v6611_v6, %v11993_v63  ;;  %v5198_v8 = vadd.f32 -5.6925062e-05, %v5150_v18  ;;  %v5199_v59 = vadd.f32 -5.6925062e-05, %v5151_v26  ;;  %v12333_v24 = vadd.f32 1.0, %v5993_v61  ;;  %v14726_v18 = vld [vmem:[#allocation75_spill] sm:$0xff]  ;;  %v12344_v26 = vpop.permute.xlu0 %3497 }
 0x77d   : > { %v6047_v37 = vadd.f32 1.0, %v5965_v62  ;;  %v5775_v25 = vadd.f32 -0.0073733293, %v5727_v42  ;;  %v5857_v41 = vadd.f32 -0.014264739, %v5809_v49  ;;  %v5436_v54 = vmul.f32 %v5388_v33, %v12227_v23  ;;  %14727 = vst [vmem:[#allocation52_spill] sm:$0xff] %v12344_v26 }
 0x77e   : > { %v5868_v43 = vadd.f32 -0.014264739, %v5820_v38  ;;  %v6050_v15 = vadd.f32 1.0, %v5971_v17  ;;  %v5247_v34 = vmul.f32 %v5199_v59, %v12297_v36  ;;  %v5525_v51 = vmul.f32 -1.45660715e-05, %v11878_v29  ;;  %v12358_v17 = vpop.permute.xlu1 %3495  ;;  %v14733_v26 = vld [vmem:[#allocation18_spill] sm:$0xff] }
 0x77f   : > { %v5483_v13 = vadd.f32 -0.016096033, %v5435_v5  ;;  %v5630_v63 = vmul.f32 %v5582_v0, %v12293_v10  ;;  %6616 = vrcp.f32 %v5854_v16  ;;  %v6095_v61 = vmul.f32 %v6047_v37, %v14726_v18  ;;  %14729 = vst [vmem:[#allocation76_spill] sm:$0xff] %v12358_v17 }
 0x780   : > { %v6098_v53 = vmul.f32 %v6050_v15, %v11950_v9  ;;  %v5246_v19 = vmul.f32 %v5198_v8, %v12293_v10  ;;  %v5295_v31 = vadd.f32 -0.00073499064, %v5247_v34  ;;  %v12347_v38 = vmul.f32 0.5, %v12253_v11  ;;  %v14728_v9 = vld [vmem:[#allocation23_spill] sm:$0xff] }
 0x781   : > { %v5823_v42 = vmul.f32 %v5775_v25, %v12297_v36  ;;  %6618 = vrcp.f32 %v5857_v41  ;;  %v5528_v23 = vmul.f32 -1.45660715e-05, %v11922_v1  ;;  %v5573_v6 = vadd.f32 -0.00021337405, %v5525_v51  ;;  %v14730_v25 = vld [vmem:[#allocation96_spill] sm:$0xff] }
 0x782   : > { %6620 = vrcp.f32 %v5868_v43  ;;  %v6141_v5 = vpack.c.bf16 %v6098_v53, %v6095_v61  ;;  %v5343_v33 = vmul.f32 %v5295_v31, %v12297_v36  ;;  %v12352_v62 = vpop.eup %6612  ;;  %v12355_v0 = vmul.f32 %v14728_v9, %v5482_v35  ;;  %v14732_v53 = vld [vmem:[#allocation102_spill] sm:$0xff] }
 0x783   : > { %v5678_v49 = vadd.f32 -0.001682827, %v5630_v63  ;;  %v5576_v16 = vadd.f32 -0.00021337405, %v5528_v23  ;;  %v5529_v11 = vmul.f32 -1.45660715e-05, %v11926_v20  ;;  %v5621_v37 = vmul.f32 %v5573_v6, %v11878_v29  ;;  %v12370_v23 = vpop.permute.xlu0 %4383 }
 0x784   : > { %v5484_v8 = vadd.f32 -0.016096033, %v5436_v54  ;;  %6232 = vrot.lane.b32.xlu1 %v6141_v5, %s6730_s25  ;;  %v5294_v59 = vadd.f32 -0.00073499064, %v5246_v19  ;;  %v5524_v41 = vmul.f32 -1.45660715e-05, %v14730_v25 }
 0x785   : > { %v5391_v43 = vadd.f32 -0.0029546, %v5343_v33  ;;  %v5871_v15 = vadd.f32 -0.014264739, %v5823_v42  ;;  %v5624_v34 = vmul.f32 %v5576_v16, %v11922_v1  ;;  %v5577_v35 = vadd.f32 -0.00021337405, %v5529_v11  ;;  %v12364_v51 = vpop.eup %6614 }
 0x786   : > { %v14731_v63 = vld [vmem:[#allocation24_spill] sm:$0xff]  ;;  %v5669_v61 = vadd.f32 -0.001682827, %v5621_v37  ;;  %v5527_v54 = vmul.f32 -1.45660715e-05, %v14732_v53  ;;  %v5726_v19 = vmul.f32 %v5678_v49, %v12293_v10  ;;  %v3985_v42 = vsel %vm3964_vm12, %v12258_v47, %v12242_v4 }
 0x787   : > { %v12367_v18 = vmul.f32 %v14731_v63, %v5483_v13  ;;  %v5572_v31 = vadd.f32 -0.00021337405, %v5524_v41  ;;  %v5672_v5 = vadd.f32 -0.001682827, %v5624_v34  ;;  %v5625_v33 = vmul.f32 %v5577_v35, %v11926_v20  ;;  %v12382_v63 = vpop.permute.xlu1 %4381  ;;  %v12390_v60 = vpop.permute.xlu0 %4387 }
 0x788   : > { %v5916_v6 = vmul.f32 %v12220_v45, %v5484_v8  ;;  %v5717_v13 = vmul.f32 %v5669_v61, %v11878_v29  ;;  %v5575_v9 = vadd.f32 -0.00021337405, %v5527_v54  ;;  %v5342_v37 = vmul.f32 %v5294_v59, %v12293_v10 }
 0x789   : > { %v5620_v16 = vmul.f32 %v5572_v31, %v14730_v25  ;;  %v6617_v11 = vpop.eup %6616  ;;  %6622 = vrcp.f32 %v5871_v15  ;;  %v5720_v49 = vmul.f32 %v5672_v5, %v11922_v1  ;;  %v5673_v41 = vadd.f32 -0.001682827, %v5625_v33  ;;  %v14734_v15 = vld [vmem:[#allocation67_spill] sm:$0xff] }
 0x78a   : > { %v5439_v34 = vmul.f32 %v5391_v43, %v12297_v36  ;;  %v5963_v35 = vmul.f32 %v6617_v11, %v14733_v26  ;;  %v5765_v17 = vadd.f32 -0.0073733293, %v5717_v13  ;;  %v5623_v45 = vmul.f32 %v5575_v9, %v14732_v53  ;;  %v14735_v11 = vld [vmem:[#allocation292_spill] sm:$0xff] }
 0x78b   : > { %v6619_v8 = vpop.eup %6618  ;;  %v5774_v61 = vadd.f32 -0.0073733293, %v5726_v19  ;;  %v5768_v54 = vadd.f32 -0.0073733293, %v5720_v49  ;;  %v5721_v31 = vmul.f32 %v5673_v41, %v11926_v20  ;;  %v5668_v44 = vadd.f32 -0.001682827, %v5620_v16 }
 0x78c   : > { %v6621_v59 = vpop.eup %6620  ;;  %v5969_v12 = vmul.f32 %v6619_v8, %v14734_v15  ;;  %v6046_v5 = vadd.f32 1.0, %v5963_v35  ;;  %v5813_v33 = vmul.f32 %v5765_v17, %v11878_v29  ;;  %v5671_v32 = vadd.f32 -0.001682827, %v5623_v45  ;;  %v4386_v17 = vpop.permute.xlu1 %4385 }
 0x78d   : > { %v5390_v36 = vadd.f32 -0.0029546, %v5342_v37  ;;  %v5816_v26 = vmul.f32 %v5768_v54, %v11922_v1  ;;  %v5769_v43 = vadd.f32 -0.0073733293, %v5721_v31  ;;  %v5716_v13 = vmul.f32 %v5668_v44, %v14730_v25  ;;  %v14736_v37 = vld [vmem:[#allocation17_spill] sm:$0xff]  ;;  %v12405_v31 = vpop.permute.xlu0 %4391 }
 0x78e   : > { %v5487_v19 = vadd.f32 -0.016096033, %v5439_v34  ;;  %v6049_v9 = vadd.f32 1.0, %v5969_v12  ;;  %v6094_v49 = vmul.f32 %v6046_v5, %v14735_v11  ;;  %v5861_v16 = vadd.f32 -0.014264739, %v5813_v33 }
 0x78f   : > { %v5991_v41 = vmul.f32 %v6621_v59, %v5916_v6  ;;  %v5864_v57 = vadd.f32 -0.014264739, %v5816_v26  ;;  %v5817_v35 = vmul.f32 %v5769_v43, %v11926_v20  ;;  %v5719_v29 = vmul.f32 %v5671_v32, %v14732_v53 }
 0x790   : > { %v5822_v45 = vmul.f32 %v5774_v61, %v12293_v10  ;;  %v6097_v8 = vmul.f32 %v6049_v9, %v14736_v37  ;;  %6624 = vrcp.f32 %v5861_v16  ;;  %v5764_v1 = vadd.f32 -0.0073733293, %v5716_v13  ;;  %v12419_v43 = vpop.permute.xlu1 %4389 }
 0x791   : > { %6626 = vrcp.f32 %v5864_v57  ;;  %v5865_v44 = vadd.f32 -0.014264739, %v5817_v35  ;;  %v3986_v12 = vsel %vm3964_vm12, %v12242_v4, %v12278_v40  ;;  %v5767_v34 = vadd.f32 -0.0073733293, %v5719_v29  ;;  %v14737_v57 = vld [vmem:[#allocation77_spill] sm:$0xff] }
 0x792   : > { %v5438_v6 = vmul.f32 %v5390_v36, %v12293_v10  ;;  %v5919_v20 = vmul.f32 %v12276_v52, %v5487_v19  ;;  %v6140_v54 = vpack.c.bf16 %v6097_v8, %v6094_v49  ;;  %v5812_v32 = vmul.f32 %v5764_v1, %v14730_v25  ;;  %v14738_v52 = vld [vmem:[#allocation37_spill] sm:$0xff]  ;;  %v14739_v25 = vld [vmem:[#allocation32_spill] sm:$0xff]  ;;  %v12433_v49 = vpop.permute.xlu0 %4629 }
 0x793   : > { %v6623_v61 = vpop.eup %6622  ;;  %v5987_v59 = vmul.f32 %v12352_v62, %v12355_v0  ;;  %v4078_v15 = vadd.f32 %v12267_v46, %v14737_v57  ;;  %6628 = vrcp.f32 %v5865_v44  ;;  %v5815_v4 = vmul.f32 %v5767_v34, %v14732_v53 }
 0x794   : > { %v5989_v40 = vmul.f32 %v12364_v51, %v12367_v18  ;;  %6230 = vrot.lane.b32.xlu1 %v6140_v54, %s6730_s25  ;;  %v4075_v10 = vadd.f32 %v12258_v47, %v14738_v52  ;;  %v4076_v5 = vadd.f32 %v3985_v42, %v14739_v25  ;;  %v5860_v33 = vadd.f32 -0.014264739, %v5812_v32  ;;  %v14740_v54 = vld [vmem:[#allocation22_spill] sm:$0xff]  ;;  %v14742_v25 = vld [vmem:[#allocation81_spill] sm:$0xff] }
 0x795   : > { %v6060_v36 = vadd.f32 1.0, %v5991_v41  ;;  %v5870_v26 = vadd.f32 -0.014264739, %v5822_v45  ;;  %v4077_v62 = vadd.f32 %v3986_v12, %v12185_v14  ;;  %v5863_v0 = vadd.f32 -0.014264739, %v5815_v4  ;;  %v12456_v12 = vpop.permute.xlu1 %4624  ;;  %v14741_v4 = vld [vmem:[#allocation20_spill] sm:$0xff] }
 0x796   : > { %v5486_v13 = vadd.f32 -0.016096033, %v5438_v6  ;;  %v5997_v53 = vmul.f32 %v6623_v61, %v5919_v20  ;;  %6630 = vrcp.f32 %v5860_v33  ;;  %v4531_v51 = vadd.f32 %v12390_v60, %v4078_v15  ;;  %v12480_v57 = vpop.permute.xlu0 %3942 }
 0x797   : > { %6632 = vrcp.f32 %v5863_v0  ;;  %v4438_v47 = vsel %vm4417_vm13, %v12382_v63, %v12370_v23  ;;  %v4528_v18 = vadd.f32 %v12382_v63, %v4075_v10  ;;  %v4439_v42 = vsel %vm4417_vm13, %v12370_v23, %v4386_v17 }
 0x798   : > { %v12428_v19 = vadd.f32 1.0, %v5987_v59  ;;  %v12431_v14 = vadd.f32 %v12215_v55, %v4531_v51  ;;  %v4529_v9 = vadd.f32 %v4438_v47, %v4076_v5  ;;  %v4530_v11 = vadd.f32 %v4439_v42, %v4077_v62 }
 0x799   : > { %v12435_v16 = vadd.f32 1.0, %v5989_v40  ;;  %v12438_v41 = vmul.f32 %v6060_v36, %v12255_v50  ;;  %6634 = vrcp.f32 %v5870_v26  ;;  %v12441_v63 = vadd.f32 %v12232_v56, %v4528_v18  ;;  %v12502_v51 = vpop.permute.xlu1 %3940  ;;  %v14743_v18 = vld [vmem:[#allocation15_spill] sm:$0xff] }
 0x79a   : > { %v6625_v35 = vpop.eup %6624  ;;  %v3987_v23 = vsel %vm3964_vm12, %v12267_v46, %v12303_v2  ;;  %v4771_v29 = vmul.f32 0.70710677, %v12431_v14  ;;  %v12448_v17 = vadd.f32 %v12232_v56, %v4529_v9  ;;  %v12451_v45 = vadd.f32 %v12232_v56, %v4530_v11  ;;  %v14744_v9 = vld [vmem:[#allocation127_spill] sm:$0xff] }
 0x79b   : > { %v6627_v37 = vpop.eup %6626  ;;  %v5918_v50 = vmul.f32 %v12272_v39, %v5486_v13  ;;  %v6063_v8 = vadd.f32 1.0, %v5997_v53  ;;  %v5977_v1 = vmul.f32 %v6625_v35, %v12195_v3  ;;  %v4768_v44 = vmul.f32 0.70710677, %v12441_v63 }
 0x79c   : > { %v5983_v46 = vmul.f32 %v6627_v37, %v12204_v27  ;;  %v12462_v34 = vsel %vm3964_vm12, %v12303_v2, %v12286_v7  ;;  %v12464_v6 = vclamps-f32 %v4771_v29, 4.0  ;;  %v4769_v56 = vmul.f32 0.70710677, %v12448_v17 }
 0x79d   : > { %v6629_v20 = vpop.eup %6628  ;;  %v6053_v39 = vadd.f32 1.0, %v5977_v1  ;;  %v12468_v32 = vadd.f32 %v3987_v23, %v14740_v54  ;;  %v12470_v3 = vclamps-f32 %v4768_v44, 4.0  ;;  %v4770_v61 = vmul.f32 0.70710677, %v12451_v45 }
 0x79e   : > { %v6056_v59 = vadd.f32 1.0, %v5983_v46  ;;  %v5985_v27 = vmul.f32 %v6629_v20, %v12207_v48  ;;  %v12476_v7 = vmul.f32 %v12464_v6, %v12464_v6  ;;  %v12478_v2 = vclamps-f32 %v4769_v56, 4.0  ;;  %v12514_v20 = vpop.permute.xlu0 %3946 }
 0x79f   : > { %v12483_v15 = vmul.f32 %v6063_v8, %v12347_v38  ;;  %v6101_v40 = vmul.f32 %v6053_v39, %v14741_v4  ;;  %v12488_v52 = vmul.f32 %v12470_v3, %v12470_v3  ;;  %v12490_v10 = vclamps-f32 %v4770_v61, 4.0  ;;  %v14745_v39 = vld [vmem:[#allocation47_spill] sm:$0xff]  ;;  %v14746_v4 = vld [vmem:[#allocation21_spill] sm:$0xff] }
 0x7a0   : > { %v6631_v48 = vpop.eup %6630  ;;  %v6104_v5 = vmul.f32 %v6056_v59, %v14742_v25  ;;  %v6057_v33 = vadd.f32 1.0, %v5985_v27  ;;  %v4963_v36 = vmul.f32 -2.7261424e-10, %v12476_v7  ;;  %v5539_v26 = vmul.f32 -1.45660715e-05, %v12476_v7 }
 0x7a1   : > { %v6633_v62 = vpop.eup %6632  ;;  %v5975_v38 = vmul.f32 %v6631_v48, %v12182_v30  ;;  %v12498_v0 = vmul.f32 %v12478_v2, %v12478_v2  ;;  %v4960_v13 = vmul.f32 -2.7261424e-10, %v12488_v52  ;;  %v5536_v53 = vmul.f32 -1.45660715e-05, %v12488_v52 }
 0x7a2   : > { %v6144_v47 = vpack.c.bf16 %v6104_v5, %v6101_v40  ;;  %v6105_v42 = vmul.f32 %v6057_v33, %v14743_v18  ;;  %v5981_v11 = vmul.f32 %v6633_v62, %v14744_v9  ;;  %v5011_v35 = vadd.f32 2.7706815e-08, %v4963_v36  ;;  %v12524_v62 = vpop.permute.xlu1 %3944 }
 0x7a3   : > { %v6635_v23 = vpop.eup %6634  ;;  %v6052_v29 = vadd.f32 1.0, %v5975_v38  ;;  %v5587_v37 = vadd.f32 -0.00021337405, %v5539_v26  ;;  %v4961_v30 = vmul.f32 -2.7261424e-10, %v12498_v0  ;;  %v12509_v8 = vmul.f32 %v12490_v10, %v12490_v10 }
 0x7a4   : > { %6238 = vrot.lane.b32.xlu0 %v6144_v47, %s6730_s25  ;;  %v6145_v1 = vpack.c.bf16 %v6105_v42, %v12211_v28  ;;  %v6055_v44 = vadd.f32 1.0, %v5981_v11  ;;  %v5059_v46 = vmul.f32 %v5011_v35, %v12476_v7  ;;  %v5008_v56 = vadd.f32 2.7706815e-08, %v4960_v13 }
 0x7a5   : > { %v6100_v54 = vmul.f32 %v6052_v29, %v14745_v39  ;;  %v5635_v61 = vmul.f32 %v5587_v37, %v12476_v7  ;;  %v5009_v59 = vadd.f32 2.7706815e-08, %v4961_v30  ;;  %v5537_v27 = vmul.f32 -1.45660715e-05, %v12498_v0  ;;  %v12534_v37 = vpop.permute.xlu0 %3950 }
 0x7a6   : > { %6240 = vrot.lane.b32.xlu1 %v6145_v1, %s6730_s25  ;;  %v6103_v40 = vmul.f32 %v6055_v44, %v14746_v4  ;;  %v5107_v48 = vadd.f32 -2.101024e-06, %v5059_v46  ;;  %v5056_v28 = vmul.f32 %v5008_v56, %v12488_v52  ;;  %v5584_v25 = vadd.f32 -0.00021337405, %v5536_v53  ;;  %v12547_v4 = vpop.permute.xlu1 %3948 }
 0x7a7   : > { %v5995_v5 = vmul.f32 %v6635_v23, %v5918_v50  ;;  %v5057_v33 = vmul.f32 %v5009_v59, %v12498_v0  ;;  %v5585_v36 = vadd.f32 -0.00021337405, %v5537_v27  ;;  %v4962_v26 = vmul.f32 -2.7261424e-10, %v12509_v8 }
 0x7a8   : > { %v6143_v38 = vpack.c.bf16 %v6103_v40, %v6100_v54  ;;  %v5155_v13 = vmul.f32 %v5107_v48, %v12476_v7  ;;  %v5104_v47 = vadd.f32 -2.101024e-06, %v5056_v28  ;;  %v5632_v18 = vmul.f32 %v5584_v25, %v12488_v52 }
 0x7a9   : > { %v5683_v42 = vadd.f32 -0.001682827, %v5635_v61  ;;  %v5105_v9 = vadd.f32 -2.101024e-06, %v5057_v33  ;;  %v5633_v11 = vmul.f32 %v5585_v36, %v12498_v0  ;;  %v5010_v35 = vadd.f32 2.7706815e-08, %v4962_v26 }
 0x7aa   : > { %6236 = vrot.lane.b32.xlu0 %v6143_v38, %s6730_s25  ;;  %v5203_v50 = vadd.f32 -5.6925062e-05, %v5155_v13  ;;  %v5152_v53 = vmul.f32 %v5104_v47, %v12488_v52  ;;  %v5538_v23 = vmul.f32 -1.45660715e-05, %v12509_v8  ;;  %v6148_v29 = vpack.c.bf16 %v12483_v15, %v12438_v41  ;;  %v14748_v26 = vld [vmem:[#allocation11_spill] sm:$0xff] }
 0x7ab   : > { %v5153_v30 = vmul.f32 %v5105_v9, %v12498_v0  ;;  %v5680_v1 = vadd.f32 -0.001682827, %v5632_v18  ;;  %v5058_v44 = vmul.f32 %v5010_v35, %v12509_v8  ;;  %v4440_v46 = vsel %vm4417_vm13, %v12390_v60, %v12419_v43  ;;  %v14747_v60 = vld [vmem:[#allocation13_spill] sm:$0xff] }
 0x7ac   : > { %v5200_v56 = vadd.f32 -5.6925062e-05, %v5152_v53  ;;  %v5681_v39 = vadd.f32 -0.001682827, %v5633_v11  ;;  %v5586_v54 = vadd.f32 -0.00021337405, %v5538_v23  ;;  %v4441_v61 = vsel %vm4417_vm13, %v12419_v43, %v12405_v31 }
 0x7ad   : > { %v4080_v41 = vadd.f32 %v12462_v34, %v12199_v21  ;;  %v5731_v15 = vmul.f32 %v5683_v42, %v12476_v7  ;;  %v5201_v59 = vadd.f32 -5.6925062e-05, %v5153_v30  ;;  %v5106_v27 = vadd.f32 -2.101024e-06, %v5058_v44  ;;  %v14749_v42 = vld [vmem:[#allocation33_spill] sm:$0xff]  ;;  %v14751_v11 = vld [vmem:[#allocation146_spill] sm:$0xff] }
 0x7ae   : > { %v12551_v40 = vmul.f32 %v12333_v24, %v12218_v22  ;;  %v4715_v48 = vmul.f32 0.5, %v14747_v60  ;;  %v6062_v28 = vadd.f32 1.0, %v5995_v5  ;;  %v5251_v25 = vmul.f32 %v5203_v50, %v12476_v7  ;;  %6246 = vrot.lane.b32.xlu0 %v6148_v29, %s6730_s25  ;;  %v12563_v5 = vpop.permute.xlu0 %3501  ;;  %v12583_v29 = vpop.permute.xlu1 %3499  ;;  %v14752_v30 = vld [vmem:[#allocation143_spill] sm:$0xff] }
 0x7af   : > { %v5248_v31 = vmul.f32 %v5200_v56, %v12488_v52  ;;  %v5728_v21 = vmul.f32 %v5680_v1, %v12488_v52  ;;  %v4532_v43 = vadd.f32 %v4440_v46, %v12468_v32  ;;  %v4533_v34 = vadd.f32 %v4441_v61, %v4080_v41  ;;  %v14753_v1 = vld [vmem:[#allocation134_spill] sm:$0xff]  ;;  %v14755_v41 = vld [vmem:[#allocation260_spill] sm:$0xff] }
 0x7b0   : > { %v4718_v33 = vmul.f32 0.5, %v12247_v58  ;;  %v5249_v36 = vmul.f32 %v5201_v59, %v12498_v0  ;;  %v5729_v22 = vmul.f32 %v5681_v39, %v12498_v0  ;;  %v5634_v24 = vmul.f32 %v5586_v54, %v12509_v8  ;;  %v14750_v58 = vld [vmem:[#allocation46_spill] sm:$0xff]  ;;  %v14754_v54 = vld [vmem:[#allocation259_spill] sm:$0xff] }
 0x7b1   : > { %v12567_v38 = vmul.f32 %v12428_v19, %v14748_v26  ;;  %v6107_v13 = vmul.f32 %v12435_v16, %v4715_v48  ;;  %v5779_v47 = vadd.f32 -0.0073733293, %v5731_v15  ;;  %v5154_v32 = vmul.f32 %v5106_v27, %v12509_v8  ;;  %v14756_v27 = vld [vmem:[#allocation262_spill] sm:$0xff]  ;;  %v14757_v48 = vld [vmem:[#allocation76_spill] sm:$0xff] }
 0x7b2   : > { %v6110_v18 = vmul.f32 %v6062_v28, %v4718_v33  ;;  %v3536_v9 = vsel %vm3511_vm11, %v14750_v58, %v14749_v42  ;;  %v3537_v35 = vsel %vm3511_vm11, %v14749_v42, %v14751_v11  ;;  %v5299_v50 = vadd.f32 -0.00073499064, %v5251_v25 }
 0x7b3   : > { %v5296_v53 = vadd.f32 -0.00073499064, %v5248_v31  ;;  %v5776_v23 = vadd.f32 -0.0073733293, %v5728_v21  ;;  %v12578_v19 = vadd.f32 %v12215_v55, %v4532_v43  ;;  %v12581_v16 = vadd.f32 %v12215_v55, %v4533_v34  ;;  %v12607_v21 = vpop.permute.xlu0 %3505 }
 0x7b4   : > { %v12587_v44 = vadd.f32 %v14753_v1, %v14752_v30  ;;  %v5297_v46 = vadd.f32 -0.00073499064, %v5249_v36  ;;  %v5777_v56 = vadd.f32 -0.0073733293, %v5729_v22  ;;  %v5682_v39 = vadd.f32 -0.001682827, %v5634_v24 }
 0x7b5   : > { %v12591_v61 = vadd.f32 %v14750_v58, %v14754_v54  ;;  %v12594_v15 = vadd.f32 %v3536_v9, %v14755_v41  ;;  %v5827_v59 = vmul.f32 %v5779_v47, %v12476_v7  ;;  %v5202_v55 = vadd.f32 -5.6925062e-05, %v5154_v32  ;;  %v12624_v9 = vpop.permute.xlu1 %3503 }
 0x7b6   : > { %v12598_v60 = vadd.f32 %v3537_v35, %v14756_v27  ;;  %v3538_v28 = vsel %vm3511_vm11, %v14753_v1, %v14757_v48  ;;  %v12604_v25 = vmul.f32 0.5, %v12431_v14  ;;  %v5347_v31 = vmul.f32 %v5299_v50, %v12476_v7 }
 0x7b7   : > { %v5344_v43 = vmul.f32 %v5296_v53, %v12488_v52  ;;  %v5824_v34 = vmul.f32 %v5776_v23, %v12488_v52  ;;  %v4772_v33 = vmul.f32 0.70710677, %v12578_v19  ;;  %v4773_v36 = vmul.f32 0.70710677, %v12581_v16 }
 0x7b8   : > { %v12614_v22 = vmul.f32 0.5, %v12441_v63  ;;  %v5345_v24 = vmul.f32 %v5297_v46, %v12498_v0  ;;  %v5825_v14 = vmul.f32 %v5777_v56, %v12498_v0  ;;  %v5730_v26 = vmul.f32 %v5682_v39, %v12509_v8  ;;  %v14758_v46 = vld [vmem:[#allocation52_spill] sm:$0xff] }
 0x7b9   : > { %v5875_v47 = vadd.f32 -0.014264739, %v5827_v59  ;;  %v5250_v32 = vmul.f32 %v5202_v55, %v12509_v8  ;;  %v12620_v42 = vclamps-f32 %v4772_v33, 4.0  ;;  %v12622_v58 = vclamps-f32 %v4773_v36, 4.0  ;;  %v12654_v33 = vpop.permute.xlu1 %3507 }
 0x7ba   : > { %v5395_v11 = vadd.f32 -0.0029546, %v5347_v31  ;;  %v12627_v35 = vmul.f32 0.5, %v12448_v17  ;;  %v12630_v63 = vmul.f32 0.5, %v12451_v45  ;;  %v6147_v50 = vpack.c.bf16 %v6110_v18, %v6107_v13  ;;  %v12644_v45 = vpop.permute.xlu0 %3509 }
 0x7bb   : > { %v5392_v53 = vadd.f32 -0.0029546, %v5344_v43  ;;  %v5872_v23 = vadd.f32 -0.014264739, %v5824_v34  ;;  %v12634_v30 = vmul.f32 %v12620_v42, %v12620_v42  ;;  %v12638_v1 = vmul.f32 %v12622_v58, %v12622_v58 }
 0x7bc   : > { %v3539_v56 = vsel %vm3511_vm11, %v14757_v48, %v14758_v46  ;;  %v5393_v17 = vadd.f32 -0.0029546, %v5345_v24  ;;  %v5873_v39 = vadd.f32 -0.014264739, %v5825_v14  ;;  %v5778_v54 = vadd.f32 -0.0073733293, %v5730_v26  ;;  %6244 = vrot.lane.b32.xlu1 %v6147_v50, %s6730_s25 }
 0x7bd   : > { %6636 = vrcp.f32 %v5875_v47  ;;  %v5298_v13 = vadd.f32 -0.00073499064, %v5250_v32  ;;  %v4964_v18 = vmul.f32 -2.7261424e-10, %v12634_v30  ;;  %v4965_v41 = vmul.f32 -2.7261424e-10, %v12638_v1 }
 0x7be   : > { %v5443_v59 = vmul.f32 %v5395_v11, %v12476_v7  ;;  %v5540_v55 = vmul.f32 -1.45660715e-05, %v12634_v30  ;;  %v5541_v27 = vmul.f32 -1.45660715e-05, %v12638_v1  ;;  %v6146_v48 = vpack.c.bf16 %v12551_v40, %v12567_v38  ;;  %v4396_v50 = vpop.permute.xlu0 %4395 }
 0x7bf   : > { %v5440_v31 = vmul.f32 %v5392_v53, %v12488_v52  ;;  %6638 = vrcp.f32 %v5872_v23  ;;  %v5012_v43 = vadd.f32 2.7706815e-08, %v4964_v18  ;;  %v5013_v34 = vadd.f32 2.7706815e-08, %v4965_v41  ;;  %v14759_v53 = vld [vmem:[#allocation142_spill] sm:$0xff] }
 0x7c0   : > { %6640 = vrcp.f32 %v5873_v39  ;;  %v5826_v36 = vmul.f32 %v5778_v54, %v12509_v8  ;;  %v5588_v24 = vadd.f32 -0.00021337405, %v5540_v55  ;;  %v5589_v14 = vadd.f32 -0.00021337405, %v5541_v27  ;;  %6242 = vrot.lane.b32.xlu1 %v6146_v48, %s6730_s25  ;;  %v14760_v39 = vld [vmem:[#allocation144_spill] sm:$0xff]  ;;  %v4394_v48 = vpop.permute.xlu1 %4393 }
 0x7c1   : > { %v5441_v7 = vmul.f32 %v5393_v17, %v12498_v0  ;;  %v5346_v26 = vmul.f32 %v5298_v13, %v12509_v8  ;;  %v5060_v40 = vmul.f32 %v5012_v43, %v12634_v30  ;;  %v5061_v52 = vmul.f32 %v5013_v34, %v12638_v1 }
 0x7c2   : > { %v5491_v38 = vadd.f32 -0.016096033, %v5443_v59  ;;  %v12663_v47 = vmul.f32 0.5, %v12578_v19  ;;  %v5636_v32 = vmul.f32 %v5588_v24, %v12634_v30  ;;  %v5637_v11 = vmul.f32 %v5589_v14, %v12638_v1 }
 0x7c3   : > { %v12668_v23 = vadd.f32 %v3538_v28, %v14759_v53  ;;  %v5488_v46 = vadd.f32 -0.016096033, %v5440_v31  ;;  %v5108_v0 = vadd.f32 -2.101024e-06, %v5060_v40  ;;  %v5109_v17 = vadd.f32 -2.101024e-06, %v5061_v52  ;;  %v12687_v40 = vpop.permute.xlu0 %4399 }
 0x7c4   : > { %v12671_v54 = vadd.f32 %v3539_v56, %v14760_v39  ;;  %v5874_v13 = vadd.f32 -0.014264739, %v5826_v36  ;;  %v5684_v18 = vadd.f32 -0.001682827, %v5636_v32  ;;  %v5685_v41 = vadd.f32 -0.001682827, %v5637_v11 }
 0x7c5   : > { %v5489_v59 = vadd.f32 -0.016096033, %v5441_v7  ;;  %v5394_v19 = vadd.f32 -0.0029546, %v5346_v26  ;;  %v5156_v55 = vmul.f32 %v5108_v0, %v12634_v30  ;;  %v5157_v27 = vmul.f32 %v5109_v17, %v12638_v1 }
 0x7c6   : > { %v5923_v43 = vmul.f32 %v12464_v6, %v5491_v38  ;;  %v12677_v28 = vmul.f32 0.5, %v12581_v16  ;;  %v5732_v31 = vmul.f32 %v5684_v18, %v12634_v30  ;;  %v5733_v56 = vmul.f32 %v5685_v41, %v12638_v1 }
 0x7c7   : > { %v6637_v34 = vpop.eup %6636  ;;  %v5204_v36 = vadd.f32 -5.6925062e-05, %v5156_v55  ;;  %v5205_v24 = vadd.f32 -5.6925062e-05, %v5157_v27  ;;  %v4084_v14 = vadd.f32 %v12514_v20, %v12587_v44  ;;  %v3989_v7 = vsel %vm3964_vm12, %v12502_v51, %v12480_v57 }
 0x7c8   : > { %v5920_v26 = vmul.f32 %v12470_v3, %v5488_v46  ;;  %6642 = vrcp.f32 %v5874_v13  ;;  %v5780_v6 = vadd.f32 -0.0073733293, %v5732_v31  ;;  %v5781_v16 = vadd.f32 -0.0073733293, %v5733_v56 }
 0x7c9   : > { %v6639_v52 = vpop.eup %6638  ;;  %v5921_v38 = vmul.f32 %v12478_v2, %v5489_v59  ;;  %v5442_v32 = vmul.f32 %v5394_v19, %v12509_v8  ;;  %v5252_v11 = vmul.f32 %v5204_v36, %v12634_v30  ;;  %v5253_v44 = vmul.f32 %v5205_v24, %v12638_v1  ;;  %v4398_v8 = vpop.permute.xlu1 %4397 }
 0x7ca   : > { %v6641_v53 = vpop.eup %6640  ;;  %v6005_v0 = vmul.f32 %v6637_v34, %v5923_v43  ;;  %v5828_v17 = vmul.f32 %v5780_v6, %v12634_v30  ;;  %v4081_v3 = vadd.f32 %v12502_v51, %v12591_v61  ;;  %v4082_v46 = vadd.f32 %v3989_v7, %v12594_v15 }
 0x7cb   : > { %v5300_v39 = vadd.f32 -0.00073499064, %v5252_v11  ;;  %v5301_v13 = vadd.f32 -0.00073499064, %v5253_v44  ;;  %v5829_v18 = vmul.f32 %v5781_v16, %v12638_v1  ;;  %v4537_v2 = vadd.f32 %v12687_v40, %v4084_v14 }
 0x7cc   : > { %v5876_v41 = vadd.f32 -0.014264739, %v5828_v17  ;;  %v3990_v59 = vsel %vm3964_vm12, %v12480_v57, %v12524_v62  ;;  %v4442_v19 = vsel %vm4417_vm13, %v4394_v48, %v4396_v50  ;;  %v4534_v55 = vadd.f32 %v4394_v48, %v4081_v3 }
 0x7cd   : > { %v5348_v27 = vmul.f32 %v5300_v39, %v12634_v30  ;;  %v5349_v51 = vmul.f32 %v5301_v13, %v12638_v1  ;;  %v12706_v61 = vadd.f32 %v12433_v49, %v4537_v2  ;;  %v4535_v15 = vadd.f32 %v4442_v19, %v4082_v46 }
 0x7ce   : > { %v5999_v43 = vmul.f32 %v6639_v52, %v5920_v26  ;;  %v5490_v31 = vadd.f32 -0.016096033, %v5442_v32  ;;  %v12709_v56 = vadd.f32 %v12456_v12, %v4534_v55  ;;  %v4443_v34 = vsel %vm4417_vm13, %v4396_v50, %v4398_v8 }
 0x7cf   : > { %v6001_v36 = vmul.f32 %v6641_v53, %v5921_v38  ;;  %v5396_v57 = vadd.f32 -0.0029546, %v5348_v27  ;;  %v5877_v62 = vadd.f32 -0.014264739, %v5829_v18  ;;  %v4083_v48 = vadd.f32 %v3990_v59, %v12598_v60  ;;  %v4404_v59 = vpop.permute.xlu0 %4403 }
 0x7d0   : > { %v5397_v24 = vadd.f32 -0.0029546, %v5349_v51  ;;  %v4777_v14 = vmul.f32 0.70710677, %v12706_v61  ;;  %v12715_v7 = vadd.f32 %v12456_v12, %v4535_v15  ;;  %v4774_v6 = vmul.f32 0.70710677, %v12709_v56 }
 0x7d1   : > { %v6067_v26 = vadd.f32 1.0, %v6005_v0  ;;  %v5444_v16 = vmul.f32 %v5396_v57, %v12634_v30  ;;  %6644 = vrcp.f32 %v5876_v41  ;;  %v4536_v52 = vadd.f32 %v4443_v34, %v4083_v48 }
 0x7d2   : > { %v6643_v32 = vpop.eup %6642  ;;  %v6064_v50 = vadd.f32 1.0, %v5999_v43  ;;  %v12719_v38 = vclamps-f32 %v4777_v14, 4.0  ;;  %v4775_v11 = vmul.f32 0.70710677, %v12715_v7  ;;  %v12722_v60 = vclamps-f32 %v4774_v6, 4.0 }
 0x7d3   : > { %v6065_v44 = vadd.f32 1.0, %v6001_v36  ;;  %6646 = vrcp.f32 %v5877_v62  ;;  %v3991_v53 = vsel %vm3964_vm12, %v12514_v20, %v12547_v4  ;;  %v12728_v0 = vadd.f32 %v12456_v12, %v4536_v52  ;;  %v14761_v62 = vld [vmem:[#allocation149_spill] sm:$0xff] }
 0x7d4   : > { %v5445_v30 = vmul.f32 %v5397_v24, %v12638_v1  ;;  %v12733_v17 = vmul.f32 %v12719_v38, %v12719_v38  ;;  %v12735_v3 = vclamps-f32 %v4775_v11, 4.0  ;;  %v12739_v46 = vmul.f32 %v12722_v60, %v12722_v60 }
 0x7d5   : > { %v12742_v39 = vmul.f32 %v6067_v26, %v12604_v25  ;;  %v5922_v20 = vmul.f32 %v12490_v10, %v5490_v31  ;;  %v5492_v13 = vadd.f32 -0.016096033, %v5444_v16  ;;  %v3992_v12 = vsel %vm3964_vm12, %v12547_v4, %v12534_v37  ;;  %v4402_v31 = vpop.permute.xlu1 %4401 }
 0x7d6   : > { %v4969_v1 = vmul.f32 -2.7261424e-10, %v12733_v17  ;;  %v5545_v18 = vmul.f32 -1.45660715e-05, %v12733_v17  ;;  %v12752_v2 = vmul.f32 %v12735_v3, %v12735_v3  ;;  %v4966_v8 = vmul.f32 -2.7261424e-10, %v12739_v46 }
 0x7d7   : > { %v12756_v25 = vmul.f32 %v6064_v50, %v12614_v22  ;;  %v12759_v10 = vmul.f32 %v6065_v44, %v12627_v35  ;;  %v4085_v41 = vadd.f32 %v3991_v53, %v12668_v23  ;;  %v4776_v37 = vmul.f32 0.70710677, %v12728_v0  ;;  %v12785_v53 = vpop.permute.xlu0 %4639 }
 0x7d8   : > { %v5493_v4 = vadd.f32 -0.016096033, %v5445_v30  ;;  %v4086_v19 = vadd.f32 %v3992_v12, %v12671_v54  ;;  %v5017_v55 = vadd.f32 2.7706815e-08, %v4969_v1  ;;  %v4967_v27 = vmul.f32 -2.7261424e-10, %v12752_v2 }
 0x7d9   : > { %v6003_v51 = vmul.f32 %v6643_v32, %v5922_v20  ;;  %v5593_v15 = vadd.f32 -0.00021337405, %v5545_v18  ;;  %v5014_v43 = vadd.f32 2.7706815e-08, %v4966_v8  ;;  %v5542_v22 = vmul.f32 -1.45660715e-05, %v12739_v46 }
 0x7da   : > { %v5924_v35 = vmul.f32 %v12620_v42, %v5492_v13  ;;  %v5065_v34 = vmul.f32 %v5017_v55, %v12733_v17  ;;  %v5015_v23 = vadd.f32 2.7706815e-08, %v4967_v27  ;;  %v5543_v36 = vmul.f32 -1.45660715e-05, %v12752_v2  ;;  %v14762_v18 = vld [vmem:[#allocation63_spill] sm:$0xff] }
 0x7db   : > { %v6645_v57 = vpop.eup %6644  ;;  %v12771_v54 = vadd.f32 %v12607_v21, %v14761_v62  ;;  %v3540_v48 = vsel %vm3511_vm11, %v12583_v29, %v12563_v5  ;;  %v5062_v24 = vmul.f32 %v5014_v43, %v12739_v46  ;;  %v12777_v14 = vclamps-f32 %v4776_v37, 4.0  ;;  %v14764_v62 = vld [vmem:[#allocation261_spill] sm:$0xff] }
 0x7dc   : > { %v5113_v6 = vadd.f32 -2.101024e-06, %v5065_v34  ;;  %v5063_v42 = vmul.f32 %v5015_v23, %v12752_v2  ;;  %v4444_v26 = vsel %vm4417_vm13, %v12687_v40, %v4402_v31  ;;  %v4445_v16 = vsel %vm4417_vm13, %v4402_v31, %v4404_v59  ;;  %v14763_v59 = vld [vmem:[#allocation64_spill] sm:$0xff] }
 0x7dd   : > { %v6647_v52 = vpop.eup %6646  ;;  %v5925_v32 = vmul.f32 %v12622_v58, %v5493_v4  ;;  %v5641_v50 = vmul.f32 %v5593_v15, %v12733_v17  ;;  %v5110_v11 = vadd.f32 -2.101024e-06, %v5062_v24  ;;  %v5590_v44 = vadd.f32 -0.00021337405, %v5542_v22 }
 0x7de   : > { %v6007_v30 = vmul.f32 %v6645_v57, %v5924_v35  ;;  %v5161_v20 = vmul.f32 %v5113_v6, %v12733_v17  ;;  %v5111_v13 = vadd.f32 -2.101024e-06, %v5063_v42  ;;  %v5591_v12 = vadd.f32 -0.00021337405, %v5543_v36  ;;  %v12813_v36 = vpop.permute.xlu0 %3954 }
 0x7df   : > { %v6066_v1 = vadd.f32 1.0, %v6003_v51  ;;  %v12790_v40 = vadd.f32 %v12583_v29, %v14762_v18  ;;  %v5158_v8 = vmul.f32 %v5110_v11, %v12739_v46  ;;  %v12795_v58 = vmul.f32 %v12777_v14, %v12777_v14  ;;  %v12803_v51 = vpop.permute.xlu1 %4634 }
 0x7e0   : > { %v12798_v37 = vadd.f32 %v3540_v48, %v14763_v59  ;;  %v3541_v4 = vsel %vm3511_vm11, %v12563_v5, %v12624_v9  ;;  %v4538_v55 = vadd.f32 %v4444_v26, %v4085_v41  ;;  %v4539_v27 = vadd.f32 %v4445_v16, %v4086_v19 }
 0x7e1   : > { %v6009_v15 = vmul.f32 %v6647_v52, %v5925_v32  ;;  %v5689_v29 = vadd.f32 -0.001682827, %v5641_v50  ;;  %v5638_v43 = vmul.f32 %v5590_v44, %v12739_v46  ;;  %v4968_v22 = vmul.f32 -2.7261424e-10, %v12795_v58 }
 0x7e2   : > { %v6068_v31 = vadd.f32 1.0, %v6007_v30  ;;  %v5209_v35 = vadd.f32 -5.6925062e-05, %v5161_v20  ;;  %v5159_v34 = vmul.f32 %v5111_v13, %v12752_v2  ;;  %v5639_v23 = vmul.f32 %v5591_v12, %v12752_v2 }
 0x7e3   : > { %v3542_v5 = vsel %vm3511_vm11, %v12607_v21, %v12654_v33  ;;  %v5206_v9 = vadd.f32 -5.6925062e-05, %v5158_v8  ;;  %v5016_v41 = vadd.f32 2.7706815e-08, %v4968_v22  ;;  %v5544_v19 = vmul.f32 -1.45660715e-05, %v12795_v58  ;;  %v12829_v11 = vpop.permute.xlu1 %3952 }
 0x7e4   : > { %v6114_v57 = vmul.f32 %v6066_v1, %v12630_v63  ;;  %v12817_v48 = vadd.f32 %v3541_v4, %v14764_v62  ;;  %v3543_v24 = vsel %vm3511_vm11, %v12654_v33, %v12644_v45  ;;  %v4682_v6 = vadd.f32 %v12433_v49, %v4538_v55  ;;  %v14765_v45 = vld [vmem:[#allocation148_spill] sm:$0xff]  ;;  %v12847_v4 = vpop.permute.xlu0 %3958 }
 0x7e5   : > { %v6069_v42 = vadd.f32 1.0, %v6009_v15  ;;  %v5737_v21 = vmul.f32 %v5689_v29, %v12733_v17  ;;  %v5686_v26 = vadd.f32 -0.001682827, %v5638_v43  ;;  %v5064_v16 = vmul.f32 %v5016_v41, %v12795_v58 }
 0x7e6   : > { %v5257_v52 = vmul.f32 %v5209_v35, %v12733_v17  ;;  %v5207_v32 = vadd.f32 -5.6925062e-05, %v5159_v34  ;;  %v5687_v50 = vadd.f32 -0.001682827, %v5639_v23  ;;  %v12827_v63 = vadd.f32 %v12433_v49, %v4539_v27 }
 0x7e7   : > { %v6116_v44 = vmul.f32 %v6068_v31, %v12663_v47  ;;  %v12833_v33 = vadd.f32 %v3542_v5, %v14765_v45  ;;  %v5254_v30 = vmul.f32 %v5206_v9, %v12739_v46  ;;  %v5592_v20 = vadd.f32 -0.00021337405, %v5544_v19  ;;  %v12864_v34 = vpop.permute.xlu1 %3956 }
 0x7e8   : > { %v12837_v13 = vmul.f32 0.5, %v12706_v61  ;;  %v12840_v12 = vmul.f32 0.5, %v12709_v56  ;;  %v12843_v1 = vmul.f32 0.5, %v12715_v7  ;;  %v5112_v49 = vadd.f32 -2.101024e-06, %v5064_v16  ;;  %v12881_v16 = vpop.permute.xlu0 %3962 }
 0x7e9   : > { %v6117_v18 = vmul.f32 %v6069_v42, %v12677_v28  ;;  %v5785_v8 = vadd.f32 -0.0073733293, %v5737_v21  ;;  %v5734_v47 = vmul.f32 %v5686_v26, %v12739_v46  ;;  %v4778_v59 = vmul.f32 0.70710677, %v4682_v6 }
 0x7ea   : > { %v5305_v55 = vadd.f32 -0.00073499064, %v5257_v52  ;;  %v5255_v27 = vmul.f32 %v5207_v32, %v12752_v2  ;;  %v5735_v61 = vmul.f32 %v5687_v50, %v12752_v2  ;;  %v4779_v56 = vmul.f32 0.70710677, %v12827_v63 }
 0x7eb   : > { %v5302_v15 = vadd.f32 -0.00073499064, %v5254_v30  ;;  %v5640_v7 = vmul.f32 %v5592_v20, %v12795_v58  ;;  %v12853_v29 = vclamps-f32 %v4778_v59, 4.0  ;;  %v6150_v28 = vpack.c.bf16 %v6116_v44, %v12759_v10 }
 0x7ec   : > { %v12857_v43 = vmul.f32 0.5, %v12728_v0  ;;  %v5160_v22 = vmul.f32 %v5112_v49, %v12795_v58  ;;  %v12860_v31 = vmul.f32 0.5, %v4682_v6  ;;  %v12862_v35 = vclamps-f32 %v4779_v56, 4.0 }
 0x7ed   : > { %v5833_v23 = vmul.f32 %v5785_v8, %v12733_v17  ;;  %v5782_v5 = vadd.f32 -0.0073733293, %v5734_v47  ;;  %v12869_v9 = vmul.f32 %v12853_v29, %v12853_v29  ;;  %6250 = vrot.lane.b32.xlu0 %v6150_v28, %s6730_s25  ;;  %v6151_v10 = vpack.c.bf16 %v6117_v18, %v6114_v57  ;;  %v14766_v57 = vld [vmem:[#allocation150_spill] sm:$0xff] }
 0x7ee   : > { %v5353_v0 = vmul.f32 %v5305_v55, %v12733_v17  ;;  %v5303_v41 = vadd.f32 -0.00073499064, %v5255_v27  ;;  %v5783_v19 = vadd.f32 -0.0073733293, %v5735_v61  ;;  %v12875_v62 = vmul.f32 %v12862_v35, %v12862_v35  ;;  %v12890_v55 = vpop.permute.xlu1 %3960 }
 0x7ef   : > { %v5350_v6 = vmul.f32 %v5302_v15, %v12739_v46  ;;  %v5688_v42 = vadd.f32 -0.001682827, %v5640_v7  ;;  %v4970_v21 = vmul.f32 -2.7261424e-10, %v12869_v9  ;;  %v5546_v26 = vmul.f32 -1.45660715e-05, %v12869_v9  ;;  %6252 = vrot.lane.b32.xlu1 %v6151_v10, %s6730_s25 }
 0x7f0   : > { %v12884_v52 = vadd.f32 %v3543_v24, %v14766_v57  ;;  %v5208_v32 = vadd.f32 -5.6925062e-05, %v5160_v22  ;;  %v4971_v50 = vmul.f32 -2.7261424e-10, %v12875_v62  ;;  %v5547_v44 = vmul.f32 -1.45660715e-05, %v12875_v62 }
 0x7f1   : > { %v5881_v45 = vadd.f32 -0.014264739, %v5833_v23  ;;  %v5830_v30 = vmul.f32 %v5782_v5, %v12739_v46  ;;  %v5018_v20 = vadd.f32 2.7706815e-08, %v4970_v21  ;;  %v5594_v49 = vadd.f32 -0.00021337405, %v5546_v26 }
 0x7f2   : > { %v5401_v18 = vadd.f32 -0.0029546, %v5353_v0  ;;  %v5831_v8 = vmul.f32 %v5783_v19, %v12752_v2  ;;  %v5019_v47 = vadd.f32 2.7706815e-08, %v4971_v50  ;;  %v5595_v59 = vadd.f32 -0.00021337405, %v5547_v44 }
 0x7f3   : > { %v5351_v24 = vmul.f32 %v5303_v41, %v12752_v2  ;;  %v5398_v27 = vadd.f32 -0.0029546, %v5350_v6  ;;  %v5066_v61 = vmul.f32 %v5018_v20, %v12869_v9  ;;  %v5642_v56 = vmul.f32 %v5594_v49, %v12869_v9  ;;  %v4408_v41 = vpop.permute.xlu0 %4407  ;;  %v4406_v49 = vpop.permute.xlu1 %4405 }
 0x7f4   : > { %v5256_v15 = vmul.f32 %v5208_v32, %v12795_v58  ;;  %v5736_v7 = vmul.f32 %v5688_v42, %v12795_v58  ;;  %v5067_v28 = vmul.f32 %v5019_v47, %v12875_v62  ;;  %v5643_v22 = vmul.f32 %v5595_v59, %v12875_v62 }
 0x7f5   : > { %v5878_v23 = vadd.f32 -0.014264739, %v5830_v30  ;;  %v5114_v5 = vadd.f32 -2.101024e-06, %v5066_v61  ;;  %v5690_v10 = vadd.f32 -0.001682827, %v5642_v56  ;;  %v4090_v0 = vadd.f32 %v12847_v4, %v12771_v54 }
 0x7f6   : > { %6648 = vrcp.f32 %v5881_v45  ;;  %v5879_v19 = vadd.f32 -0.014264739, %v5831_v8  ;;  %v5115_v6 = vadd.f32 -2.101024e-06, %v5067_v28  ;;  %v5691_v21 = vadd.f32 -0.001682827, %v5643_v22 }
 0x7f7   : > { %v5449_v26 = vmul.f32 %v5401_v18, %v12733_v17  ;;  %v5399_v57 = vadd.f32 -0.0029546, %v5351_v24  ;;  %v5162_v42 = vmul.f32 %v5114_v5, %v12869_v9  ;;  %v5738_v32 = vmul.f32 %v5690_v10, %v12869_v9 }
 0x7f8   : > { %v5446_v50 = vmul.f32 %v5398_v27, %v12739_v46  ;;  %v5304_v44 = vadd.f32 -0.00073499064, %v5256_v15  ;;  %v5784_v30 = vadd.f32 -0.0073733293, %v5736_v7  ;;  %v5163_v20 = vmul.f32 %v5115_v6, %v12875_v62 }
 0x7f9   : > { %6650 = vrcp.f32 %v5878_v23  ;;  %v12907_v54 = vmul.f32 0.5, %v12827_v63  ;;  %v5210_v45 = vadd.f32 -5.6925062e-05, %v5162_v42  ;;  %v5739_v8 = vmul.f32 %v5691_v21, %v12875_v62  ;;  %v12917_v63 = vpop.permute.xlu0 %4411 }
 0x7fa   : > { %v5211_v17 = vadd.f32 -5.6925062e-05, %v5163_v20  ;;  %v5786_v18 = vadd.f32 -0.0073733293, %v5738_v32  ;;  %v3993_v47 = vsel %vm3964_vm12, %v12829_v11, %v12813_v36  ;;  %v6149_v46 = vpack.c.bf16 %v12742_v39, %v12756_v25 }
 0x7fb   : > { %v5497_v59 = vadd.f32 -0.016096033, %v5449_v26  ;;  %v5447_v24 = vmul.f32 %v5399_v57, %v12752_v2  ;;  %6652 = vrcp.f32 %v5879_v19  ;;  %v5258_v27 = vmul.f32 %v5210_v45, %v12869_v9  ;;  %v4410_v19 = vpop.permute.xlu1 %4409 }
 0x7fc   : > { %v5494_v61 = vadd.f32 -0.016096033, %v5446_v50  ;;  %v5352_v56 = vmul.f32 %v5304_v44, %v12795_v58  ;;  %v5832_v15 = vmul.f32 %v5784_v30, %v12795_v58  ;;  %v5259_v7 = vmul.f32 %v5211_v17, %v12875_v62  ;;  %6248 = vrot.lane.b32.xlu0 %v6149_v46, %s6730_s25 }
 0x7fd   : > { %v5306_v28 = vadd.f32 -0.00073499064, %v5258_v27  ;;  %v5787_v22 = vadd.f32 -0.0073733293, %v5739_v8  ;;  %v4087_v39 = vadd.f32 %v12829_v11, %v12790_v40  ;;  %v4088_v2 = vadd.f32 %v3993_v47, %v12798_v37 }
 0x7fe   : > { %v5834_v25 = vmul.f32 %v5786_v18, %v12869_v9  ;;  %v3994_v23 = vsel %vm3964_vm12, %v12813_v36, %v12864_v34  ;;  %v4543_v5 = vadd.f32 %v12917_v63, %v4090_v0  ;;  %v4446_v10 = vsel %vm4417_vm13, %v4406_v49, %v4408_v41 }
 0x7ff   : > { %v5929_v6 = vmul.f32 %v12719_v38, %v5497_v59  ;;  %v5307_v21 = vadd.f32 -0.00073499064, %v5259_v7  ;;  %v5354_v26 = vmul.f32 %v5306_v28, %v12869_v9  ;;  %v4540_v57 = vadd.f32 %v4406_v49, %v4087_v39 }
 0x800   : > { %v6649_v40 = vpop.eup %6648  ;;  %v5495_v11 = vadd.f32 -0.016096033, %v5447_v24  ;;  %v5880_v37 = vadd.f32 -0.014264739, %v5832_v15  ;;  %v12935_v42 = vadd.f32 %v12785_v53, %v4543_v5  ;;  %v4541_v32 = vadd.f32 %v4446_v10, %v4088_v2  ;;  %v12960_v15 = vpop.permute.xlu1 %4413 }
 0x801   : > { %v5400_v50 = vadd.f32 -0.0029546, %v5352_v56  ;;  %v4089_v36 = vadd.f32 %v3994_v23, %v12817_v48  ;;  %v12939_v34 = vadd.f32 %v12803_v51, %v4540_v57  ;;  %v4447_v0 = vsel %vm4417_vm13, %v4408_v41, %v4410_v19 }
 0x802   : > { %v5835_v38 = vmul.f32 %v5787_v22, %v12875_v62  ;;  %v5882_v44 = vadd.f32 -0.014264739, %v5834_v25  ;;  %v4783_v30 = vmul.f32 0.70710677, %v12935_v42  ;;  %v12945_v20 = vadd.f32 %v12803_v51, %v4541_v32 }
 0x803   : > { %v6651_v49 = vpop.eup %6650  ;;  %v5355_v45 = vmul.f32 %v5307_v21, %v12875_v62  ;;  %v5402_v8 = vadd.f32 -0.0029546, %v5354_v26  ;;  %v4780_v17 = vmul.f32 0.70710677, %v12939_v34  ;;  %v4542_v48 = vadd.f32 %v4447_v0, %v4089_v36 }
 0x804   : > { %v5926_v18 = vmul.f32 %v12722_v60, %v5494_v61  ;;  %v5927_v47 = vmul.f32 %v12735_v3, %v5495_v11  ;;  %v12951_v41 = vclamps-f32 %v4783_v30, 4.0  ;;  %v4781_v46 = vmul.f32 0.70710677, %v12945_v20  ;;  %v12968_v61 = vpop.permute.xlu0 %4415  ;;  %v12987_v32 = vpop.permute.xlu1 %6220 }
 0x805   : > { %v6653_v59 = vpop.eup %6652  ;;  %v5448_v24 = vmul.f32 %v5400_v50, %v12795_v58  ;;  %6654 = vrcp.f32 %v5880_v37  ;;  %v12955_v27 = vclamps-f32 %v4780_v17, 4.0  ;;  %v12958_v56 = vadd.f32 %v12803_v51, %v4542_v48 }
 0x806   : > { %v6017_v7 = vmul.f32 %v6649_v40, %v5929_v6  ;;  %v5883_v28 = vadd.f32 -0.014264739, %v5835_v38  ;;  %v12964_v60 = vmul.f32 %v12951_v41, %v12951_v41  ;;  %v12966_v3 = vclamps-f32 %v4781_v46, 4.0 }
 0x807   : > { %v5403_v22 = vadd.f32 -0.0029546, %v5355_v45  ;;  %v5450_v58 = vmul.f32 %v5402_v8, %v12869_v9  ;;  %6656 = vrcp.f32 %v5882_v44  ;;  %v12973_v51 = vmul.f32 %v12955_v27, %v12955_v27 }
 0x808   : > { %v4975_v39 = vmul.f32 -2.7261424e-10, %v12964_v60  ;;  %v5551_v2 = vmul.f32 -1.45660715e-05, %v12964_v60  ;;  %v12979_v25 = vmul.f32 %v12966_v3, %v12966_v3  ;;  %v4782_v23 = vmul.f32 0.70710677, %v12958_v56  ;;  %v12992_v44 = vpop.permute.xlu0 %6222 }
 0x809   : > { %v6011_v5 = vmul.f32 %v6651_v49, %v5926_v18  ;;  %v5496_v10 = vadd.f32 -0.016096033, %v5448_v24  ;;  %v4972_v19 = vmul.f32 -2.7261424e-10, %v12973_v51  ;;  %v5548_v9 = vmul.f32 -1.45660715e-05, %v12973_v51 }
 0x80a   : > { %6658 = vrcp.f32 %v5883_v28  ;;  %v5023_v6 = vadd.f32 2.7706815e-08, %v4975_v39  ;;  %v5599_v21 = vadd.f32 -0.00021337405, %v5551_v2  ;;  %v4973_v26 = vmul.f32 -2.7261424e-10, %v12979_v25 }
 0x80b   : > { %v5451_v57 = vmul.f32 %v5403_v22, %v12875_v62  ;;  %v5020_v40 = vadd.f32 2.7706815e-08, %v4972_v19  ;;  %v5549_v11 = vmul.f32 -1.45660715e-05, %v12979_v25  ;;  %v5596_v37 = vadd.f32 -0.00021337405, %v5548_v9  ;;  %v13012_v19 = vpop.permute.xlu1 %6218 }
 0x80c   : > { %v5498_v50 = vadd.f32 -0.016096033, %v5450_v58  ;;  %v5071_v36 = vmul.f32 %v5023_v6, %v12964_v60  ;;  %v5021_v0 = vadd.f32 2.7706815e-08, %v4973_v26  ;;  %v12990_v38 = vclamps-f32 %v4782_v23, 4.0  ;;  %v13016_v6 = vpop.permute.xlu0 %6226 }
 0x80d   : > { %v5647_v30 = vmul.f32 %v5599_v21, %v12964_v60  ;;  %v5068_v49 = vmul.f32 %v5020_v40, %v12973_v51  ;;  %v5597_v45 = vadd.f32 -0.00021337405, %v5549_v11  ;;  %v5644_v62 = vmul.f32 %v5596_v37, %v12973_v51 }
 0x80e   : > { %v6073_v8 = vadd.f32 1.0, %v6017_v7  ;;  %v5928_v17 = vmul.f32 %v12777_v14, %v5496_v10  ;;  %v3995_v48 = vsel %vm3964_vm12, %v12847_v4, %v12890_v55  ;;  %v5069_v18 = vmul.f32 %v5021_v0, %v12979_v25 }
 0x80f   : > { %v6655_v46 = vpop.eup %6654  ;;  %v6013_v24 = vmul.f32 %v6653_v59, %v5927_v47  ;;  %v3996_v28 = vsel %vm3964_vm12, %v12890_v55, %v12881_v16  ;;  %v5119_v22 = vadd.f32 -2.101024e-06, %v5071_v36  ;;  %v5645_v58 = vmul.f32 %v5597_v45, %v12979_v25 }
 0x810   : > { %v6070_v39 = vadd.f32 1.0, %v6011_v5  ;;  %v5499_v2 = vadd.f32 -0.016096033, %v5451_v57  ;;  %v5116_v7 = vadd.f32 -2.101024e-06, %v5068_v49  ;;  %v13008_v14 = vmul.f32 %v12990_v38, %v12990_v38 }
 0x811   : > { %v6657_v23 = vpop.eup %6656  ;;  %v5930_v4 = vmul.f32 %v12853_v29, %v5498_v50  ;;  %v4091_v10 = vadd.f32 %v3995_v48, %v12833_v33  ;;  %v5695_v47 = vadd.f32 -0.001682827, %v5647_v30  ;;  %v5692_v59 = vadd.f32 -0.001682827, %v5644_v62 }
 0x812   : > { %v6015_v16 = vmul.f32 %v6655_v46, %v5928_v17  ;;  %v4092_v55 = vadd.f32 %v3996_v28, %v12884_v52  ;;  %v5117_v9 = vadd.f32 -2.101024e-06, %v5069_v18  ;;  %v4974_v5 = vmul.f32 -2.7261424e-10, %v13008_v14 }
 0x813   : > { %v5167_v21 = vmul.f32 %v5119_v22, %v12964_v60  ;;  %v5693_v26 = vadd.f32 -0.001682827, %v5645_v58  ;;  %v5550_v57 = vmul.f32 -1.45660715e-05, %v13008_v14  ;;  %v4448_v33 = vsel %vm4417_vm13, %v12917_v63, %v12960_v15  ;;  %v6225_v58 = vpop.permute.xlu0 %6224 }
 0x814   : > { %v6659_v29 = vpop.eup %6658  ;;  %v5931_v40 = vmul.f32 %v12862_v35, %v5499_v2  ;;  %v5164_v11 = vmul.f32 %v5116_v7, %v12973_v51  ;;  %v5022_v52 = vadd.f32 2.7706815e-08, %v4974_v5  ;;  %v4449_v37 = vsel %vm4417_vm13, %v12960_v15, %v12968_v61  ;;  %v6229_v61 = vpop.permute.xlu1 %6228 }
 0x815   : > { %v6019_v50 = vmul.f32 %v6657_v23, %v5930_v4  ;;  %v5743_v36 = vmul.f32 %v5695_v47, %v12964_v60  ;;  %v5740_v0 = vmul.f32 %v5692_v59, %v12973_v51  ;;  %v5598_v30 = vadd.f32 -0.00021337405, %v5550_v57 }
 0x816   : > { %v13031_v49 = vmul.f32 %v6073_v8, %v12837_v13  ;;  %v5165_v63 = vmul.f32 %v5117_v9, %v12979_v25  ;;  %v5070_v35 = vmul.f32 %v5022_v52, %v13008_v14  ;;  %v4544_v45 = vadd.f32 %v4448_v33, %v4091_v10 }
 0x817   : > { %v5215_v62 = vadd.f32 -5.6925062e-05, %v5167_v21  ;;  %v5741_v17 = vmul.f32 %v5693_v26, %v12979_v25  ;;  %v5646_v48 = vmul.f32 %v5598_v30, %v13008_v14  ;;  %v4545_v15 = vadd.f32 %v4449_v37, %v4092_v55  ;;  %v6235_v52 = vpop.permute.xlu0 %6234 }
 0x818   : > { %v6071_v18 = vadd.f32 1.0, %v6013_v24  ;;  %v6021_v46 = vmul.f32 %v6659_v29, %v5931_v40  ;;  %v5212_v28 = vadd.f32 -5.6925062e-05, %v5164_v11  ;;  %v5118_v22 = vadd.f32 -2.101024e-06, %v5070_v35  ;;  %v13058_v29 = vpop.permute.xlu1 %6232 }
 0x819   : > { %v6072_v2 = vadd.f32 1.0, %v6015_v16  ;;  %v6074_v13 = vadd.f32 1.0, %v6019_v50  ;;  %v5791_v8 = vadd.f32 -0.0073733293, %v5743_v36  ;;  %v5788_v7 = vadd.f32 -0.0073733293, %v5740_v0 }
 0x81a   : > { %v5213_v23 = vadd.f32 -5.6925062e-05, %v5165_v63  ;;  %v5166_v4 = vmul.f32 %v5118_v22, %v13008_v14  ;;  %v5694_v10 = vadd.f32 -0.001682827, %v5646_v48  ;;  %v13039_v47 = vadd.f32 %v12785_v53, %v4544_v45 }
 0x81b   : > { %v13042_v59 = vmul.f32 %v6070_v39, %v12840_v12  ;;  %v5263_v24 = vmul.f32 %v5215_v62, %v12964_v60  ;;  %v5789_v55 = vadd.f32 -0.0073733293, %v5741_v17  ;;  %v13046_v9 = vadd.f32 %v12785_v53, %v4545_v15 }
 0x81c   : > { %v13049_v16 = vmul.f32 %v6071_v18, %v12843_v1  ;;  %v6075_v5 = vadd.f32 1.0, %v6021_v46  ;;  %v5260_v21 = vmul.f32 %v5212_v28, %v12973_v51  ;;  %v5214_v26 = vadd.f32 -5.6925062e-05, %v5166_v4  ;;  %v13089_v18 = vpop.permute.xlu0 %6238 }
 0x81d   : > { %v13053_v57 = vmul.f32 %v6072_v2, %v12857_v43  ;;  %v5839_v33 = vmul.f32 %v5791_v8, %v12964_v60  ;;  %v5836_v12 = vmul.f32 %v5788_v7, %v12973_v51  ;;  %v4784_v39 = vmul.f32 0.70710677, %v13039_v47 }
 0x81e   : > { %v13061_v53 = vmul.f32 %v6074_v13, %v12860_v31  ;;  %v5261_v1 = vmul.f32 %v5213_v23, %v12979_v25  ;;  %v5742_v40 = vmul.f32 %v5694_v10, %v13008_v14  ;;  %v4785_v11 = vmul.f32 0.70710677, %v13046_v9 }
 0x81f   : > { %v5311_v43 = vadd.f32 -0.00073499064, %v5263_v24  ;;  %v5837_v37 = vmul.f32 %v5789_v55, %v12979_v25  ;;  %v13067_v50 = vclamps-f32 %v4784_v39, 4.0  ;;  %v6268_v36 = vsel %vm4108_vm9, %v12987_v32, %v12992_v44 }
 0x820   : > { %v6123_v0 = vmul.f32 %v6075_v5, %v12907_v54  ;;  %v5308_v31 = vadd.f32 -0.00073499064, %v5260_v21  ;;  %v5262_v30 = vmul.f32 %v5214_v26, %v13008_v14  ;;  %v13074_v63 = vclamps-f32 %v4785_v11, 4.0  ;;  %6299 = vmatprep.subr.bf16.mxu1 %v6268_v36 }
 0x821   : > { %v5887_v35 = vadd.f32 -0.014264739, %v5839_v33  ;;  %v5884_v45 = vadd.f32 -0.014264739, %v5836_v12  ;;  %v13078_v62 = vmul.f32 %v13067_v50, %v13067_v50  ;;  %v6267_v17 = vsel %vm4108_vm9, %v13012_v19, %v12987_v32  ;;  %v6231_v32 = vpop.permute.xlu1 %6230 }
 0x822   : > { %v5309_v48 = vadd.f32 -0.00073499064, %v5261_v1  ;;  %v5790_v44 = vadd.f32 -0.0073733293, %v5742_v40  ;;  %v13085_v54 = vmul.f32 %v13074_v63, %v13074_v63  ;;  %6300 = vmatpush1.bf16.msra.mxu1 %v6267_v17  ;;  %v6270_v15 = vsel %vm4108_vm9, %v13016_v6, %v6229_v61 }
 0x823   : > { %v5359_v46 = vmul.f32 %v5311_v43, %v12964_v60  ;;  %v5885_v28 = vadd.f32 -0.014264739, %v5837_v37  ;;  %v4976_v22 = vmul.f32 -2.7261424e-10, %v13078_v62  ;;  %v5552_v2 = vmul.f32 -1.45660715e-05, %v13078_v62  ;;  %6301 = vmatprep.subr.bf16.mxu1 %v6270_v15 }
 0x824   : > { %v5356_v19 = vmul.f32 %v5308_v31, %v12973_v51  ;;  %v5310_v13 = vadd.f32 -0.00073499064, %v5262_v30  ;;  %v4977_v8 = vmul.f32 -2.7261424e-10, %v13085_v54  ;;  %v5553_v7 = vmul.f32 -1.45660715e-05, %v13085_v54 }
 0x825   : > { %6660 = vrcp.f32 %v5887_v35  ;;  %v5024_v61 = vadd.f32 2.7706815e-08, %v4976_v22  ;;  %v5600_v23 = vadd.f32 -0.00021337405, %v5552_v2  ;;  %v6269_v4 = vsel %vm4108_vm9, %v6225_v58, %v13016_v6  ;;  %v6237_v6 = vpop.permute.xlu0 %6236  ;;  %v6241_v37 = vpop.permute.xlu1 %6240 }
 0x826   : > { %v5357_v10 = vmul.f32 %v5309_v48, %v12979_v25  ;;  %6662 = vrcp.f32 %v5884_v45  ;;  %v5838_v24 = vmul.f32 %v5790_v44, %v13008_v14  ;;  %v5025_v55 = vadd.f32 2.7706815e-08, %v4977_v8  ;;  %6302 = vmatpush1.bf16.msra.mxu1 %v6269_v4 }
 0x827   : > { %v5407_v5 = vadd.f32 -0.0029546, %v5359_v46  ;;  %v5072_v21 = vmul.f32 %v5024_v61, %v13078_v62  ;;  %v5601_v26 = vadd.f32 -0.00021337405, %v5553_v7  ;;  %v5648_v33 = vmul.f32 %v5600_v23, %v13078_v62 }
 0x828   : > { %v5404_v12 = vadd.f32 -0.0029546, %v5356_v19  ;;  %6664 = vrcp.f32 %v5885_v28  ;;  %v5358_v39 = vmul.f32 %v5310_v13, %v13008_v14  ;;  %v5073_v1 = vmul.f32 %v5025_v55, %v13085_v54 }
 0x829   : > { %v5120_v58 = vadd.f32 -2.101024e-06, %v5072_v21  ;;  %v5649_v40 = vmul.f32 %v5601_v26, %v13085_v54  ;;  %v5696_v11 = vadd.f32 -0.001682827, %v5648_v33  ;;  %v6272_v43 = vsel %vm4108_vm9, %v13058_v29, %v6235_v52 }
 0x82a   : > { %v5405_v36 = vadd.f32 -0.0029546, %v5357_v10  ;;  %v5886_v31 = vadd.f32 -0.014264739, %v5838_v24  ;;  %v5121_v30 = vadd.f32 -2.101024e-06, %v5073_v1  ;;  %6303 = vmatprep.subr.bf16.mxu1 %v6272_v43  ;;  %v6154_v35 = vpack.c.bf16 %v6123_v0, %v13053_v57  ;;  %v6247_v57 = vpop.permute.xlu0 %6246 }
 0x82b   : > { %v5168_v45 = vmul.f32 %v5120_v58, %v13078_v62  ;;  %v5697_v17 = vadd.f32 -0.001682827, %v5649_v40  ;;  %v5744_v48 = vmul.f32 %v5696_v11, %v13078_v62  ;;  %v6153_v44 = vpack.c.bf16 %v13061_v53, %v13049_v16 }
 0x82c   : > { %v5406_v15 = vadd.f32 -0.0029546, %v5358_v39  ;;  %v5169_v46 = vmul.f32 %v5121_v30, %v13085_v54  ;;  %6258 = vrot.lane.b32.xlu0 %v6154_v35, %s6730_s25  ;;  %v6271_v52 = vsel %vm4108_vm9, %v6231_v32, %v13058_v29  ;;  %v6274_v28 = vsel %vm4108_vm9, %v13089_v18, %v6241_v37 }
 0x82d   : > { %v5455_v0 = vmul.f32 %v5407_v5, %v12964_v60  ;;  %v5216_v22 = vadd.f32 -5.6925062e-05, %v5168_v45  ;;  %v5745_v2 = vmul.f32 %v5697_v17, %v13085_v54  ;;  %v5792_v19 = vadd.f32 -0.0073733293, %v5744_v48  ;;  %6256 = vrot.lane.b32.xlu1 %v6153_v44, %s6730_s25  ;;  %6304 = vmatpush1.bf16.msra.mxu1 %v6271_v52 }
 0x82e   : > { %v5453_v16 = vmul.f32 %v5405_v36, %v12979_v25  ;;  %6666 = vrcp.f32 %v5886_v31  ;;  %v5217_v53 = vadd.f32 -5.6925062e-05, %v5169_v46  ;;  %v6152_v29 = vpack.c.bf16 %v13031_v49, %v13042_v59  ;;  %6305 = vmatprep.subr.bf16.mxu1 %v6274_v28  ;;  %v6245_v32 = vpop.permute.xlu1 %6244 }
 0x82f   : > { %v6661_v13 = vpop.eup %6660  ;;  %v5264_v8 = vmul.f32 %v5216_v22, %v13078_v62  ;;  %v5793_v60 = vadd.f32 -0.0073733293, %v5745_v2  ;;  %v5840_v7 = vmul.f32 %v5792_v19, %v13078_v62  ;;  %v6276_v61 = vsel %vm4108_vm9, %v6245_v32, %v6247_v57 }
 0x830   : > { %v6663_v23 = vpop.eup %6662  ;;  %v5452_v4 = vmul.f32 %v5404_v12, %v12973_v51  ;;  %v5454_v25 = vmul.f32 %v5406_v15, %v13008_v14  ;;  %v5265_v10 = vmul.f32 %v5217_v53, %v13085_v54  ;;  %v6273_v49 = vsel %vm4108_vm9, %v6237_v6, %v13089_v18 }
 0x831   : > { %v5312_v59 = vadd.f32 -0.00073499064, %v5264_v8  ;;  %v5841_v24 = vmul.f32 %v5793_v60, %v13085_v54  ;;  %v5888_v55 = vadd.f32 -0.014264739, %v5840_v7  ;;  %6254 = vrot.lane.b32.xlu1 %v6152_v29, %s6730_s25  ;;  %6306 = vmatpush1.bf16.msra.mxu1 %v6273_v49  ;;  %v5503_v21 = vadd.f32 -0.016096033, %v5455_v0 }
 0x832   : > { %v6665_v5 = vpop.eup %6664  ;;  %v5501_v26 = vadd.f32 -0.016096033, %v5453_v16  ;;  %v5313_v33 = vadd.f32 -0.00073499064, %v5265_v10  ;;  %6307 = vmatprep.subr.bf16.mxu1 %v6276_v61  ;;  %v6243_v51 = vpop.permute.xlu1 %6242  ;;  %v5500_v18 = vadd.f32 -0.016096033, %v5452_v4 }
 0x833   : > { %v5360_v14 = vmul.f32 %v5312_v59, %v13078_v62  ;;  %v5889_v12 = vadd.f32 -0.014264739, %v5841_v24  ;;  %6668 = vrcp.f32 %v5888_v55  ;;  %v6275_v39 = vsel %vm4108_vm9, %v6243_v51, %v6245_v32 }
 0x834   : > { %v5502_v1 = vadd.f32 -0.016096033, %v5454_v25  ;;  %v5361_v6 = vmul.f32 %v5313_v33, %v13085_v54  ;;  %v5933_v40 = vmul.f32 %v12966_v3, %v5501_v26  ;;  %v5935_v43 = vmul.f32 %v12951_v41, %v5503_v21 }
 0x835   : > { %v5408_v58 = vadd.f32 -0.0029546, %v5360_v14  ;;  %6670 = vrcp.f32 %v5889_v12  ;;  %6308 = vmatpush1.bf16.msra.mxu1 %v6275_v39  ;;  %v5932_v31 = vmul.f32 %v12955_v27, %v5500_v18  ;;  %v4733_v27 = vmul.f32 0.5, %v12945_v20  ;;  %v6574_v18 = vld [vmem:[%s13193_s5] sm:$0xff]  }
 0x836   : > { %v5409_v11 = vadd.f32 -0.0029546, %v5361_v6  ;;  %v5934_v30 = vmul.f32 %v12990_v38, %v5502_v1  ;;  %v6025_v17 = vmul.f32 %v6665_v5, %v5933_v40  ;;  %v6029_v44 = vmul.f32 %v6661_v13, %v5935_v43  ;;  %v6575_v6 = vld [vmem:[%s13193_s5 + $0x8] sm:$0xff]  }
 0x837   : > { %v5456_v37 = vmul.f32 %v5408_v58, %v13078_v62  ;;  %v6023_v46 = vmul.f32 %v6663_v23, %v5932_v31  ;;  %v4736_v38 = vmul.f32 0.5, %v13039_v47  ;;  %v4735_v16 = vmul.f32 0.5, %v12935_v42  ;;  %v6161_v23 = vld [vmem:[%s13194_s6 + $0x18] sm:$0xff] }
 0x838   : > { %v6667_v36 = vpop.eup %6666  ;;  %v5457_v35 = vmul.f32 %v5409_v11, %v13085_v54  ;;  %v6077_v28 = vadd.f32 1.0, %v6025_v17  ;;  %v6079_v0 = vadd.f32 1.0, %v6029_v44  ;;  %v4734_v53 = vmul.f32 0.5, %v12958_v56  ;;  %v6159_v56 = vld [vmem:[%s13194_s6 + $0x8] sm:$0xff] }
 0x839   : > { %v5504_v45 = vadd.f32 -0.016096033, %v5456_v37  ;;  %v6027_v3 = vmul.f32 %v6667_v36, %v5934_v30  ;;  %v6076_v54 = vadd.f32 1.0, %v6023_v46  ;;  %v4737_v29 = vmul.f32 0.5, %v13046_v9  ;;  %v6160_v9 = vld [vmem:[%s13194_s6 + $0x10] sm:$0xff] }
 0x83a   : > { %v5505_v48 = vadd.f32 -0.016096033, %v5457_v35  ;;  %v6127_v8 = vmul.f32 %v6079_v0, %v4735_v16  ;;  %v14767_v1 = vmov 0  }
 0x83b   : > { %v5936_v15 = vmul.f32 %v13067_v50, %v5504_v45  ;;  %v6078_v22 = vadd.f32 1.0, %v6027_v3  ;;  %v4732_v50 = vmul.f32 0.5, %v12939_v34  ;;  %v6158_v34 = vld [vmem:[%s13194_s6] sm:$0xff] }
 0x83c   : > { %v5937_v52 = vmul.f32 %v13074_v63, %v5505_v48  ;;  %v6125_v63 = vmul.f32 %v6077_v28, %v4733_v27 }
 0x83d   : > { %v6669_v41 = vpop.eup %6668  ;;  %v6124_v60 = vmul.f32 %v6076_v54, %v4732_v50  ;;  %v6126_v20 = vmul.f32 %v6078_v22, %v4734_v53 }
 0x83e   : > { %v6031_v62 = vmul.f32 %v6669_v41, %v5936_v15 }
 0x83f   : > { %v6671_v57 = vpop.eup %6670  ;;  %v6155_v42 = vpack.c.bf16 %v6127_v8, %v6124_v60 }
 0x840   : > { %v6033_v2 = vmul.f32 %v6671_v57, %v5937_v52  ;;  %v6080_v19 = vadd.f32 1.0, %v6031_v62 }
 0x842   : > { %v6081_v32 = vadd.f32 1.0, %v6033_v2  ;;  %v6128_v13 = vmul.f32 %v6080_v19, %v4736_v38 }
 0x844   : > { %v6129_v7 = vmul.f32 %v6081_v32, %v4737_v29  ;;  %v6156_v47 = vpack.c.bf16 %v6128_v13, %v6125_v63 }
 0x846   : > { %6262 = vrot.lane.b32.xlu0 %v6156_v47, %s6730_s25  ;;  %v6157_v61 = vpack.c.bf16 %v6129_v7, %v6126_v20 }
 0x848   : > { %6264 = vrot.lane.b32.xlu1 %v6157_v61, %s6730_s25 }
 0x84a   : > { %6260 = vrot.lane.b32.xlu0 %v6155_v42, %s6730_s25 }
 0x84c   : > { %6164 = vperm.xlu1 %6565, %v6158_v34  }
 0x84e   : > { %6169 = vperm.xlu0 %6564, %v6159_v56  }
 0x850   : > { %6174 = vperm.xlu1 %6565, %v6160_v9  }
 0x852   : > { %6179 = vperm.xlu0 %6564, %v6161_v23  }
 0x85f   : > { %v6251_v4 = vpop.permute.xlu0 %6250 }
 0x861   : > { %v6253_v25 = vpop.permute.xlu1 %6252 }
 0x862   : > { %v6278_v10 = vsel %vm4108_vm9, %v6251_v4, %v6253_v25 }
 0x863   : > { %6309 = vmatprep.subr.bf16.mxu1 %v6278_v10 }
 0x86e   : > { %v6249_v49 = vpop.permute.xlu0 %6248 }
 0x86f   : > { %v6277_v59 = vsel %vm4108_vm9, %v6249_v49, %v6251_v4 }
 0x870   : > { %6310 = vmatpush1.bf16.msra.mxu1 %v6277_v59 }
 0x89e   : > { %v6259_v24 = vpop.permute.xlu0 %6258 }
 0x89f   : > { %v6257_v55 = vpop.permute.xlu1 %6256 }
 0x8a0   : > { %v6280_v5 = vsel %vm4108_vm9, %v6257_v55, %v6259_v24 }
 0x8a1   : > { %6311 = vmatprep.subr.bf16.mxu1 %v6280_v5 }
 0x8a3   : > { %v6255_v21 = vpop.permute.xlu1 %6254 }
 0x8a4   : > { %v6279_v26 = vsel %vm4108_vm9, %v6255_v21, %v6257_v55 }
 0x8a5   : > { %6312 = vmatpush1.bf16.msra.mxu1 %v6279_v26 }
 0x8b8   : > { %v6263_v33 = vpop.permute.xlu0 %6262 }
 0x8ba   : > { %v6265_v51 = vpop.permute.xlu1 %6264 }
 0x8bb   : > { %v6282_v14 = vsel %vm4108_vm9, %v6263_v33, %v6265_v51 }
 0x8bc   : > { %6313 = vmatprep.subr.bf16.mxu1 %v6282_v14  ;;  %v6261_v12 = vpop.permute.xlu0 %6260 }
 0x8bd   : > { %v6281_v39 = vsel %vm4108_vm9, %v6261_v12, %v6263_v33 }
 0x8be   : > { %6314 = vmatpush1.bf16.msra.mxu1 %v6281_v39 }
 0x8c1   : > { %6332 = vmatmul.mubr.bf16.vlgmr.msra.gmra.mrb[0].mxu1 %v6574_v18 }
 0x8c2   : > { %6341 = vmatprep.mubr.bf16.mxu1 %v14767_v1 }
 0x8c9   : > { %6342 = vmatmul.mubr.bf16.gmra.mrb[4].mxu1 %v6575_v6 }
 0x8cb   : > { %v6165_v58 = vpop.permute.xlu1 %6164 }
 0x8cd   : > { %v6170_v37 = vpop.permute.xlu0 %6169 }
 0x8cf   : > { %v6175_v17 = vpop.permute.xlu1 %6174 }
 0x8d1   : > { %v6180_v46 = vpop.permute.xlu0 %6179 }
 0x994   : > { %v6333_v40 = vpop.f32.mrb[0].mxu1 }
 0x995   : > { %v6334_v11 = vadd.f32 %v6333_v40, %v6165_v58  ;;  %v6335_v43 = vpop.f32.mrb[1].mxu1 }
 0x996   : > { %v6336_v36 = vadd.f32 %v6335_v43, %v6165_v58  ;;  %v6337_v31 = vpop.f32.mrb[2].mxu1 }
 0x997   : > { %6352 = vst [vmem:[%s305_s17] sm:$0xff] %v6334_v11  ;;  %v6338_v30 = vadd.f32 %v6337_v31, %v6170_v37  ;;  %v6339_v35 = vpop.f32.mrb[3].mxu1 }
 0x998   : > { %6353 = vst [vmem:[%s305_s17 + $0x8] sm:$0xff] %v6336_v36  ;;  %v6340_v45 = vadd.f32 %v6339_v35, %v6170_v37 }
 0x999   : > { %6354 = vst [vmem:[%s305_s17 + $0x10] sm:$0xff] %v6338_v30 }
 0x99a   : > { %6355 = vst [vmem:[%s305_s17 + $0x18] sm:$0xff] %v6340_v45 }
 0x99c   : > { %v6343_v48 = vpop.f32.mrb[4].mxu1 }
 0x99d   : > { %v6344_v44 = vadd.f32 %v6343_v48, %v6175_v17  ;;  %v6345_v15 = vpop.f32.mrb[5].mxu1 }
 0x99e   : > { %v6346_v3 = vadd.f32 %v6345_v15, %v6175_v17  ;;  %v6347_v52 = vpop.f32.mrb[6].mxu1 }
 0x99f   : > { %6356 = vst [vmem:[%s305_s17 + $0x20] sm:$0xff] %v6344_v44  ;;  %v6348_v41 = vadd.f32 %v6347_v52, %v6180_v46  ;;  %v6349_v28 = vpop.f32.mrb[7].mxu1 }
 0x9a0   : > { %6357 = vst [vmem:[%s305_s17 + $0x28] sm:$0xff] %v6346_v3  ;;  %v6350_v62 = vadd.f32 %v6349_v28, %v6180_v46 }
 0x9a1   : > { %6358 = vst [vmem:[%s305_s17 + $0x30] sm:$0xff] %v6348_v41 }
 0x9a2   : > { %6359 = vst [vmem:[%s305_s17 + $0x38] sm:$0xff] %v6350_v62 }
 0x9a3 PF: > { %s18_s27 = sadd.s32 1, %s6710_s27  }
 0x9a4   : > { %p15_p4 = scmp.ge.s32.totalorder %s18_s27, 4  }
 0x9a6   :  { %17 = sbr.rel (!%p15_p4) target bundleno = 1 (0x1), region = 90 }

</bundles_post_ra>
